<compile_context>
chip_gen: v5e
topology: v5e:2x2
jax: 0.10.0
libtpu: 0.0.40
codegen_flags: <defaults>
</compile_context>

<pallas_src>
import functools
import math

import jax
import jax.numpy as jnp
from jax.experimental import pallas as pl
from jax.experimental.pallas import tpu as pltpu

D_MODEL = 768
N_HEADS = 12
D_HEAD = D_MODEL // N_HEADS
D_FFN = 3072
MRL_DIMS = (16, 64, 128, 256, 512, 768)
LN_EPS = 1e-12


# --------------------------- Pallas kernels ---------------------------

def _padded_rows(m):
    """Pad the row extent to a sublane multiple so any M tiles cleanly."""
    return max(8, pl.cdiv(m, 8) * 8)


def _row_tile(m_padded):
    """Largest row tile that yields >= 2 grid blocks (pipelining + megacore)."""
    for tm in (512, 256, 128, 64, 32, 16, 8):
        if m_padded % tm == 0 and m_padded // tm >= 2:
            return tm
    return m_padded


def _pad_rows(x, m_padded):
    m = x.shape[0]
    if m == m_padded:
        return x
    return jnp.concatenate(
        [x, jnp.zeros((m_padded - m,) + x.shape[1:], x.dtype)], axis=0)


def _linear_kernel(x_ref, w_ref, b_ref, o_ref, *, apply_gelu):
    # bf16 activations x bf16 weights, f32 accumulation on the MXU.
    acc = jnp.dot(x_ref[...], w_ref[...],
                  preferred_element_type=jnp.float32) + b_ref[...]
    if apply_gelu:
        # TODO(synk): jax.nn.gelu here uses the tanh approximation; PyTorch
        # nn.GELU defaults to exact erf (tiny numeric divergence, backbone is
        # a deterministic stand-in for the pretrained HF model anyway).
        acc = jax.nn.gelu(acc)
    o_ref[...] = acc.astype(o_ref.dtype)


def _linear_residual_ln_kernel(x_ref, res_ref, w_ref, b_ref, g_ref, beta_ref, o_ref):
    # y = x @ W + b ; h = residual + y ; out = LayerNorm(h) * g + beta
    # Single centered pass: hc computed once, var from mean(hc*hc).
    y = jnp.dot(x_ref[...], w_ref[...],
                preferred_element_type=jnp.float32) + b_ref[...]
    h = res_ref[...].astype(jnp.float32) + y
    mu = jnp.mean(h, axis=-1, keepdims=True)
    hc = h - mu
    var = jnp.mean(hc * hc, axis=-1, keepdims=True)
    o_ref[...] = (hc * jax.lax.rsqrt(var + LN_EPS) * g_ref[...]
                  + beta_ref[...]).astype(o_ref.dtype)


def pallas_linear(x, w, b, *, apply_gelu=False, out_dtype=jnp.bfloat16):
    """y = (gelu)(x @ w + b); x:[M,K] bf16, w:[K,N] bf16, b:[N] f32 -> [M,N]."""
    M, K = x.shape
    N = w.shape[1]
    mp = _padded_rows(M)
    tm = _row_tile(mp)
    xp = _pad_rows(x, mp)
    kernel = functools.partial(_linear_kernel, apply_gelu=apply_gelu)
    out = pl.pallas_call(
        kernel,
        out_shape=jax.ShapeDtypeStruct((mp, N), out_dtype),
        grid=(mp // tm,),
        in_specs=[
            pl.BlockSpec((tm, K), lambda i: (i, 0)),
            pl.BlockSpec((K, N), lambda i: (0, 0)),
            pl.BlockSpec((1, N), lambda i: (0, 0)),
        ],
        out_specs=pl.BlockSpec((tm, N), lambda i: (i, 0)),
        compiler_params=pltpu.CompilerParams(
            dimension_semantics=("parallel",)),
    )(xp, w, b.reshape(1, N))
    return out[:M] if mp != M else out


def pallas_linear_residual_ln(x, residual, w, b, gamma, beta):
    """LayerNorm(residual + x @ w + b); fused matmul + residual + LN, bf16 out."""
    M, K = x.shape
    N = w.shape[1]
    mp = _padded_rows(M)
    tm = _row_tile(mp)
    xp = _pad_rows(x, mp)
    rp = _pad_rows(residual, mp)
    out = pl.pallas_call(
        _linear_residual_ln_kernel,
        out_shape=jax.ShapeDtypeStruct((mp, N), jnp.bfloat16),
        grid=(mp // tm,),
        in_specs=[
            pl.BlockSpec((tm, K), lambda i: (i, 0)),
            pl.BlockSpec((tm, N), lambda i: (i, 0)),
            pl.BlockSpec((K, N), lambda i: (0, 0)),
            pl.BlockSpec((1, N), lambda i: (0, 0)),
            pl.BlockSpec((1, N), lambda i: (0, 0)),
            pl.BlockSpec((1, N), lambda i: (0, 0)),
        ],
        out_specs=pl.BlockSpec((tm, N), lambda i: (i, 0)),
        compiler_params=pltpu.CompilerParams(
            dimension_semantics=("parallel",)),
    )(xp, rp, w, b.reshape(1, N), gamma.reshape(1, N), beta.reshape(1, N))
    return out[:M] if mp != M else out


# ------------------------ deterministic parameters ------------------------

def xavier_uniform(key, shape):
    fan_in, fan_out = shape[0], shape[1]
    bound = math.sqrt(6.0 / (fan_in + fan_out))
    return jax.random.uniform(key, shape, jnp.float32, -bound, bound)


def init_params(key, vocab_size, max_seq, num_classes):
    keys = jax.random.split(key, 16)
    p = {}
    p["tok_emb"] = 0.02 * jax.random.normal(keys[0], (vocab_size, D_MODEL), jnp.float32)
    p["pos_emb"] = 0.02 * jax.random.normal(keys[1], (max_seq, D_MODEL), jnp.float32)

    wq = xavier_uniform(keys[2], (D_MODEL, D_MODEL))
    wk = xavier_uniform(keys[3], (D_MODEL, D_MODEL))
    wv = xavier_uniform(keys[4], (D_MODEL, D_MODEL))
    p["wqkv"] = jnp.concatenate([wq, wk, wv], axis=1).astype(jnp.bfloat16)   # [768, 2304]
    p["bqkv"] = jnp.zeros((3 * D_MODEL,), jnp.float32)

    p["wo"] = xavier_uniform(keys[5], (D_MODEL, D_MODEL)).astype(jnp.bfloat16)
    p["bo"] = jnp.zeros((D_MODEL,), jnp.float32)
    p["w1"] = xavier_uniform(keys[6], (D_MODEL, D_FFN)).astype(jnp.bfloat16)
    p["b1"] = jnp.zeros((D_FFN,), jnp.float32)
    p["w2"] = xavier_uniform(keys[7], (D_FFN, D_MODEL)).astype(jnp.bfloat16)
    p["b2"] = jnp.zeros((D_MODEL,), jnp.float32)
    for name in ("ln0", "ln1", "ln2"):
        p[name + "_g"] = jnp.ones((D_MODEL,), jnp.float32)
        p[name + "_b"] = jnp.zeros((D_MODEL,), jnp.float32)

    # MRL classifier: per-granularity Linear(d -> num_classes), xavier-uniform
    # weight (bound = sqrt(6/(num_classes + d)), matching torch xavier on [C, d]),
    # zero bias.  Each weight is stored transposed [d, C], zero-padded to
    # [768, C] (so x @ w_pad == x[:, :d] @ w), and all granularities are packed
    # column-wise into one lane-dense [768, 128] slab for a single MXU pass.
    # Per-granularity biases are folded into the packed bias columns.
    w_cols = []
    for i, d in enumerate(MRL_DIMS):
        bound = math.sqrt(6.0 / (num_classes + d))
        w = jax.random.uniform(keys[8 + i], (d, num_classes), jnp.float32, -bound, bound)
        w_cols.append(jnp.concatenate(
            [w, jnp.zeros((D_MODEL - d, num_classes), jnp.float32)], axis=0))
    p["mrl_w"] = jnp.stack(w_cols)                               # [Mg, 768, C] (f32, checks)
    p["mrl_b"] = jnp.zeros((len(MRL_DIMS), num_classes), jnp.float32)

    packed = jnp.concatenate(w_cols, axis=1)                     # [768, Mg*C]
    n_pad = pl.cdiv(packed.shape[1], 128) * 128
    p["mrl_w_packed"] = jnp.concatenate(
        [packed, jnp.zeros((D_MODEL, n_pad - packed.shape[1]), jnp.float32)],
        axis=1).astype(jnp.bfloat16)                             # [768, 128] bf16
    b_cols = jnp.reshape(p["mrl_b"], (-1,))                      # [Mg*C] (zeros)
    p["mrl_b_packed"] = jnp.concatenate(
        [b_cols, jnp.zeros((n_pad - b_cols.shape[0],), jnp.float32)])   # [128]
    return p


# ------------------------------ forward pass ------------------------------

def layer_norm(x, g, b, eps=LN_EPS):
    mu = jnp.mean(x, axis=-1, keepdims=True)
    var = jnp.mean((x - mu) ** 2, axis=-1, keepdims=True)
    return (x - mu) * jax.lax.rsqrt(var + eps) * g + b


def backbone_forward(params, input_ids, attention_mask):
    # TODO(synk): the pretrained HF AutoModel backbone cannot be reproduced
    # in-script; this is a deterministic single-layer BERT-style stand-in with
    # the same interface.  Dense projections run through fused Pallas kernels;
    # embedding gather and the tiny attention softmax stay in XLA.
    # TODO(synk): for realistic sequence lengths the XLA attention block should
    # become a flash-attention Pallas kernel consuming the bf16 q/k/v directly.
    B, S = input_ids.shape
    x = params["tok_emb"][input_ids] + params["pos_emb"][None, :S, :]
    x = layer_norm(x, params["ln0_g"], params["ln0_b"])
    xf = x.reshape(B * S, D_MODEL).astype(jnp.bfloat16)          # bf16 activations

    # Fused QKV projection: one [M,768] x [768,2304] MXU pass, bf16 out.
    qkv = pallas_linear(xf, params["wqkv"], params["bqkv"])
    q, k, v = jnp.split(qkv, 3, axis=-1)
    q = q.reshape(B, S, N_HEADS, D_HEAD)
    k = k.reshape(B, S, N_HEADS, D_HEAD)
    v = v.reshape(B, S, N_HEADS, D_HEAD)

    scores = jnp.einsum("bqhd,bkhd->bhqk", q, k,
                        preferred_element_type=jnp.float32) / math.sqrt(D_HEAD)
    neg = (1.0 - attention_mask.astype(jnp.float32))[:, None, None, :] * -1e9
    attn = jax.nn.softmax(scores + neg, axis=-1).astype(jnp.bfloat16)
    ctx = jnp.einsum("bhqk,bkhd->bqhd", attn, v,
                     preferred_element_type=jnp.float32)
    ctx = ctx.reshape(B * S, D_MODEL).astype(jnp.bfloat16)

    # Output projection + residual + LayerNorm fused into one kernel (bf16 out).
    h = pallas_linear_residual_ln(ctx, xf, params["wo"], params["bo"],
                                  params["ln1_g"], params["ln1_b"])
    # FFN: matmul+GELU fused (bf16 [M,3072] out), then matmul+residual+LN fused.
    u = pallas_linear(h, params["w1"], params["b1"], apply_gelu=True)
    h = pallas_linear_residual_ln(u, h, params["w2"], params["b2"],
                                  params["ln2_g"], params["ln2_b"])
    return h.reshape(B, S, D_MODEL)


def emotion_classifier_forward(params, input_ids, attention_mask):
    hidden = backbone_forward(params, input_ids, attention_mask)    # [B, S, 768] bf16
    cls = hidden[:, 0, :]                                           # [B, 768] bf16
    # MRL heads: single lane-dense matmul [B,768]x[768,128] with biases folded
    # into the packed bias; logits are plain slices of the packed output.
    packed = pallas_linear(cls, params["mrl_w_packed"], params["mrl_b_packed"],
                           out_dtype=jnp.float32)
    Mg, C = params["mrl_b"].shape
    logits = [packed[:, i * C:(i + 1) * C] for i in range(Mg)]
    return logits, cls


if __name__ == "__main__":
    B, S, VOCAB, NUM_CLASSES = 2, 8, 30, 6
    key = jax.random.PRNGKey(0)
    pkey, ikey = jax.random.split(key)

    params = init_params(pkey, VOCAB, S, NUM_CLASSES)
    input_ids = jax.random.randint(ikey, (B, S), 0, VOCAB, dtype=jnp.int32)
    attention_mask = jnp.array([[1] * S, [1] * 6 + [0] * 2], dtype=jnp.int32)

    logits, cls = emotion_classifier_forward(params, input_ids, attention_mask)
    logits = [jax.block_until_ready(l) for l in logits]
    cls = jax.block_until_ready(cls)

    # Verify the MRL Pallas path against plain-JAX truncated linears computed
    # on the same bf16 inputs/weights the kernel consumes.
    cls_f32 = cls.astype(jnp.float32)
    for i, d in enumerate(MRL_DIMS):
        w = params["mrl_w"][i, :d, :].astype(jnp.bfloat16).astype(jnp.float32)
        ref = cls_f32[:, :d] @ w + params["mrl_b"][i]
        assert logits[i].shape == (B, NUM_CLASSES)
        assert jnp.allclose(logits[i], ref, atol=1e-2, rtol=1e-2), f"mismatch at d={d}"

    print("KERNEL_OK")
</pallas_src>

<mosaic_0001>
module attributes {stable_mosaic.version = 11 : i64} {
  func.func @_linear_kernel(%arg0: i32, %arg1: memref<8x768xbf16, #tpu.memory_space<vmem>>, %arg2: memref<768x2304xbf16, #tpu.memory_space<vmem>>, %arg3: memref<1x2304xf32, #tpu.memory_space<vmem>>, %arg4: memref<8x2304xbf16, #tpu.memory_space<vmem>>) attributes {dimension_semantics = [#tpu.dimension_semantics<parallel>], iteration_bounds = array<i64: 2>, scalar_prefetch = 0 : i64, scratch_operands = 0 : i64, tpu.core_type = #tpu.core_type<tc>, window_params = [{transform_indices = @transform_0, window_bounds = array<i64: 8, 768>}, {pipeline_mode = #tpu.pipeline_mode<synchronous>, transform_indices = @transform_1, window_bounds = array<i64: 768, 2304>}, {pipeline_mode = #tpu.pipeline_mode<synchronous>, transform_indices = @transform_2, window_bounds = array<i64: 1, 2304>}, {transform_indices = @transform_3, window_bounds = array<i64: 8, 2304>}]} {
    %c0 = arith.constant 0 : index
    %c0_0 = arith.constant 0 : index
    %0 = vector.load %arg1[%c0, %c0_0] : memref<8x768xbf16, #tpu.memory_space<vmem>>, vector<8x768xbf16>
    %c0_1 = arith.constant 0 : index
    %c0_2 = arith.constant 0 : index
    %1 = vector.load %arg2[%c0_1, %c0_2] : memref<768x2304xbf16, #tpu.memory_space<vmem>>, vector<768x2304xbf16>
    %cst = arith.constant dense<0.000000e+00> : vector<8x2304xf32>
    %2 = tpu.matmul %0, %1, %cst {dimension_numbers = #tpu.dot_dimension_numbers<[1], [0], [0], [1], [0, 0, 1, 1], [], []>} : vector<8x768xbf16>, vector<768x2304xbf16>, vector<8x2304xf32> -> vector<8x2304xf32>
    %c0_3 = arith.constant 0 : index
    %c0_4 = arith.constant 0 : index
    %3 = vector.load %arg3[%c0_3, %c0_4] : memref<1x2304xf32, #tpu.memory_space<vmem>>, vector<1x2304xf32>
    %4 = vector.broadcast %3 : vector<1x2304xf32> to vector<8x2304xf32>
    %5 = arith.addf %2, %4 : vector<8x2304xf32>
    %6 = arith.truncf %5 : vector<8x2304xf32> to vector<8x2304xbf16>
    %c0_5 = arith.constant 0 : index
    %c0_6 = arith.constant 0 : index
    %7 = vector.load %arg4[%c0_5, %c0_6] : memref<8x2304xbf16, #tpu.memory_space<vmem>>, vector<8x2304xbf16>
    tpu.vector_store %arg4[%c0_5, %c0_6], %6 {strides = array<i32>} : memref<8x2304xbf16, #tpu.memory_space<vmem>>, vector<8x2304xbf16>,
    return
  }
  func.func @transform_0(%arg0: i32) -> (i32, i32) {
    %c0_i32 = arith.constant 0 : i32
    %c0_i32_0 = arith.constant 0 : i32
    return %arg0, %c0_i32 : i32, i32
  }
  func.func @transform_1(%arg0: i32) -> (i32, i32) {
    %c0_i32 = arith.constant 0 : i32
    %c0_i32_0 = arith.constant 0 : i32
    %c0_i32_1 = arith.constant 0 : i32
    return %c0_i32, %c0_i32_0 : i32, i32
  }
  func.func @transform_2(%arg0: i32) -> (i32, i32) {
    %c0_i32 = arith.constant 0 : i32
    %c0_i32_0 = arith.constant 0 : i32
    %c0_i32_1 = arith.constant 0 : i32
    return %c0_i32, %c0_i32_0 : i32, i32
  }
  func.func @transform_3(%arg0: i32) -> (i32, i32) {
    %c0_i32 = arith.constant 0 : i32
    %c0_i32_0 = arith.constant 0 : i32
    return %arg0, %c0_i32 : i32, i32
  }
}

</mosaic_0001>

<bundles_post_ra>
// kernel: tpu_custom_call.1
= control target key start
LH: loop header
LB: loop body
LE: loop exit
PB: predicated region body
PF: predicated region fallthrough
CT: control target
= control target key end

     0   :  { %8 = vsyncpa [#allocation3], 0  ;;  %s12075_s0 = inlined_call_operand.hbm [shape: bf16[16,768], index: 0, kind: input, shape index: {}]   ;;  %s12076_s1 = inlined_call_operand.hbm [shape: bf16[768,2304], index: 1, kind: input, shape index: {}]   ;;  %s12077_s2 = inlined_call_operand.hbm [shape: f32[1,2304], index: 2, kind: input, shape index: {}]   ;;  %s12078_s3 = inlined_call_operand.hbm [shape: bf16[16,2304], index: 3, kind: output, shape index: {}]  }
   0x1   :  { %10 = vsyncpa [#allocation3 + $0x1], 0 }
   0x2   :  { %11 = vsyncpa [#allocation6], 0 }
   0x3   :  { %12 = vsyncpa [#allocation4], 0 }
   0x4   :  { %14 = vsyncpa [#allocation4 + $0x1], 0  ;;  %s11592_s12 = smov 0   ;;  %s11594_s13 = smov 0  }
   0x5   :  { %s11596_s14 = smov 0   ;;  %s11598_s15 = smov 0  }
   0x6 LB: > { %s130_s18 = sshll.u32 %s12076_s1, 4  ;;  %s11616_s19 = sadd.s32 4294967295, %s11566_s15   ;;  %s11566_s15 = sphi %s11598_s15, %s12088_s15   ;;  %s11562_s14 = sphi %s11596_s14, %s12087_s14   ;;  %s11558_s13 = sphi %s11594_s13, %s12086_s13   ;;  %s11554_s12 = sphi %s11592_s12, %s12085_s12   ;;  %s131_s18 = int_to_ptr.hbm [resolvable:$true] %s130_s18 }
   0x7   : > { %p6999_p0 = scmp.ge.s32.totalorder %s11566_s15, 1  ;;  %p41_p1 = scmp.eq.s32.totalorder %s11616_s19, 0 }
   0x8   : > { %p119_p2 = scmp.lt.s32.totalorder %s11566_s15, 3  ;;  %s11568_s21 = smov [#allocation5]  }
   0x9   : > { %s132_s22 = sshll.u32 %s11568_s21, 4  ;;  %s145_s25 = sshll.u32 %s12077_s2, 4  ;;  %s133_s22 = int_to_ptr.vmem [resolvable:$true] %s132_s22  ;;  %s146_s25 = int_to_ptr.hbm [resolvable:$true] %s145_s25 }
   0xa   : > { %p11621_p3 = pnand %p6999_p0, %p119_p2  ;;  %s11569_s26 = smov [#allocation7]  }
   0xb   : > { %s147_s27 = sshll.u32 %s11569_s26, 4  ;;  %s11570_s28 = smov 1152   ;;  %s148_s27 = int_to_ptr.vmem [resolvable:$true] %s147_s27 }
   0xc   : > { %p11347_p4 = pneg %p11621_p3  ;;  %s11571_s29 = smov 72  }
   0xd   : > { %s6998_s30 = sadd.s32 4294967294, %s11566_s15   ;;  %s11635_s4 = sadd.s32 1, %s11566_s15  }
   0xe   : > { %p11348_p6 = pnand %p11347_p4, %p41_p1  ;;  %s24_s5 = ssub.s32 %s11566_s15, %s11635_s4 }
   0xf   : > { %s27_s6 = sadd.s32 1, %s11562_s14  ;;  %p25_p7 = scmp.eq.s32.totalorder %s24_s5, 0 }
  0x10   : > { %11350 = dma.hbm_to_vmem [thread:$0]  (!%p11348_p6), %s131_s18, 110592, %s133_s22, [#allocation6], %s11570_s28, %s11570_s28, %s11571_s29  }
  0x11   : > { %11353 = dma.hbm_to_vmem [thread:$0]  (!%p11348_p6), %s146_s25, 288, %s148_s27, [#allocation6]  }
  0x12   : > { %p34_p8 = scmp.ne.s32.totalorder %s11562_s14, %s11558_s13  ;;  %p35_p9 = scmp.eq.s32.totalorder %s11566_s15, 0 }
  0x13   : > { %p40_p10 = scmp.ne.s32.totalorder %s11558_s13, %s11554_s12  ;;  %p106_p13 = scmp.eq.s32.totalorder %s11616_s19, 1 }
  0x14   : > { %s11646_s7 = scalar_select %p25_p7, %s11562_s14, %s27_s6  }
  0x15   : > { %p36_p11 = por %p35_p9, %p34_p8  ;;  %p11650_p12 = por %p41_p1, %p40_p10 }
  0x16   : > { %p112_p0 = scmp.eq.s32.totalorder %s6998_s30, 1  ;;  %p11364_p2 = scmp.lt.s32.totalorder %s11566_s15, 2 }
  0x17   : > { %s158_s9 = sand.u32 1, %s11562_s14   ;;  %p11657_p4 = por %p106_p13, %p34_p8 }
  0x18   : > { %p11661_p6 = por %p112_p0, %p40_p10  ;;  %s11330_s16 = smul.u32 24, %s158_s9 }
  0x19   : > { %s11331_s17 = smul.u32 24, %s11566_s15  ;;  %p11666_p7 = pnand %p11364_p2, %p36_p11 }
  0x1a   : > { %s162_s24 = scalar_lea.vmem [#allocation2], %s11330_s16  ;;  %s159_s27 = scalar_lea.sflag [#allocation3], %s158_s9 }
  0x1b   : > { %s167_s23 = scalar_lea.hbm %s12075_s0, %s11331_s17  ;;  %s171_s25 = sshll.u32 %s162_s24, 4  ;;  %s172_s25 = int_to_ptr.vmem [resolvable:$true] %s171_s25 }
  0x1c   : > { %s169_s26 = sshll.u32 %s167_s23, 4  ;;  %p11470_p9 = pneg %p11666_p7  ;;  %s170_s26 = int_to_ptr.hbm [resolvable:$true] %s169_s26 }
  0x1d   : > { %s11466_s28 = sshra.s32 %s170_s26, 4  ;;  %s11473_s6 = scalar_lea.hbm %s12075_s0, 48  ;;  %s11467_s28 = int_to_ptr.hbm [resolvable:$true] %s11466_s28 }
  0x1e   : > { %s11468_s29 = scalar_lea.hbm %s11467_s28, 24  ;;  %p11474_p13 = scmp.lt.s32.totalorder %s11467_s28, %s12075_s0 }
  0x1f   : > { %p11469_p8 = scmp.ne.s32.totalorder %s11467_s28, %s11468_s29  ;;  %p11475_p0 = scmp.lt.s32.totalorder %s11473_s6, %s11468_s29 }
  0x21   : > { %p11471_p10 = pnand %p11470_p9, %p11469_p8  ;;  %p11476_p2 = por %p11475_p0, %p11474_p13 }
  0x23   : > { %p11472_p11 = pneg %p11471_p10 }
  0x25   : > { %p11477_p5 = pnand %p11476_p2, %p11472_p11 }
  0x27   : > { %11480 = shalt.err (!%p11477_p5)
}
  0x28   : > { %11357 = dma.hbm_to_vmem [thread:$0]  (!%p11666_p7), %s170_s26, 384, %s172_s25, %s159_s27  }
  0x29   : > { %180 = sbr.rel (%p11621_p3) target bundleno = 1059 (0x423), region = 32  ;;  %s11686_s9 = sand.u32 (!%p11621_p3), 1, %s11558_s13  }
  0x2a   : > { %s11332_s16 = smul.u32 (!%p11621_p3), 24, %s11686_s9  ;;  %s183_s22 = scalar_lea.sflag (!%p11621_p3), [#allocation3], %s11686_s9 }
  0x2c   : > { %s11690_s23 = scalar_lea.vmem (!%p11621_p3), [#allocation2], %s11332_s16 }
  0x2e   : > { %11541 = dma.done.wait (%p11650_p12), %s183_s22, 384  }
  0x2f   : > { %11543 = vsyncadd (%p11650_p12), %s183_s22, 4294966912 }
  0x30   : > { %11545 = dma.done.wait (%p41_p1), [#allocation6], 110880  }
  0x31   : > { %11547 = vsyncadd (%p41_p1), [#allocation6], 4294856416  ;;  %v7513_v0 = vld [vmem:[#allocation5 + $0x3f0] sm:$0xf]  ;;  %v10601_v1 = vld [vmem:[#allocation5 + $0x434] sm:$0xf0] }
  0x32   : > { %v8089_v2 = vld [vmem:[#allocation5 + $0x870] sm:$0xf]  ;;  %v7514_v3 = vor.u32 %v10601_v1, %v7513_v0  ;;  %v10745_v4 = vld [vmem:[#allocation5 + $0x8b4] sm:$0xf0]  ;;  %v7441_v11 = vld [vmem:[#allocation5 + $0x360] sm:$0xf] }
  0x33   : > { %v8665_v5 = vld [vmem:[#allocation5 + $0xcf0] sm:$0xf]  ;;  %v10889_v6 = vld [vmem:[#allocation5 + $0xd34] sm:$0xf0]  ;;  %v8090_v7 = vor.u32 %v10745_v4, %v8089_v2  ;;  %v10583_v13 = vld [vmem:[#allocation5 + $0x3a4] sm:$0xf0] }
  0x34   : > { %v8666_v8 = vor.u32 %v10889_v6, %v8665_v5  ;;  %v9241_v9 = vld [vmem:[#allocation5 + $0x1170] sm:$0xf]  ;;  %v11033_v10 = vld [vmem:[#allocation5 + $0x11b4] sm:$0xf0]  ;;  %5470 = vmatpush.bf16.msra.mxu0 %v7514_v3  ;;  %v8017_v14 = vld [vmem:[#allocation5 + $0x7e0] sm:$0xf]  ;;  %v7442_v16 = vor.u32 %v10583_v13, %v7441_v11 }
  0x35   : > { %v9242_v12 = vor.u32 %v11033_v10, %v9241_v9  ;;  %v10727_v15 = vld [vmem:[#allocation5 + $0x824] sm:$0xf0]  ;;  %5483 = vmatpush.bf16.msra.mxu1 %v8090_v7  ;;  %v8593_v18 = vld [vmem:[#allocation5 + $0xc60] sm:$0xf]  ;;  %v7369_v23 = vld [vmem:[#allocation5 + $0x2d0] sm:$0xf] }
  0x36   : > { %5496 = vmatpush.bf16.msra.mxu2 %v8666_v8  ;;  %v8018_v17 = vor.u32 %v10727_v15, %v8017_v14  ;;  %v10871_v19 = vld [vmem:[#allocation5 + $0xca4] sm:$0xf0]  ;;  %v9169_v20 = vld [vmem:[#allocation5 + $0x10e0] sm:$0xf]  ;;  %v10565_v24 = vld [vmem:[#allocation5 + $0x314] sm:$0xf0] }
  0x37   : > { %5509 = vmatpush.bf16.msra.mxu3 %v9242_v12  ;;  %v8594_v21 = vor.u32 %v10871_v19, %v8593_v18  ;;  %v11015_v22 = vld [vmem:[#allocation5 + $0x1124] sm:$0xf0]  ;;  %v7945_v26 = vld [vmem:[#allocation5 + $0x750] sm:$0xf]  ;;  %v10709_v27 = vld [vmem:[#allocation5 + $0x794] sm:$0xf0]  ;;  %v7370_v29 = vor.u32 %v10565_v24, %v7369_v23 }
  0x38   : > { %v9170_v25 = vor.u32 %v11015_v22, %v9169_v20  ;;  %v8521_v28 = vld [vmem:[#allocation5 + $0xbd0] sm:$0xf]  ;;  %5471 = vmatpush.bf16.msra.mxu0 %v7442_v16  ;;  %v10853_v30 = vld [vmem:[#allocation5 + $0xc14] sm:$0xf0]  ;;  %v7946_v33 = vor.u32 %v10709_v27, %v7945_v26  ;;  %v7297_v35 = vld [vmem:[#allocation5 + $0x240] sm:$0xf] }
  0x39   : > { %v9097_v31 = vld [vmem:[#allocation5 + $0x1050] sm:$0xf]  ;;  %v10997_v32 = vld [vmem:[#allocation5 + $0x1094] sm:$0xf0]  ;;  %5484 = vmatpush.bf16.msra.mxu1 %v8018_v17  ;;  %v8522_v34 = vor.u32 %v10853_v30, %v8521_v28  ;;  %v10547_v36 = vld [vmem:[#allocation5 + $0x284] sm:$0xf0] }
  0x3a   : > { %5497 = vmatpush.bf16.msra.mxu2 %v8594_v21  ;;  %v7873_v37 = vld [vmem:[#allocation5 + $0x6c0] sm:$0xf]  ;;  %v9098_v38 = vor.u32 %v10997_v32, %v9097_v31  ;;  %v10691_v39 = vld [vmem:[#allocation5 + $0x704] sm:$0xf0]  ;;  %v7298_v44 = vor.u32 %v10547_v36, %v7297_v35  ;;  %v7225_v47 = vld [vmem:[#allocation5 + $0x1b0] sm:$0xf] }
  0x3b   : > { %5510 = vmatpush.bf16.msra.mxu3 %v9170_v25  ;;  %v8449_v40 = vld [vmem:[#allocation5 + $0xb40] sm:$0xf]  ;;  %v10835_v41 = vld [vmem:[#allocation5 + $0xb84] sm:$0xf0]  ;;  %v7874_v45 = vor.u32 %v10691_v39, %v7873_v37  ;;  %v10529_v48 = vld [vmem:[#allocation5 + $0x1f4] sm:$0xf0] }
  0x3c   : > { %v9025_v42 = vld [vmem:[#allocation5 + $0xfc0] sm:$0xf]  ;;  %v10979_v43 = vld [vmem:[#allocation5 + $0x1004] sm:$0xf0]  ;;  %5472 = vmatpush.bf16.msra.mxu0 %v7370_v29  ;;  %v8450_v46 = vor.u32 %v10835_v41, %v8449_v40  ;;  %v7801_v49 = vld [vmem:[#allocation5 + $0x630] sm:$0xf]  ;;  %v7226_v56 = vor.u32 %v10529_v48, %v7225_v47 }
  0x3d   : > { %5485 = vmatpush.bf16.msra.mxu1 %v7946_v33  ;;  %v9026_v50 = vor.u32 %v10979_v43, %v9025_v42  ;;  %v10673_v51 = vld [vmem:[#allocation5 + $0x674] sm:$0xf0]  ;;  %v8377_v52 = vld [vmem:[#allocation5 + $0xab0] sm:$0xf]  ;;  %v7153_v59 = vld [vmem:[#allocation5 + $0x120] sm:$0xf] }
  0x3e   : > { %5498 = vmatpush.bf16.msra.mxu2 %v8522_v34  ;;  %v10817_v53 = vld [vmem:[#allocation5 + $0xaf4] sm:$0xf0]  ;;  %v8953_v54 = vld [vmem:[#allocation5 + $0xf30] sm:$0xf]  ;;  %v7802_v57 = vor.u32 %v10673_v51, %v7801_v49  ;;  %v10511_v60 = vld [vmem:[#allocation5 + $0x164] sm:$0xf0] }
  0x3f   : > { %5511 = vmatpush.bf16.msra.mxu3 %v9098_v38  ;;  %v10961_v55 = vld [vmem:[#allocation5 + $0xf74] sm:$0xf0]  ;;  %v8378_v58 = vor.u32 %v10817_v53, %v8377_v52  ;;  %v7729_v61 = vld [vmem:[#allocation5 + $0x5a0] sm:$0xf]  ;;  %v10655_v63 = vld [vmem:[#allocation5 + $0x5e4] sm:$0xf0]  ;;  %v7154_v4 = vor.u32 %v10511_v60, %v7153_v59 }
  0x40   : > { %5473 = vmatpush.bf16.msra.mxu0 %v7298_v44  ;;  %v8954_v62 = vor.u32 %v10961_v55, %v8953_v54  ;;  %v8305_v0 = vld [vmem:[#allocation5 + $0xa20] sm:$0xf]  ;;  %v10799_v1 = vld [vmem:[#allocation5 + $0xa64] sm:$0xf0]  ;;  %v7730_v5 = vor.u32 %v10655_v63, %v7729_v61  ;;  %v7081_v7 = vld [vmem:[#allocation5 + $0x90] sm:$0xf] }
  0x41   : > { %5486 = vmatpush.bf16.msra.mxu1 %v7874_v45  ;;  %v8881_v2 = vld [vmem:[#allocation5 + $0xea0] sm:$0xf]  ;;  %v10943_v3 = vld [vmem:[#allocation5 + $0xee4] sm:$0xf0]  ;;  %v8306_v6 = vor.u32 %v10799_v1, %v8305_v0  ;;  %v10493_v8 = vld [vmem:[#allocation5 + $0xd4] sm:$0xf0] }
  0x42   : > { %5499 = vmatpush.bf16.msra.mxu2 %v8450_v46  ;;  %v7657_v9 = vld [vmem:[#allocation5 + $0x510] sm:$0xf]  ;;  %v8882_v10 = vor.u32 %v10943_v3, %v8881_v2  ;;  %v10637_v11 = vld [vmem:[#allocation5 + $0x554] sm:$0xf0]  ;;  %v7082_v16 = vor.u32 %v10493_v8, %v7081_v7  ;;  %v7009_v17 = vld [vmem:[#allocation5] sm:$0xf] }
  0x43   : > { %5512 = vmatpush.bf16.msra.mxu3 %v9026_v50  ;;  %v8233_v12 = vld [vmem:[#allocation5 + $0x990] sm:$0xf]  ;;  %v10781_v13 = vld [vmem:[#allocation5 + $0x9d4] sm:$0xf0]  ;;  %v10475_v18 = vld [vmem:[#allocation5 + $0x44] sm:$0xf0]  ;;  %v7658_v19 = vor.u32 %v10637_v11, %v7657_v9 }
  0x44   : > { %5474 = vmatpush.bf16.msra.mxu0 %v7226_v56  ;;  %v8809_v14 = vld [vmem:[#allocation5 + $0xe10] sm:$0xf]  ;;  %v10925_v15 = vld [vmem:[#allocation5 + $0xe54] sm:$0xf0]  ;;  %v8234_v20 = vor.u32 %v10781_v13, %v8233_v12  ;;  %v7585_v21 = vld [vmem:[#allocation5 + $0x480] sm:$0xf]  ;;  %v7010_v31 = vor.u32 %v10475_v18, %v7009_v17 }
  0x45   : > { %5487 = vmatpush.bf16.msra.mxu1 %v7802_v57  ;;  %v10619_v22 = vld [vmem:[#allocation5 + $0x4c4] sm:$0xf0]  ;;  %v8161_v23 = vld [vmem:[#allocation5 + $0x900] sm:$0xf]  ;;  %v8810_v24 = vor.u32 %v10925_v15, %v8809_v14  ;;  %v9817_v28 = vld [vmem:[#allocation5 + $0x15f0] sm:$0xf] }
  0x46   : > { %5500 = vmatpush.bf16.msra.mxu2 %v8378_v58  ;;  %v10763_v25 = vld [vmem:[#allocation5 + $0x944] sm:$0xf0]  ;;  %v8737_v26 = vld [vmem:[#allocation5 + $0xd80] sm:$0xf]  ;;  %v11177_v29 = vld [vmem:[#allocation5 + $0x1634] sm:$0xf0]  ;;  %v7586_v35 = vor.u32 %v10619_v22, %v7585_v21 }
  0x47   : > { %5513 = vmatpush.bf16.msra.mxu3 %v8954_v62  ;;  %v10907_v27 = vld [vmem:[#allocation5 + $0xdc4] sm:$0xf0]  ;;  %v10393_v30 = vld [vmem:[#allocation5 + $0x1a70] sm:$0xf]  ;;  %v11321_v32 = vld [vmem:[#allocation5 + $0x1ab4] sm:$0xf0]  ;;  %v8162_v36 = vor.u32 %v10763_v25, %v8161_v23  ;;  %v9818_v40 = vor.u32 %v11177_v29, %v9817_v28 }
  0x48   : > { %5475 = vmatpush.bf16.msra.mxu0 %v7154_v4  ;;  %v10592_v33 = vld [vmem:[#allocation5 + $0x3f4] sm:$0xf]  ;;  %v7515_v34 = vld [vmem:[#allocation5 + $0x438] sm:$0xf0]  ;;  %v8738_v39 = vor.u32 %v10907_v27, %v8737_v26  ;;  %v10394_v41 = vor.u32 %v11321_v32, %v10393_v30  ;;  %v9745_v43 = vld [vmem:[#allocation5 + $0x1560] sm:$0xf] }
  0x49   : > { %5488 = vmatpush.bf16.msra.mxu1 %v7730_v5  ;;  %v10736_v37 = vld [vmem:[#allocation5 + $0x874] sm:$0xf]  ;;  %v8091_v38 = vld [vmem:[#allocation5 + $0x8b8] sm:$0xf0]  ;;  %v7518_v42 = vor.u32 %v10592_v33, %v7515_v34  ;;  %v11159_v44 = vld [vmem:[#allocation5 + $0x15a4] sm:$0xf0] }
  0x4a   : > { %5501 = vmatpush.bf16.msra.mxu2 %v8306_v6  ;;  %v10321_v45 = vld [vmem:[#allocation5 + $0x19e0] sm:$0xf]  ;;  %v8094_v46 = vor.u32 %v10736_v37, %v8091_v38  ;;  %v11303_v47 = vld [vmem:[#allocation5 + $0x1a24] sm:$0xf0]  ;;  %v10574_v48 = vld [vmem:[#allocation5 + $0x364] sm:$0xf]  ;;  %v9746_v52 = vor.u32 %v11159_v44, %v9745_v43 }
  0x4b   : > { %5514 = vmatpush.bf16.msra.mxu3 %v8882_v10  ;;  %v7443_v49 = vld [vmem:[#allocation5 + $0x3a8] sm:$0xf0]  ;;  %v10718_v50 = vld [vmem:[#allocation5 + $0x7e4] sm:$0xf]  ;;  %v9673_v53 = vld [vmem:[#allocation5 + $0x14d0] sm:$0xf]  ;;  %v10322_v54 = vor.u32 %v11303_v47, %v10321_v45 }
  0x4c   : > { %5476 = vmatpush.bf16.msra.mxu0 %v7082_v16  ;;  %v8019_v51 = vld [vmem:[#allocation5 + $0x828] sm:$0xf0]  ;;  %v7446_v55 = vor.u32 %v10574_v48, %v7443_v49  ;;  %v11141_v56 = vld [vmem:[#allocation5 + $0x1514] sm:$0xf0]  ;;  %v10249_v57 = vld [vmem:[#allocation5 + $0x1950] sm:$0xf] }
  0x4d   : > { %5489 = vmatpush.bf16.msra.mxu1 %v7658_v19  ;;  %v11285_v58 = vld [vmem:[#allocation5 + $0x1994] sm:$0xf0]  ;;  %v8022_v59 = vor.u32 %v10718_v50, %v8019_v51  ;;  %v10556_v60 = vld [vmem:[#allocation5 + $0x2d4] sm:$0xf]  ;;  %v7371_v61 = vld [vmem:[#allocation5 + $0x318] sm:$0xf0]  ;;  %v9674_v0 = vor.u32 %v11141_v56, %v9673_v53 }
  0x4e   : > { %5502 = vmatpush.bf16.msra.mxu2 %v8234_v20  ;;  %v10700_v62 = vld [vmem:[#allocation5 + $0x754] sm:$0xf]  ;;  %v7947_v63 = vld [vmem:[#allocation5 + $0x798] sm:$0xf0]  ;;  %v10250_v1 = vor.u32 %v11285_v58, %v10249_v57  ;;  %v7374_v4 = vor.u32 %v10556_v60, %v7371_v61  ;;  %v9601_v5 = vld [vmem:[#allocation5 + $0x1440] sm:$0xf] }
  0x4f   : > { %5515 = vmatpush.bf16.msra.mxu3 %v8810_v24  ;;  %v220_v2 = vld [vmem:[%s11690_s23] sm:$0xff]  ;;  %v221_v3 = vld [vmem:[%s11690_s23 + $0x8] sm:$0xff]  ;;  %v10177_v7 = vld [vmem:[#allocation5 + $0x18c0] sm:$0xf]  ;;  %v7950_v11 = vor.u32 %v10700_v62, %v7947_v63  ;;  %s11333_s20 = smul.u32 72, %s11686_s9  ;;  %s11516_s21 = scalar_lea.hbm %s12078_s3, 144 }
  0x50   : > { %5477 = vmatpush.bf16.msra.mxu0 %v7010_v31  ;;  %v11123_v6 = vld [vmem:[#allocation5 + $0x1484] sm:$0xf0]  ;;  %v1132_v8 = vunpack.c.l.b16 %v220_v2  ;;  %v1134_v9 = vunpack.c.l.b16 %v221_v3  ;;  %v1135_v10 = vunpack.c.h.b16 %v221_v3  ;;  %v10538_v13 = vld [vmem:[#allocation5 + $0x244] sm:$0xf]  ;;  %v7299_v14 = vld [vmem:[#allocation5 + $0x288] sm:$0xf0]  ;;  %v1133_v15 = vunpack.c.h.b16 %v220_v2 }
  0x51   : > { %5490 = vmatpush.bf16.msra.mxu1 %v7586_v35  ;;  %v11267_v12 = vld [vmem:[#allocation5 + $0x1904] sm:$0xf0]  ;;  %v10682_v16 = vld [vmem:[#allocation5 + $0x6c4] sm:$0xf]  ;;  %v7875_v17 = vld [vmem:[#allocation5 + $0x708] sm:$0xf0]  ;;  %v9602_v21 = vor.u32 %v11123_v6, %v9601_v5  ;;  %v7302_v24 = vor.u32 %v10538_v13, %v7299_v14 }
  0x52   : > { %5503 = vmatpush.bf16.msra.mxu2 %v8162_v36  ;;  %v11702_v18 = vpack.c.b16 %v1132_v8, %v1132_v8  ;;  %v11704_v19 = vpack.c.b16 %v1134_v9, %v1134_v9  ;;  %v11706_v20 = vpack.c.b16 %v1135_v10, %v1135_v10  ;;  %v11708_v22 = vpack.c.b16 %v1133_v15, %v1133_v15  ;;  %v9529_v25 = vld [vmem:[#allocation5 + $0x13b0] sm:$0xf]  ;;  %v11105_v26 = vld [vmem:[#allocation5 + $0x13f4] sm:$0xf0]  ;;  %v10520_v30 = vld [vmem:[#allocation5 + $0x1b4] sm:$0xf] }
  0x53   : > { %5516 = vmatpush.bf16.msra.mxu3 %v8738_v39  ;;  %v10178_v23 = vor.u32 %v11267_v12, %v10177_v7  ;;  %v10105_v27 = vld [vmem:[#allocation5 + $0x1830] sm:$0xf]  ;;  %v7878_v28 = vor.u32 %v10682_v16, %v7875_v17  ;;  %v11249_v29 = vld [vmem:[#allocation5 + $0x1874] sm:$0xf0]  ;;  %v7227_v31 = vld [vmem:[#allocation5 + $0x1f8] sm:$0xf0]  ;;  %v9530_v34 = vor.u32 %v11105_v26, %v9529_v25 }
  0x54   : > { %5522 = vmatpush.bf16.msrb.mxu0 %v9818_v40  ;;  %v10664_v32 = vld [vmem:[#allocation5 + $0x634] sm:$0xf]  ;;  %v7803_v33 = vld [vmem:[#allocation5 + $0x678] sm:$0xf0]  ;;  %5491 = vmatmul.bf16.vlgmr.msra.gmra.mxu1 %v11708_v22  ;;  %v10106_v35 = vor.u32 %v11249_v29, %v10105_v27  ;;  %v7230_v36 = vor.u32 %v10520_v30, %v7227_v31  ;;  %v9457_v37 = vld [vmem:[#allocation5 + $0x1320] sm:$0xf] }
  0x55   : > { %5535 = vmatpush.bf16.msrb.mxu1 %v10394_v41  ;;  %5478 = vmatmul.bf16.vlgmr.msra.gmra.mxu0 %v11702_v18  ;;  %v11087_v38 = vld [vmem:[#allocation5 + $0x1364] sm:$0xf0]  ;;  %v10033_v39 = vld [vmem:[#allocation5 + $0x17a0] sm:$0xf]  ;;  %v7806_v40 = vor.u32 %v10664_v32, %v7803_v33  ;;  %v7155_v43 = vld [vmem:[#allocation5 + $0x168] sm:$0xf0] }
  0x56   : > { %5548 = vmatpush.bf16.msrb.mxu2 %v7518_v42  ;;  %5517 = vmatmul.bf16.vlgmr.msra.gmra.mxu3 %v11706_v20  ;;  %v11231_v41 = vld [vmem:[#allocation5 + $0x17e4] sm:$0xf0]  ;;  %v10502_v42 = vld [vmem:[#allocation5 + $0x124] sm:$0xf]  ;;  %v7731_v45 = vld [vmem:[#allocation5 + $0x5e8] sm:$0xf0] }
  0x57   : > { %5561 = vmatpush.bf16.msrb.mxu3 %v8094_v46  ;;  %5504 = vmatmul.bf16.vlgmr.msra.gmra.mxu2 %v11704_v19  ;;  %v10646_v44 = vld [vmem:[#allocation5 + $0x5a4] sm:$0xf]  ;;  %v9458_v46 = vor.u32 %v11087_v38, %v9457_v37  ;;  %v10034_v47 = vor.u32 %v11231_v41, %v10033_v39  ;;  %v7158_v48 = vor.u32 %v10502_v42, %v7155_v43  ;;  %v9385_v49 = vld [vmem:[#allocation5 + $0x1290] sm:$0xf]  ;;  %v11069_v50 = vld [vmem:[#allocation5 + $0x12d4] sm:$0xf0] }
  0x58   : > { %5523 = vmatpush.bf16.msrb.mxu0 %v9746_v52  ;;  %v9961_v51 = vld [vmem:[#allocation5 + $0x1710] sm:$0xf]  ;;  %v7734_v52 = vor.u32 %v10646_v44, %v7731_v45  ;;  %v11213_v53 = vld [vmem:[#allocation5 + $0x1754] sm:$0xf0]  ;;  %v10628_v56 = vld [vmem:[#allocation5 + $0x514] sm:$0xf]  ;;  %v9386_v58 = vor.u32 %v11069_v50, %v9385_v49 }
  0x59   : > { %5536 = vmatpush.bf16.msrb.mxu1 %v10322_v54  ;;  %v10484_v54 = vld [vmem:[#allocation5 + $0x94] sm:$0xf]  ;;  %v7659_v57 = vld [vmem:[#allocation5 + $0x558] sm:$0xf0]  ;;  %v11051_v60 = vld [vmem:[#allocation5 + $0x1244] sm:$0xf0]  ;;  %v9962_v62 = vor.u32 %v11213_v53, %v9961_v51 }
  0x5a   : > { %5549 = vmatpush.bf16.msrb.mxu2 %v7446_v55  ;;  %v7083_v55 = vld [vmem:[#allocation5 + $0xd8] sm:$0xf0]  ;;  %v9889_v61 = vld [vmem:[#allocation5 + $0x1680] sm:$0xf]  ;;  %v7662_v3 = vor.u32 %v10628_v56, %v7659_v57  ;;  %v10610_v5 = vld [vmem:[#allocation5 + $0x484] sm:$0xf] }
  0x5b   : > { %5562 = vmatpush.bf16.msrb.mxu3 %v8022_v59  ;;  %v9313_v59 = vld [vmem:[#allocation5 + $0x1200] sm:$0xf]  ;;  %v7086_v63 = vor.u32 %v10484_v54, %v7083_v55  ;;  %v7587_v6 = vld [vmem:[#allocation5 + $0x4c8] sm:$0xf0]  ;;  %v10880_v7 = vld [vmem:[#allocation5 + $0xcf4] sm:$0xf] }
  0x5c   : > { %5524 = vmatpush.bf16.msrb.mxu0 %v9674_v0  ;;  %v11195_v0 = vld [vmem:[#allocation5 + $0x16c4] sm:$0xf0]  ;;  %v222_v2 = vld [vmem:[%s11690_s23 + $0x10] sm:$0xff]  ;;  %v11024_v9 = vld [vmem:[#allocation5 + $0x1174] sm:$0xf]  ;;  %v9314_v10 = vor.u32 %v11051_v60, %v9313_v59  ;;  %s11774_s8 = scalar_lea.vmem [#allocation8], %s11333_s20 }
  0x5d   : > { %5537 = vmatpush.bf16.msrb.mxu1 %v10250_v1  ;;  %v10466_v1 = vld [vmem:[#allocation5 + $0x4] sm:$0xf]  ;;  %v8667_v8 = vld [vmem:[#allocation5 + $0xd38] sm:$0xf0]  ;;  %v11168_v12 = vld [vmem:[#allocation5 + $0x15f4] sm:$0xf]  ;;  %v1136_v14 = vunpack.c.l.b16 %v222_v2  ;;  %v9890_v15 = vor.u32 %v11195_v0, %v9889_v61 }
  0x5e   : > { %5550 = vmatpush.bf16.msrb.mxu2 %v7374_v4  ;;  %v7011_v4 = vld [vmem:[#allocation5 + $0x48] sm:$0xf0]  ;;  %v9819_v13 = vld [vmem:[#allocation5 + $0x1638] sm:$0xf0]  ;;  %v11312_v17 = vld [vmem:[#allocation5 + $0x1a74] sm:$0xf]  ;;  %v8670_v25 = vor.u32 %v10880_v7, %v8667_v8 }
  0x5f   : > { %5563 = vmatpush.bf16.msrb.mxu3 %v7950_v11  ;;  %v9243_v11 = vld [vmem:[#allocation5 + $0x11b8] sm:$0xf0]  ;;  %v7014_v16 = vor.u32 %v10466_v1, %v7011_v4  ;;  %v9822_v27 = vor.u32 %v11168_v12, %v9819_v13  ;;  %v8595_v29 = vld [vmem:[#allocation5 + $0xca8] sm:$0xf0]  ;;  %v11006_v30 = vld [vmem:[#allocation5 + $0x10e4] sm:$0xf] }
  0x60   : > { %5525 = vmatpush.bf16.msrb.mxu0 %v9602_v21  ;;  %v10395_v21 = vld [vmem:[#allocation5 + $0x1ab8] sm:$0xf0]  ;;  %v9246_v26 = vor.u32 %v11024_v9, %v9243_v11  ;;  %v9171_v32 = vld [vmem:[#allocation5 + $0x1128] sm:$0xf0]  ;;  %v11150_v33 = vld [vmem:[#allocation5 + $0x1564] sm:$0xf] }
  0x61   : > { %5538 = vmatpush.bf16.msrb.mxu1 %v10178_v23  ;;  %v1137_v23 = vunpack.c.h.b16 %v222_v2  ;;  %v10398_v31 = vor.u32 %v11312_v17, %v10395_v21  ;;  %v10323_v37 = vld [vmem:[#allocation5 + $0x1a28] sm:$0xf0]  ;;  %v10844_v42 = vld [vmem:[#allocation5 + $0xbd4] sm:$0xf]  ;;  %v8523_v43 = vld [vmem:[#allocation5 + $0xc18] sm:$0xf0] }
  0x62   : > { %5551 = vmatpush.bf16.msrb.mxu2 %v7302_v24  ;;  %v7590_v24 = vor.u32 %v10610_v5, %v7587_v6  ;;  %v10988_v44 = vld [vmem:[#allocation5 + $0x1054] sm:$0xf]  ;;  %v10251_v50 = vld [vmem:[#allocation5 + $0x1998] sm:$0xf0]  ;;  %v8526_v51 = vor.u32 %v10844_v42, %v8523_v43  ;;  %v10826_v54 = vld [vmem:[#allocation5 + $0xb44] sm:$0xf] }
  0x63   : > { %5564 = vmatpush.bf16.msrb.mxu3 %v7878_v28  ;;  %v10862_v28 = vld [vmem:[#allocation5 + $0xc64] sm:$0xf]  ;;  %v11717_v38 = vpack.c.b16 %v1137_v23, %v1137_v23  ;;  %v11276_v49 = vld [vmem:[#allocation5 + $0x1954] sm:$0xf]  ;;  %v8451_v55 = vld [vmem:[#allocation5 + $0xb88] sm:$0xf0] }
  0x64   : > { %5526 = vmatpush.bf16.msrb.mxu0 %v9530_v34  ;;  %v9747_v34 = vld [vmem:[#allocation5 + $0x15a8] sm:$0xf0]  ;;  %v8598_v39 = vor.u32 %v10862_v28, %v8595_v29  ;;  %v10970_v56 = vld [vmem:[#allocation5 + $0xfc4] sm:$0xf]  ;;  %v10254_v57 = vor.u32 %v11276_v49, %v10251_v50  ;;  %v10808_v2 = vld [vmem:[#allocation5 + $0xab4] sm:$0xf] }
  0x65   : > { %5539 = vmatpush.bf16.msrb.mxu1 %v10106_v35  ;;  %v11715_v35 = vpack.c.b16 %v1136_v14, %v1136_v14  ;;  %v9750_v41 = vor.u32 %v11150_v33, %v9747_v34  ;;  %v11114_v59 = vld [vmem:[#allocation5 + $0x1444] sm:$0xf]  ;;  %v9603_v60 = vld [vmem:[#allocation5 + $0x1488] sm:$0xf0]  ;;  %v10952_v4 = vld [vmem:[#allocation5 + $0xf34] sm:$0xf] }
  0x66   : > { %5552 = vmatpush.bf16.msrb.mxu2 %v7230_v36  ;;  %v11294_v36 = vld [vmem:[#allocation5 + $0x19e4] sm:$0xf]  ;;  %v9606_v1 = vor.u32 %v11114_v59, %v9603_v60  ;;  %v8955_v6 = vld [vmem:[#allocation5 + $0xf78] sm:$0xf0]  ;;  %v11096_v7 = vld [vmem:[#allocation5 + $0x13b4] sm:$0xf] }
  0x67   : > { %5565 = vmatpush.bf16.msrb.mxu3 %v7806_v40  ;;  %v9174_v40 = vor.u32 %v11006_v30, %v9171_v32  ;;  %v10326_v45 = vor.u32 %v11294_v36, %v10323_v37  ;;  %v11258_v61 = vld [vmem:[#allocation5 + $0x18c4] sm:$0xf]  ;;  %v9531_v8 = vld [vmem:[#allocation5 + $0x13f8] sm:$0xf0]  ;;  %v11240_v9 = vld [vmem:[#allocation5 + $0x1834] sm:$0xf]  ;;  %v8958_v12 = vor.u32 %v10952_v4, %v8955_v6 }
  0x68   : > { %5527 = vmatpush.bf16.msrb.mxu0 %v9458_v46  ;;  %v9099_v46 = vld [vmem:[#allocation5 + $0x1098] sm:$0xf0]  ;;  %v9534_v13 = vor.u32 %v11096_v7, %v9531_v8  ;;  %v10790_v14 = vld [vmem:[#allocation5 + $0xa24] sm:$0xf]  ;;  %v8883_v21 = vld [vmem:[#allocation5 + $0xee8] sm:$0xf0] }
  0x69   : > { %5540 = vmatpush.bf16.msrb.mxu1 %v10034_v47  ;;  %v11132_v47 = vld [vmem:[#allocation5 + $0x14d4] sm:$0xf]  ;;  %v11078_v23 = vld [vmem:[#allocation5 + $0x1324] sm:$0xf]  ;;  %v8811_v34 = vld [vmem:[#allocation5 + $0xe58] sm:$0xf0] }
  0x6a   : > { %5553 = vmatpush.bf16.msrb.mxu2 %v7158_v48  ;;  %v9675_v48 = vld [vmem:[#allocation5 + $0x1518] sm:$0xf0]  ;;  %v10772_v30 = vld [vmem:[#allocation5 + $0x994] sm:$0xf]  ;;  %v10754_v42 = vld [vmem:[#allocation5 + $0x904] sm:$0xf] }
  0x6b   : > { %5566 = vmatpush.bf16.msrb.mxu3 %v7734_v52  ;;  %v9102_v52 = vor.u32 %v10988_v44, %v9099_v46  ;;  %v9678_v53 = vor.u32 %v11132_v47, %v9675_v48  ;;  %v10916_v32 = vld [vmem:[#allocation5 + $0xe14] sm:$0xf]  ;;  %v9387_v37 = vld [vmem:[#allocation5 + $0x12d8] sm:$0xf0]  ;;  %v8163_v43 = vld [vmem:[#allocation5 + $0x948] sm:$0xf0] }
  0x6c   : > { %5528 = vmatpush.bf16.msrb.mxu0 %v9386_v58  ;;  %v9027_v58 = vld [vmem:[#allocation5 + $0x1008] sm:$0xf0]  ;;  %v11060_v36 = vld [vmem:[#allocation5 + $0x1294] sm:$0xf]  ;;  %v8814_v44 = vor.u32 %v10916_v32, %v8811_v34  ;;  %v10898_v46 = vld [vmem:[#allocation5 + $0xd84] sm:$0xf] }
  0x6d   : > { %5541 = vmatpush.bf16.msrb.mxu1 %v9962_v62  ;;  %v10179_v62 = vld [vmem:[#allocation5 + $0x1908] sm:$0xf0]  ;;  %v9030_v0 = vor.u32 %v10970_v56, %v9027_v58  ;;  %v11042_v48 = vld [vmem:[#allocation5 + $0x1204] sm:$0xf]  ;;  %v8166_v56 = vor.u32 %v10754_v42, %v8163_v43  ;;  %v8673_v58 = vld [vmem:[#allocation5 + $0xcf8] sm:$0xf] }
  0x6e   : > { %5554 = vmatpush.bf16.msrb.mxu2 %v7086_v63  ;;  %v8454_v63 = vor.u32 %v10826_v54, %v8451_v55  ;;  %v10182_v5 = vor.u32 %v11258_v61, %v10179_v62  ;;  %v8739_v47 = vld [vmem:[#allocation5 + $0xdc8] sm:$0xf0]  ;;  %v10602_v54 = vld [vmem:[#allocation5 + $0x43c] sm:$0xf0]  ;;  %v8097_v55 = vld [vmem:[#allocation5 + $0x878] sm:$0xf] }
  0x6f   : > { %5567 = vmatpush.bf16.msrb.mxu3 %v7662_v3  ;;  %v8379_v3 = vld [vmem:[#allocation5 + $0xaf8] sm:$0xf0]  ;;  %v9315_v50 = vld [vmem:[#allocation5 + $0x1248] sm:$0xf0]  ;;  %v10890_v59 = vld [vmem:[#allocation5 + $0xd3c] sm:$0xf0]  ;;  %v8742_v60 = vor.u32 %v10898_v46, %v8739_v47 }
  0x70   : > { %5529 = vmatpush.bf16.msrb.mxu0 %v9314_v10  ;;  %v10107_v10 = vld [vmem:[#allocation5 + $0x1878] sm:$0xf0]  ;;  %v8382_v11 = vor.u32 %v10808_v2, %v8379_v3  ;;  %v9318_v61 = vor.u32 %v11042_v48, %v9315_v50  ;;  %v9249_v62 = vld [vmem:[#allocation5 + $0x1178] sm:$0xf]  ;;  %v8674_v3 = vor.u32 %v10890_v59, %v8673_v58  ;;  %v7449_v4 = vld [vmem:[#allocation5 + $0x368] sm:$0xf] }
  0x71   : > { %5542 = vmatpush.bf16.msrb.mxu1 %v9890_v15  ;;  %v8307_v15 = vld [vmem:[#allocation5 + $0xa68] sm:$0xf0]  ;;  %v10110_v17 = vor.u32 %v11240_v9, %v10107_v10  ;;  %v8025_v6 = vld [vmem:[#allocation5 + $0x7e8] sm:$0xf]  ;;  %v10728_v8 = vld [vmem:[#allocation5 + $0x82c] sm:$0xf0] }
  0x72   : > { %5555 = vmatpush.bf16.msrb.mxu2 %v7014_v16  ;;  %v10934_v16 = vld [vmem:[#allocation5 + $0xea4] sm:$0xf]  ;;  %v8601_v9 = vld [vmem:[#allocation5 + $0xc68] sm:$0xf]  ;;  %v10872_v10 = vld [vmem:[#allocation5 + $0xcac] sm:$0xf0] }
  0x73   : > { %5568 = vmatpush.bf16.msrb.mxu3 %v7590_v24  ;;  %5530 = vmatmul.bf16.vlgmr.msrb.gmra.mxu0 %v11715_v35  ;;  %v9459_v24 = vld [vmem:[#allocation5 + $0x1368] sm:$0xf0]  ;;  %v8886_v28 = vor.u32 %v10934_v16, %v8883_v21  ;;  %v7377_v16 = vld [vmem:[#allocation5 + $0x2d8] sm:$0xf]  ;;  %v7305_v32 = vld [vmem:[#allocation5 + $0x248] sm:$0xf] }
  0x74   : > { %5574 = vmatpush.bf16.msra.mxu0 %v8670_v25  ;;  %5543 = vmatmul.bf16.vlgmr.msrb.gmra.mxu1 %v11717_v38  ;;  %v11222_v25 = vld [vmem:[#allocation5 + $0x17a4] sm:$0xf]  ;;  %v9462_v29 = vor.u32 %v11078_v23, %v9459_v24  ;;  %v7953_v21 = vld [vmem:[#allocation5 + $0x758] sm:$0xf]  ;;  %v10710_v24 = vld [vmem:[#allocation5 + $0x79c] sm:$0xf0] }
  0x75   : > { %5587 = vmatpush.bf16.msra.mxu1 %v9246_v26  ;;  %5556 = vmatmul.bf16.vlgmr.msrb.gmra.mxu2 %v11702_v18  ;;  %v10035_v26 = vld [vmem:[#allocation5 + $0x17e8] sm:$0xf0]  ;;  %v7881_v34 = vld [vmem:[#allocation5 + $0x6c8] sm:$0xf]  ;;  %v10980_v42 = vld [vmem:[#allocation5 + $0x100c] sm:$0xf0] }
  0x76   : > { %5600 = vmatpush.bf16.msra.mxu2 %v9822_v27  ;;  %5569 = vmatmul.bf16.vlgmr.msrb.gmra.mxu3 %v11708_v22  ;;  %v8310_v27 = vor.u32 %v10790_v14, %v8307_v15  ;;  %v10038_v33 = vor.u32 %v11222_v25, %v10035_v26  ;;  %v8026_v14 = vor.u32 %v10728_v8, %v8025_v6  ;;  %v8529_v25 = vld [vmem:[#allocation5 + $0xbd8] sm:$0xf]  ;;  %v10854_v26 = vld [vmem:[#allocation5 + $0xc1c] sm:$0xf0]  ;;  %v7161_v58 = vld [vmem:[#allocation5 + $0x128] sm:$0xf] }
  0x77   : > { %5613 = vmatpush.bf16.msra.mxu3 %v10398_v31  ;;  %v8235_v31 = vld [vmem:[#allocation5 + $0x9d8] sm:$0xf0]  ;;  %v8602_v15 = vor.u32 %v10872_v10, %v8601_v9  ;;  %v7233_v46 = vld [vmem:[#allocation5 + $0x1b8] sm:$0xf]  ;;  %v10530_v47 = vld [vmem:[#allocation5 + $0x1fc] sm:$0xf0] }
  0x78   : > { %5575 = vmatpush.bf16.msra.mxu0 %v8598_v39  ;;  %v11204_v39 = vld [vmem:[#allocation5 + $0x1714] sm:$0xf]  ;;  %v7809_v48 = vld [vmem:[#allocation5 + $0x638] sm:$0xf]  ;;  %v10674_v50 = vld [vmem:[#allocation5 + $0x67c] sm:$0xf0] }
  0x79   : > { %5588 = vmatpush.bf16.msra.mxu1 %v9174_v40  ;;  %v9963_v40 = vld [vmem:[#allocation5 + $0x1758] sm:$0xf0]  ;;  %v10512_v59 = vld [vmem:[#allocation5 + $0x16c] sm:$0xf0]  ;;  %v7089_v6 = vld [vmem:[#allocation5 + $0x98] sm:$0xf] }
  0x7a   : > { %5601 = vmatpush.bf16.msra.mxu2 %v9750_v41  ;;  %v8238_v41 = vor.u32 %v10772_v30, %v8235_v31  ;;  %v9966_v49 = vor.u32 %v11204_v39, %v9963_v40  ;;  %v7954_v30 = vor.u32 %v10710_v24, %v7953_v21  ;;  %v8530_v31 = vor.u32 %v10854_v26, %v8529_v25  ;;  %v8457_v39 = vld [vmem:[#allocation5 + $0xb48] sm:$0xf]  ;;  %v10836_v40 = vld [vmem:[#allocation5 + $0xb8c] sm:$0xf0]  ;;  %v7665_v8 = vld [vmem:[#allocation5 + $0x518] sm:$0xf] }
  0x7b   : > { %5614 = vmatpush.bf16.msra.mxu3 %v10326_v45  ;;  %v9390_v45 = vor.u32 %v11060_v36, %v9387_v37  ;;  %v10692_v37 = vld [vmem:[#allocation5 + $0x70c] sm:$0xf0]  ;;  %v10638_v10 = vld [vmem:[#allocation5 + $0x55c] sm:$0xf0]  ;;  %v7593_v24 = vld [vmem:[#allocation5 + $0x488] sm:$0xf] }
  0x7c   : > { %5576 = vmatpush.bf16.msra.mxu0 %v8526_v51  ;;  %v11186_v51 = vld [vmem:[#allocation5 + $0x1684] sm:$0xf]  ;;  %v7666_v21 = vor.u32 %v10638_v10, %v7665_v8  ;;  %v10620_v25 = vld [vmem:[#allocation5 + $0x4cc] sm:$0xf0]  ;;  %v8169_v26 = vld [vmem:[#allocation5 + $0x908] sm:$0xf] }
  0x7d   : > { %5589 = vmatpush.bf16.msra.mxu1 %v9102_v52  ;;  %v9891_v52 = vld [vmem:[#allocation5 + $0x16c8] sm:$0xf0]  ;;  %v9609_v8 = vld [vmem:[#allocation5 + $0x1448] sm:$0xf]  ;;  %s11334_s18 = smul.u32 72, %s11616_s19  ;;  %s6906_s27 = sshll.u32 %s11774_s8, 4  ;;  %s6907_s27 = int_to_ptr.vmem [resolvable:$true] %s6906_s27 }
  0x7e   : > { %5602 = vmatpush.bf16.msra.mxu2 %v9678_v53  ;;  %v7521_v53 = vld [vmem:[#allocation5 + $0x3f8] sm:$0xf]  ;;  %v10185_v10 = vld [vmem:[#allocation5 + $0x18c8] sm:$0xf]  ;;  %s6893_s19 = scalar_lea.sflag [#allocation4], %s11686_s9 }
  0x7f   : > { %5615 = vmatpush.bf16.msra.mxu3 %v10254_v57  ;;  %v10746_v57 = vld [vmem:[#allocation5 + $0x8bc] sm:$0xf0]  ;;  %s6904_s26 = scalar_lea.hbm %s12078_s3, %s11334_s18 }
  0x80   : > { %5577 = vmatpush.bf16.msra.mxu0 %v8454_v63  ;;  %v11034_v63 = vld [vmem:[#allocation5 + $0x11bc] sm:$0xf0]  ;;  %v8098_v2 = vor.u32 %v10746_v57, %v8097_v55  ;;  %v7234_v55 = vor.u32 %v10530_v47, %v7233_v46  ;;  %s6908_s28 = sshll.u32 %s6904_s26, 4  ;;  %s6909_s28 = int_to_ptr.hbm [resolvable:$true] %s6908_s28 }
  0x81   : > { %5590 = vmatpush.bf16.msra.mxu1 %v9030_v0  ;;  %v9894_v0 = vor.u32 %v11186_v51, %v9891_v52  ;;  %v9250_v7 = vor.u32 %v11034_v63, %v9249_v62  ;;  %v8385_v51 = vld [vmem:[#allocation5 + $0xab8] sm:$0xf]  ;;  %v10818_v52 = vld [vmem:[#allocation5 + $0xafc] sm:$0xf0]  ;;  %v10656_v62 = vld [vmem:[#allocation5 + $0x5ec] sm:$0xf0] }
  0x82   : > { %5603 = vmatpush.bf16.msra.mxu2 %v9606_v1  ;;  %v7522_v1 = vor.u32 %v10602_v54, %v7521_v53  ;;  %v8961_v53 = vld [vmem:[#allocation5 + $0xf38] sm:$0xf]  ;;  %v10962_v54 = vld [vmem:[#allocation5 + $0xf7c] sm:$0xf0]  ;;  %v8386_v57 = vor.u32 %v10818_v52, %v8385_v51  ;;  %v8313_v63 = vld [vmem:[#allocation5 + $0xa28] sm:$0xf] }
  0x83   : > { %5616 = vmatpush.bf16.msra.mxu3 %v10182_v5  ;;  %v10584_v5 = vld [vmem:[#allocation5 + $0x3ac] sm:$0xf0]  ;;  %s11510_s29 = sshra.s32 %s6909_s28, 4  ;;  %s11511_s29 = int_to_ptr.hbm [resolvable:$true] %s11510_s29 }
  0x84   : > { %5578 = vmatpush.bf16.msra.mxu0 %v8382_v11  ;;  %v9177_v11 = vld [vmem:[#allocation5 + $0x10e8] sm:$0xf]  ;;  %v11304_v52 = vld [vmem:[#allocation5 + $0x1a2c] sm:$0xf0]  ;;  %s11512_s30 = scalar_lea.hbm %s11511_s29, 72  ;;  %p11517_p12 = scmp.lt.s32.totalorder %s11511_s29, %s12078_s3 }
  0x85   : > { %5591 = vmatpush.bf16.msra.mxu1 %v8958_v12  ;;  %v11016_v12 = vld [vmem:[#allocation5 + $0x112c] sm:$0xf0]  ;;  %p11513_p1 = scmp.ne.s32.totalorder %s11511_s29, %s11512_s30  ;;  %p11518_p7 = scmp.lt.s32.totalorder %s11516_s21, %s11512_s30 }
  0x86   : > { %5604 = vmatpush.bf16.msra.mxu2 %v9534_v13  ;;  %v7450_v13 = vor.u32 %v10584_v5, %v7449_v4  ;;  %v9178_v23 = vor.u32 %v11016_v12, %v9177_v11  ;;  %v8241_v11 = vld [vmem:[#allocation5 + $0x998] sm:$0xf]  ;;  %v10782_v12 = vld [vmem:[#allocation5 + $0x9dc] sm:$0xf0] }
  0x87   : > { %5617 = vmatpush.bf16.msra.mxu3 %v10110_v17  ;;  %v10566_v17 = vld [vmem:[#allocation5 + $0x31c] sm:$0xf0]  ;;  %p11514_p3 = pnand %p11513_p1, %p11657_p4  ;;  %p11519_p8 = por %p11518_p7, %p11517_p12 }
  0x88   : > { %5579 = vmatpush.bf16.msra.mxu0 %v8310_v27  ;;  %v9105_v27 = vld [vmem:[#allocation5 + $0x1058] sm:$0xf] }
  0x89   : > { %5592 = vmatpush.bf16.msra.mxu1 %v8886_v28  ;;  %v10998_v28 = vld [vmem:[#allocation5 + $0x109c] sm:$0xf0]  ;;  %p11515_p5 = pneg %p11514_p3 }
  0x8a   : > { %5605 = vmatpush.bf16.msra.mxu2 %v9462_v29  ;;  %v7378_v29 = vor.u32 %v10566_v17, %v7377_v16  ;;  %v9106_v36 = vor.u32 %v10998_v28, %v9105_v27  ;;  %v7017_v16 = vld [vmem:[#allocation5 + $0x8] sm:$0xf]  ;;  %v10476_v17 = vld [vmem:[#allocation5 + $0x4c] sm:$0xf0] }
  0x8b   : > { %5618 = vmatpush.bf16.msra.mxu3 %v10038_v33  ;;  %v10548_v33 = vld [vmem:[#allocation5 + $0x28c] sm:$0xf0]  ;;  %p11520_p9 = pnand %p11519_p8, %p11515_p5 }
  0x8c   : > { %5580 = vmatpush.bf16.msra.mxu0 %v8238_v41  ;;  %v9033_v41 = vld [vmem:[#allocation5 + $0xfc8] sm:$0xf]  ;;  %v7306_v43 = vor.u32 %v10548_v33, %v7305_v32  ;;  %v10764_v28 = vld [vmem:[#allocation5 + $0x94c] sm:$0xf0]  ;;  %v11178_v32 = vld [vmem:[#allocation5 + $0x163c] sm:$0xf0] }
  0x8d   : > { %5593 = vmatpush.bf16.msra.mxu1 %v8814_v44  ;;  %v7882_v44 = vor.u32 %v10692_v37, %v7881_v34  ;;  %v10401_v33 = vld [vmem:[#allocation5 + $0x1a78] sm:$0xf]  ;;  %v7018_v34 = vor.u32 %v10476_v17, %v7017_v16  ;;  %v10593_v37 = vld [vmem:[#allocation5 + $0x3fc] sm:$0xf]  ;;  %v7883_v16 = vld [vmem:[#allocation5 + $0x710] sm:$0xf0] }
  0x8e   : > { %5606 = vmatpush.bf16.msra.mxu2 %v9390_v45  ;;  %v8458_v45 = vor.u32 %v10836_v40, %v8457_v39  ;;  %v7523_v39 = vld [vmem:[#allocation5 + $0x440] sm:$0xf0]  ;;  %v7594_v40 = vor.u32 %v10620_v25, %v7593_v24  ;;  %v9537_v24 = vld [vmem:[#allocation5 + $0x13b8] sm:$0xf]  ;;  %v11106_v25 = vld [vmem:[#allocation5 + $0x13fc] sm:$0xf0] }
  0x8f   : > { %5619 = vmatpush.bf16.msra.mxu3 %v9966_v49  ;;  %v9034_v49 = vor.u32 %v10980_v42, %v9033_v41  ;;  %v8170_v41 = vor.u32 %v10764_v28, %v8169_v26  ;;  %v10737_v42 = vld [vmem:[#allocation5 + $0x87c] sm:$0xf]  ;;  %v7526_v47 = vor.u32 %v10593_v37, %v7523_v39  ;;  %v10113_v26 = vld [vmem:[#allocation5 + $0x1838] sm:$0xf]  ;;  %v11250_v28 = vld [vmem:[#allocation5 + $0x187c] sm:$0xf0] }
  0x90   : > { %5581 = vmatpush.bf16.msra.mxu0 %v8166_v56  ;;  %v7810_v56 = vor.u32 %v10674_v50, %v7809_v48  ;;  %v9753_v48 = vld [vmem:[#allocation5 + $0x1568] sm:$0xf]  ;;  %v11088_v39 = vld [vmem:[#allocation5 + $0x136c] sm:$0xf0] }
  0x91   : > { %5594 = vmatpush.bf16.msra.mxu1 %v8742_v60  ;;  %v7737_v60 = vld [vmem:[#allocation5 + $0x5a8] sm:$0xf] }
  0x92   : > { %5607 = vmatpush.bf16.msra.mxu2 %v9318_v61  ;;  %v8962_v61 = vor.u32 %v10962_v54, %v8961_v53  ;;  %v7738_v4 = vor.u32 %v10656_v62, %v7737_v60  ;;  %v10329_v50 = vld [vmem:[#allocation5 + $0x19e8] sm:$0xf]  ;;  %v10575_v53 = vld [vmem:[#allocation5 + $0x36c] sm:$0xf]  ;;  %v7451_v54 = vld [vmem:[#allocation5 + $0x3b0] sm:$0xf0] }
  0x93   : > { %5620 = vmatpush.bf16.msra.mxu3 %v9894_v0  ;;  %5582 = vmatmul.bf16.vlgmr.msra.gmra.mxu0 %v11704_v19  ;;  %v10800_v0 = vld [vmem:[#allocation5 + $0xa6c] sm:$0xf0]  ;;  %v9681_v60 = vld [vmem:[#allocation5 + $0x14d8] sm:$0xf]  ;;  %v9465_v37 = vld [vmem:[#allocation5 + $0x1328] sm:$0xf] }
  0x94   : > { %5626 = vmatpush.bf16.msrb.mxu0 %v7522_v1  ;;  %5595 = vmatmul.bf16.vlgmr.msra.gmra.mxu1 %v11706_v20  ;;  %v8889_v1 = vld [vmem:[#allocation5 + $0xea8] sm:$0xf]  ;;  %v8314_v5 = vor.u32 %v10800_v0, %v8313_v63  ;;  %v10257_v62 = vld [vmem:[#allocation5 + $0x1958] sm:$0xf]  ;;  %v11286_v0 = vld [vmem:[#allocation5 + $0x199c] sm:$0xf0] }
  0x95   : > { %5639 = vmatpush.bf16.msrb.mxu1 %v8098_v2  ;;  %5608 = vmatmul.bf16.vlgmr.msra.gmra.mxu2 %v11715_v35  ;;  %v10944_v2 = vld [vmem:[#allocation5 + $0xeec] sm:$0xf0] }
  0x96   : > { %5652 = vmatpush.bf16.msrb.mxu2 %v8674_v3  ;;  %5621 = vmatmul.bf16.vlgmr.msra.gmra.mxu3 %v11717_v38  ;;  %v7162_v3 = vor.u32 %v10512_v59, %v7161_v58  ;;  %v8890_v9 = vor.u32 %v10944_v2, %v8889_v1  ;;  %v10330_v58 = vor.u32 %v11304_v52, %v10329_v50  ;;  %v10557_v1 = vld [vmem:[#allocation5 + $0x2dc] sm:$0xf]  ;;  %v7379_v2 = vld [vmem:[#allocation5 + $0x320] sm:$0xf0]  ;;  %v9393_v50 = vld [vmem:[#allocation5 + $0x1298] sm:$0xf] }
  0x97   : > { %5665 = vmatpush.bf16.msrb.mxu3 %v9250_v7  ;;  %v10494_v7 = vld [vmem:[#allocation5 + $0xdc] sm:$0xf0]  ;;  %v7454_v59 = vor.u32 %v10575_v53, %v7451_v54  ;;  %v9969_v52 = vld [vmem:[#allocation5 + $0x1718] sm:$0xf] }
  0x98   : > { %5627 = vmatpush.bf16.msrb.mxu0 %v7450_v13  ;;  %v8817_v13 = vld [vmem:[#allocation5 + $0xe18] sm:$0xf]  ;;  %v11214_v54 = vld [vmem:[#allocation5 + $0x175c] sm:$0xf0] }
  0x99   : > { %5640 = vmatpush.bf16.msrb.mxu1 %v8026_v14  ;;  %v10926_v14 = vld [vmem:[#allocation5 + $0xe5c] sm:$0xf0] }
  0x9a   : > { %5653 = vmatpush.bf16.msrb.mxu2 %v8602_v15  ;;  %v7090_v15 = vor.u32 %v10494_v7, %v7089_v6  ;;  %v8818_v27 = vor.u32 %v10926_v14, %v8817_v13  ;;  %v10258_v6 = vor.u32 %v11286_v0, %v10257_v62  ;;  %v7382_v7 = vor.u32 %v10557_v1, %v7379_v2  ;;  %v10539_v13 = vld [vmem:[#allocation5 + $0x24c] sm:$0xf]  ;;  %v7307_v14 = vld [vmem:[#allocation5 + $0x290] sm:$0xf0]  ;;  %v9897_v0 = vld [vmem:[#allocation5 + $0x1688] sm:$0xf] }
  0x9b   : > { %5666 = vmatpush.bf16.msrb.mxu3 %v9178_v23  ;;  %v8242_v23 = vor.u32 %v10782_v12, %v8241_v11  ;;  %v11268_v12 = vld [vmem:[#allocation5 + $0x190c] sm:$0xf0]  ;;  %v9970_v62 = vor.u32 %v11214_v54, %v9969_v52  ;;  %v10467_v2 = vld [vmem:[#allocation5 + $0xc] sm:$0xf] }
  0x9c   : > { %5628 = vmatpush.bf16.msrb.mxu0 %v7378_v29  ;;  %v8745_v29 = vld [vmem:[#allocation5 + $0xd88] sm:$0xf]  ;;  %v11196_v1 = vld [vmem:[#allocation5 + $0x16cc] sm:$0xf0]  ;;  %v10827_v52 = vld [vmem:[#allocation5 + $0xb4c] sm:$0xf] }
  0x9d   : > { %5641 = vmatpush.bf16.msrb.mxu1 %v7954_v30  ;;  %v10908_v30 = vld [vmem:[#allocation5 + $0xdcc] sm:$0xf0]  ;;  %v10971_v54 = vld [vmem:[#allocation5 + $0xfcc] sm:$0xf] }
  0x9e   : > { %5654 = vmatpush.bf16.msrb.mxu2 %v8530_v31  ;;  %v9825_v31 = vld [vmem:[#allocation5 + $0x15f8] sm:$0xf] }
  0x9f   : > { %5667 = vmatpush.bf16.msrb.mxu3 %v9106_v36  ;;  %v11322_v36 = vld [vmem:[#allocation5 + $0x1abc] sm:$0xf0] }
  0xa0   : > { %5629 = vmatpush.bf16.msrb.mxu0 %v7306_v43  ;;  %v8099_v43 = vld [vmem:[#allocation5 + $0x8c0] sm:$0xf0]  ;;  %v10402_v46 = vor.u32 %v11322_v36, %v10401_v33  ;;  %v9538_v33 = vor.u32 %v11106_v25, %v9537_v24 }
  0xa1   : > { %5642 = vmatpush.bf16.msrb.mxu1 %v7882_v44  ;;  %v8746_v44 = vor.u32 %v10908_v30, %v8745_v29  ;;  %v8102_v51 = vor.u32 %v10737_v42, %v8099_v43  ;;  %v10521_v29 = vld [vmem:[#allocation5 + $0x1bc] sm:$0xf]  ;;  %v7235_v30 = vld [vmem:[#allocation5 + $0x200] sm:$0xf0]  ;;  %v11232_v42 = vld [vmem:[#allocation5 + $0x17ec] sm:$0xf0] }
  0xa2   : > { %5655 = vmatpush.bf16.msrb.mxu2 %v8458_v45  ;;  %v9826_v45 = vor.u32 %v11178_v32, %v9825_v31  ;;  %v10665_v31 = vld [vmem:[#allocation5 + $0x63c] sm:$0xf]  ;;  %v7811_v32 = vld [vmem:[#allocation5 + $0x680] sm:$0xf0]  ;;  %v7238_v36 = vor.u32 %v10521_v29, %v7235_v30  ;;  %v10503_v43 = vld [vmem:[#allocation5 + $0x12c] sm:$0xf] }
  0xa3   : > { %5668 = vmatpush.bf16.msrb.mxu3 %v9034_v49  ;;  %v11160_v49 = vld [vmem:[#allocation5 + $0x15ac] sm:$0xf0]  ;;  %v9179_v30 = vld [vmem:[#allocation5 + $0x1130] sm:$0xf0] }
  0xa4   : > { %5630 = vmatpush.bf16.msrb.mxu0 %v7234_v55  ;;  %v10719_v55 = vld [vmem:[#allocation5 + $0x7ec] sm:$0xf] }
  0xa5   : > { %5643 = vmatpush.bf16.msrb.mxu1 %v7810_v56  ;;  %v8027_v56 = vld [vmem:[#allocation5 + $0x830] sm:$0xf0] }
  0xa6   : > { %5656 = vmatpush.bf16.msrb.mxu2 %v8386_v57  ;;  %v9754_v57 = vor.u32 %v11160_v49, %v9753_v48  ;;  %v8030_v63 = vor.u32 %v10719_v55, %v8027_v56  ;;  %v10485_v55 = vld [vmem:[#allocation5 + $0x9c] sm:$0xf]  ;;  %v7091_v56 = vld [vmem:[#allocation5 + $0xe0] sm:$0xf0] }
  0xa7   : > { %5669 = vmatpush.bf16.msrb.mxu3 %v8962_v61  ;;  %v11142_v61 = vld [vmem:[#allocation5 + $0x151c] sm:$0xf0] }
  0xa8   : > { %5631 = vmatpush.bf16.msrb.mxu0 %v7162_v3  ;;  %v10701_v3 = vld [vmem:[#allocation5 + $0x75c] sm:$0xf] }
  0xa9   : > { %5644 = vmatpush.bf16.msrb.mxu1 %v7738_v4  ;;  %v7955_v4 = vld [vmem:[#allocation5 + $0x7a0] sm:$0xf0] }
  0xaa   : > { %5657 = vmatpush.bf16.msrb.mxu2 %v8314_v5  ;;  %v9682_v5 = vor.u32 %v11142_v61, %v9681_v60  ;;  %v7958_v11 = vor.u32 %v10701_v3, %v7955_v4  ;;  %v9321_v60 = vld [vmem:[#allocation5 + $0x1208] sm:$0xf]  ;;  %v11052_v61 = vld [vmem:[#allocation5 + $0x124c] sm:$0xf0]  ;;  %v7019_v4 = vld [vmem:[#allocation5 + $0x50] sm:$0xf0] }
  0xab   : > { %5670 = vmatpush.bf16.msrb.mxu3 %v8890_v9  ;;  %v11124_v9 = vld [vmem:[#allocation5 + $0x148c] sm:$0xf0] }
  0xac   : > { %5632 = vmatpush.bf16.msrb.mxu0 %v7090_v15  ;;  %v10683_v15 = vld [vmem:[#allocation5 + $0x6cc] sm:$0xf]  ;;  %v9610_v17 = vor.u32 %v11124_v9, %v9609_v8  ;;  %v8675_v8 = vld [vmem:[#allocation5 + $0xd40] sm:$0xf0]  ;;  %v11025_v9 = vld [vmem:[#allocation5 + $0x117c] sm:$0xf] }
  0xad   : > { %5645 = vmatpush.bf16.msrb.mxu1 %v7666_v21  ;;  %v10186_v21 = vor.u32 %v11268_v12, %v10185_v10  ;;  %v9322_v10 = vor.u32 %v11052_v61, %v9321_v60  ;;  %v11169_v12 = vld [vmem:[#allocation5 + $0x15fc] sm:$0xf]  ;;  %v10187_v60 = vld [vmem:[#allocation5 + $0x1910] sm:$0xf0] }
  0xae   : > { %5658 = vmatpush.bf16.msrb.mxu2 %v8242_v23  ;;  %v7310_v23 = vor.u32 %v10539_v13, %v7307_v14  ;;  %v9827_v13 = vld [vmem:[#allocation5 + $0x1640] sm:$0xf0]  ;;  %v9898_v14 = vor.u32 %v11196_v1, %v9897_v0  ;;  %v10809_v0 = vld [vmem:[#allocation5 + $0xabc] sm:$0xf] }
  0xaf   : > { %5671 = vmatpush.bf16.msrb.mxu3 %v8818_v27  ;;  %v7886_v27 = vor.u32 %v10683_v15, %v7883_v16  ;;  %v7022_v15 = vor.u32 %v10467_v2, %v7019_v4  ;;  %v11313_v16 = vld [vmem:[#allocation5 + $0x1a7c] sm:$0xf]  ;;  %v9830_v25 = vor.u32 %v11169_v12, %v9827_v13  ;;  %v8387_v1 = vld [vmem:[#allocation5 + $0xb00] sm:$0xf0]  ;;  %v10791_v12 = vld [vmem:[#allocation5 + $0xa2c] sm:$0xf] }
  0xb0   : > { %5633 = vmatpush.bf16.msrb.mxu0 %v7018_v34  ;;  %v10114_v34 = vor.u32 %v11250_v28, %v10113_v26  ;;  %v10863_v26 = vld [vmem:[#allocation5 + $0xc6c] sm:$0xf]  ;;  %v10953_v2 = vld [vmem:[#allocation5 + $0xf3c] sm:$0xf]  ;;  %v8963_v4 = vld [vmem:[#allocation5 + $0xf80] sm:$0xf0] }
  0xb1   : > { %5646 = vmatpush.bf16.msrb.mxu1 %v7594_v40  ;;  %v10041_v40 = vld [vmem:[#allocation5 + $0x17a8] sm:$0xf]  ;;  %v11007_v28 = vld [vmem:[#allocation5 + $0x10ec] sm:$0xf]  ;;  %v8315_v13 = vld [vmem:[#allocation5 + $0xa70] sm:$0xf0] }
  0xb2   : > { %5659 = vmatpush.bf16.msrb.mxu2 %v8170_v41  ;;  %v7814_v41 = vor.u32 %v10665_v31, %v7811_v32  ;;  %v10042_v48 = vor.u32 %v11232_v42, %v10041_v40  ;;  %v11151_v31 = vld [vmem:[#allocation5 + $0x156c] sm:$0xf]  ;;  %v9755_v32 = vld [vmem:[#allocation5 + $0x15b0] sm:$0xf0]  ;;  %v10845_v40 = vld [vmem:[#allocation5 + $0xbdc] sm:$0xf] }
  0xb3   : > { %5672 = vmatpush.bf16.msrb.mxu3 %v8746_v44  ;;  %5634 = vmatmul.bf16.vlgmr.msrb.gmra.mxu0 %v11702_v18  ;;  %v7163_v44 = vld [vmem:[#allocation5 + $0x170] sm:$0xf0]  ;;  %v10989_v42 = vld [vmem:[#allocation5 + $0x105c] sm:$0xf] }
  0xb4   : > { %5678 = vmatpush.bf16.msra.mxu0 %v9826_v45  ;;  %5647 = vmatmul.bf16.vlgmr.msrb.gmra.mxu1 %v11708_v22  ;;  %v10647_v45 = vld [vmem:[#allocation5 + $0x5ac] sm:$0xf]  ;;  %v7166_v49 = vor.u32 %v10503_v43, %v7163_v44  ;;  %v9107_v44 = vld [vmem:[#allocation5 + $0x10a0] sm:$0xf0] }
  0xb5   : > { %5691 = vmatpush.bf16.msra.mxu1 %v10402_v46  ;;  %5660 = vmatmul.bf16.vlgmr.msrb.gmra.mxu2 %v11704_v19  ;;  %v7739_v46 = vld [vmem:[#allocation5 + $0x5f0] sm:$0xf0] }
  0xb6   : > { %5704 = vmatpush.bf16.msra.mxu2 %v7526_v47  ;;  %5673 = vmatmul.bf16.vlgmr.msrb.gmra.mxu3 %v11706_v20  ;;  %v9466_v47 = vor.u32 %v11088_v39, %v9465_v37  ;;  %v7742_v53 = vor.u32 %v10647_v45, %v7739_v46  ;;  %v9182_v37 = vor.u32 %v11007_v28, %v9179_v30  ;;  %v11133_v45 = vld [vmem:[#allocation5 + $0x14dc] sm:$0xf]  ;;  %v9683_v46 = vld [vmem:[#allocation5 + $0x1520] sm:$0xf0] }
  0xb7   : > { %5717 = vmatpush.bf16.msra.mxu3 %v8102_v51  ;;  %v11070_v51 = vld [vmem:[#allocation5 + $0x12dc] sm:$0xf0]  ;;  %v9758_v39 = vor.u32 %v11151_v31, %v9755_v32  ;;  %v8243_v30 = vld [vmem:[#allocation5 + $0x9e0] sm:$0xf0]  ;;  %v10917_v31 = vld [vmem:[#allocation5 + $0xe1c] sm:$0xf] }
  0xb8   : > { %5679 = vmatpush.bf16.msra.mxu0 %v9754_v57  ;;  %v10629_v57 = vld [vmem:[#allocation5 + $0x51c] sm:$0xf] }
  0xb9   : > { %5692 = vmatpush.bf16.msra.mxu1 %v10330_v58  ;;  %v7667_v58 = vld [vmem:[#allocation5 + $0x560] sm:$0xf0] }
  0xba   : > { %5705 = vmatpush.bf16.msra.mxu2 %v7454_v59  ;;  %v9394_v59 = vor.u32 %v11070_v51, %v9393_v50  ;;  %v7670_v3 = vor.u32 %v10629_v57, %v7667_v58  ;;  %v9110_v50 = vor.u32 %v10989_v42, %v9107_v44  ;;  %v9686_v51 = vor.u32 %v11133_v45, %v9683_v46  ;;  %v11115_v57 = vld [vmem:[#allocation5 + $0x144c] sm:$0xf]  ;;  %v9611_v58 = vld [vmem:[#allocation5 + $0x1490] sm:$0xf0] }
  0xbb   : > { %5718 = vmatpush.bf16.msra.mxu3 %v8030_v63  ;;  %v7094_v63 = vor.u32 %v10485_v55, %v7091_v56  ;;  %v9035_v56 = vld [vmem:[#allocation5 + $0x1010] sm:$0xf0]  ;;  %v10755_v42 = vld [vmem:[#allocation5 + $0x90c] sm:$0xf] }
  0xbc   : > { %5680 = vmatpush.bf16.msra.mxu0 %v9682_v5  ;;  %v10611_v5 = vld [vmem:[#allocation5 + $0x48c] sm:$0xf] }
  0xbd   : > { %5693 = vmatpush.bf16.msra.mxu1 %v10258_v6  ;;  %v7595_v6 = vld [vmem:[#allocation5 + $0x4d0] sm:$0xf0]  ;;  %v10899_v46 = vld [vmem:[#allocation5 + $0xd8c] sm:$0xf] }
  0xbe   : > { %5706 = vmatpush.bf16.msra.mxu2 %v7382_v7  ;;  %v10881_v7 = vld [vmem:[#allocation5 + $0xcfc] sm:$0xf] }
  0xbf   : > { %5719 = vmatpush.bf16.msra.mxu3 %v7958_v11  ;;  %v9251_v11 = vld [vmem:[#allocation5 + $0x11c0] sm:$0xf0] }
  0xc0   : > { %5681 = vmatpush.bf16.msra.mxu0 %v9610_v17  ;;  %v10403_v17 = vld [vmem:[#allocation5 + $0x1ac0] sm:$0xf0]  ;;  %v9254_v24 = vor.u32 %v11025_v9, %v9251_v11  ;;  %v8390_v9 = vor.u32 %v10809_v0, %v8387_v1  ;;  %v9257_v1 = vld [vmem:[#allocation5 + $0x1180] sm:$0xf] }
  0xc1   : > { %5694 = vmatpush.bf16.msra.mxu1 %v10186_v21  ;;  %v7598_v21 = vor.u32 %v10611_v5, %v7595_v6  ;;  %v10406_v29 = vor.u32 %v11313_v16, %v10403_v17  ;;  %v11097_v5 = vld [vmem:[#allocation5 + $0x13bc] sm:$0xf]  ;;  %v9539_v6 = vld [vmem:[#allocation5 + $0x1400] sm:$0xf0]  ;;  %v8891_v16 = vld [vmem:[#allocation5 + $0xef0] sm:$0xf0] }
  0xc2   : > { %5707 = vmatpush.bf16.msra.mxu2 %v7310_v23  ;;  %v8678_v23 = vor.u32 %v10881_v7, %v8675_v8  ;;  %v11241_v7 = vld [vmem:[#allocation5 + $0x183c] sm:$0xf]  ;;  %v10115_v8 = vld [vmem:[#allocation5 + $0x1880] sm:$0xf0]  ;;  %v9542_v11 = vor.u32 %v11097_v5, %v9539_v6  ;;  %v11079_v17 = vld [vmem:[#allocation5 + $0x132c] sm:$0xf] }
  0xc3   : > { %5720 = vmatpush.bf16.msra.mxu3 %v7886_v27  ;;  %v8603_v27 = vld [vmem:[#allocation5 + $0xcb0] sm:$0xf0] }
  0xc4   : > { %5682 = vmatpush.bf16.msra.mxu0 %v9538_v33  ;;  %v11295_v33 = vld [vmem:[#allocation5 + $0x19ec] sm:$0xf] }
  0xc5   : > { %5695 = vmatpush.bf16.msra.mxu1 %v10114_v34  ;;  %v10331_v34 = vld [vmem:[#allocation5 + $0x1a30] sm:$0xf0] }
  0xc6   : > { %5708 = vmatpush.bf16.msra.mxu2 %v7238_v36  ;;  %v8606_v36 = vor.u32 %v10863_v26, %v8603_v27  ;;  %v10334_v43 = vor.u32 %v11295_v33, %v10331_v34  ;;  %v8318_v26 = vor.u32 %v10791_v12, %v8315_v13  ;;  %v8819_v34 = vld [vmem:[#allocation5 + $0xe60] sm:$0xf0]  ;;  %v10729_v12 = vld [vmem:[#allocation5 + $0x834] sm:$0xf0]  ;;  %v8609_v13 = vld [vmem:[#allocation5 + $0xc70] sm:$0xf] }
  0xc7   : > { %5721 = vmatpush.bf16.msra.mxu3 %v7814_v41  ;;  %v8531_v41 = vld [vmem:[#allocation5 + $0xc20] sm:$0xf0]  ;;  %v8822_v44 = vor.u32 %v10917_v31, %v8819_v34  ;;  %v10711_v31 = vld [vmem:[#allocation5 + $0x7a4] sm:$0xf0] }
  0xc8   : > { %5683 = vmatpush.bf16.msra.mxu0 %v9466_v47  ;;  %v11277_v47 = vld [vmem:[#allocation5 + $0x195c] sm:$0xf]  ;;  %v10855_v34 = vld [vmem:[#allocation5 + $0xc24] sm:$0xf0] }
  0xc9   : > { %5696 = vmatpush.bf16.msra.mxu1 %v10042_v48  ;;  %v10259_v48 = vld [vmem:[#allocation5 + $0x19a0] sm:$0xf0] }
  0xca   : > { %5709 = vmatpush.bf16.msra.mxu2 %v7166_v49  ;;  %v8534_v49 = vor.u32 %v10845_v40, %v8531_v41  ;;  %v10262_v55 = vor.u32 %v11277_v47, %v10259_v48  ;;  %v9971_v40 = vld [vmem:[#allocation5 + $0x1760] sm:$0xf0]  ;;  %v8747_v47 = vld [vmem:[#allocation5 + $0xdd0] sm:$0xf0]  ;;  %v11043_v48 = vld [vmem:[#allocation5 + $0x120c] sm:$0xf] }
  0xcb   : > { %5722 = vmatpush.bf16.msra.mxu3 %v7742_v53  ;;  %v8459_v53 = vld [vmem:[#allocation5 + $0xb90] sm:$0xf0] }
  0xcc   : > { %5684 = vmatpush.bf16.msra.mxu0 %v9394_v59  ;;  %v11259_v59 = vld [vmem:[#allocation5 + $0x18cc] sm:$0xf]  ;;  %v8462_v61 = vor.u32 %v10827_v52, %v8459_v53  ;;  %v9899_v52 = vld [vmem:[#allocation5 + $0x16d0] sm:$0xf0] }
  0xcd   : > { %5697 = vmatpush.bf16.msra.mxu1 %v9970_v62  ;;  %v9038_v62 = vor.u32 %v10971_v54, %v9035_v56  ;;  %v10603_v56 = vld [vmem:[#allocation5 + $0x444] sm:$0xf0] }
  0xce   : > { %5710 = vmatpush.bf16.msra.mxu2 %v7094_v63  ;;  %v9614_v63 = vor.u32 %v11115_v57, %v9611_v58  ;;  %v8105_v57 = vld [vmem:[#allocation5 + $0x880] sm:$0xf] }
  0xcf   : > { %5723 = vmatpush.bf16.msra.mxu3 %v7670_v3  ;;  %v10190_v3 = vor.u32 %v11259_v59, %v10187_v60  ;;  %v10747_v60 = vld [vmem:[#allocation5 + $0x8c4] sm:$0xf0] }
  0xd0   : > { %5685 = vmatpush.bf16.msra.mxu0 %v9322_v10  ;;  %v8966_v10 = vor.u32 %v10953_v2, %v8963_v4  ;;  %v11035_v2 = vld [vmem:[#allocation5 + $0x11c4] sm:$0xf0]  ;;  %v8106_v6 = vor.u32 %v10747_v60, %v8105_v57  ;;  %v7817_v60 = vld [vmem:[#allocation5 + $0x640] sm:$0xf] }
  0xd1   : > { %5698 = vmatpush.bf16.msra.mxu1 %v9898_v14  ;;  %v10935_v14 = vld [vmem:[#allocation5 + $0xeac] sm:$0xf]  ;;  %v11737_v32 = vpop.f32.mrf.mxu1 }
  0xd2   : > { %5711 = vmatpush.bf16.msra.mxu2 %v7022_v15  ;;  %v10118_v15 = vor.u32 %v11241_v7, %v10115_v8  ;;  %v8894_v27 = vor.u32 %v10935_v14, %v8891_v16  ;;  %v7457_v8 = vld [vmem:[#allocation5 + $0x370] sm:$0xf]  ;;  %v10873_v14 = vld [vmem:[#allocation5 + $0xcb4] sm:$0xf0] }
  0xd3   : > { %5724 = vmatpush.bf16.msra.mxu3 %v7598_v21  ;;  %5686 = vmatmul.bf16.vlgmr.msra.gmra.mxu0 %v11715_v35  ;;  %v9467_v21 = vld [vmem:[#allocation5 + $0x1370] sm:$0xf0]  ;;  %v11017_v16 = vld [vmem:[#allocation5 + $0x1134] sm:$0xf0] }
  0xd4   : > { %5730 = vmatpush.bf16.msrb.mxu0 %v8678_v23  ;;  %5699 = vmatmul.bf16.vlgmr.msra.gmra.mxu1 %v11717_v38  ;;  %v11223_v23 = vld [vmem:[#allocation5 + $0x17ac] sm:$0xf]  ;;  %v9470_v28 = vor.u32 %v11079_v17, %v9467_v21 }
  0xd5   : > { %5743 = vmatpush.bf16.msrb.mxu1 %v9254_v24  ;;  %5712 = vmatmul.bf16.vlgmr.msra.gmra.mxu2 %v11702_v18  ;;  %v10043_v24 = vld [vmem:[#allocation5 + $0x17f0] sm:$0xf0] }
  0xd6   : > { %5756 = vmatpush.bf16.msrb.mxu2 %v9830_v25  ;;  %5725 = vmatmul.bf16.vlgmr.msra.gmra.mxu3 %v11708_v22  ;;  %v11735_v25 = vpop.f32.mrf.mxu0  ;;  %v10046_v33 = vor.u32 %v11223_v23, %v10043_v24 }
  0xd7   : > { %5769 = vmatpush.bf16.msrb.mxu3 %v10406_v29  ;;  %v10773_v29 = vld [vmem:[#allocation5 + $0x99c] sm:$0xf] }
  0xd8   : > { %5731 = vmatpush.bf16.msrb.mxu0 %v8606_v36  ;;  %v11061_v36 = vld [vmem:[#allocation5 + $0x129c] sm:$0xf]  ;;  %v8246_v41 = vor.u32 %v10773_v29, %v8243_v30  ;;  %v7961_v29 = vld [vmem:[#allocation5 + $0x760] sm:$0xf] }
  0xd9   : > { %5744 = vmatpush.bf16.msrb.mxu1 %v9182_v37  ;;  %v9395_v37 = vld [vmem:[#allocation5 + $0x12e0] sm:$0xf0]  ;;  %v11741_v54 = vpop.f32.mrf.mxu3 }
  0xda   : > { %5757 = vmatpush.bf16.msrb.mxu2 %v9758_v39  ;;  %v11205_v39 = vld [vmem:[#allocation5 + $0x171c] sm:$0xf]  ;;  %v9398_v45 = vor.u32 %v11061_v36, %v9395_v37  ;;  %v11739_v53 = vpop.f32.mrf.mxu2  ;;  %v9113_v36 = vld [vmem:[#allocation5 + $0x1060] sm:$0xf]  ;;  %v10999_v37 = vld [vmem:[#allocation5 + $0x10a4] sm:$0xf0] }
  0xdb   : > { %5770 = vmatpush.bf16.msrb.mxu3 %v10334_v43  ;;  %v8171_v43 = vld [vmem:[#allocation5 + $0x950] sm:$0xf0] }
  0xdc   : > { %5732 = vmatpush.bf16.msrb.mxu0 %v8534_v49  ;;  %v9974_v49 = vor.u32 %v11205_v39, %v9971_v40  ;;  %v8174_v59 = vor.u32 %v10755_v42, %v8171_v43  ;;  %v7962_v40 = vor.u32 %v10711_v31, %v7961_v29  ;;  %v7313_v42 = vld [vmem:[#allocation5 + $0x250] sm:$0xf]  ;;  %v10549_v43 = vld [vmem:[#allocation5 + $0x294] sm:$0xf0]  ;;  %v10495_v29 = vld [vmem:[#allocation5 + $0xe4] sm:$0xf0] }
  0xdd   : > { %5745 = vmatpush.bf16.msrb.mxu1 %v9110_v50  ;;  %v9323_v50 = vld [vmem:[#allocation5 + $0x1250] sm:$0xf0] }
  0xde   : > { %5758 = vmatpush.bf16.msrb.mxu2 %v9686_v51  ;;  %v11187_v51 = vld [vmem:[#allocation5 + $0x168c] sm:$0xf]  ;;  %v5481_v58 = vpop.f32.mrf.mxu0  ;;  %v9326_v0 = vor.u32 %v11043_v48, %v9323_v50  ;;  %v10837_v48 = vld [vmem:[#allocation5 + $0xb94] sm:$0xf0] }
  0xdf   : > { %5771 = vmatpush.bf16.msrb.mxu3 %v10262_v55  ;;  %v7529_v55 = vld [vmem:[#allocation5 + $0x400] sm:$0xf]  ;;  %v9902_v4 = vor.u32 %v11187_v51, %v9899_v52  ;;  %v10981_v50 = vld [vmem:[#allocation5 + $0x1014] sm:$0xf0]  ;;  %v7314_v52 = vor.u32 %v10549_v43, %v7313_v42  ;;  %v7025_v42 = vld [vmem:[#allocation5 + $0x10] sm:$0xf] }
  0xe0   : > { %5733 = vmatpush.bf16.msrb.mxu0 %v8462_v61  ;;  %v8681_v61 = vld [vmem:[#allocation5 + $0xd00] sm:$0xf]  ;;  %v7530_v5 = vor.u32 %v10603_v56, %v7529_v55  ;;  %v10477_v43 = vld [vmem:[#allocation5 + $0x54] sm:$0xf0] }
  0xe1   : > { %5746 = vmatpush.bf16.msrb.mxu1 %v9038_v62  ;;  %v10891_v62 = vld [vmem:[#allocation5 + $0xd44] sm:$0xf0]  ;;  %v5520_v23 = vpop.f32.mrf.mxu3  ;;  %v7241_v58 = vld [vmem:[#allocation5 + $0x1c0] sm:$0xf] }
  0xe2   : > { %5759 = vmatpush.bf16.msrb.mxu2 %v9614_v63  ;;  %v8750_v63 = vor.u32 %v10899_v46, %v8747_v47  ;;  %v8682_v7 = vor.u32 %v10891_v62, %v8681_v61  ;;  %v5507_v21 = vpop.f32.mrf.mxu2  ;;  %v10693_v46 = vld [vmem:[#allocation5 + $0x714] sm:$0xf0]  ;;  %v8465_v47 = vld [vmem:[#allocation5 + $0xb50] sm:$0xf]  ;;  %v10675_v62 = vld [vmem:[#allocation5 + $0x684] sm:$0xf0] }
  0xe3   : > { %5772 = vmatpush.bf16.msrb.mxu3 %v10190_v3  ;;  %v5494_v3 = vpop.f32.mrf.mxu1  ;;  %v8466_v57 = vor.u32 %v10837_v48, %v8465_v47  ;;  %v11755_v21 = vld [vmem:[#allocation7] sm:$0xff]  ;;  %v10621_v47 = vld [vmem:[#allocation5 + $0x4d4] sm:$0xf0]  ;;  %v8177_v48 = vld [vmem:[#allocation5 + $0x910] sm:$0xf] }
  0xe4   : > { %5734 = vmatpush.bf16.msrb.mxu0 %v8390_v9  ;;  %v10585_v9 = vld [vmem:[#allocation5 + $0x3b4] sm:$0xf0] }
  0xe5   : > { %5747 = vmatpush.bf16.msrb.mxu1 %v8966_v10  ;;  %v8033_v10 = vld [vmem:[#allocation5 + $0x7f0] sm:$0xf]  ;;  %v7458_v17 = vor.u32 %v10585_v9, %v7457_v8 }
  0xe6   : > { %5760 = vmatpush.bf16.msrb.mxu2 %v9542_v11  ;;  %v9258_v11 = vor.u32 %v11035_v2, %v9257_v1  ;;  %v8034_v24 = vor.u32 %v10729_v12, %v8033_v10  ;;  %v8969_v1 = vld [vmem:[#allocation5 + $0xf40] sm:$0xf]  ;;  %v10963_v2 = vld [vmem:[#allocation5 + $0xf84] sm:$0xf0]  ;;  %v7745_v8 = vld [vmem:[#allocation5 + $0x5b0] sm:$0xf] }
  0xe7   : > { %5773 = vmatpush.bf16.msrb.mxu3 %v10118_v15  ;;  %v9185_v15 = vld [vmem:[#allocation5 + $0x10f0] sm:$0xf]  ;;  %v8970_v9 = vor.u32 %v10963_v2, %v8969_v1  ;;  %v10657_v10 = vld [vmem:[#allocation5 + $0x5f4] sm:$0xf0]  ;;  %v7531_v1 = vld [vmem:[#allocation5 + $0x448] sm:$0xf0] }
  0xe8   : > { %5735 = vmatpush.bf16.msrb.mxu0 %v8318_v26  ;;  %v8610_v26 = vor.u32 %v10873_v14, %v8609_v13  ;;  %v9186_v30 = vor.u32 %v11017_v16, %v9185_v15  ;;  %v10801_v12 = vld [vmem:[#allocation5 + $0xa74] sm:$0xf0]  ;;  %v8897_v14 = vld [vmem:[#allocation5 + $0xeb0] sm:$0xf] }
  0xe9   : > { %5748 = vmatpush.bf16.msrb.mxu1 %v8894_v27  ;;  %v7385_v27 = vld [vmem:[#allocation5 + $0x2e0] sm:$0xf]  ;;  %v10945_v15 = vld [vmem:[#allocation5 + $0xef4] sm:$0xf0] }
  0xea   : > { %5761 = vmatpush.bf16.msrb.mxu2 %v9470_v28  ;;  %v10567_v28 = vld [vmem:[#allocation5 + $0x324] sm:$0xf0]  ;;  %v8898_v31 = vor.u32 %v10945_v15, %v8897_v14  ;;  %v11161_v14 = vld [vmem:[#allocation5 + $0x15b4] sm:$0xf0]  ;;  %v10337_v15 = vld [vmem:[#allocation5 + $0x19f0] sm:$0xf] }
  0xeb   : > { %5774 = vmatpush.bf16.msrb.mxu3 %v10046_v33  ;;  %v8537_v33 = vld [vmem:[#allocation5 + $0xbe0] sm:$0xf]  ;;  %v7386_v39 = vor.u32 %v10567_v28, %v7385_v27 }
  0xec   : > { %5736 = vmatpush.bf16.msrb.mxu0 %v8246_v41  ;;  %v8538_v41 = vor.u32 %v10855_v34, %v8537_v33  ;;  %v7097_v28 = vld [vmem:[#allocation5 + $0xa0] sm:$0xf]  ;;  %v10639_v33 = vld [vmem:[#allocation5 + $0x564] sm:$0xf0] }
  0xed   : > { %5749 = vmatpush.bf16.msrb.mxu1 %v8822_v44  ;;  %v7889_v44 = vld [vmem:[#allocation5 + $0x6d0] sm:$0xf]  ;;  %v8249_v34 = vld [vmem:[#allocation5 + $0x9a0] sm:$0xf] }
  0xee   : > { %5762 = vmatpush.bf16.msrb.mxu2 %v9398_v45  ;;  %v9114_v45 = vor.u32 %v10999_v37, %v9113_v36  ;;  %v7890_v56 = vor.u32 %v10693_v46, %v7889_v44  ;;  %v10783_v36 = vld [vmem:[#allocation5 + $0x9e4] sm:$0xf0]  ;;  %v8825_v37 = vld [vmem:[#allocation5 + $0xe20] sm:$0xf]  ;;  %v7601_v46 = vld [vmem:[#allocation5 + $0x490] sm:$0xf] }
  0xef   : > { %5775 = vmatpush.bf16.msrb.mxu3 %v9974_v49  ;;  %v9041_v49 = vld [vmem:[#allocation5 + $0xfd0] sm:$0xf]  ;;  %v7602_v2 = vor.u32 %v10621_v47, %v7601_v46 }
  0xf0   : > { %5737 = vmatpush.bf16.msrb.mxu0 %v8174_v59  ;;  %v11747_v51 = vpop.f32.mrf.mxu0  ;;  %v10531_v59 = vld [vmem:[#allocation5 + $0x204] sm:$0xf0]  ;;  %v9042_v61 = vor.u32 %v10981_v50, %v9041_v49  ;;  %v10765_v50 = vld [vmem:[#allocation5 + $0x954] sm:$0xf0] }
  0xf1   : > { %5750 = vmatpush.bf16.msrb.mxu1 %v8750_v63  ;;  %v11749_v55 = vpop.f32.mrf.mxu1  ;;  %v8393_v63 = vld [vmem:[#allocation5 + $0xac0] sm:$0xf]  ;;  %v7242_v3 = vor.u32 %v10531_v59, %v7241_v58  ;;  %v11179_v59 = vld [vmem:[#allocation5 + $0x1644] sm:$0xf0] }
  0xf2   : > { %5763 = vmatpush.bf16.msrb.mxu2 %v9326_v0  ;;  %v10819_v0 = vld [vmem:[#allocation5 + $0xb04] sm:$0xf0]  ;;  %v9833_v58 = vld [vmem:[#allocation5 + $0x1600] sm:$0xf] }
  0xf3   : > { %5776 = vmatpush.bf16.msrb.mxu3 %v9902_v4  ;;  %5738 = vmatmul.bf16.vlgmr.msrb.gmra.mxu0 %v11704_v19  ;;  %v7818_v4 = vor.u32 %v10675_v62, %v7817_v60  ;;  %v10409_v60 = vld [vmem:[#allocation5 + $0x1a80] sm:$0xf]  ;;  %v7026_v62 = vor.u32 %v10477_v43, %v7025_v42  ;;  %v7387_v42 = vld [vmem:[#allocation5 + $0x328] sm:$0xf0] }
  0xf4   : > { %5782 = vmatpush.bf16.msra.mxu0 %v7530_v5  ;;  %5751 = vmatmul.bf16.vlgmr.msrb.gmra.mxu1 %v11706_v20  ;;  %v8394_v5 = vor.u32 %v10819_v0, %v8393_v63  ;;  %v11323_v63 = vld [vmem:[#allocation5 + $0x1ac4] sm:$0xf0]  ;;  %v10594_v0 = vld [vmem:[#allocation5 + $0x404] sm:$0xf]  ;;  %v7963_v43 = vld [vmem:[#allocation5 + $0x7a8] sm:$0xf0] }
  0xf5   : > { %5795 = vmatpush.bf16.msra.mxu1 %v8106_v6  ;;  %5764 = vmatmul.bf16.vlgmr.msrb.gmra.mxu2 %v11715_v35  ;;  %v7169_v6 = vld [vmem:[#allocation5 + $0x130] sm:$0xf] }
  0xf6   : > { %5808 = vmatpush.bf16.msra.mxu2 %v8682_v7  ;;  %5777 = vmatmul.bf16.vlgmr.msrb.gmra.mxu3 %v11717_v38  ;;  %v10513_v7 = vld [vmem:[#allocation5 + $0x174] sm:$0xf0] }
  0xf7   : > { %5821 = vmatpush.bf16.msra.mxu3 %v9258_v11  ;;  %v8321_v11 = vld [vmem:[#allocation5 + $0xa30] sm:$0xf]  ;;  %v7170_v23 = vor.u32 %v10513_v7, %v7169_v6 }
  0xf8   : > { %5783 = vmatpush.bf16.msra.mxu0 %v7458_v17  ;;  %v11751_v13 = vpop.f32.mrf.mxu2  ;;  %v5533_v17 = vpop.f32.mrf.mxu0  ;;  %v8322_v27 = vor.u32 %v10801_v12, %v8321_v11  ;;  %v7534_v11 = vor.u32 %v10594_v0, %v7531_v1  ;;  %v9761_v12 = vld [vmem:[#allocation5 + $0x1570] sm:$0xf] }
  0xf9   : > { %5796 = vmatpush.bf16.msra.mxu1 %v8034_v24  ;;  %v11753_v16 = vpop.f32.mrf.mxu3  ;;  %v5546_v24 = vpop.f32.mrf.mxu1 }
  0xfa   : > { %5809 = vmatpush.bf16.msra.mxu2 %v8610_v26  ;;  %v7746_v26 = vor.u32 %v10657_v10, %v7745_v8  ;;  %v9834_v8 = vor.u32 %v11179_v59, %v9833_v58  ;;  %v10410_v10 = vor.u32 %v11323_v63, %v10409_v60  ;;  %v10576_v24 = vld [vmem:[#allocation5 + $0x374] sm:$0xf]  ;;  %v7315_v58 = vld [vmem:[#allocation5 + $0x298] sm:$0xf0] }
  0xfb   : > { %5822 = vmatpush.bf16.msra.mxu3 %v9186_v30  ;;  %v7673_v30 = vld [vmem:[#allocation5 + $0x520] sm:$0xf]  ;;  %v10684_v59 = vld [vmem:[#allocation5 + $0x6d4] sm:$0xf] }
  0xfc   : > { %5784 = vmatpush.bf16.msra.mxu0 %v7386_v39  ;;  %v10927_v39 = vld [vmem:[#allocation5 + $0xe64] sm:$0xf0]  ;;  %v7674_v44 = vor.u32 %v10639_v33, %v7673_v30 }
  0xfd   : > { %5797 = vmatpush.bf16.msra.mxu1 %v7962_v40  ;;  %v1093_v40 = vperm.slane %v11755_v21, 0  ;;  %v8826_v49 = vor.u32 %v10927_v39, %v8825_v37  ;;  %v10265_v37 = vld [vmem:[#allocation5 + $0x1960] sm:$0xf] }
  0xfe   : > { %5810 = vmatpush.bf16.msra.mxu2 %v8538_v41  ;;  %v7098_v41 = vor.u32 %v10495_v29, %v7097_v28  ;;  %v8035_v28 = vld [vmem:[#allocation5 + $0x838] sm:$0xf0]  ;;  %v9762_v29 = vor.u32 %v11161_v14, %v9761_v12 }
  0xff   : > { %5823 = vmatpush.bf16.msra.mxu3 %v9114_v45  ;;  %v8250_v45 = vor.u32 %v10783_v36, %v8249_v34  ;;  %v5480_v6 = vadd.f32 %v11735_v25, %v1093_v40  ;;  %v9689_v34 = vld [vmem:[#allocation5 + $0x14e0] sm:$0xf]  ;;  %v11143_v36 = vld [vmem:[#allocation5 + $0x1524] sm:$0xf0] }
 0x100   : > { %5785 = vmatpush.bf16.msra.mxu0 %v7314_v52  ;;  %v8753_v52 = vld [vmem:[#allocation5 + $0xd90] sm:$0xf]  ;;  %v11287_v40 = vld [vmem:[#allocation5 + $0x19a4] sm:$0xf0] }
 0x101   : > { %5798 = vmatpush.bf16.msra.mxu1 %v7890_v56  ;;  %v10909_v56 = vld [vmem:[#allocation5 + $0xdd4] sm:$0xf0]  ;;  %v5493_v25 = vadd.f32 %v11737_v32, %v5480_v6  ;;  %v10702_v32 = vld [vmem:[#allocation5 + $0x764] sm:$0xf]  ;;  %v10266_v46 = vor.u32 %v11287_v40, %v10265_v37  ;;  %v11251_v6 = vld [vmem:[#allocation5 + $0x1884] sm:$0xf0] }
 0x102   : > { %5811 = vmatpush.bf16.msra.mxu2 %v8466_v57  ;;  %v5559_v57 = vpop.f32.mrf.mxu2  ;;  %v8754_v7 = vor.u32 %v10909_v56, %v8753_v52  ;;  %v7966_v52 = vor.u32 %v10702_v32, %v7963_v43  ;;  %v11269_v56 = vld [vmem:[#allocation5 + $0x1914] sm:$0xf0]  ;;  %v11071_v32 = vld [vmem:[#allocation5 + $0x12e4] sm:$0xf0]  ;;  %v9977_v43 = vld [vmem:[#allocation5 + $0x1720] sm:$0xf] }
 0x103   : > { %5824 = vmatpush.bf16.msra.mxu3 %v9042_v61  ;;  %v5572_v61 = vpop.f32.mrf.mxu3  ;;  %v10540_v57 = vld [vmem:[#allocation5 + $0x254] sm:$0xf] }
 0x104   : > { %5786 = vmatpush.bf16.msra.mxu0 %v7242_v3  ;;  %v8178_v3 = vor.u32 %v10765_v50, %v8177_v48  ;;  %v9617_v48 = vld [vmem:[#allocation5 + $0x1450] sm:$0xf]  ;;  %v7318_v63 = vor.u32 %v10540_v57, %v7315_v58 }
 0x105   : > { %5799 = vmatpush.bf16.msra.mxu1 %v7818_v4  ;;  %v10738_v4 = vld [vmem:[#allocation5 + $0x884] sm:$0xf]  ;;  %v10193_v50 = vld [vmem:[#allocation5 + $0x18d0] sm:$0xf] }
 0x106   : > { %5812 = vmatpush.bf16.msra.mxu2 %v8394_v5  ;;  %v8107_v5 = vld [vmem:[#allocation5 + $0x8c8] sm:$0xf0] }
 0x107   : > { %5825 = vmatpush.bf16.msra.mxu3 %v8970_v9  ;;  %v1094_v9 = vperm.slane %v11755_v21, 1  ;;  %v8110_v17 = vor.u32 %v10738_v4, %v8107_v5  ;;  %v10121_v4 = vld [vmem:[#allocation5 + $0x1840] sm:$0xf] }
 0x108   : > { %5787 = vmatpush.bf16.msra.mxu0 %v7170_v23  ;;  %v11305_v23 = vld [vmem:[#allocation5 + $0x1a34] sm:$0xf0]  ;;  %v10122_v14 = vor.u32 %v11251_v6, %v10121_v4  ;;  %v11026_v4 = vld [vmem:[#allocation5 + $0x1184] sm:$0xf]  ;;  %v9259_v6 = vld [vmem:[#allocation5 + $0x11c8] sm:$0xf0] }
 0x109   : > { %5800 = vmatpush.bf16.msra.mxu1 %v7746_v26  ;;  %v7459_v26 = vld [vmem:[#allocation5 + $0x3b8] sm:$0xf0]  ;;  %v5558_v30 = vadd.f32 %v11751_v13, %v1094_v9  ;;  %v5506_v13 = vadd.f32 %v11739_v53, %v5493_v25 }
 0x10a   : > { %5813 = vmatpush.bf16.msra.mxu2 %v8322_v27  ;;  %v10720_v27 = vld [vmem:[#allocation5 + $0x7f4] sm:$0xf]  ;;  %v7462_v33 = vor.u32 %v10576_v24, %v7459_v26  ;;  %v7891_v53 = vld [vmem:[#allocation5 + $0x718] sm:$0xf0]  ;;  %v11089_v24 = vld [vmem:[#allocation5 + $0x1374] sm:$0xf0] }
 0x10b   : > { %5826 = vmatpush.bf16.msra.mxu3 %v8898_v31  ;;  %v10338_v31 = vor.u32 %v11305_v23, %v10337_v15  ;;  %v8038_v39 = vor.u32 %v10720_v27, %v8035_v28  ;;  %v5519_v60 = vadd.f32 %v11741_v54, %v5506_v13  ;;  %v7894_v5 = vor.u32 %v10684_v59, %v7891_v53  ;;  %v10666_v54 = vld [vmem:[#allocation5 + $0x644] sm:$0xf]  ;;  %v9473_v23 = vld [vmem:[#allocation5 + $0x1330] sm:$0xf]  ;;  %v11197_v53 = vld [vmem:[#allocation5 + $0x16d4] sm:$0xf0] }
 0x10c   : > { %5788 = vmatpush.bf16.msra.mxu0 %v7098_v41  ;;  %v10558_v41 = vld [vmem:[#allocation5 + $0x2e4] sm:$0xf]  ;;  %v10049_v26 = vld [vmem:[#allocation5 + $0x17b0] sm:$0xf]  ;;  %v9474_v37 = vor.u32 %v11089_v24, %v9473_v23  ;;  %v10864_v23 = vld [vmem:[#allocation5 + $0xc74] sm:$0xf] }
 0x10d   : > { %5801 = vmatpush.bf16.msra.mxu1 %v7674_v44  ;;  %v9690_v44 = vor.u32 %v11143_v36, %v9689_v34  ;;  %v7390_v47 = vor.u32 %v10558_v41, %v7387_v42  ;;  %v9401_v42 = vld [vmem:[#allocation5 + $0x12a0] sm:$0xf]  ;;  %v9905_v59 = vld [vmem:[#allocation5 + $0x1690] sm:$0xf]  ;;  %v8611_v24 = vld [vmem:[#allocation5 + $0xcb8] sm:$0xf0] }
 0x10e   : > { %5814 = vmatpush.bf16.msra.mxu2 %v8250_v45  ;;  %v5571_v45 = vadd.f32 %v11753_v16, %v5558_v30  ;;  %v10194_v16 = vor.u32 %v11269_v56, %v10193_v50  ;;  %v10504_v30 = vld [vmem:[#allocation5 + $0x134] sm:$0xf]  ;;  %v9402_v50 = vor.u32 %v11071_v32, %v9401_v42  ;;  %v11053_v56 = vld [vmem:[#allocation5 + $0x1254] sm:$0xf0]  ;;  %v11134_v42 = vld [vmem:[#allocation5 + $0x14e4] sm:$0xf] }
 0x10f   : > { %5827 = vmatpush.bf16.msra.mxu3 %v8826_v49  ;;  %v11125_v49 = vld [vmem:[#allocation5 + $0x1494] sm:$0xf0]  ;;  %v9691_v32 = vld [vmem:[#allocation5 + $0x1528] sm:$0xf0] }
 0x110   : > { %5789 = vmatpush.bf16.msra.mxu0 %v7026_v62  ;;  %v9618_v61 = vor.u32 %v11125_v49, %v9617_v48  ;;  %v5583_v62 = vpop.f32.mrf.mxu0  ;;  %v7099_v48 = vld [vmem:[#allocation5 + $0xe8] sm:$0xf0] }
 0x111   : > { %5802 = vmatpush.bf16.msra.mxu1 %v7602_v2  ;;  %v5584_v0 = vadd.f32 %v5583_v62, %v5571_v45  ;;  %v5596_v1 = vpop.f32.mrf.mxu1  ;;  %v9545_v2 = vld [vmem:[#allocation5 + $0x13c0] sm:$0xf]  ;;  %v7675_v49 = vld [vmem:[#allocation5 + $0x568] sm:$0xf0] }
 0x112   : > { %5815 = vmatpush.bf16.msra.mxu2 %v8178_v3  ;;  %v11107_v3 = vld [vmem:[#allocation5 + $0x1404] sm:$0xf0] }
 0x113   : > { %5828 = vmatpush.bf16.msra.mxu3 %v8754_v7  ;;  %5790 = vmatmul.bf16.vlgmr.msra.gmra.mxu0 %v11702_v18  ;;  %v10522_v7 = vld [vmem:[#allocation5 + $0x1c4] sm:$0xf]  ;;  %v5597_v9 = vadd.f32 %v5596_v1, %v5584_v0  ;;  %v9546_v12 = vor.u32 %v11107_v3, %v9545_v2  ;;  %v7603_v0 = vld [vmem:[#allocation5 + $0x4d8] sm:$0xf0]  ;;  %v8683_v3 = vld [vmem:[#allocation5 + $0xd48] sm:$0xf0] }
 0x114   : > { %5834 = vmatpush.bf16.msrb.mxu0 %v9834_v8  ;;  %5803 = vmatmul.bf16.vlgmr.msra.gmra.mxu1 %v11708_v22  ;;  %v7243_v8 = vld [vmem:[#allocation5 + $0x208] sm:$0xf0]  ;;  %v10882_v2 = vld [vmem:[#allocation5 + $0xd04] sm:$0xf] }
 0x115   : > { %5847 = vmatpush.bf16.msrb.mxu1 %v10410_v10  ;;  %5816 = vmatmul.bf16.vlgmr.msra.gmra.mxu2 %v11704_v19  ;;  %v7819_v10 = vld [vmem:[#allocation5 + $0x688] sm:$0xf0]  ;;  %v7246_v15 = vor.u32 %v10522_v7, %v7243_v8  ;;  %v11170_v7 = vld [vmem:[#allocation5 + $0x1604] sm:$0xf] }
 0x116   : > { %5860 = vmatpush.bf16.msrb.mxu2 %v7534_v11  ;;  %5829 = vmatmul.bf16.vlgmr.msra.gmra.mxu3 %v11706_v20  ;;  %v5532_v11 = vadd.f32 %v11747_v51, %v5519_v60  ;;  %v7822_v27 = vor.u32 %v10666_v54, %v7819_v10  ;;  %v7747_v51 = vld [vmem:[#allocation5 + $0x5f8] sm:$0xf0]  ;;  %v10468_v60 = vld [vmem:[#allocation5 + $0x14] sm:$0xf]  ;;  %v9835_v8 = vld [vmem:[#allocation5 + $0x1648] sm:$0xf0] }
 0x117   : > { %5873 = vmatpush.bf16.msrb.mxu3 %v8110_v17  ;;  %v11314_v10 = vld [vmem:[#allocation5 + $0x1a84] sm:$0xf] }
 0x118   : > { %5835 = vmatpush.bf16.msrb.mxu0 %v9762_v29  ;;  %v5609_v17 = vpop.f32.mrf.mxu2  ;;  %v11233_v29 = vld [vmem:[#allocation5 + $0x17f4] sm:$0xf0]  ;;  %v5545_v34 = vadd.f32 %v11749_v55, %v5532_v11  ;;  %v10630_v55 = vld [vmem:[#allocation5 + $0x524] sm:$0xf]  ;;  %v10411_v11 = vld [vmem:[#allocation5 + $0x1ac8] sm:$0xf0] }
 0x119   : > { %5848 = vmatpush.bf16.msrb.mxu1 %v10338_v31  ;;  %v5610_v28 = vadd.f32 %v5609_v17, %v5597_v9  ;;  %v5622_v25 = vpop.f32.mrf.mxu3  ;;  %v7171_v31 = vld [vmem:[#allocation5 + $0x178] sm:$0xf0]  ;;  %v10050_v40 = vor.u32 %v11233_v29, %v10049_v26  ;;  %v5598_v13 = vpop.f32.mrf.mxu1  ;;  %v7678_v62 = vor.u32 %v10630_v55, %v7675_v49  ;;  %v9906_v9 = vor.u32 %v11197_v53, %v9905_v59  ;;  %v11008_v26 = vld [vmem:[#allocation5 + $0x10f4] sm:$0xf] }
 0x11a   : > { %5861 = vmatpush.bf16.msrb.mxu2 %v7462_v33  ;;  %v10648_v33 = vld [vmem:[#allocation5 + $0x5b4] sm:$0xf]  ;;  %v7174_v41 = vor.u32 %v10504_v30, %v7171_v31  ;;  %v9838_v17 = vor.u32 %v11170_v7, %v9835_v8  ;;  %v9763_v29 = vld [vmem:[#allocation5 + $0x15b8] sm:$0xf0]  ;;  %v10267_v13 = vld [vmem:[#allocation5 + $0x19a8] sm:$0xf0] }
 0x11b   : > { %5874 = vmatpush.bf16.msrb.mxu3 %v8038_v39  ;;  %v5623_v36 = vadd.f32 %v5622_v25, %v5610_v28  ;;  %v5585_v39 = vpop.f32.mrf.mxu0  ;;  %v7750_v45 = vor.u32 %v10648_v33, %v7747_v51  ;;  %v9187_v28 = vld [vmem:[#allocation5 + $0x1138] sm:$0xf0]  ;;  %v11152_v25 = vld [vmem:[#allocation5 + $0x1574] sm:$0xf]  ;;  %v8614_v33 = vor.u32 %v10864_v23, %v8611_v24 }
 0x11c   : > { %5836 = vmatpush.bf16.msrb.mxu0 %v9690_v44  ;;  %v11296_v30 = vld [vmem:[#allocation5 + $0x19f4] sm:$0xf]  ;;  %v10339_v31 = vld [vmem:[#allocation5 + $0x1a38] sm:$0xf0]  ;;  %v9190_v51 = vor.u32 %v11008_v26, %v9187_v28  ;;  %v10990_v39 = vld [vmem:[#allocation5 + $0x1064] sm:$0xf] }
 0x11d   : > { %5849 = vmatpush.bf16.msrb.mxu1 %v10266_v46  ;;  %v6874_v44 = vpack.c.bf16 %v5623_v36, %v5545_v34  ;;  %v11215_v46 = vld [vmem:[#allocation5 + $0x1764] sm:$0xf0]  ;;  %v9766_v34 = vor.u32 %v11152_v25, %v9763_v29  ;;  %v10846_v36 = vld [vmem:[#allocation5 + $0xbe4] sm:$0xf]  ;;  %v10972_v55 = vld [vmem:[#allocation5 + $0xfd4] sm:$0xf] }
 0x11e   : > { %5862 = vmatpush.bf16.msrb.mxu2 %v7390_v47  ;;  %v10486_v47 = vld [vmem:[#allocation5 + $0xa4] sm:$0xf]  ;;  %v9978_v57 = vor.u32 %v11215_v46, %v9977_v43  ;;  %v9694_v46 = vor.u32 %v11134_v42, %v9691_v32  ;;  %v11224_v26 = vld [vmem:[#allocation5 + $0x17b4] sm:$0xf]  ;;  %v9979_v42 = vld [vmem:[#allocation5 + $0x1768] sm:$0xf0] }
 0x11f   : > { %5875 = vmatpush.bf16.msrb.mxu3 %v7966_v52  ;;  %6883 = vst [vmem:[%s11774_s8] sm:$0xff] %v6874_v44  ;;  %v9329_v52 = vld [vmem:[#allocation5 + $0x1210] sm:$0xf]  ;;  %v7102_v58 = vor.u32 %v10486_v47, %v7099_v48  ;;  %v11278_v43 = vld [vmem:[#allocation5 + $0x1964] sm:$0xf]  ;;  %v10828_v47 = vld [vmem:[#allocation5 + $0xb54] sm:$0xf] }
 0x120   : > { %5837 = vmatpush.bf16.msrb.mxu0 %v9618_v61  ;;  %v5611_v61 = vpop.f32.mrf.mxu2  ;;  %v8467_v48 = vld [vmem:[#allocation5 + $0xb98] sm:$0xf0]  ;;  %v10270_v49 = vor.u32 %v11278_v43, %v10267_v13  ;;  %v10756_v43 = vld [vmem:[#allocation5 + $0x914] sm:$0xf] }
 0x121   : > { %5850 = vmatpush.bf16.msrb.mxu1 %v10194_v16  ;;  %v7027_v16 = vld [vmem:[#allocation5 + $0x58] sm:$0xf0]  ;;  %v5624_v1 = vpop.f32.mrf.mxu3  ;;  %v8470_v53 = vor.u32 %v10828_v47, %v8467_v48  ;;  %v11044_v48 = vld [vmem:[#allocation5 + $0x1214] sm:$0xf] }
 0x122   : > { %5863 = vmatpush.bf16.msrb.mxu2 %v7318_v63  ;;  %v10612_v63 = vld [vmem:[#allocation5 + $0x494] sm:$0xf]  ;;  %v7030_v54 = vor.u32 %v10468_v60, %v7027_v16  ;;  %v8395_v16 = vld [vmem:[#allocation5 + $0xb08] sm:$0xf0]  ;;  %v8179_v13 = vld [vmem:[#allocation5 + $0x958] sm:$0xf0] }
 0x123   : > { %5876 = vmatpush.bf16.msrb.mxu3 %v7894_v5  ;;  %v9330_v5 = vor.u32 %v11053_v56, %v9329_v52  ;;  %v11116_v52 = vld [vmem:[#allocation5 + $0x1454] sm:$0xf]  ;;  %v9619_v56 = vld [vmem:[#allocation5 + $0x1498] sm:$0xf0] }
 0x124   : > { %5838 = vmatpush.bf16.msrb.mxu0 %v9546_v12  ;;  %v7606_v12 = vor.u32 %v10612_v63, %v7603_v0  ;;  %v9622_v61 = vor.u32 %v11116_v52, %v9619_v56  ;;  %v10954_v63 = vld [vmem:[#allocation5 + $0xf44] sm:$0xf]  ;;  %v8755_v47 = vld [vmem:[#allocation5 + $0xdd8] sm:$0xf0] }
 0x125   : > { %5851 = vmatpush.bf16.msrb.mxu1 %v10122_v14  ;;  %v8686_v14 = vor.u32 %v10882_v2, %v8683_v3  ;;  %v8971_v2 = vld [vmem:[#allocation5 + $0xf88] sm:$0xf0]  ;;  %v11098_v3 = vld [vmem:[#allocation5 + $0x13c4] sm:$0xf]  ;;  %v9907_v52 = vld [vmem:[#allocation5 + $0x16d8] sm:$0xf0] }
 0x126   : > { %5864 = vmatpush.bf16.msrb.mxu2 %v7246_v15  ;;  %v9262_v15 = vor.u32 %v11026_v4, %v9259_v6  ;;  %v9547_v4 = vld [vmem:[#allocation5 + $0x1408] sm:$0xf0]  ;;  %v8974_v8 = vor.u32 %v10954_v63, %v8971_v2  ;;  %v10892_v63 = vld [vmem:[#allocation5 + $0xd4c] sm:$0xf0] }
 0x127   : > { %5877 = vmatpush.bf16.msrb.mxu3 %v7822_v27  ;;  %v10414_v27 = vor.u32 %v11314_v10, %v10411_v11  ;;  %v10123_v6 = vld [vmem:[#allocation5 + $0x1888] sm:$0xf0]  ;;  %v8323_v10 = vld [vmem:[#allocation5 + $0xa78] sm:$0xf0]  ;;  %v10936_v11 = vld [vmem:[#allocation5 + $0xeb4] sm:$0xf] }
 0x128   : > { %5839 = vmatpush.bf16.msrb.mxu0 %v9474_v37  ;;  %v8539_v37 = vld [vmem:[#allocation5 + $0xc28] sm:$0xf0] }
 0x129   : > { %5852 = vmatpush.bf16.msrb.mxu1 %v10050_v40  ;;  %v10342_v40 = vor.u32 %v11296_v30, %v10339_v31  ;;  %v8542_v44 = vor.u32 %v10846_v36, %v8539_v37  ;;  %v10774_v31 = vld [vmem:[#allocation5 + $0x9a4] sm:$0xf]  ;;  %v8827_v37 = vld [vmem:[#allocation5 + $0xe68] sm:$0xf0] }
 0x12a   : > { %5865 = vmatpush.bf16.msrb.mxu2 %v7174_v41  ;;  %v9115_v41 = vld [vmem:[#allocation5 + $0x10a8] sm:$0xf0] }
 0x12b   : > { %5878 = vmatpush.bf16.msrb.mxu3 %v7750_v45  ;;  %v9118_v45 = vor.u32 %v10990_v39, %v9115_v41  ;;  %v11062_v39 = vld [vmem:[#allocation5 + $0x12a4] sm:$0xf] }
 0x12c   : > { %5840 = vmatpush.bf16.msrb.mxu0 %v9402_v50  ;;  %v9043_v50 = vld [vmem:[#allocation5 + $0x1018] sm:$0xf0]  ;;  %v11206_v41 = vld [vmem:[#allocation5 + $0x1724] sm:$0xf] }
 0x12d   : > { %5853 = vmatpush.bf16.msrb.mxu1 %v9978_v57  ;;  %v11260_v57 = vld [vmem:[#allocation5 + $0x18d4] sm:$0xf]  ;;  %v9046_v60 = vor.u32 %v10972_v55, %v9043_v50  ;;  %v9982_v55 = vor.u32 %v11206_v41, %v9979_v42 }
 0x12e   : > { %5866 = vmatpush.bf16.msrb.mxu2 %v7102_v58  ;;  %v10195_v58 = vld [vmem:[#allocation5 + $0x1918] sm:$0xf0]  ;;  %v11188_v50 = vld [vmem:[#allocation5 + $0x1694] sm:$0xf] }
 0x12f   : > { %5879 = vmatpush.bf16.msrb.mxu3 %v7678_v62  ;;  %v10810_v62 = vld [vmem:[#allocation5 + $0xac4] sm:$0xf]  ;;  %v10198_v1 = vor.u32 %v11260_v57, %v10195_v58  ;;  %v7537_v58 = vld [vmem:[#allocation5 + $0x408] sm:$0xf] }
 0x130   : > { %5841 = vmatpush.bf16.msrb.mxu0 %v9330_v5  ;;  %v11781_v59 = vpop.f32.mrf.mxu0  ;;  %v11242_v5 = vld [vmem:[#allocation5 + $0x1844] sm:$0xf]  ;;  %v8398_v7 = vor.u32 %v10810_v62, %v8395_v16  ;;  %v10748_v62 = vld [vmem:[#allocation5 + $0x8cc] sm:$0xf0]  ;;  %v8689_v16 = vld [vmem:[#allocation5 + $0xd08] sm:$0xf] }
 0x131   : > { %5854 = vmatpush.bf16.msrb.mxu1 %v9906_v9  ;;  %v11783_v0 = vpop.f32.mrf.mxu1  ;;  %v9550_v9 = vor.u32 %v11098_v3, %v9547_v4  ;;  %v9265_v3 = vld [vmem:[#allocation5 + $0x1188] sm:$0xf]  ;;  %v11036_v4 = vld [vmem:[#allocation5 + $0x11cc] sm:$0xf0] }
 0x132   : > { %5867 = vmatpush.bf16.msrb.mxu2 %v7030_v54  ;;  %v10792_v54 = vld [vmem:[#allocation5 + $0xa34] sm:$0xf] }
 0x133   : > { %5880 = vmatpush.bf16.msrb.mxu3 %v7606_v12  ;;  %5842 = vmatmul.bf16.vlgmr.msrb.gmra.mxu0 %v11715_v35  ;;  %v10126_v12 = vor.u32 %v11242_v5, %v10123_v6  ;;  %v8326_v25 = vor.u32 %v10792_v54, %v8323_v10  ;;  %v9910_v5 = vor.u32 %v11188_v50, %v9907_v52  ;;  %v10586_v54 = vld [vmem:[#allocation5 + $0x3bc] sm:$0xf0]  ;;  %v8041_v10 = vld [vmem:[#allocation5 + $0x7f8] sm:$0xf] }
 0x134   : > { %5886 = vmatpush.bf16.msra.mxu0 %v8686_v14  ;;  %5855 = vmatmul.bf16.vlgmr.msrb.gmra.mxu1 %v11717_v38  ;;  %v8899_v14 = vld [vmem:[#allocation5 + $0xef8] sm:$0xf0] }
 0x135   : > { %5899 = vmatpush.bf16.msra.mxu1 %v9262_v15  ;;  %5868 = vmatmul.bf16.vlgmr.msrb.gmra.mxu2 %v11702_v18  ;;  %v11080_v15 = vld [vmem:[#allocation5 + $0x1334] sm:$0xf]  ;;  %v8902_v29 = vor.u32 %v10936_v11, %v8899_v14  ;;  %v9266_v11 = vor.u32 %v11036_v4, %v9265_v3  ;;  %v8617_v14 = vld [vmem:[#allocation5 + $0xc78] sm:$0xf] }
 0x136   : > { %5912 = vmatpush.bf16.msra.mxu2 %v9838_v17  ;;  %5881 = vmatmul.bf16.vlgmr.msrb.gmra.mxu3 %v11708_v22  ;;  %v9475_v17 = vld [vmem:[#allocation5 + $0x1378] sm:$0xf0] }
 0x137   : > { %5925 = vmatpush.bf16.msra.mxu3 %v10414_v27  ;;  %v10051_v27 = vld [vmem:[#allocation5 + $0x17f8] sm:$0xf0]  ;;  %v9478_v30 = vor.u32 %v11080_v15, %v9475_v17  ;;  %v10874_v15 = vld [vmem:[#allocation5 + $0xcbc] sm:$0xf0]  ;;  %v9193_v17 = vld [vmem:[#allocation5 + $0x10f8] sm:$0xf] }
 0x138   : > { %5887 = vmatpush.bf16.msra.mxu0 %v8614_v33  ;;  %v11785_v23 = vpop.f32.mrf.mxu2  ;;  %v5637_v28 = vpop.f32.mrf.mxu0  ;;  %v8251_v33 = vld [vmem:[#allocation5 + $0x9e8] sm:$0xf0]  ;;  %v10054_v36 = vor.u32 %v11224_v26, %v10051_v27  ;;  %v11018_v26 = vld [vmem:[#allocation5 + $0x113c] sm:$0xf0] }
 0x139   : > { %5900 = vmatpush.bf16.msra.mxu1 %v9190_v51  ;;  %v11787_v24 = vpop.f32.mrf.mxu3  ;;  %v10918_v51 = vld [vmem:[#allocation5 + $0xe24] sm:$0xf]  ;;  %v8254_v32 = vor.u32 %v10774_v31, %v8251_v33  ;;  %v7969_v31 = vld [vmem:[#allocation5 + $0x768] sm:$0xf]  ;;  %v9194_v33 = vor.u32 %v11018_v26, %v9193_v17 }
 0x13a   : > { %5913 = vmatpush.bf16.msra.mxu2 %v9766_v34  ;;  %v5650_v34 = vpop.f32.mrf.mxu1 }
 0x13b   : > { %5926 = vmatpush.bf16.msra.mxu3 %v10342_v40  ;;  %v9403_v40 = vld [vmem:[#allocation5 + $0x12e8] sm:$0xf0]  ;;  %v8545_v34 = vld [vmem:[#allocation5 + $0xbe8] sm:$0xf] }
 0x13c   : > { %5888 = vmatpush.bf16.msra.mxu0 %v8542_v44  ;;  %v8830_v44 = vor.u32 %v10918_v51, %v8827_v37  ;;  %v10712_v51 = vld [vmem:[#allocation5 + $0x7ac] sm:$0xf0]  ;;  %v9121_v37 = vld [vmem:[#allocation5 + $0x1068] sm:$0xf] }
 0x13d   : > { %5901 = vmatpush.bf16.msra.mxu1 %v9118_v45  ;;  %v9406_v45 = vor.u32 %v11062_v39, %v9403_v40  ;;  %v11000_v39 = vld [vmem:[#allocation5 + $0x10ac] sm:$0xf0]  ;;  %v7970_v41 = vor.u32 %v10712_v51, %v7969_v31 }
 0x13e   : > { %5914 = vmatpush.bf16.msra.mxu2 %v9694_v46  ;;  %v10900_v46 = vld [vmem:[#allocation5 + $0xd94] sm:$0xf]  ;;  %v10496_v31 = vld [vmem:[#allocation5 + $0xec] sm:$0xf0] }
 0x13f   : > { %5927 = vmatpush.bf16.msra.mxu3 %v10270_v49  ;;  %v9331_v49 = vld [vmem:[#allocation5 + $0x1258] sm:$0xf0] }
 0x140   : > { %5889 = vmatpush.bf16.msra.mxu0 %v8470_v53  ;;  %v5663_v56 = vpop.f32.mrf.mxu2  ;;  %v10604_v53 = vld [vmem:[#allocation5 + $0x44c] sm:$0xf0]  ;;  %v9334_v2 = vor.u32 %v11044_v48, %v9331_v49  ;;  %v9049_v48 = vld [vmem:[#allocation5 + $0xfd8] sm:$0xf] }
 0x141   : > { %5902 = vmatpush.bf16.msra.mxu1 %v9046_v60  ;;  %v5676_v57 = vpop.f32.mrf.mxu3  ;;  %v8113_v60 = vld [vmem:[#allocation5 + $0x888] sm:$0xf]  ;;  %v7538_v6 = vor.u32 %v10604_v53, %v7537_v58  ;;  %v10532_v53 = vld [vmem:[#allocation5 + $0x20c] sm:$0xf0] }
 0x142   : > { %5915 = vmatpush.bf16.msra.mxu2 %v9622_v61  ;;  %v8182_v61 = vor.u32 %v10756_v43, %v8179_v13  ;;  %v10550_v43 = vld [vmem:[#allocation5 + $0x29c] sm:$0xf0]  ;;  %v7897_v13 = vld [vmem:[#allocation5 + $0x6d8] sm:$0xf]  ;;  %v7249_v58 = vld [vmem:[#allocation5 + $0x1c8] sm:$0xf] }
 0x143   : > { %5928 = vmatpush.bf16.msra.mxu3 %v10198_v1  ;;  %v8758_v1 = vor.u32 %v10900_v46, %v8755_v47  ;;  %v8473_v46 = vld [vmem:[#allocation5 + $0xb58] sm:$0xf]  ;;  %v10838_v47 = vld [vmem:[#allocation5 + $0xb9c] sm:$0xf0]  ;;  %v7250_v3 = vor.u32 %v10532_v53, %v7249_v58  ;;  %v9841_v58 = vld [vmem:[#allocation5 + $0x1608] sm:$0xf] }
 0x144   : > { %5890 = vmatpush.bf16.msra.mxu0 %v8398_v7  ;;  %v8114_v7 = vor.u32 %v10748_v62, %v8113_v60  ;;  %v8474_v57 = vor.u32 %v10838_v47, %v8473_v46  ;;  %v7825_v60 = vld [vmem:[#allocation5 + $0x648] sm:$0xf]  ;;  %v10676_v62 = vld [vmem:[#allocation5 + $0x68c] sm:$0xf0]  ;;  %v10622_v46 = vld [vmem:[#allocation5 + $0x4dc] sm:$0xf0] }
 0x145   : > { %5903 = vmatpush.bf16.msra.mxu1 %v8974_v8  ;;  %v8690_v8 = vor.u32 %v10892_v63, %v8689_v16  ;;  %v8401_v16 = vld [vmem:[#allocation5 + $0xac8] sm:$0xf]  ;;  %v10820_v63 = vld [vmem:[#allocation5 + $0xb0c] sm:$0xf0]  ;;  %v7826_v4 = vor.u32 %v10676_v62, %v7825_v60  ;;  %v8185_v47 = vld [vmem:[#allocation5 + $0x918] sm:$0xf] }
 0x146   : > { %5916 = vmatpush.bf16.msra.mxu2 %v9550_v9  ;;  %v7465_v9 = vld [vmem:[#allocation5 + $0x378] sm:$0xf]  ;;  %v11180_v53 = vld [vmem:[#allocation5 + $0x164c] sm:$0xf0]  ;;  %v10417_v60 = vld [vmem:[#allocation5 + $0x1a88] sm:$0xf] }
 0x147   : > { %5929 = vmatpush.bf16.msra.mxu3 %v10126_v12  ;;  %v10730_v12 = vld [vmem:[#allocation5 + $0x83c] sm:$0xf0]  ;;  %v7466_v27 = vor.u32 %v10586_v54, %v7465_v9 }
 0x148   : > { %5891 = vmatpush.bf16.msra.mxu0 %v8326_v25  ;;  %v8042_v28 = vor.u32 %v10730_v12, %v8041_v10  ;;  %v8618_v25 = vor.u32 %v10874_v15, %v8617_v14  ;;  %v10658_v54 = vld [vmem:[#allocation5 + $0x5fc] sm:$0xf0]  ;;  %v8329_v10 = vld [vmem:[#allocation5 + $0xa38] sm:$0xf] }
 0x149   : > { %5904 = vmatpush.bf16.msra.mxu1 %v8902_v29  ;;  %v7393_v29 = vld [vmem:[#allocation5 + $0x2e8] sm:$0xf]  ;;  %v8905_v14 = vld [vmem:[#allocation5 + $0xeb8] sm:$0xf]  ;;  %v10946_v15 = vld [vmem:[#allocation5 + $0xefc] sm:$0xf0] }
 0x14a   : > { %5917 = vmatpush.bf16.msra.mxu2 %v9478_v30  ;;  %v10568_v30 = vld [vmem:[#allocation5 + $0x32c] sm:$0xf0]  ;;  %v8906_v51 = vor.u32 %v10946_v15, %v8905_v14  ;;  %v11162_v14 = vld [vmem:[#allocation5 + $0x15bc] sm:$0xf0]  ;;  %v10345_v15 = vld [vmem:[#allocation5 + $0x19f8] sm:$0xf] }
 0x14b   : > { %5930 = vmatpush.bf16.msra.mxu3 %v10054_v36  ;;  %v10856_v36 = vld [vmem:[#allocation5 + $0xc2c] sm:$0xf0]  ;;  %v7394_v40 = vor.u32 %v10568_v30, %v7393_v29  ;;  %v7105_v30 = vld [vmem:[#allocation5 + $0xa8] sm:$0xf] }
 0x14c   : > { %5892 = vmatpush.bf16.msra.mxu0 %v8254_v32  ;;  %v8546_v42 = vor.u32 %v10856_v36, %v8545_v34  ;;  %v7321_v32 = vld [vmem:[#allocation5 + $0x258] sm:$0xf]  ;;  %v10640_v34 = vld [vmem:[#allocation5 + $0x56c] sm:$0xf0]  ;;  %v8257_v36 = vld [vmem:[#allocation5 + $0x9a8] sm:$0xf] }
 0x14d   : > { %5905 = vmatpush.bf16.msra.mxu1 %v8830_v44  ;;  %v9122_v44 = vor.u32 %v11000_v39, %v9121_v37  ;;  %v7322_v50 = vor.u32 %v10550_v43, %v7321_v32  ;;  %v10784_v37 = vld [vmem:[#allocation5 + $0x9ec] sm:$0xf0]  ;;  %v8833_v39 = vld [vmem:[#allocation5 + $0xe28] sm:$0xf]  ;;  %v7033_v32 = vld [vmem:[#allocation5 + $0x18] sm:$0xf] }
 0x14e   : > { %5918 = vmatpush.bf16.msra.mxu2 %v9406_v45  ;;  %v10694_v45 = vld [vmem:[#allocation5 + $0x71c] sm:$0xf0] }
 0x14f   : > { %5931 = vmatpush.bf16.msra.mxu3 %v9982_v55  ;;  %v10982_v55 = vld [vmem:[#allocation5 + $0x101c] sm:$0xf0]  ;;  %v7898_v56 = vor.u32 %v10694_v45, %v7897_v13  ;;  %v7609_v45 = vld [vmem:[#allocation5 + $0x498] sm:$0xf] }
 0x150   : > { %5893 = vmatpush.bf16.msra.mxu0 %v8182_v61  ;;  %v11793_v49 = vpop.f32.mrf.mxu0  ;;  %v9050_v61 = vor.u32 %v10982_v55, %v9049_v48  ;;  %v10478_v43 = vld [vmem:[#allocation5 + $0x5c] sm:$0xf0] }
 0x151   : > { %5906 = vmatpush.bf16.msra.mxu1 %v8758_v1  ;;  %v11795_v52 = vpop.f32.mrf.mxu1  ;;  %v8977_v1 = vld [vmem:[#allocation5 + $0xf48] sm:$0xf]  ;;  %v10766_v55 = vld [vmem:[#allocation5 + $0x95c] sm:$0xf0]  ;;  %v7034_v62 = vor.u32 %v10478_v43, %v7033_v32  ;;  %v7971_v32 = vld [vmem:[#allocation5 + $0x7b0] sm:$0xf0] }
 0x152   : > { %5919 = vmatpush.bf16.msra.mxu2 %v9334_v2  ;;  %v10964_v2 = vld [vmem:[#allocation5 + $0xf8c] sm:$0xf0] }
 0x153   : > { %5932 = vmatpush.bf16.msra.mxu3 %v9910_v5  ;;  %5894 = vmatmul.bf16.vlgmr.msra.gmra.mxu0 %v11704_v19  ;;  %v8402_v5 = vor.u32 %v10820_v63, %v8401_v16  ;;  %v8978_v9 = vor.u32 %v10964_v2, %v8977_v1  ;;  %v11324_v16 = vld [vmem:[#allocation5 + $0x1acc] sm:$0xf0]  ;;  %v10595_v63 = vld [vmem:[#allocation5 + $0x40c] sm:$0xf]  ;;  %v7539_v1 = vld [vmem:[#allocation5 + $0x450] sm:$0xf0]  ;;  %v7610_v2 = vor.u32 %v10622_v46, %v7609_v45 }
 0x154   : > { %5938 = vmatpush.bf16.msrb.mxu0 %v7538_v6  ;;  %5907 = vmatmul.bf16.vlgmr.msra.gmra.mxu1 %v11706_v20  ;;  %v7177_v6 = vld [vmem:[#allocation5 + $0x138] sm:$0xf] }
 0x155   : > { %5951 = vmatpush.bf16.msrb.mxu1 %v8114_v7  ;;  %5920 = vmatmul.bf16.vlgmr.msra.gmra.mxu2 %v11715_v35  ;;  %v10514_v7 = vld [vmem:[#allocation5 + $0x17c] sm:$0xf0]  ;;  %v9625_v46 = vld [vmem:[#allocation5 + $0x1458] sm:$0xf] }
 0x156   : > { %5964 = vmatpush.bf16.msrb.mxu2 %v8690_v8  ;;  %5933 = vmatmul.bf16.vlgmr.msra.gmra.mxu3 %v11717_v38  ;;  %v7753_v8 = vld [vmem:[#allocation5 + $0x5b8] sm:$0xf] }
 0x157   : > { %5977 = vmatpush.bf16.msrb.mxu3 %v9266_v11  ;;  %v10802_v11 = vld [vmem:[#allocation5 + $0xa7c] sm:$0xf0] }
 0x158   : > { %5939 = vmatpush.bf16.msrb.mxu0 %v7466_v27  ;;  %v11797_v12 = vpop.f32.mrf.mxu2  ;;  %v5689_v26 = vpop.f32.mrf.mxu0  ;;  %v7178_v27 = vor.u32 %v10514_v7, %v7177_v6  ;;  %v8330_v29 = vor.u32 %v10802_v11, %v8329_v10  ;;  %v7542_v10 = vor.u32 %v10595_v63, %v7539_v1  ;;  %v9769_v11 = vld [vmem:[#allocation5 + $0x1578] sm:$0xf]  ;;  %v9553_v1 = vld [vmem:[#allocation5 + $0x13c8] sm:$0xf] }
 0x159   : > { %5952 = vmatpush.bf16.msrb.mxu1 %v8042_v28  ;;  %v11799_v17 = vpop.f32.mrf.mxu3  ;;  %v5702_v28 = vpop.f32.mrf.mxu1 }
 0x15a   : > { %5965 = vmatpush.bf16.msrb.mxu2 %v8618_v25  ;;  %v7754_v25 = vor.u32 %v10658_v54, %v7753_v8  ;;  %v9842_v8 = vor.u32 %v11180_v53, %v9841_v58  ;;  %v10418_v54 = vor.u32 %v11324_v16, %v10417_v60  ;;  %v10577_v28 = vld [vmem:[#allocation5 + $0x37c] sm:$0xf] }
 0x15b   : > { %5978 = vmatpush.bf16.msrb.mxu3 %v9194_v33  ;;  %v7681_v33 = vld [vmem:[#allocation5 + $0x528] sm:$0xf]  ;;  %v10685_v58 = vld [vmem:[#allocation5 + $0x6dc] sm:$0xf] }
 0x15c   : > { %5940 = vmatpush.bf16.msrb.mxu0 %v7394_v40  ;;  %v10928_v40 = vld [vmem:[#allocation5 + $0xe6c] sm:$0xf0]  ;;  %v7682_v13 = vor.u32 %v10640_v34, %v7681_v33  ;;  %v9697_v34 = vld [vmem:[#allocation5 + $0x14e8] sm:$0xf] }
 0x15d   : > { %5953 = vmatpush.bf16.msrb.mxu1 %v7970_v41  ;;  %v1095_v41 = vperm.slane %v11755_v21, 2  ;;  %v8834_v48 = vor.u32 %v10928_v40, %v8833_v39  ;;  %v11288_v40 = vld [vmem:[#allocation5 + $0x19ac] sm:$0xf0] }
 0x15e   : > { %5966 = vmatpush.bf16.msrb.mxu2 %v8546_v42  ;;  %v7106_v42 = vor.u32 %v10496_v31, %v7105_v30  ;;  %v8043_v30 = vld [vmem:[#allocation5 + $0x840] sm:$0xf0]  ;;  %v9770_v31 = vor.u32 %v11162_v14, %v9769_v11 }
 0x15f   : > { %5979 = vmatpush.bf16.msrb.mxu3 %v9122_v44  ;;  %v8258_v44 = vor.u32 %v10784_v37, %v8257_v36  ;;  %v5636_v6 = vadd.f32 %v11781_v59, %v1095_v41  ;;  %v11144_v36 = vld [vmem:[#allocation5 + $0x152c] sm:$0xf0]  ;;  %v10273_v37 = vld [vmem:[#allocation5 + $0x1968] sm:$0xf]  ;;  %v10559_v41 = vld [vmem:[#allocation5 + $0x2ec] sm:$0xf] }
 0x160   : > { %5941 = vmatpush.bf16.msrb.mxu0 %v7322_v50  ;;  %v8761_v50 = vld [vmem:[#allocation5 + $0xd98] sm:$0xf]  ;;  %v9698_v43 = vor.u32 %v11144_v36, %v9697_v34 }
 0x161   : > { %5954 = vmatpush.bf16.msrb.mxu1 %v7898_v56  ;;  %v10910_v56 = vld [vmem:[#allocation5 + $0xddc] sm:$0xf0]  ;;  %v5649_v59 = vadd.f32 %v11783_v0, %v5636_v6  ;;  %v10703_v0 = vld [vmem:[#allocation5 + $0x76c] sm:$0xf] }
 0x162   : > { %5967 = vmatpush.bf16.msrb.mxu2 %v8474_v57  ;;  %v5715_v57 = vpop.f32.mrf.mxu2  ;;  %v8762_v7 = vor.u32 %v10910_v56, %v8761_v50  ;;  %v11270_v50 = vld [vmem:[#allocation5 + $0x191c] sm:$0xf0]  ;;  %v10541_v56 = vld [vmem:[#allocation5 + $0x25c] sm:$0xf]  ;;  %v10523_v6 = vld [vmem:[#allocation5 + $0x1cc] sm:$0xf] }
 0x163   : > { %5980 = vmatpush.bf16.msrb.mxu3 %v9050_v61  ;;  %v5728_v61 = vpop.f32.mrf.mxu3  ;;  %v7323_v57 = vld [vmem:[#allocation5 + $0x2a0] sm:$0xf0] }
 0x164   : > { %5942 = vmatpush.bf16.msrb.mxu0 %v7250_v3  ;;  %v8186_v3 = vor.u32 %v10766_v55, %v8185_v47  ;;  %v11126_v47 = vld [vmem:[#allocation5 + $0x149c] sm:$0xf0]  ;;  %v7974_v55 = vor.u32 %v10703_v0, %v7971_v32  ;;  %v9985_v0 = vld [vmem:[#allocation5 + $0x1728] sm:$0xf] }
 0x165   : > { %5955 = vmatpush.bf16.msrb.mxu1 %v7826_v4  ;;  %v10739_v4 = vld [vmem:[#allocation5 + $0x88c] sm:$0xf]  ;;  %v9626_v60 = vor.u32 %v11126_v47, %v9625_v46  ;;  %v7683_v46 = vld [vmem:[#allocation5 + $0x570] sm:$0xf0] }
 0x166   : > { %5968 = vmatpush.bf16.msrb.mxu2 %v8402_v5  ;;  %v8115_v5 = vld [vmem:[#allocation5 + $0x8d0] sm:$0xf0] }
 0x167   : > { %5981 = vmatpush.bf16.msrb.mxu3 %v8978_v9  ;;  %v1096_v9 = vperm.slane %v11755_v21, 3  ;;  %v8118_v26 = vor.u32 %v10739_v4, %v8115_v5  ;;  %v11252_v5 = vld [vmem:[#allocation5 + $0x188c] sm:$0xf0] }
 0x168   : > { %5943 = vmatpush.bf16.msrb.mxu0 %v7178_v27  ;;  %v11306_v27 = vld [vmem:[#allocation5 + $0x1a3c] sm:$0xf0] }
 0x169   : > { %5956 = vmatpush.bf16.msrb.mxu1 %v7754_v25  ;;  %v7467_v25 = vld [vmem:[#allocation5 + $0x3c0] sm:$0xf0]  ;;  %v5714_v21 = vadd.f32 %v11797_v12, %v1096_v9  ;;  %v10346_v33 = vor.u32 %v11306_v27, %v10345_v15  ;;  %v5662_v12 = vadd.f32 %v11785_v23, %v5649_v59  ;;  %v10667_v9 = vld [vmem:[#allocation5 + $0x64c] sm:$0xf]  ;;  %v11090_v27 = vld [vmem:[#allocation5 + $0x137c] sm:$0xf0] }
 0x16a   : > { %5969 = vmatpush.bf16.msrb.mxu2 %v8330_v29  ;;  %v10721_v29 = vld [vmem:[#allocation5 + $0x7fc] sm:$0xf]  ;;  %v7899_v23 = vld [vmem:[#allocation5 + $0x720] sm:$0xf0]  ;;  %v11234_v59 = vld [vmem:[#allocation5 + $0x17fc] sm:$0xf0] }
 0x16b   : > { %5982 = vmatpush.bf16.msrb.mxu3 %v8906_v51  ;;  %v7470_v51 = vor.u32 %v10577_v28, %v7467_v25  ;;  %v8046_v39 = vor.u32 %v10721_v29, %v8043_v30  ;;  %v5675_v53 = vadd.f32 %v11787_v24, %v5662_v12  ;;  %v7902_v4 = vor.u32 %v10685_v58, %v7899_v23  ;;  %v7827_v24 = vld [vmem:[#allocation5 + $0x690] sm:$0xf0]  ;;  %v10057_v28 = vld [vmem:[#allocation5 + $0x17b8] sm:$0xf]  ;;  %v11198_v58 = vld [vmem:[#allocation5 + $0x16dc] sm:$0xf0] }
 0x16c   : > { %5944 = vmatpush.bf16.msrb.mxu0 %v7106_v42  ;;  %v7395_v42 = vld [vmem:[#allocation5 + $0x330] sm:$0xf0]  ;;  %v7830_v25 = vor.u32 %v10667_v9, %v7827_v24  ;;  %v10469_v23 = vld [vmem:[#allocation5 + $0x1c] sm:$0xf]  ;;  %v11315_v9 = vld [vmem:[#allocation5 + $0x1a8c] sm:$0xf] }
 0x16d   : > { %5957 = vmatpush.bf16.msrb.mxu1 %v7682_v13  ;;  %v5727_v13 = vadd.f32 %v11799_v17, %v5714_v21  ;;  %v7398_v45 = vor.u32 %v10559_v41, %v7395_v42  ;;  %v7179_v21 = vld [vmem:[#allocation5 + $0x180] sm:$0xf0]  ;;  %v9409_v41 = vld [vmem:[#allocation5 + $0x12a8] sm:$0xf]  ;;  %v11072_v42 = vld [vmem:[#allocation5 + $0x12ec] sm:$0xf0] }
 0x16e   : > { %5970 = vmatpush.bf16.msrb.mxu2 %v8258_v44  ;;  %v10274_v44 = vor.u32 %v11288_v40, %v10273_v37  ;;  %v9410_v47 = vor.u32 %v11072_v42, %v9409_v41  ;;  %v10419_v24 = vld [vmem:[#allocation5 + $0x1ad0] sm:$0xf0]  ;;  %v11279_v42 = vld [vmem:[#allocation5 + $0x196c] sm:$0xf] }
 0x16f   : > { %5983 = vmatpush.bf16.msrb.mxu3 %v8834_v48  ;;  %v10201_v48 = vld [vmem:[#allocation5 + $0x18d8] sm:$0xf]  ;;  %v9699_v41 = vld [vmem:[#allocation5 + $0x1530] sm:$0xf0] }
 0x170   : > { %5945 = vmatpush.bf16.msrb.mxu0 %v7034_v62  ;;  %v5739_v61 = vpop.f32.mrf.mxu0  ;;  %v10202_v17 = vor.u32 %v11270_v50, %v10201_v48  ;;  %v7326_v62 = vor.u32 %v10541_v56, %v7323_v57  ;;  %v9337_v48 = vld [vmem:[#allocation5 + $0x1218] sm:$0xf] }
 0x171   : > { %5958 = vmatpush.bf16.msrb.mxu1 %v7610_v2  ;;  %v5740_v16 = vadd.f32 %v5739_v61, %v5727_v13  ;;  %v5752_v63 = vpop.f32.mrf.mxu1  ;;  %v11108_v2 = vld [vmem:[#allocation5 + $0x140c] sm:$0xf0]  ;;  %v9913_v57 = vld [vmem:[#allocation5 + $0x1698] sm:$0xf]  ;;  %v7035_v61 = vld [vmem:[#allocation5 + $0x60] sm:$0xf0] }
 0x172   : > { %5971 = vmatpush.bf16.msrb.mxu2 %v8186_v3  ;;  %v10129_v3 = vld [vmem:[#allocation5 + $0x1848] sm:$0xf]  ;;  %v11216_v13 = vld [vmem:[#allocation5 + $0x176c] sm:$0xf0] }
 0x173   : > { %5984 = vmatpush.bf16.msrb.mxu3 %v8762_v7  ;;  %5946 = vmatmul.bf16.vlgmr.msrb.gmra.mxu0 %v11702_v18  ;;  %v7251_v7 = vld [vmem:[#allocation5 + $0x210] sm:$0xf0]  ;;  %v10130_v11 = vor.u32 %v11252_v5, %v10129_v3  ;;  %v9986_v50 = vor.u32 %v11216_v13, %v9985_v0  ;;  %v11171_v5 = vld [vmem:[#allocation5 + $0x160c] sm:$0xf]  ;;  %v10829_v13 = vld [vmem:[#allocation5 + $0xb5c] sm:$0xf] }
 0x174   : > { %5990 = vmatpush.bf16.msra.mxu0 %v9842_v8  ;;  %5959 = vmatmul.bf16.vlgmr.msrb.gmra.mxu1 %v11708_v22  ;;  %v5753_v8 = vadd.f32 %v5752_v63, %v5740_v16  ;;  %v7254_v14 = vor.u32 %v10523_v6, %v7251_v7  ;;  %v10883_v63 = vld [vmem:[#allocation5 + $0xd0c] sm:$0xf]  ;;  %v9843_v6 = vld [vmem:[#allocation5 + $0x1650] sm:$0xf0]  ;;  %v9914_v7 = vor.u32 %v11198_v58, %v9913_v57 }
 0x175   : > { %6003 = vmatpush.bf16.msra.mxu1 %v10418_v54  ;;  %5972 = vmatmul.bf16.vlgmr.msrb.gmra.mxu2 %v11704_v19  ;;  %v5688_v54 = vadd.f32 %v11793_v49, %v5675_v53  ;;  %v10275_v0 = vld [vmem:[#allocation5 + $0x19b0] sm:$0xf0] }
 0x176   : > { %6016 = vmatpush.bf16.msra.mxu2 %v7542_v10  ;;  %5985 = vmatmul.bf16.vlgmr.msrb.gmra.mxu3 %v11706_v20  ;;  %v9554_v10 = vor.u32 %v11108_v2, %v9553_v1  ;;  %v8691_v1 = vld [vmem:[#allocation5 + $0xd50] sm:$0xf0]  ;;  %v11027_v2 = vld [vmem:[#allocation5 + $0x118c] sm:$0xf] }
 0x177   : > { %6029 = vmatpush.bf16.msra.mxu3 %v8118_v26  ;;  %v9481_v26 = vld [vmem:[#allocation5 + $0x1338] sm:$0xf]  ;;  %v5701_v49 = vadd.f32 %v11795_v52, %v5688_v54  ;;  %v10631_v52 = vld [vmem:[#allocation5 + $0x52c] sm:$0xf] }
 0x178   : > { %5991 = vmatpush.bf16.msra.mxu0 %v9770_v31  ;;  %v5765_v15 = vpop.f32.mrf.mxu2  ;;  %v10505_v31 = vld [vmem:[#allocation5 + $0x13c] sm:$0xf]  ;;  %v9482_v36 = vor.u32 %v11090_v27, %v9481_v26  ;;  %v5741_v37 = vpop.f32.mrf.mxu0  ;;  %v8619_v26 = vld [vmem:[#allocation5 + $0xcc0] sm:$0xf0] }
 0x179   : > { %6004 = vmatpush.bf16.msra.mxu1 %v10346_v33  ;;  %v5766_v29 = vadd.f32 %v5765_v15, %v5753_v8  ;;  %v5778_v30 = vpop.f32.mrf.mxu3  ;;  %v10649_v33 = vld [vmem:[#allocation5 + $0x5bc] sm:$0xf]  ;;  %v7182_v40 = vor.u32 %v10505_v31, %v7179_v21  ;;  %v5754_v32 = vpop.f32.mrf.mxu1  ;;  %v7038_v8 = vor.u32 %v10469_v23, %v7035_v61  ;;  %v10347_v31 = vld [vmem:[#allocation5 + $0x1a40] sm:$0xf0]  ;;  %v10955_v61 = vld [vmem:[#allocation5 + $0xf4c] sm:$0xf] }
 0x17a   : > { %6017 = vmatpush.bf16.msra.mxu2 %v7470_v51  ;;  %v7755_v51 = vld [vmem:[#allocation5 + $0x600] sm:$0xf0]  ;;  %v10865_v15 = vld [vmem:[#allocation5 + $0xc7c] sm:$0xf] }
 0x17b   : > { %6030 = vmatpush.bf16.msra.mxu3 %v8046_v39  ;;  %v5779_v34 = vadd.f32 %v5778_v30, %v5766_v29  ;;  %v10058_v39 = vor.u32 %v11234_v59, %v10057_v28  ;;  %v11009_v27 = vld [vmem:[#allocation5 + $0x10fc] sm:$0xf]  ;;  %v10422_v28 = vor.u32 %v11315_v9, %v10419_v24  ;;  %v9771_v30 = vld [vmem:[#allocation5 + $0x15c0] sm:$0xf0]  ;;  %v8622_v21 = vor.u32 %v10865_v15, %v8619_v26 }
 0x17c   : > { %5992 = vmatpush.bf16.msra.mxu0 %v9698_v43  ;;  %v7758_v43 = vor.u32 %v10649_v33, %v7755_v51  ;;  %v11153_v29 = vld [vmem:[#allocation5 + $0x157c] sm:$0xf] }
 0x17d   : > { %6005 = vmatpush.bf16.msra.mxu1 %v10274_v44  ;;  %v6875_v12 = vpack.c.bf16 %v5779_v34, %v5701_v49  ;;  %v10487_v44 = vld [vmem:[#allocation5 + $0xac] sm:$0xf]  ;;  %v11297_v59 = vld [vmem:[#allocation5 + $0x19fc] sm:$0xf]  ;;  %v9774_v51 = vor.u32 %v11153_v29, %v9771_v30  ;;  %v8547_v34 = vld [vmem:[#allocation5 + $0xc30] sm:$0xf0] }
 0x17e   : > { %6018 = vmatpush.bf16.msra.mxu2 %v7398_v45  ;;  %v7107_v45 = vld [vmem:[#allocation5 + $0xf0] sm:$0xf0]  ;;  %v10847_v49 = vld [vmem:[#allocation5 + $0xbec] sm:$0xf]  ;;  %v10350_v37 = vor.u32 %v11297_v59, %v10347_v31  ;;  %v10937_v9 = vld [vmem:[#allocation5 + $0xebc] sm:$0xf] }
 0x17f   : > { %6031 = vmatpush.bf16.msra.mxu3 %v7974_v55  ;;  %6884 = vst [vmem:[%s11774_s8 + $0x8] sm:$0xff] %v6875_v12  ;;  %v11054_v55 = vld [vmem:[#allocation5 + $0x125c] sm:$0xf0]  ;;  %v7110_v56 = vor.u32 %v10487_v44, %v7107_v45  ;;  %v8550_v32 = vor.u32 %v10847_v49, %v8547_v34  ;;  %v8475_v44 = vld [vmem:[#allocation5 + $0xba0] sm:$0xf0] }
 0x180   : > { %5993 = vmatpush.bf16.msra.mxu0 %v9626_v60  ;;  %v5767_v53 = vpop.f32.mrf.mxu2  ;;  %v7686_v60 = vor.u32 %v10631_v52, %v7683_v46  ;;  %v9338_v3 = vor.u32 %v11054_v55, %v9337_v48  ;;  %v10973_v45 = vld [vmem:[#allocation5 + $0xfdc] sm:$0xf]  ;;  %v10278_v52 = vor.u32 %v11279_v42, %v10275_v0  ;;  %v9051_v46 = vld [vmem:[#allocation5 + $0x1020] sm:$0xf0]  ;;  %v8478_v57 = vor.u32 %v10829_v13, %v8475_v44  ;;  %v10775_v59 = vld [vmem:[#allocation5 + $0x9ac] sm:$0xf] }
 0x181   : > { %6006 = vmatpush.bf16.msra.mxu1 %v10202_v17  ;;  %v10613_v17 = vld [vmem:[#allocation5 + $0x49c] sm:$0xf]  ;;  %v5780_v16 = vpop.f32.mrf.mxu3  ;;  %v9627_v48 = vld [vmem:[#allocation5 + $0x14a0] sm:$0xf0]  ;;  %v9054_v58 = vor.u32 %v10973_v45, %v9051_v46  ;;  %v10811_v53 = vld [vmem:[#allocation5 + $0xacc] sm:$0xf] }
 0x182   : > { %6019 = vmatpush.bf16.msra.mxu2 %v7326_v62  ;;  %v7611_v62 = vld [vmem:[#allocation5 + $0x4e0] sm:$0xf0]  ;;  %v11261_v55 = vld [vmem:[#allocation5 + $0x18dc] sm:$0xf]  ;;  %v8979_v16 = vld [vmem:[#allocation5 + $0xf90] sm:$0xf0] }
 0x183   : > { %6032 = vmatpush.bf16.msra.mxu3 %v7902_v4  ;;  %v9267_v4 = vld [vmem:[#allocation5 + $0x11d0] sm:$0xf0]  ;;  %v7614_v54 = vor.u32 %v10613_v17, %v7611_v62  ;;  %v11225_v26 = vld [vmem:[#allocation5 + $0x17bc] sm:$0xf]  ;;  %v11063_v34 = vld [vmem:[#allocation5 + $0x12ac] sm:$0xf] }
 0x184   : > { %5994 = vmatpush.bf16.msra.mxu0 %v9554_v10  ;;  %v8694_v10 = vor.u32 %v10883_v63, %v8691_v1  ;;  %v11099_v63 = vld [vmem:[#allocation5 + $0x13cc] sm:$0xf]  ;;  %v9555_v1 = vld [vmem:[#allocation5 + $0x1410] sm:$0xf0]  ;;  %v8187_v42 = vld [vmem:[#allocation5 + $0x960] sm:$0xf0] }
 0x185   : > { %6007 = vmatpush.bf16.msra.mxu1 %v10130_v11  ;;  %v9270_v11 = vor.u32 %v11027_v2, %v9267_v4  ;;  %v11243_v2 = vld [vmem:[#allocation5 + $0x184c] sm:$0xf]  ;;  %v8259_v31 = vld [vmem:[#allocation5 + $0x9f0] sm:$0xf0]  ;;  %v11045_v13 = vld [vmem:[#allocation5 + $0x121c] sm:$0xf] }
 0x186   : > { %6020 = vmatpush.bf16.msra.mxu2 %v7254_v14  ;;  %v9846_v14 = vor.u32 %v11171_v5, %v9843_v6  ;;  %v8982_v5 = vor.u32 %v10955_v61, %v8979_v16  ;;  %v9558_v6 = vor.u32 %v11099_v63, %v9555_v1  ;;  %v8835_v49 = vld [vmem:[#allocation5 + $0xe70] sm:$0xf0]  ;;  %v9339_v45 = vld [vmem:[#allocation5 + $0x1260] sm:$0xf0]  ;;  %v9273_v16 = vld [vmem:[#allocation5 + $0x1190] sm:$0xf] }
 0x187   : > { %6033 = vmatpush.bf16.msra.mxu3 %v7830_v25  ;;  %v9195_v25 = vld [vmem:[#allocation5 + $0x1140] sm:$0xf0]  ;;  %v11037_v63 = vld [vmem:[#allocation5 + $0x11d4] sm:$0xf0] }
 0x188   : > { %5995 = vmatpush.bf16.msra.mxu0 %v9482_v36  ;;  %v9198_v33 = vor.u32 %v11009_v27, %v9195_v25  ;;  %v10991_v36 = vld [vmem:[#allocation5 + $0x106c] sm:$0xf]  ;;  %v10059_v27 = vld [vmem:[#allocation5 + $0x1800] sm:$0xf0] }
 0x189   : > { %6008 = vmatpush.bf16.msra.mxu1 %v10058_v39  ;;  %v9123_v39 = vld [vmem:[#allocation5 + $0x10b0] sm:$0xf0]  ;;  %v9915_v46 = vld [vmem:[#allocation5 + $0x16e0] sm:$0xf0] }
 0x18a   : > { %6021 = vmatpush.bf16.msra.mxu2 %v7182_v40  ;;  %v11135_v40 = vld [vmem:[#allocation5 + $0x14ec] sm:$0xf]  ;;  %v9126_v12 = vor.u32 %v10991_v36, %v9123_v39  ;;  %v9411_v36 = vld [vmem:[#allocation5 + $0x12f0] sm:$0xf0] }
 0x18b   : > { %6034 = vmatpush.bf16.msra.mxu3 %v7758_v43  ;;  %v9702_v43 = vor.u32 %v11135_v40, %v9699_v41  ;;  %v9987_v39 = vld [vmem:[#allocation5 + $0x1770] sm:$0xf0]  ;;  %v8262_v40 = vor.u32 %v10775_v59, %v8259_v31  ;;  %v10757_v41 = vld [vmem:[#allocation5 + $0x91c] sm:$0xf]  ;;  %v10713_v31 = vld [vmem:[#allocation5 + $0x7b4] sm:$0xf0] }
 0x18c   : > { %5996 = vmatpush.bf16.msra.mxu0 %v9410_v47  ;;  %v11117_v47 = vld [vmem:[#allocation5 + $0x145c] sm:$0xf] }
 0x18d   : > { %6009 = vmatpush.bf16.msra.mxu1 %v9986_v50  ;;  %v10203_v50 = vld [vmem:[#allocation5 + $0x1920] sm:$0xf0]  ;;  %v9630_v23 = vor.u32 %v11117_v47, %v9627_v48 }
 0x18e   : > { %6022 = vmatpush.bf16.msra.mxu2 %v7110_v56  ;;  %v10206_v62 = vor.u32 %v11261_v55, %v10203_v50  ;;  %v7545_v55 = vld [vmem:[#allocation5 + $0x410] sm:$0xf]  ;;  %v10605_v50 = vld [vmem:[#allocation5 + $0x454] sm:$0xf0] }
 0x18f   : > { %6035 = vmatpush.bf16.msra.mxu3 %v7686_v60  ;;  %v8403_v60 = vld [vmem:[#allocation5 + $0xb10] sm:$0xf0] }
 0x190   : > { %5997 = vmatpush.bf16.msra.mxu0 %v9338_v3  ;;  %v11820_v56 = vpop.f32.mrf.mxu0  ;;  %v10131_v3 = vld [vmem:[#allocation5 + $0x1890] sm:$0xf0]  ;;  %v8406_v4 = vor.u32 %v10811_v53, %v8403_v60  ;;  %v8697_v53 = vld [vmem:[#allocation5 + $0xd10] sm:$0xf]  ;;  %v10893_v60 = vld [vmem:[#allocation5 + $0xd54] sm:$0xf0] }
 0x191   : > { %6010 = vmatpush.bf16.msra.mxu1 %v9914_v7  ;;  %v11822_v17 = vpop.f32.mrf.mxu1  ;;  %v10793_v7 = vld [vmem:[#allocation5 + $0xa3c] sm:$0xf]  ;;  %v10134_v24 = vor.u32 %v11243_v2, %v10131_v3  ;;  %v7546_v2 = vor.u32 %v10605_v50, %v7545_v55  ;;  %v10533_v55 = vld [vmem:[#allocation5 + $0x214] sm:$0xf0]  ;;  %v7833_v50 = vld [vmem:[#allocation5 + $0x650] sm:$0xf] }
 0x192   : > { %6023 = vmatpush.bf16.msra.mxu2 %v7038_v8  ;;  %v8331_v8 = vld [vmem:[#allocation5 + $0xa80] sm:$0xf0] }
 0x193   : > { %6036 = vmatpush.bf16.msra.mxu3 %v7614_v54  ;;  %5998 = vmatmul.bf16.vlgmr.msra.gmra.mxu0 %v11715_v35  ;;  %v8907_v54 = vld [vmem:[#allocation5 + $0xf00] sm:$0xf0]  ;;  %v8334_v25 = vor.u32 %v10793_v7, %v8331_v8  ;;  %v8049_v7 = vld [vmem:[#allocation5 + $0x800] sm:$0xf]  ;;  %v9274_v8 = vor.u32 %v11037_v63, %v9273_v16 }
 0x194   : > { %6042 = vmatpush.bf16.msrb.mxu0 %v8694_v10  ;;  %6011 = vmatmul.bf16.vlgmr.msra.gmra.mxu1 %v11717_v38  ;;  %v11081_v10 = vld [vmem:[#allocation5 + $0x133c] sm:$0xf]  ;;  %v8910_v29 = vor.u32 %v10937_v9, %v8907_v54  ;;  %v10731_v9 = vld [vmem:[#allocation5 + $0x844] sm:$0xf0] }
 0x195   : > { %6055 = vmatpush.bf16.msrb.mxu1 %v9270_v11  ;;  %6024 = vmatmul.bf16.vlgmr.msra.gmra.mxu2 %v11702_v18  ;;  %v9483_v11 = vld [vmem:[#allocation5 + $0x1380] sm:$0xf0]  ;;  %v10875_v54 = vld [vmem:[#allocation5 + $0xcc4] sm:$0xf0] }
 0x196   : > { %6068 = vmatpush.bf16.msrb.mxu2 %v9846_v14  ;;  %6037 = vmatmul.bf16.vlgmr.msra.gmra.mxu3 %v11708_v22  ;;  %v9486_v30 = vor.u32 %v11081_v10, %v9483_v11  ;;  %v9201_v10 = vld [vmem:[#allocation5 + $0x1100] sm:$0xf]  ;;  %v11019_v11 = vld [vmem:[#allocation5 + $0x1144] sm:$0xf0] }
 0x197   : > { %6081 = vmatpush.bf16.msrb.mxu3 %v10422_v28  ;;  %v9202_v59 = vor.u32 %v11019_v11, %v9201_v10 }
 0x198   : > { %6043 = vmatpush.bf16.msrb.mxu0 %v8622_v21  ;;  %v11824_v14 = vpop.f32.mrf.mxu2  ;;  %v5793_v28 = vpop.f32.mrf.mxu0  ;;  %v10919_v21 = vld [vmem:[#allocation5 + $0xe2c] sm:$0xf] }
 0x199   : > { %6056 = vmatpush.bf16.msrb.mxu1 %v9198_v33  ;;  %v11826_v15 = vpop.f32.mrf.mxu3  ;;  %v5806_v33 = vpop.f32.mrf.mxu1  ;;  %v8838_v0 = vor.u32 %v10919_v21, %v8835_v49  ;;  %v8553_v21 = vld [vmem:[#allocation5 + $0xbf0] sm:$0xf]  ;;  %v11001_v49 = vld [vmem:[#allocation5 + $0x10b4] sm:$0xf0] }
 0x19a   : > { %6069 = vmatpush.bf16.msrb.mxu2 %v9774_v51  ;;  %v10062_v51 = vor.u32 %v11225_v26, %v10059_v27  ;;  %v8050_v27 = vor.u32 %v10731_v9, %v8049_v7  ;;  %v10857_v33 = vld [vmem:[#allocation5 + $0xc34] sm:$0xf0]  ;;  %v10803_v7 = vld [vmem:[#allocation5 + $0xa84] sm:$0xf0]  ;;  %v8913_v9 = vld [vmem:[#allocation5 + $0xec0] sm:$0xf] }
 0x19b   : > { %6082 = vmatpush.bf16.msrb.mxu3 %v10350_v37  ;;  %v11207_v37 = vld [vmem:[#allocation5 + $0x172c] sm:$0xf] }
 0x19c   : > { %6044 = vmatpush.bf16.msrb.mxu0 %v8550_v32  ;;  %v9414_v32 = vor.u32 %v11063_v34, %v9411_v36  ;;  %v9990_v44 = vor.u32 %v11207_v37, %v9987_v39  ;;  %v8554_v37 = vor.u32 %v10857_v33, %v8553_v21  ;;  %v7329_v39 = vld [vmem:[#allocation5 + $0x260] sm:$0xf]  ;;  %v8265_v21 = vld [vmem:[#allocation5 + $0x9b0] sm:$0xf]  ;;  %v10785_v33 = vld [vmem:[#allocation5 + $0x9f4] sm:$0xf0] }
 0x19d   : > { %6057 = vmatpush.bf16.msrb.mxu1 %v9126_v12  ;;  %v10901_v12 = vld [vmem:[#allocation5 + $0xd9c] sm:$0xf] }
 0x19e   : > { %6070 = vmatpush.bf16.msrb.mxu2 %v9702_v43  ;;  %v8763_v43 = vld [vmem:[#allocation5 + $0xde0] sm:$0xf0] }
 0x19f   : > { %6083 = vmatpush.bf16.msrb.mxu3 %v10278_v52  ;;  %v11189_v52 = vld [vmem:[#allocation5 + $0x169c] sm:$0xf]  ;;  %v8766_v61 = vor.u32 %v10901_v12, %v8763_v43  ;;  %v10839_v12 = vld [vmem:[#allocation5 + $0xba4] sm:$0xf0]  ;;  %v9057_v43 = vld [vmem:[#allocation5 + $0xfe0] sm:$0xf] }
 0x1a0   : > { %6045 = vmatpush.bf16.msrb.mxu0 %v8478_v57  ;;  %v5819_v47 = vpop.f32.mrf.mxu2  ;;  %v8121_v57 = vld [vmem:[#allocation5 + $0x890] sm:$0xf]  ;;  %v9918_v1 = vor.u32 %v11189_v52, %v9915_v46 }
 0x1a1   : > { %6058 = vmatpush.bf16.msrb.mxu1 %v9054_v58  ;;  %v5832_v48 = vpop.f32.mrf.mxu3  ;;  %v8190_v58 = vor.u32 %v10757_v41, %v8187_v42  ;;  %v7905_v41 = vld [vmem:[#allocation5 + $0x6e0] sm:$0xf] }
 0x1a2   : > { %6071 = vmatpush.bf16.msrb.mxu2 %v9630_v23  ;;  %v10749_v23 = vld [vmem:[#allocation5 + $0x8d4] sm:$0xf0]  ;;  %v7257_v48 = vld [vmem:[#allocation5 + $0x1d0] sm:$0xf] }
 0x1a3   : > { %6084 = vmatpush.bf16.msrb.mxu3 %v10206_v62  ;;  %v9342_v62 = vor.u32 %v11045_v13, %v9339_v45  ;;  %v8122_v3 = vor.u32 %v10749_v23, %v8121_v57  ;;  %v10983_v13 = vld [vmem:[#allocation5 + $0x1024] sm:$0xf0]  ;;  %v8409_v23 = vld [vmem:[#allocation5 + $0xad0] sm:$0xf] }
 0x1a4   : > { %6046 = vmatpush.bf16.msrb.mxu0 %v8406_v4  ;;  %v8698_v4 = vor.u32 %v10893_v60, %v8697_v53  ;;  %v9058_v57 = vor.u32 %v10983_v13, %v9057_v43  ;;  %v10821_v53 = vld [vmem:[#allocation5 + $0xb14] sm:$0xf0]  ;;  %v8985_v60 = vld [vmem:[#allocation5 + $0xf50] sm:$0xf]  ;;  %v10767_v13 = vld [vmem:[#allocation5 + $0x964] sm:$0xf0] }
 0x1a5   : > { %6059 = vmatpush.bf16.msrb.mxu1 %v8982_v5  ;;  %v7473_v5 = vld [vmem:[#allocation5 + $0x380] sm:$0xf]  ;;  %v8410_v63 = vor.u32 %v10821_v53, %v8409_v23  ;;  %v11325_v23 = vld [vmem:[#allocation5 + $0x1ad4] sm:$0xf0]  ;;  %v10596_v53 = vld [vmem:[#allocation5 + $0x414] sm:$0xf] }
 0x1a6   : > { %6072 = vmatpush.bf16.msrb.mxu2 %v9558_v6  ;;  %v10587_v6 = vld [vmem:[#allocation5 + $0x3c4] sm:$0xf0] }
 0x1a7   : > { %6085 = vmatpush.bf16.msrb.mxu3 %v10134_v24  ;;  %v8625_v24 = vld [vmem:[#allocation5 + $0xc80] sm:$0xf]  ;;  %v7474_v26 = vor.u32 %v10587_v6, %v7473_v5  ;;  %v10659_v5 = vld [vmem:[#allocation5 + $0x604] sm:$0xf0] }
 0x1a8   : > { %6047 = vmatpush.bf16.msrb.mxu0 %v8334_v25  ;;  %v8626_v28 = vor.u32 %v10875_v54, %v8625_v24  ;;  %v7401_v25 = vld [vmem:[#allocation5 + $0x2f0] sm:$0xf]  ;;  %v8337_v6 = vld [vmem:[#allocation5 + $0xa40] sm:$0xf]  ;;  %v10947_v24 = vld [vmem:[#allocation5 + $0xf04] sm:$0xf0] }
 0x1a9   : > { %6060 = vmatpush.bf16.msrb.mxu1 %v8910_v29  ;;  %v10569_v29 = vld [vmem:[#allocation5 + $0x334] sm:$0xf0] }
 0x1aa   : > { %6073 = vmatpush.bf16.msrb.mxu2 %v9486_v30  ;;  %v7977_v30 = vld [vmem:[#allocation5 + $0x770] sm:$0xf]  ;;  %v7402_v34 = vor.u32 %v10569_v29, %v7401_v25  ;;  %v10497_v29 = vld [vmem:[#allocation5 + $0xf4] sm:$0xf0] }
 0x1ab   : > { %6086 = vmatpush.bf16.msrb.mxu3 %v10062_v51  ;;  %v9129_v51 = vld [vmem:[#allocation5 + $0x1070] sm:$0xf]  ;;  %v7978_v36 = vor.u32 %v10713_v31, %v7977_v30  ;;  %v10641_v31 = vld [vmem:[#allocation5 + $0x574] sm:$0xf0] }
 0x1ac   : > { %6048 = vmatpush.bf16.msrb.mxu0 %v8262_v40  ;;  %v10551_v40 = vld [vmem:[#allocation5 + $0x2a4] sm:$0xf0]  ;;  %v9130_v42 = vor.u32 %v11001_v49, %v9129_v51  ;;  %v7113_v25 = vld [vmem:[#allocation5 + $0xb0] sm:$0xf]  ;;  %v10929_v49 = vld [vmem:[#allocation5 + $0xe74] sm:$0xf0] }
 0x1ad   : > { %6061 = vmatpush.bf16.msrb.mxu1 %v8838_v0  ;;  %v10695_v0 = vld [vmem:[#allocation5 + $0x724] sm:$0xf0]  ;;  %v7330_v45 = vor.u32 %v10551_v40, %v7329_v39  ;;  %v7689_v30 = vld [vmem:[#allocation5 + $0x530] sm:$0xf]  ;;  %v7041_v39 = vld [vmem:[#allocation5 + $0x20] sm:$0xf] }
 0x1ae   : > { %6074 = vmatpush.bf16.msrb.mxu2 %v9414_v32  ;;  %v8481_v32 = vld [vmem:[#allocation5 + $0xb60] sm:$0xf]  ;;  %v7906_v46 = vor.u32 %v10695_v0, %v7905_v41  ;;  %v8841_v51 = vld [vmem:[#allocation5 + $0xe30] sm:$0xf]  ;;  %v10479_v40 = vld [vmem:[#allocation5 + $0x64] sm:$0xf0]  ;;  %v7690_v41 = vor.u32 %v10641_v31, %v7689_v30 }
 0x1af   : > { %6087 = vmatpush.bf16.msrb.mxu3 %v9990_v44  ;;  %v8482_v47 = vor.u32 %v10839_v12, %v8481_v32  ;;  %v7617_v0 = vld [vmem:[#allocation5 + $0x4a0] sm:$0xf]  ;;  %v10623_v32 = vld [vmem:[#allocation5 + $0x4e4] sm:$0xf0]  ;;  %v8842_v43 = vor.u32 %v10929_v49, %v8841_v51  ;;  %v10281_v51 = vld [vmem:[#allocation5 + $0x1970] sm:$0xf] }
 0x1b0   : > { %6049 = vmatpush.bf16.msrb.mxu0 %v8190_v58  ;;  %v11832_v44 = vpop.f32.mrf.mxu0  ;;  %v10677_v58 = vld [vmem:[#allocation5 + $0x694] sm:$0xf0]  ;;  %v8193_v12 = vld [vmem:[#allocation5 + $0x920] sm:$0xf] }
 0x1b1   : > { %6062 = vmatpush.bf16.msrb.mxu1 %v8766_v61  ;;  %v11834_v52 = vpop.f32.mrf.mxu1  ;;  %v10965_v61 = vld [vmem:[#allocation5 + $0xf94] sm:$0xf0]  ;;  %v7834_v16 = vor.u32 %v10677_v58, %v7833_v50  ;;  %v10425_v50 = vld [vmem:[#allocation5 + $0x1a90] sm:$0xf]  ;;  %v7042_v58 = vor.u32 %v10479_v40, %v7041_v39  ;;  %v7403_v39 = vld [vmem:[#allocation5 + $0x338] sm:$0xf0] }
 0x1b2   : > { %6075 = vmatpush.bf16.msrb.mxu2 %v9342_v62  ;;  %v7258_v62 = vor.u32 %v10533_v55, %v7257_v48  ;;  %v9849_v48 = vld [vmem:[#allocation5 + $0x1610] sm:$0xf]  ;;  %v11181_v55 = vld [vmem:[#allocation5 + $0x1654] sm:$0xf0]  ;;  %v7979_v40 = vld [vmem:[#allocation5 + $0x7b8] sm:$0xf0] }
 0x1b3   : > { %6088 = vmatpush.bf16.msrb.mxu3 %v9918_v1  ;;  %6050 = vmatmul.bf16.vlgmr.msrb.gmra.mxu0 %v11704_v19  ;;  %v7185_v1 = vld [vmem:[#allocation5 + $0x140] sm:$0xf] }
 0x1b4   : > { %6094 = vmatpush.bf16.msra.mxu0 %v7546_v2  ;;  %6063 = vmatmul.bf16.vlgmr.msrb.gmra.mxu1 %v11706_v20  ;;  %v10515_v2 = vld [vmem:[#allocation5 + $0x184] sm:$0xf0] }
 0x1b5   : > { %6107 = vmatpush.bf16.msra.mxu1 %v8122_v3  ;;  %6076 = vmatmul.bf16.vlgmr.msrb.gmra.mxu2 %v11715_v35  ;;  %v7761_v3 = vld [vmem:[#allocation5 + $0x5c0] sm:$0xf]  ;;  %v7186_v11 = vor.u32 %v10515_v2, %v7185_v1 }
 0x1b6   : > { %6120 = vmatpush.bf16.msra.mxu2 %v8698_v4  ;;  %6089 = vmatmul.bf16.vlgmr.msrb.gmra.mxu3 %v11717_v38  ;;  %v8986_v4 = vor.u32 %v10965_v61, %v8985_v60  ;;  %v7547_v60 = vld [vmem:[#allocation5 + $0x458] sm:$0xf0]  ;;  %v7618_v61 = vor.u32 %v10623_v32, %v7617_v0 }
 0x1b7   : > { %6133 = vmatpush.bf16.msra.mxu3 %v9274_v8 }
 0x1b8   : > { %6095 = vmatpush.bf16.msra.mxu0 %v7474_v26  ;;  %v11836_v8 = vpop.f32.mrf.mxu2  ;;  %v5845_v10 = vpop.f32.mrf.mxu0 }
 0x1b9   : > { %6108 = vmatpush.bf16.msra.mxu1 %v8050_v27  ;;  %v11838_v54 = vpop.f32.mrf.mxu3  ;;  %v5858_v26 = vpop.f32.mrf.mxu1  ;;  %v7762_v27 = vor.u32 %v10659_v5, %v7761_v3  ;;  %v9850_v3 = vor.u32 %v11181_v55, %v9849_v48  ;;  %v10426_v5 = vor.u32 %v11325_v23, %v10425_v50  ;;  %v7331_v48 = vld [vmem:[#allocation5 + $0x2a8] sm:$0xf0]  ;;  %v10686_v55 = vld [vmem:[#allocation5 + $0x6e4] sm:$0xf] }
 0x1ba   : > { %6121 = vmatpush.bf16.msra.mxu2 %v8626_v28  ;;  %v8338_v28 = vor.u32 %v10803_v7, %v8337_v6  ;;  %v7550_v6 = vor.u32 %v10596_v53, %v7547_v60  ;;  %v9777_v7 = vld [vmem:[#allocation5 + $0x1580] sm:$0xf]  ;;  %v10578_v26 = vld [vmem:[#allocation5 + $0x384] sm:$0xf] }
 0x1bb   : > { %6134 = vmatpush.bf16.msra.mxu3 %v9202_v59  ;;  %v8914_v59 = vor.u32 %v10947_v24, %v8913_v9  ;;  %v11163_v9 = vld [vmem:[#allocation5 + $0x15c4] sm:$0xf0]  ;;  %v10353_v24 = vld [vmem:[#allocation5 + $0x1a00] sm:$0xf] }
 0x1bc   : > { %6096 = vmatpush.bf16.msra.mxu0 %v7402_v34  ;;  %v11840_v34 = vld [vmem:[#allocation7] sm:$0xff] }
 0x1bd   : > { %6109 = vmatpush.bf16.msra.mxu1 %v7978_v36  ;;  %v1097_v36 = vperm.slane %v11840_v34, 4 }
 0x1be   : > { %6122 = vmatpush.bf16.msra.mxu2 %v8554_v37  ;;  %v7114_v37 = vor.u32 %v10497_v29, %v7113_v25  ;;  %v8051_v25 = vld [vmem:[#allocation5 + $0x848] sm:$0xf0]  ;;  %v9778_v29 = vor.u32 %v11163_v9, %v9777_v7 }
 0x1bf   : > { %6135 = vmatpush.bf16.msra.mxu3 %v9130_v42  ;;  %v8266_v42 = vor.u32 %v10785_v33, %v8265_v21  ;;  %v5792_v1 = vadd.f32 %v11820_v56, %v1097_v36  ;;  %v9705_v21 = vld [vmem:[#allocation5 + $0x14f0] sm:$0xf]  ;;  %v11145_v33 = vld [vmem:[#allocation5 + $0x1534] sm:$0xf0] }
 0x1c0   : > { %6097 = vmatpush.bf16.msra.mxu0 %v7330_v45  ;;  %v8769_v45 = vld [vmem:[#allocation5 + $0xda0] sm:$0xf]  ;;  %v11289_v36 = vld [vmem:[#allocation5 + $0x19b4] sm:$0xf0] }
 0x1c1   : > { %6110 = vmatpush.bf16.msra.mxu1 %v7906_v46  ;;  %v10911_v46 = vld [vmem:[#allocation5 + $0xde4] sm:$0xf0]  ;;  %v5805_v56 = vadd.f32 %v11822_v17, %v5792_v1  ;;  %v10704_v17 = vld [vmem:[#allocation5 + $0x774] sm:$0xf]  ;;  %v10282_v0 = vor.u32 %v11289_v36, %v10281_v51  ;;  %v11253_v1 = vld [vmem:[#allocation5 + $0x1894] sm:$0xf0] }
 0x1c2   : > { %6123 = vmatpush.bf16.msra.mxu2 %v8482_v47  ;;  %v5871_v47 = vpop.f32.mrf.mxu2  ;;  %v8770_v2 = vor.u32 %v10911_v46, %v8769_v45  ;;  %v7982_v45 = vor.u32 %v10704_v17, %v7979_v40  ;;  %v11271_v46 = vld [vmem:[#allocation5 + $0x1924] sm:$0xf0]  ;;  %v11073_v17 = vld [vmem:[#allocation5 + $0x12f4] sm:$0xf0]  ;;  %v9993_v40 = vld [vmem:[#allocation5 + $0x1730] sm:$0xf] }
 0x1c3   : > { %6136 = vmatpush.bf16.msra.mxu3 %v9058_v57  ;;  %v5884_v57 = vpop.f32.mrf.mxu3  ;;  %v10542_v47 = vld [vmem:[#allocation5 + $0x264] sm:$0xf] }
 0x1c4   : > { %6098 = vmatpush.bf16.msra.mxu0 %v7258_v62  ;;  %v8194_v62 = vor.u32 %v10767_v13, %v8193_v12  ;;  %v9633_v12 = vld [vmem:[#allocation5 + $0x1460] sm:$0xf]  ;;  %v7334_v23 = vor.u32 %v10542_v47, %v7331_v48 }
 0x1c5   : > { %6111 = vmatpush.bf16.msra.mxu1 %v7834_v16  ;;  %v10740_v16 = vld [vmem:[#allocation5 + $0x894] sm:$0xf]  ;;  %v10209_v13 = vld [vmem:[#allocation5 + $0x18e0] sm:$0xf] }
 0x1c6   : > { %6124 = vmatpush.bf16.msra.mxu2 %v8410_v63  ;;  %v8123_v63 = vld [vmem:[#allocation5 + $0x8d8] sm:$0xf0] }
 0x1c7   : > { %6137 = vmatpush.bf16.msra.mxu3 %v8986_v4  ;;  %v1098_v4 = vperm.slane %v11840_v34, 5  ;;  %v8126_v10 = vor.u32 %v10740_v16, %v8123_v63  ;;  %v10137_v16 = vld [vmem:[#allocation5 + $0x1850] sm:$0xf] }
 0x1c8   : > { %6099 = vmatpush.bf16.msra.mxu0 %v7186_v11  ;;  %v11307_v11 = vld [vmem:[#allocation5 + $0x1a44] sm:$0xf0]  ;;  %v10138_v9 = vor.u32 %v11253_v1, %v10137_v16  ;;  %v11028_v16 = vld [vmem:[#allocation5 + $0x1194] sm:$0xf]  ;;  %v9275_v1 = vld [vmem:[#allocation5 + $0x11d8] sm:$0xf0] }
 0x1c9   : > { %6112 = vmatpush.bf16.msra.mxu1 %v7762_v27  ;;  %v7475_v27 = vld [vmem:[#allocation5 + $0x3c8] sm:$0xf0]  ;;  %v5870_v30 = vadd.f32 %v11836_v8, %v1098_v4  ;;  %v5818_v8 = vadd.f32 %v11824_v14, %v5805_v56 }
 0x1ca   : > { %6125 = vmatpush.bf16.msra.mxu2 %v8338_v28  ;;  %v10722_v28 = vld [vmem:[#allocation5 + $0x804] sm:$0xf]  ;;  %v7478_v31 = vor.u32 %v10578_v26, %v7475_v27  ;;  %v7907_v14 = vld [vmem:[#allocation5 + $0x728] sm:$0xf0]  ;;  %v11091_v26 = vld [vmem:[#allocation5 + $0x1384] sm:$0xf0] }
 0x1cb   : > { %6138 = vmatpush.bf16.msra.mxu3 %v8914_v59  ;;  %v10354_v59 = vor.u32 %v11307_v11, %v10353_v24  ;;  %v8054_v49 = vor.u32 %v10722_v28, %v8051_v25  ;;  %v5831_v50 = vadd.f32 %v11826_v15, %v5818_v8  ;;  %v7910_v63 = vor.u32 %v10686_v55, %v7907_v14  ;;  %v7835_v15 = vld [vmem:[#allocation5 + $0x698] sm:$0xf0]  ;;  %v9489_v11 = vld [vmem:[#allocation5 + $0x1340] sm:$0xf]  ;;  %v11199_v14 = vld [vmem:[#allocation5 + $0x16e4] sm:$0xf0] }
 0x1cc   : > { %6100 = vmatpush.bf16.msra.mxu0 %v7114_v37  ;;  %v10560_v37 = vld [vmem:[#allocation5 + $0x2f4] sm:$0xf]  ;;  %v10065_v27 = vld [vmem:[#allocation5 + $0x17c0] sm:$0xf]  ;;  %v9490_v51 = vor.u32 %v11091_v26, %v9489_v11  ;;  %v10866_v11 = vld [vmem:[#allocation5 + $0xc84] sm:$0xf] }
 0x1cd   : > { %6113 = vmatpush.bf16.msra.mxu1 %v7690_v41  ;;  %v9706_v41 = vor.u32 %v11145_v33, %v9705_v21  ;;  %v7406_v32 = vor.u32 %v10560_v37, %v7403_v39  ;;  %v7763_v21 = vld [vmem:[#allocation5 + $0x608] sm:$0xf0]  ;;  %v9417_v39 = vld [vmem:[#allocation5 + $0x12b0] sm:$0xf]  ;;  %v9921_v55 = vld [vmem:[#allocation5 + $0x16a0] sm:$0xf] }
 0x1ce   : > { %6126 = vmatpush.bf16.msra.mxu2 %v8266_v42  ;;  %v5883_v42 = vadd.f32 %v11838_v54, %v5870_v30  ;;  %v10210_v54 = vor.u32 %v11271_v46, %v10209_v13  ;;  %v10506_v30 = vld [vmem:[#allocation5 + $0x144] sm:$0xf]  ;;  %v9418_v13 = vor.u32 %v11073_v17, %v9417_v39  ;;  %v11055_v46 = vld [vmem:[#allocation5 + $0x1264] sm:$0xf0]  ;;  %v8627_v26 = vld [vmem:[#allocation5 + $0xcc8] sm:$0xf0] }
 0x1cf   : > { %6139 = vmatpush.bf16.msra.mxu3 %v8842_v43  ;;  %v11127_v43 = vld [vmem:[#allocation5 + $0x14a4] sm:$0xf0]  ;;  %v11136_v39 = vld [vmem:[#allocation5 + $0x14f4] sm:$0xf]  ;;  %v9707_v17 = vld [vmem:[#allocation5 + $0x1538] sm:$0xf0] }
 0x1d0   : > { %6101 = vmatpush.bf16.msra.mxu0 %v7042_v58  ;;  %v9634_v57 = vor.u32 %v11127_v43, %v9633_v12  ;;  %v5895_v58 = vpop.f32.mrf.mxu0  ;;  %v7115_v12 = vld [vmem:[#allocation5 + $0xf8] sm:$0xf0] }
 0x1d1   : > { %6114 = vmatpush.bf16.msra.mxu1 %v7618_v61  ;;  %v5896_v53 = vadd.f32 %v5895_v58, %v5883_v42  ;;  %v5908_v60 = vpop.f32.mrf.mxu1  ;;  %v9561_v61 = vld [vmem:[#allocation5 + $0x13d0] sm:$0xf]  ;;  %v7691_v43 = vld [vmem:[#allocation5 + $0x578] sm:$0xf0] }
 0x1d2   : > { %6127 = vmatpush.bf16.msra.mxu2 %v8194_v62  ;;  %v11109_v62 = vld [vmem:[#allocation5 + $0x1414] sm:$0xf0] }
 0x1d3   : > { %6140 = vmatpush.bf16.msra.mxu3 %v8770_v2  ;;  %6102 = vmatmul.bf16.vlgmr.msra.gmra.mxu0 %v11702_v18  ;;  %v10524_v2 = vld [vmem:[#allocation5 + $0x1d4] sm:$0xf]  ;;  %v5909_v4 = vadd.f32 %v5908_v60, %v5896_v53  ;;  %v9562_v7 = vor.u32 %v11109_v62, %v9561_v61  ;;  %v7619_v53 = vld [vmem:[#allocation5 + $0x4e8] sm:$0xf0]  ;;  %v8699_v62 = vld [vmem:[#allocation5 + $0xd58] sm:$0xf0] }
 0x1d4   : > { %6146 = vmatpush.bf16.msrb.mxu0 %v9850_v3  ;;  %6115 = vmatmul.bf16.vlgmr.msra.gmra.mxu1 %v11708_v22  ;;  %v7259_v3 = vld [vmem:[#allocation5 + $0x218] sm:$0xf0]  ;;  %v10884_v61 = vld [vmem:[#allocation5 + $0xd14] sm:$0xf] }
 0x1d5   : > { %6159 = vmatpush.bf16.msrb.mxu1 %v10426_v5  ;;  %6128 = vmatmul.bf16.vlgmr.msra.gmra.mxu2 %v11704_v19  ;;  %v10668_v5 = vld [vmem:[#allocation5 + $0x654] sm:$0xf]  ;;  %v7262_v24 = vor.u32 %v10524_v2, %v7259_v3  ;;  %v9851_v3 = vld [vmem:[#allocation5 + $0x1658] sm:$0xf0] }
 0x1d6   : > { %6172 = vmatpush.bf16.msrb.mxu2 %v7550_v6  ;;  %6141 = vmatmul.bf16.vlgmr.msra.gmra.mxu3 %v11706_v20  ;;  %v5844_v6 = vadd.f32 %v11832_v44, %v5831_v50  ;;  %v7838_v28 = vor.u32 %v10668_v5, %v7835_v15  ;;  %v10470_v50 = vld [vmem:[#allocation5 + $0x24] sm:$0xf]  ;;  %v11172_v2 = vld [vmem:[#allocation5 + $0x1614] sm:$0xf] }
 0x1d7   : > { %6185 = vmatpush.bf16.msrb.mxu3 %v8126_v10  ;;  %v11316_v15 = vld [vmem:[#allocation5 + $0x1a94] sm:$0xf] }
 0x1d8   : > { %6147 = vmatpush.bf16.msrb.mxu0 %v9778_v29  ;;  %v5921_v10 = vpop.f32.mrf.mxu2  ;;  %v11235_v29 = vld [vmem:[#allocation5 + $0x1804] sm:$0xf0]  ;;  %v5857_v44 = vadd.f32 %v11834_v52, %v5844_v6  ;;  %v10632_v52 = vld [vmem:[#allocation5 + $0x534] sm:$0xf]  ;;  %v10427_v6 = vld [vmem:[#allocation5 + $0x1ad8] sm:$0xf0] }
 0x1d9   : > { %6160 = vmatpush.bf16.msrb.mxu1 %v10354_v59  ;;  %v5922_v25 = vadd.f32 %v5921_v10, %v5909_v4  ;;  %v5934_v56 = vpop.f32.mrf.mxu3  ;;  %v7187_v59 = vld [vmem:[#allocation5 + $0x188] sm:$0xf0]  ;;  %v10066_v36 = vor.u32 %v11235_v29, %v10065_v27  ;;  %v5910_v8 = vpop.f32.mrf.mxu1  ;;  %v7694_v58 = vor.u32 %v10632_v52, %v7691_v43  ;;  %v9922_v4 = vor.u32 %v11199_v14, %v9921_v55  ;;  %v11010_v27 = vld [vmem:[#allocation5 + $0x1104] sm:$0xf] }
 0x1da   : > { %6173 = vmatpush.bf16.msrb.mxu2 %v7478_v31  ;;  %v10650_v31 = vld [vmem:[#allocation5 + $0x5c4] sm:$0xf]  ;;  %v7190_v37 = vor.u32 %v10506_v30, %v7187_v59  ;;  %v9854_v10 = vor.u32 %v11172_v2, %v9851_v3  ;;  %v9779_v29 = vld [vmem:[#allocation5 + $0x15c8] sm:$0xf0]  ;;  %v10283_v8 = vld [vmem:[#allocation5 + $0x19b8] sm:$0xf0] }
 0x1db   : > { %6186 = vmatpush.bf16.msrb.mxu3 %v8054_v49  ;;  %v5935_v33 = vadd.f32 %v5934_v56, %v5922_v25  ;;  %v5897_v49 = vpop.f32.mrf.mxu0  ;;  %v7766_v42 = vor.u32 %v10650_v31, %v7763_v21  ;;  %v9203_v25 = vld [vmem:[#allocation5 + $0x1148] sm:$0xf0]  ;;  %v11154_v56 = vld [vmem:[#allocation5 + $0x1584] sm:$0xf]  ;;  %v8630_v31 = vor.u32 %v10866_v11, %v8627_v26 }
 0x1dc   : > { %6148 = vmatpush.bf16.msrb.mxu0 %v9706_v41  ;;  %v11298_v30 = vld [vmem:[#allocation5 + $0x1a04] sm:$0xf]  ;;  %v10355_v59 = vld [vmem:[#allocation5 + $0x1a48] sm:$0xf0]  ;;  %v9206_v21 = vor.u32 %v11010_v27, %v9203_v25  ;;  %v10992_v49 = vld [vmem:[#allocation5 + $0x1074] sm:$0xf] }
 0x1dd   : > { %6161 = vmatpush.bf16.msrb.mxu1 %v10282_v0  ;;  %v6876_v41 = vpack.c.bf16 %v5935_v33, %v5857_v44  ;;  %v11217_v0 = vld [vmem:[#allocation5 + $0x1774] sm:$0xf0]  ;;  %v9782_v44 = vor.u32 %v11154_v56, %v9779_v29  ;;  %v10848_v33 = vld [vmem:[#allocation5 + $0xbf4] sm:$0xf]  ;;  %v10974_v52 = vld [vmem:[#allocation5 + $0xfe4] sm:$0xf] }
 0x1de   : > { %6174 = vmatpush.bf16.msrb.mxu2 %v7406_v32  ;;  %v10488_v32 = vld [vmem:[#allocation5 + $0xb4] sm:$0xf]  ;;  %v9994_v47 = vor.u32 %v11217_v0, %v9993_v40  ;;  %v9710_v0 = vor.u32 %v11136_v39, %v9707_v17  ;;  %v11226_v27 = vld [vmem:[#allocation5 + $0x17c4] sm:$0xf]  ;;  %v9995_v39 = vld [vmem:[#allocation5 + $0x1778] sm:$0xf0] }
 0x1df   : > { %6187 = vmatpush.bf16.msrb.mxu3 %v7982_v45  ;;  %6885 = vst [vmem:[%s11774_s8 + $0x10] sm:$0xff] %v6876_v41  ;;  %v9345_v45 = vld [vmem:[#allocation5 + $0x1220] sm:$0xf]  ;;  %v7118_v48 = vor.u32 %v10488_v32, %v7115_v12  ;;  %v11280_v40 = vld [vmem:[#allocation5 + $0x1974] sm:$0xf] }
 0x1e0   : > { %6149 = vmatpush.bf16.msrb.mxu0 %v9634_v57  ;;  %v5923_v57 = vpop.f32.mrf.mxu2  ;;  %v10830_v32 = vld [vmem:[#allocation5 + $0xb64] sm:$0xf]  ;;  %v8483_v12 = vld [vmem:[#allocation5 + $0xba8] sm:$0xf0]  ;;  %v10286_v43 = vor.u32 %v11280_v40, %v10283_v8 }
 0x1e1   : > { %6162 = vmatpush.bf16.msrb.mxu1 %v10210_v54  ;;  %v7043_v54 = vld [vmem:[#allocation5 + $0x68] sm:$0xf0]  ;;  %v5936_v60 = vpop.f32.mrf.mxu3  ;;  %v8486_v14 = vor.u32 %v10830_v32, %v8483_v12  ;;  %v10758_v40 = vld [vmem:[#allocation5 + $0x924] sm:$0xf] }
 0x1e2   : > { %6175 = vmatpush.bf16.msrb.mxu2 %v7334_v23  ;;  %v10614_v23 = vld [vmem:[#allocation5 + $0x4a4] sm:$0xf]  ;;  %v7046_v5 = vor.u32 %v10470_v50, %v7043_v54  ;;  %v8411_v54 = vld [vmem:[#allocation5 + $0xb18] sm:$0xf0]  ;;  %v8195_v8 = vld [vmem:[#allocation5 + $0x968] sm:$0xf0] }
 0x1e3   : > { %6188 = vmatpush.bf16.msrb.mxu3 %v7910_v63  ;;  %v9346_v63 = vor.u32 %v11055_v46, %v9345_v45  ;;  %v11118_v45 = vld [vmem:[#allocation5 + $0x1464] sm:$0xf]  ;;  %v9635_v46 = vld [vmem:[#allocation5 + $0x14a8] sm:$0xf0] }
 0x1e4   : > { %6150 = vmatpush.bf16.msrb.mxu0 %v9562_v7  ;;  %v7622_v7 = vor.u32 %v10614_v23, %v7619_v53  ;;  %v9638_v57 = vor.u32 %v11118_v45, %v9635_v46  ;;  %v10956_v23 = vld [vmem:[#allocation5 + $0xf54] sm:$0xf]  ;;  %v8771_v32 = vld [vmem:[#allocation5 + $0xde8] sm:$0xf0]  ;;  %v11046_v12 = vld [vmem:[#allocation5 + $0x1224] sm:$0xf] }
 0x1e5   : > { %6163 = vmatpush.bf16.msrb.mxu1 %v10138_v9  ;;  %v8702_v9 = vor.u32 %v10884_v61, %v8699_v62  ;;  %v8987_v61 = vld [vmem:[#allocation5 + $0xf98] sm:$0xf0]  ;;  %v11100_v62 = vld [vmem:[#allocation5 + $0x13d4] sm:$0xf]  ;;  %v9923_v45 = vld [vmem:[#allocation5 + $0x16e8] sm:$0xf0] }
 0x1e6   : > { %6176 = vmatpush.bf16.msrb.mxu2 %v7262_v24  ;;  %v9278_v24 = vor.u32 %v11028_v16, %v9275_v1  ;;  %v9563_v16 = vld [vmem:[#allocation5 + $0x1418] sm:$0xf0]  ;;  %v8990_v3 = vor.u32 %v10956_v23, %v8987_v61  ;;  %v10894_v23 = vld [vmem:[#allocation5 + $0xd5c] sm:$0xf0] }
 0x1e7   : > { %6189 = vmatpush.bf16.msrb.mxu3 %v7838_v28  ;;  %v10430_v28 = vor.u32 %v11316_v15, %v10427_v6  ;;  %v10139_v1 = vld [vmem:[#allocation5 + $0x1898] sm:$0xf0]  ;;  %v8339_v15 = vld [vmem:[#allocation5 + $0xa88] sm:$0xf0]  ;;  %v10938_v6 = vld [vmem:[#allocation5 + $0xec4] sm:$0xf] }
 0x1e8   : > { %6151 = vmatpush.bf16.msrb.mxu0 %v9490_v51  ;;  %v8555_v51 = vld [vmem:[#allocation5 + $0xc38] sm:$0xf0] }
 0x1e9   : > { %6164 = vmatpush.bf16.msrb.mxu1 %v10066_v36  ;;  %v10358_v36 = vor.u32 %v11298_v30, %v10355_v59  ;;  %v8558_v41 = vor.u32 %v10848_v33, %v8555_v51  ;;  %v10776_v59 = vld [vmem:[#allocation5 + $0x9b4] sm:$0xf]  ;;  %v8843_v51 = vld [vmem:[#allocation5 + $0xe78] sm:$0xf0] }
 0x1ea   : > { %6177 = vmatpush.bf16.msrb.mxu2 %v7190_v37  ;;  %v9131_v37 = vld [vmem:[#allocation5 + $0x10b8] sm:$0xf0] }
 0x1eb   : > { %6190 = vmatpush.bf16.msrb.mxu3 %v7766_v42  ;;  %v9134_v42 = vor.u32 %v10992_v49, %v9131_v37  ;;  %v11064_v49 = vld [vmem:[#allocation5 + $0x12b4] sm:$0xf] }
 0x1ec   : > { %6152 = vmatpush.bf16.msrb.mxu0 %v9418_v13  ;;  %v9059_v13 = vld [vmem:[#allocation5 + $0x1028] sm:$0xf0]  ;;  %v11208_v37 = vld [vmem:[#allocation5 + $0x1734] sm:$0xf] }
 0x1ed   : > { %6165 = vmatpush.bf16.msrb.mxu1 %v9994_v47  ;;  %v11262_v47 = vld [vmem:[#allocation5 + $0x18e4] sm:$0xf]  ;;  %v9062_v50 = vor.u32 %v10974_v52, %v9059_v13  ;;  %v9998_v52 = vor.u32 %v11208_v37, %v9995_v39 }
 0x1ee   : > { %6178 = vmatpush.bf16.msrb.mxu2 %v7118_v48  ;;  %v10211_v48 = vld [vmem:[#allocation5 + $0x1928] sm:$0xf0]  ;;  %v11190_v13 = vld [vmem:[#allocation5 + $0x16a4] sm:$0xf] }
 0x1ef   : > { %6191 = vmatpush.bf16.msrb.mxu3 %v7694_v58  ;;  %v10812_v58 = vld [vmem:[#allocation5 + $0xad4] sm:$0xf]  ;;  %v10214_v60 = vor.u32 %v11262_v47, %v10211_v48  ;;  %v7553_v48 = vld [vmem:[#allocation5 + $0x418] sm:$0xf] }
 0x1f0   : > { %6153 = vmatpush.bf16.msrb.mxu0 %v9346_v63  ;;  %v11861_v55 = vpop.f32.mrf.mxu0  ;;  %v11244_v63 = vld [vmem:[#allocation5 + $0x1854] sm:$0xf]  ;;  %v8414_v2 = vor.u32 %v10812_v58, %v8411_v54  ;;  %v10750_v58 = vld [vmem:[#allocation5 + $0x8dc] sm:$0xf0]  ;;  %v8705_v54 = vld [vmem:[#allocation5 + $0xd18] sm:$0xf] }
 0x1f1   : > { %6166 = vmatpush.bf16.msrb.mxu1 %v9922_v4  ;;  %v11863_v53 = vpop.f32.mrf.mxu1  ;;  %v9566_v4 = vor.u32 %v11100_v62, %v9563_v16  ;;  %v9281_v62 = vld [vmem:[#allocation5 + $0x1198] sm:$0xf]  ;;  %v11038_v16 = vld [vmem:[#allocation5 + $0x11dc] sm:$0xf0] }
 0x1f2   : > { %6179 = vmatpush.bf16.msrb.mxu2 %v7046_v5  ;;  %v10794_v5 = vld [vmem:[#allocation5 + $0xa44] sm:$0xf] }
 0x1f3   : > { %6192 = vmatpush.bf16.msrb.mxu3 %v7622_v7  ;;  %6154 = vmatmul.bf16.vlgmr.msrb.gmra.mxu0 %v11715_v35  ;;  %v10142_v7 = vor.u32 %v11244_v63, %v10139_v1  ;;  %v8342_v56 = vor.u32 %v10794_v5, %v8339_v15  ;;  %v9926_v63 = vor.u32 %v11190_v13, %v9923_v45  ;;  %v10588_v5 = vld [vmem:[#allocation5 + $0x3cc] sm:$0xf0]  ;;  %v8057_v15 = vld [vmem:[#allocation5 + $0x808] sm:$0xf] }
 0x1f4   : > { %6198 = vmatpush.bf16.msra.mxu0 %v8702_v9  ;;  %6167 = vmatmul.bf16.vlgmr.msrb.gmra.mxu1 %v11717_v38  ;;  %v8915_v9 = vld [vmem:[#allocation5 + $0xf08] sm:$0xf0] }
 0x1f5   : > { %6211 = vmatpush.bf16.msra.mxu1 %v9278_v24  ;;  %6180 = vmatmul.bf16.vlgmr.msrb.gmra.mxu2 %v11702_v18  ;;  %v11082_v24 = vld [vmem:[#allocation5 + $0x1344] sm:$0xf]  ;;  %v8918_v29 = vor.u32 %v10938_v6, %v8915_v9  ;;  %v9282_v6 = vor.u32 %v11038_v16, %v9281_v62  ;;  %v8633_v9 = vld [vmem:[#allocation5 + $0xc88] sm:$0xf] }
 0x1f6   : > { %6224 = vmatpush.bf16.msra.mxu2 %v9854_v10  ;;  %6193 = vmatmul.bf16.vlgmr.msrb.gmra.mxu3 %v11708_v22  ;;  %v9491_v10 = vld [vmem:[#allocation5 + $0x1388] sm:$0xf0] }
 0x1f7   : > { %6237 = vmatpush.bf16.msra.mxu3 %v10430_v28  ;;  %v10067_v28 = vld [vmem:[#allocation5 + $0x1808] sm:$0xf0]  ;;  %v9494_v30 = vor.u32 %v11082_v24, %v9491_v10  ;;  %v10876_v24 = vld [vmem:[#allocation5 + $0xccc] sm:$0xf0]  ;;  %v9209_v10 = vld [vmem:[#allocation5 + $0x1108] sm:$0xf] }
 0x1f8   : > { %6199 = vmatpush.bf16.msra.mxu0 %v8630_v31  ;;  %v11865_v11 = vpop.f32.mrf.mxu2  ;;  %v5949_v25 = vpop.f32.mrf.mxu0  ;;  %v8267_v31 = vld [vmem:[#allocation5 + $0x9f8] sm:$0xf0]  ;;  %v10070_v33 = vor.u32 %v11226_v27, %v10067_v28  ;;  %v11020_v27 = vld [vmem:[#allocation5 + $0x114c] sm:$0xf0] }
 0x1f9   : > { %6212 = vmatpush.bf16.msra.mxu1 %v9206_v21  ;;  %v11867_v26 = vpop.f32.mrf.mxu3  ;;  %v10920_v21 = vld [vmem:[#allocation5 + $0xe34] sm:$0xf]  ;;  %v8270_v17 = vor.u32 %v10776_v59, %v8267_v31  ;;  %v7985_v59 = vld [vmem:[#allocation5 + $0x778] sm:$0xf]  ;;  %v9210_v31 = vor.u32 %v11020_v27, %v9209_v10 }
 0x1fa   : > { %6225 = vmatpush.bf16.msra.mxu2 %v9782_v44  ;;  %v5962_v44 = vpop.f32.mrf.mxu1 }
 0x1fb   : > { %6238 = vmatpush.bf16.msra.mxu3 %v10358_v36  ;;  %v9419_v36 = vld [vmem:[#allocation5 + $0x12f8] sm:$0xf0]  ;;  %v8561_v44 = vld [vmem:[#allocation5 + $0xbf8] sm:$0xf] }
 0x1fc   : > { %6200 = vmatpush.bf16.msra.mxu0 %v8558_v41  ;;  %v8846_v41 = vor.u32 %v10920_v21, %v8843_v51  ;;  %v10714_v21 = vld [vmem:[#allocation5 + $0x7bc] sm:$0xf0]  ;;  %v9137_v51 = vld [vmem:[#allocation5 + $0x1078] sm:$0xf] }
 0x1fd   : > { %6213 = vmatpush.bf16.msra.mxu1 %v9134_v42  ;;  %v9422_v42 = vor.u32 %v11064_v49, %v9419_v36  ;;  %v11002_v49 = vld [vmem:[#allocation5 + $0x10bc] sm:$0xf0]  ;;  %v7986_v37 = vor.u32 %v10714_v21, %v7985_v59 }
 0x1fe   : > { %6226 = vmatpush.bf16.msra.mxu2 %v9710_v0  ;;  %v10902_v0 = vld [vmem:[#allocation5 + $0xda4] sm:$0xf]  ;;  %v10498_v59 = vld [vmem:[#allocation5 + $0xfc] sm:$0xf0] }
 0x1ff   : > { %6239 = vmatpush.bf16.msra.mxu3 %v10286_v43  ;;  %v9347_v43 = vld [vmem:[#allocation5 + $0x1268] sm:$0xf0] }
 0x200   : > { %6201 = vmatpush.bf16.msra.mxu0 %v8486_v14  ;;  %v5975_v46 = vpop.f32.mrf.mxu2  ;;  %v10606_v14 = vld [vmem:[#allocation5 + $0x45c] sm:$0xf0]  ;;  %v9350_v61 = vor.u32 %v11046_v12, %v9347_v43  ;;  %v9065_v12 = vld [vmem:[#allocation5 + $0xfe8] sm:$0xf] }
 0x201   : > { %6214 = vmatpush.bf16.msra.mxu1 %v9062_v50  ;;  %v5988_v47 = vpop.f32.mrf.mxu3  ;;  %v8129_v50 = vld [vmem:[#allocation5 + $0x898] sm:$0xf]  ;;  %v7554_v1 = vor.u32 %v10606_v14, %v7553_v48  ;;  %v10534_v14 = vld [vmem:[#allocation5 + $0x21c] sm:$0xf0] }
 0x202   : > { %6227 = vmatpush.bf16.msra.mxu2 %v9638_v57  ;;  %v8198_v57 = vor.u32 %v10758_v40, %v8195_v8  ;;  %v10552_v40 = vld [vmem:[#allocation5 + $0x2ac] sm:$0xf0]  ;;  %v7913_v8 = vld [vmem:[#allocation5 + $0x6e8] sm:$0xf]  ;;  %v7265_v48 = vld [vmem:[#allocation5 + $0x1d8] sm:$0xf] }
 0x203   : > { %6240 = vmatpush.bf16.msra.mxu3 %v10214_v60  ;;  %v8774_v60 = vor.u32 %v10902_v0, %v8771_v32  ;;  %v8489_v0 = vld [vmem:[#allocation5 + $0xb68] sm:$0xf]  ;;  %v10840_v32 = vld [vmem:[#allocation5 + $0xbac] sm:$0xf0]  ;;  %v7266_v62 = vor.u32 %v10534_v14, %v7265_v48  ;;  %v9857_v48 = vld [vmem:[#allocation5 + $0x1618] sm:$0xf] }
 0x204   : > { %6202 = vmatpush.bf16.msra.mxu0 %v8414_v2  ;;  %v8130_v2 = vor.u32 %v10750_v58, %v8129_v50  ;;  %v8490_v47 = vor.u32 %v10840_v32, %v8489_v0  ;;  %v7841_v50 = vld [vmem:[#allocation5 + $0x658] sm:$0xf]  ;;  %v10678_v58 = vld [vmem:[#allocation5 + $0x69c] sm:$0xf0]  ;;  %v10624_v0 = vld [vmem:[#allocation5 + $0x4ec] sm:$0xf0] }
 0x205   : > { %6215 = vmatpush.bf16.msra.mxu1 %v8990_v3  ;;  %v8706_v3 = vor.u32 %v10894_v23, %v8705_v54  ;;  %v8417_v54 = vld [vmem:[#allocation5 + $0xad8] sm:$0xf]  ;;  %v10822_v23 = vld [vmem:[#allocation5 + $0xb1c] sm:$0xf0]  ;;  %v7842_v16 = vor.u32 %v10678_v58, %v7841_v50  ;;  %v8201_v32 = vld [vmem:[#allocation5 + $0x928] sm:$0xf] }
 0x206   : > { %6228 = vmatpush.bf16.msra.mxu2 %v9566_v4  ;;  %v7481_v4 = vld [vmem:[#allocation5 + $0x388] sm:$0xf]  ;;  %v11182_v14 = vld [vmem:[#allocation5 + $0x165c] sm:$0xf0]  ;;  %v10433_v50 = vld [vmem:[#allocation5 + $0x1a98] sm:$0xf] }
 0x207   : > { %6241 = vmatpush.bf16.msra.mxu3 %v10142_v7  ;;  %v10732_v7 = vld [vmem:[#allocation5 + $0x84c] sm:$0xf0]  ;;  %v7482_v28 = vor.u32 %v10588_v5, %v7481_v4 }
 0x208   : > { %6203 = vmatpush.bf16.msra.mxu0 %v8342_v56  ;;  %v8058_v25 = vor.u32 %v10732_v7, %v8057_v15  ;;  %v8634_v56 = vor.u32 %v10876_v24, %v8633_v9  ;;  %v10660_v5 = vld [vmem:[#allocation5 + $0x60c] sm:$0xf0]  ;;  %v8345_v15 = vld [vmem:[#allocation5 + $0xa48] sm:$0xf] }
 0x209   : > { %6216 = vmatpush.bf16.msra.mxu1 %v8918_v29  ;;  %v7409_v29 = vld [vmem:[#allocation5 + $0x2f8] sm:$0xf]  ;;  %v8921_v9 = vld [vmem:[#allocation5 + $0xec8] sm:$0xf]  ;;  %v10948_v24 = vld [vmem:[#allocation5 + $0xf0c] sm:$0xf0] }
 0x20a   : > { %6229 = vmatpush.bf16.msra.mxu2 %v9494_v30  ;;  %v10570_v30 = vld [vmem:[#allocation5 + $0x33c] sm:$0xf0]  ;;  %v8922_v21 = vor.u32 %v10948_v24, %v8921_v9  ;;  %v11164_v9 = vld [vmem:[#allocation5 + $0x15cc] sm:$0xf0]  ;;  %v10361_v24 = vld [vmem:[#allocation5 + $0x1a08] sm:$0xf] }
 0x20b   : > { %6242 = vmatpush.bf16.msra.mxu3 %v10070_v33  ;;  %v10858_v33 = vld [vmem:[#allocation5 + $0xc3c] sm:$0xf0]  ;;  %v7410_v36 = vor.u32 %v10570_v30, %v7409_v29  ;;  %v7121_v30 = vld [vmem:[#allocation5 + $0xb8] sm:$0xf] }
 0x20c   : > { %6204 = vmatpush.bf16.msra.mxu0 %v8270_v17  ;;  %v8562_v39 = vor.u32 %v10858_v33, %v8561_v44  ;;  %v7337_v17 = vld [vmem:[#allocation5 + $0x268] sm:$0xf]  ;;  %v10642_v44 = vld [vmem:[#allocation5 + $0x57c] sm:$0xf0]  ;;  %v8273_v33 = vld [vmem:[#allocation5 + $0x9b8] sm:$0xf] }
 0x20d   : > { %6217 = vmatpush.bf16.msra.mxu1 %v8846_v41  ;;  %v9138_v41 = vor.u32 %v11002_v49, %v9137_v51  ;;  %v7338_v13 = vor.u32 %v10552_v40, %v7337_v17  ;;  %v10786_v51 = vld [vmem:[#allocation5 + $0x9fc] sm:$0xf0]  ;;  %v8849_v49 = vld [vmem:[#allocation5 + $0xe38] sm:$0xf]  ;;  %v7049_v17 = vld [vmem:[#allocation5 + $0x28] sm:$0xf] }
 0x20e   : > { %6230 = vmatpush.bf16.msra.mxu2 %v9422_v42  ;;  %v10696_v42 = vld [vmem:[#allocation5 + $0x72c] sm:$0xf0] }
 0x20f   : > { %6243 = vmatpush.bf16.msra.mxu3 %v9998_v52  ;;  %v10984_v52 = vld [vmem:[#allocation5 + $0x102c] sm:$0xf0]  ;;  %v7914_v46 = vor.u32 %v10696_v42, %v7913_v8  ;;  %v7625_v42 = vld [vmem:[#allocation5 + $0x4a8] sm:$0xf] }
 0x210   : > { %6205 = vmatpush.bf16.msra.mxu0 %v8198_v57  ;;  %v11873_v43 = vpop.f32.mrf.mxu0  ;;  %v9066_v57 = vor.u32 %v10984_v52, %v9065_v12  ;;  %v10480_v40 = vld [vmem:[#allocation5 + $0x6c] sm:$0xf0] }
 0x211   : > { %6218 = vmatpush.bf16.msra.mxu1 %v8774_v60  ;;  %v11875_v45 = vpop.f32.mrf.mxu1  ;;  %v8993_v60 = vld [vmem:[#allocation5 + $0xf58] sm:$0xf]  ;;  %v10768_v52 = vld [vmem:[#allocation5 + $0x96c] sm:$0xf0]  ;;  %v7050_v58 = vor.u32 %v10480_v40, %v7049_v17  ;;  %v7987_v17 = vld [vmem:[#allocation5 + $0x7c0] sm:$0xf0] }
 0x212   : > { %6231 = vmatpush.bf16.msra.mxu2 %v9350_v61  ;;  %v10966_v61 = vld [vmem:[#allocation5 + $0xf9c] sm:$0xf0] }
 0x213   : > { %6244 = vmatpush.bf16.msra.mxu3 %v9926_v63  ;;  %6206 = vmatmul.bf16.vlgmr.msra.gmra.mxu0 %v11704_v19  ;;  %v8418_v63 = vor.u32 %v10822_v23, %v8417_v54  ;;  %v8994_v4 = vor.u32 %v10966_v61, %v8993_v60  ;;  %v11326_v54 = vld [vmem:[#allocation5 + $0x1adc] sm:$0xf0]  ;;  %v10597_v23 = vld [vmem:[#allocation5 + $0x41c] sm:$0xf]  ;;  %v7555_v60 = vld [vmem:[#allocation5 + $0x460] sm:$0xf0]  ;;  %v7626_v61 = vor.u32 %v10624_v0, %v7625_v42 }
 0x214   : > { %6250 = vmatpush.bf16.msrb.mxu0 %v7554_v1  ;;  %6219 = vmatmul.bf16.vlgmr.msra.gmra.mxu1 %v11706_v20  ;;  %v7193_v1 = vld [vmem:[#allocation5 + $0x148] sm:$0xf] }
 0x215   : > { %6263 = vmatpush.bf16.msrb.mxu1 %v8130_v2  ;;  %6232 = vmatmul.bf16.vlgmr.msra.gmra.mxu2 %v11715_v35  ;;  %v10516_v2 = vld [vmem:[#allocation5 + $0x18c] sm:$0xf0]  ;;  %v9641_v0 = vld [vmem:[#allocation5 + $0x1468] sm:$0xf] }
 0x216   : > { %6276 = vmatpush.bf16.msrb.mxu2 %v8706_v3  ;;  %6245 = vmatmul.bf16.vlgmr.msra.gmra.mxu3 %v11717_v38  ;;  %v7769_v3 = vld [vmem:[#allocation5 + $0x5c8] sm:$0xf] }
 0x217   : > { %6289 = vmatpush.bf16.msrb.mxu3 %v9282_v6  ;;  %v10804_v6 = vld [vmem:[#allocation5 + $0xa8c] sm:$0xf0] }
 0x218   : > { %6251 = vmatpush.bf16.msrb.mxu0 %v7482_v28  ;;  %v11877_v7 = vpop.f32.mrf.mxu2  ;;  %v6001_v27 = vpop.f32.mrf.mxu0  ;;  %v7194_v28 = vor.u32 %v10516_v2, %v7193_v1  ;;  %v8346_v29 = vor.u32 %v10804_v6, %v8345_v15  ;;  %v7558_v15 = vor.u32 %v10597_v23, %v7555_v60  ;;  %v9785_v6 = vld [vmem:[#allocation5 + $0x1588] sm:$0xf]  ;;  %v9569_v60 = vld [vmem:[#allocation5 + $0x13d8] sm:$0xf] }
 0x219   : > { %6264 = vmatpush.bf16.msrb.mxu1 %v8058_v25  ;;  %v11879_v10 = vpop.f32.mrf.mxu3  ;;  %v6014_v25 = vpop.f32.mrf.mxu1 }
 0x21a   : > { %6277 = vmatpush.bf16.msrb.mxu2 %v8634_v56  ;;  %v7770_v56 = vor.u32 %v10660_v5, %v7769_v3  ;;  %v9858_v3 = vor.u32 %v11182_v14, %v9857_v48  ;;  %v10434_v5 = vor.u32 %v11326_v54, %v10433_v50  ;;  %v10579_v25 = vld [vmem:[#allocation5 + $0x38c] sm:$0xf] }
 0x21b   : > { %6290 = vmatpush.bf16.msrb.mxu3 %v9210_v31  ;;  %v7697_v31 = vld [vmem:[#allocation5 + $0x538] sm:$0xf]  ;;  %v10687_v48 = vld [vmem:[#allocation5 + $0x6ec] sm:$0xf] }
 0x21c   : > { %6252 = vmatpush.bf16.msrb.mxu0 %v7410_v36  ;;  %v10930_v36 = vld [vmem:[#allocation5 + $0xe7c] sm:$0xf0]  ;;  %v7698_v8 = vor.u32 %v10642_v44, %v7697_v31  ;;  %v9713_v44 = vld [vmem:[#allocation5 + $0x14f8] sm:$0xf] }
 0x21d   : > { %6265 = vmatpush.bf16.msrb.mxu1 %v7986_v37  ;;  %v1099_v37 = vperm.slane %v11840_v34, 6  ;;  %v8850_v12 = vor.u32 %v10930_v36, %v8849_v49  ;;  %v11290_v36 = vld [vmem:[#allocation5 + $0x19bc] sm:$0xf0] }
 0x21e   : > { %6278 = vmatpush.bf16.msrb.mxu2 %v8562_v39  ;;  %v7122_v39 = vor.u32 %v10498_v59, %v7121_v30  ;;  %v8059_v30 = vld [vmem:[#allocation5 + $0x850] sm:$0xf0]  ;;  %v9786_v59 = vor.u32 %v11164_v9, %v9785_v6 }
 0x21f   : > { %6291 = vmatpush.bf16.msrb.mxu3 %v9138_v41  ;;  %v8274_v41 = vor.u32 %v10786_v51, %v8273_v33  ;;  %v5948_v1 = vadd.f32 %v11861_v55, %v1099_v37  ;;  %v11146_v33 = vld [vmem:[#allocation5 + $0x153c] sm:$0xf0]  ;;  %v10289_v51 = vld [vmem:[#allocation5 + $0x1978] sm:$0xf]  ;;  %v10561_v37 = vld [vmem:[#allocation5 + $0x2fc] sm:$0xf] }
 0x220   : > { %6253 = vmatpush.bf16.msrb.mxu0 %v7338_v13  ;;  %v8777_v13 = vld [vmem:[#allocation5 + $0xda8] sm:$0xf]  ;;  %v9714_v40 = vor.u32 %v11146_v33, %v9713_v44 }
 0x221   : > { %6266 = vmatpush.bf16.msrb.mxu1 %v7914_v46  ;;  %v10912_v46 = vld [vmem:[#allocation5 + $0xdec] sm:$0xf0]  ;;  %v5961_v55 = vadd.f32 %v11863_v53, %v5948_v1  ;;  %v10705_v53 = vld [vmem:[#allocation5 + $0x77c] sm:$0xf] }
 0x222   : > { %6279 = vmatpush.bf16.msrb.mxu2 %v8490_v47  ;;  %v6027_v47 = vpop.f32.mrf.mxu2  ;;  %v8778_v2 = vor.u32 %v10912_v46, %v8777_v13  ;;  %v11272_v13 = vld [vmem:[#allocation5 + $0x192c] sm:$0xf0]  ;;  %v10543_v46 = vld [vmem:[#allocation5 + $0x26c] sm:$0xf]  ;;  %v10525_v1 = vld [vmem:[#allocation5 + $0x1dc] sm:$0xf] }
 0x223   : > { %6292 = vmatpush.bf16.msrb.mxu3 %v9066_v57  ;;  %v6040_v57 = vpop.f32.mrf.mxu3  ;;  %v7339_v47 = vld [vmem:[#allocation5 + $0x2b0] sm:$0xf0] }
 0x224   : > { %6254 = vmatpush.bf16.msrb.mxu0 %v7266_v62  ;;  %v8202_v62 = vor.u32 %v10768_v52, %v8201_v32  ;;  %v11128_v32 = vld [vmem:[#allocation5 + $0x14ac] sm:$0xf0]  ;;  %v7990_v52 = vor.u32 %v10705_v53, %v7987_v17  ;;  %v10001_v53 = vld [vmem:[#allocation5 + $0x1738] sm:$0xf] }
 0x225   : > { %6267 = vmatpush.bf16.msrb.mxu1 %v7842_v16  ;;  %v10741_v16 = vld [vmem:[#allocation5 + $0x89c] sm:$0xf]  ;;  %v9642_v50 = vor.u32 %v11128_v32, %v9641_v0  ;;  %v7699_v0 = vld [vmem:[#allocation5 + $0x580] sm:$0xf0] }
 0x226   : > { %6280 = vmatpush.bf16.msrb.mxu2 %v8418_v63  ;;  %v8131_v63 = vld [vmem:[#allocation5 + $0x8e0] sm:$0xf0] }
 0x227   : > { %6293 = vmatpush.bf16.msrb.mxu3 %v8994_v4  ;;  %v1100_v4 = vperm.slane %v11840_v34, 7  ;;  %v8134_v27 = vor.u32 %v10741_v16, %v8131_v63  ;;  %v11254_v63 = vld [vmem:[#allocation5 + $0x189c] sm:$0xf0] }
 0x228   : > { %6255 = vmatpush.bf16.msrb.mxu0 %v7194_v28  ;;  %v11308_v28 = vld [vmem:[#allocation5 + $0x1a4c] sm:$0xf0] }
 0x229   : > { %6268 = vmatpush.bf16.msrb.mxu1 %v7770_v56  ;;  %v7483_v56 = vld [vmem:[#allocation5 + $0x3d0] sm:$0xf0]  ;;  %v6026_v34 = vadd.f32 %v11877_v7, %v1100_v4  ;;  %v10362_v31 = vor.u32 %v11308_v28, %v10361_v24  ;;  %v5974_v7 = vadd.f32 %v11865_v11, %v5961_v55  ;;  %v10669_v4 = vld [vmem:[#allocation5 + $0x65c] sm:$0xf]  ;;  %v11092_v28 = vld [vmem:[#allocation5 + $0x138c] sm:$0xf0] }
 0x22a   : > { %6281 = vmatpush.bf16.msrb.mxu2 %v8346_v29  ;;  %v10723_v29 = vld [vmem:[#allocation5 + $0x80c] sm:$0xf]  ;;  %v7915_v11 = vld [vmem:[#allocation5 + $0x730] sm:$0xf0]  ;;  %v11236_v55 = vld [vmem:[#allocation5 + $0x180c] sm:$0xf0] }
 0x22b   : > { %6294 = vmatpush.bf16.msrb.mxu3 %v8922_v21  ;;  %v7486_v21 = vor.u32 %v10579_v25, %v7483_v56  ;;  %v8062_v49 = vor.u32 %v10723_v29, %v8059_v30  ;;  %v5987_v14 = vadd.f32 %v11867_v26, %v5974_v7  ;;  %v7918_v16 = vor.u32 %v10687_v48, %v7915_v11  ;;  %v7843_v26 = vld [vmem:[#allocation5 + $0x6a0] sm:$0xf0]  ;;  %v10073_v25 = vld [vmem:[#allocation5 + $0x17c8] sm:$0xf]  ;;  %v11200_v48 = vld [vmem:[#allocation5 + $0x16ec] sm:$0xf0] }
 0x22c   : > { %6256 = vmatpush.bf16.msrb.mxu0 %v7122_v39  ;;  %v7411_v39 = vld [vmem:[#allocation5 + $0x340] sm:$0xf0]  ;;  %v7846_v56 = vor.u32 %v10669_v4, %v7843_v26  ;;  %v10471_v11 = vld [vmem:[#allocation5 + $0x2c] sm:$0xf]  ;;  %v11317_v4 = vld [vmem:[#allocation5 + $0x1a9c] sm:$0xf] }
 0x22d   : > { %6269 = vmatpush.bf16.msrb.mxu1 %v7698_v8  ;;  %v6039_v8 = vadd.f32 %v11879_v10, %v6026_v34  ;;  %v7414_v42 = vor.u32 %v10561_v37, %v7411_v39  ;;  %v7195_v34 = vld [vmem:[#allocation5 + $0x190] sm:$0xf0]  ;;  %v9425_v37 = vld [vmem:[#allocation5 + $0x12b8] sm:$0xf]  ;;  %v11074_v39 = vld [vmem:[#allocation5 + $0x12fc] sm:$0xf0] }
 0x22e   : > { %6282 = vmatpush.bf16.msrb.mxu2 %v8274_v41  ;;  %v10290_v41 = vor.u32 %v11290_v36, %v10289_v51  ;;  %v9426_v32 = vor.u32 %v11074_v39, %v9425_v37  ;;  %v10435_v26 = vld [vmem:[#allocation5 + $0x1ae0] sm:$0xf0]  ;;  %v11281_v39 = vld [vmem:[#allocation5 + $0x197c] sm:$0xf] }
 0x22f   : > { %6295 = vmatpush.bf16.msrb.mxu3 %v8850_v12  ;;  %v10217_v12 = vld [vmem:[#allocation5 + $0x18e8] sm:$0xf]  ;;  %v9715_v37 = vld [vmem:[#allocation5 + $0x1540] sm:$0xf0] }
 0x230   : > { %6257 = vmatpush.bf16.msrb.mxu0 %v7050_v58  ;;  %v6051_v57 = vpop.f32.mrf.mxu0  ;;  %v10218_v10 = vor.u32 %v11272_v13, %v10217_v12  ;;  %v7342_v58 = vor.u32 %v10543_v46, %v7339_v47  ;;  %v9353_v12 = vld [vmem:[#allocation5 + $0x1228] sm:$0xf] }
 0x231   : > { %6270 = vmatpush.bf16.msrb.mxu1 %v7626_v61  ;;  %v6052_v54 = vadd.f32 %v6051_v57, %v6039_v8  ;;  %v6064_v23 = vpop.f32.mrf.mxu1  ;;  %v11110_v61 = vld [vmem:[#allocation5 + $0x141c] sm:$0xf0]  ;;  %v9929_v47 = vld [vmem:[#allocation5 + $0x16a8] sm:$0xf]  ;;  %v7051_v57 = vld [vmem:[#allocation5 + $0x70] sm:$0xf0] }
 0x232   : > { %6283 = vmatpush.bf16.msrb.mxu2 %v8202_v62  ;;  %v10145_v62 = vld [vmem:[#allocation5 + $0x1858] sm:$0xf]  ;;  %v11218_v8 = vld [vmem:[#allocation5 + $0x177c] sm:$0xf0] }
 0x233   : > { %6296 = vmatpush.bf16.msrb.mxu3 %v8778_v2  ;;  %6258 = vmatmul.bf16.vlgmr.msrb.gmra.mxu0 %v11702_v18  ;;  %v7267_v2 = vld [vmem:[#allocation5 + $0x220] sm:$0xf0]  ;;  %v10146_v6 = vor.u32 %v11254_v63, %v10145_v62  ;;  %v10002_v13 = vor.u32 %v11218_v8, %v10001_v53  ;;  %v11173_v63 = vld [vmem:[#allocation5 + $0x161c] sm:$0xf]  ;;  %v10831_v8 = vld [vmem:[#allocation5 + $0xb6c] sm:$0xf] }
 0x234   : > { %6302 = vmatpush.bf16.msra.mxu0 %v9858_v3  ;;  %6271 = vmatmul.bf16.vlgmr.msrb.gmra.mxu1 %v11708_v22  ;;  %v6065_v3 = vadd.f32 %v6064_v23, %v6052_v54  ;;  %v7270_v9 = vor.u32 %v10525_v1, %v7267_v2  ;;  %v10885_v23 = vld [vmem:[#allocation5 + $0xd1c] sm:$0xf]  ;;  %v9859_v1 = vld [vmem:[#allocation5 + $0x1660] sm:$0xf0]  ;;  %v9930_v2 = vor.u32 %v11200_v48, %v9929_v47 }
 0x235   : > { %6315 = vmatpush.bf16.msra.mxu1 %v10434_v5  ;;  %6284 = vmatmul.bf16.vlgmr.msrb.gmra.mxu2 %v11704_v19  ;;  %v6000_v5 = vadd.f32 %v11873_v43, %v5987_v14  ;;  %v10291_v53 = vld [vmem:[#allocation5 + $0x19c0] sm:$0xf0] }
 0x236   : > { %6328 = vmatpush.bf16.msra.mxu2 %v7558_v15  ;;  %6297 = vmatmul.bf16.vlgmr.msrb.gmra.mxu3 %v11706_v20  ;;  %v9570_v15 = vor.u32 %v11110_v61, %v9569_v60  ;;  %v8707_v60 = vld [vmem:[#allocation5 + $0xd60] sm:$0xf0]  ;;  %v11029_v61 = vld [vmem:[#allocation5 + $0x119c] sm:$0xf] }
 0x237   : > { %6341 = vmatpush.bf16.msra.mxu3 %v8134_v27  ;;  %v9497_v27 = vld [vmem:[#allocation5 + $0x1348] sm:$0xf]  ;;  %v6013_v43 = vadd.f32 %v11875_v45, %v6000_v5  ;;  %v10633_v45 = vld [vmem:[#allocation5 + $0x53c] sm:$0xf] }
 0x238   : > { %6303 = vmatpush.bf16.msra.mxu0 %v9786_v59  ;;  %v6077_v24 = vpop.f32.mrf.mxu2  ;;  %v10507_v59 = vld [vmem:[#allocation5 + $0x14c] sm:$0xf]  ;;  %v9498_v33 = vor.u32 %v11092_v28, %v9497_v27  ;;  %v6053_v51 = vpop.f32.mrf.mxu0  ;;  %v8635_v27 = vld [vmem:[#allocation5 + $0xcd0] sm:$0xf0] }
 0x239   : > { %6316 = vmatpush.bf16.msra.mxu1 %v10362_v31  ;;  %v6078_v29 = vadd.f32 %v6077_v24, %v6065_v3  ;;  %v6090_v30 = vpop.f32.mrf.mxu3  ;;  %v10651_v31 = vld [vmem:[#allocation5 + $0x5cc] sm:$0xf]  ;;  %v7198_v36 = vor.u32 %v10507_v59, %v7195_v34  ;;  %v6066_v17 = vpop.f32.mrf.mxu1  ;;  %v7054_v3 = vor.u32 %v10471_v11, %v7051_v57  ;;  %v10363_v59 = vld [vmem:[#allocation5 + $0x1a50] sm:$0xf0]  ;;  %v10957_v57 = vld [vmem:[#allocation5 + $0xf5c] sm:$0xf] }
 0x23a   : > { %6329 = vmatpush.bf16.msra.mxu2 %v7486_v21  ;;  %v7771_v21 = vld [vmem:[#allocation5 + $0x610] sm:$0xf0]  ;;  %v10867_v24 = vld [vmem:[#allocation5 + $0xc8c] sm:$0xf] }
 0x23b   : > { %6342 = vmatpush.bf16.msra.mxu3 %v8062_v49  ;;  %v6091_v44 = vadd.f32 %v6090_v30, %v6078_v29  ;;  %v10074_v49 = vor.u32 %v11236_v55, %v10073_v25  ;;  %v11011_v28 = vld [vmem:[#allocation5 + $0x110c] sm:$0xf]  ;;  %v10438_v25 = vor.u32 %v11317_v4, %v10435_v26  ;;  %v9787_v30 = vld [vmem:[#allocation5 + $0x15d0] sm:$0xf0]  ;;  %v8638_v34 = vor.u32 %v10867_v24, %v8635_v27 }
 0x23c   : > { %6304 = vmatpush.bf16.msra.mxu0 %v9714_v40  ;;  %v7774_v40 = vor.u32 %v10651_v31, %v7771_v21  ;;  %v11155_v29 = vld [vmem:[#allocation5 + $0x158c] sm:$0xf] }
 0x23d   : > { %6317 = vmatpush.bf16.msra.mxu1 %v10290_v41  ;;  %v6877_v7 = vpack.c.bf16 %v6091_v44, %v6013_v43  ;;  %v10489_v41 = vld [vmem:[#allocation5 + $0xbc] sm:$0xf]  ;;  %v11299_v55 = vld [vmem:[#allocation5 + $0x1a0c] sm:$0xf]  ;;  %v9790_v21 = vor.u32 %v11155_v29, %v9787_v30  ;;  %v8563_v44 = vld [vmem:[#allocation5 + $0xc40] sm:$0xf0] }
 0x23e   : > { %6330 = vmatpush.bf16.msra.mxu2 %v7414_v42  ;;  %v7123_v42 = vld [vmem:[#allocation5 + $0x100] sm:$0xf0]  ;;  %v10849_v43 = vld [vmem:[#allocation5 + $0xbfc] sm:$0xf]  ;;  %v10366_v51 = vor.u32 %v11299_v55, %v10363_v59  ;;  %v10939_v4 = vld [vmem:[#allocation5 + $0xecc] sm:$0xf] }
 0x23f   : > { %6343 = vmatpush.bf16.msra.mxu3 %v7990_v52  ;;  %6886 = vst [vmem:[%s11774_s8 + $0x18] sm:$0xff] %v6877_v7  ;;  %v11056_v52 = vld [vmem:[#allocation5 + $0x126c] sm:$0xf0]  ;;  %v7126_v46 = vor.u32 %v10489_v41, %v7123_v42  ;;  %v8566_v17 = vor.u32 %v10849_v43, %v8563_v44  ;;  %v8491_v41 = vld [vmem:[#allocation5 + $0xbb0] sm:$0xf0] }
 0x240   : > { %6305 = vmatpush.bf16.msra.mxu0 %v9642_v50  ;;  %v6079_v14 = vpop.f32.mrf.mxu2  ;;  %v7702_v50 = vor.u32 %v10633_v45, %v7699_v0  ;;  %v9354_v62 = vor.u32 %v11056_v52, %v9353_v12  ;;  %v10975_v42 = vld [vmem:[#allocation5 + $0xfec] sm:$0xf]  ;;  %v10294_v45 = vor.u32 %v11281_v39, %v10291_v53  ;;  %v9067_v0 = vld [vmem:[#allocation5 + $0x1030] sm:$0xf0]  ;;  %v8494_v47 = vor.u32 %v10831_v8, %v8491_v41  ;;  %v10777_v55 = vld [vmem:[#allocation5 + $0x9bc] sm:$0xf] }
 0x241   : > { %6318 = vmatpush.bf16.msra.mxu1 %v10218_v10  ;;  %v10615_v10 = vld [vmem:[#allocation5 + $0x4ac] sm:$0xf]  ;;  %v6092_v54 = vpop.f32.mrf.mxu3  ;;  %v9643_v12 = vld [vmem:[#allocation5 + $0x14b0] sm:$0xf0]  ;;  %v9070_v48 = vor.u32 %v10975_v42, %v9067_v0  ;;  %v10813_v14 = vld [vmem:[#allocation5 + $0xadc] sm:$0xf] }
 0x242   : > { %6331 = vmatpush.bf16.msra.mxu2 %v7342_v58  ;;  %v7627_v58 = vld [vmem:[#allocation5 + $0x4f0] sm:$0xf0]  ;;  %v11263_v52 = vld [vmem:[#allocation5 + $0x18ec] sm:$0xf]  ;;  %v8995_v54 = vld [vmem:[#allocation5 + $0xfa0] sm:$0xf0] }
 0x243   : > { %6344 = vmatpush.bf16.msra.mxu3 %v7918_v16  ;;  %v9283_v16 = vld [vmem:[#allocation5 + $0x11e0] sm:$0xf0]  ;;  %v7630_v5 = vor.u32 %v10615_v10, %v7627_v58  ;;  %v11227_v27 = vld [vmem:[#allocation5 + $0x17cc] sm:$0xf]  ;;  %v11065_v44 = vld [vmem:[#allocation5 + $0x12bc] sm:$0xf] }
 0x244   : > { %6306 = vmatpush.bf16.msra.mxu0 %v9570_v15  ;;  %v8710_v15 = vor.u32 %v10885_v23, %v8707_v60  ;;  %v11101_v23 = vld [vmem:[#allocation5 + $0x13dc] sm:$0xf]  ;;  %v9571_v60 = vld [vmem:[#allocation5 + $0x1420] sm:$0xf0]  ;;  %v8203_v39 = vld [vmem:[#allocation5 + $0x970] sm:$0xf0] }
 0x245   : > { %6319 = vmatpush.bf16.msra.mxu1 %v10146_v6  ;;  %v9286_v6 = vor.u32 %v11029_v61, %v9283_v16  ;;  %v11245_v61 = vld [vmem:[#allocation5 + $0x185c] sm:$0xf]  ;;  %v8275_v59 = vld [vmem:[#allocation5 + $0xa00] sm:$0xf0]  ;;  %v11047_v8 = vld [vmem:[#allocation5 + $0x122c] sm:$0xf] }
 0x246   : > { %6332 = vmatpush.bf16.msra.mxu2 %v7270_v9  ;;  %v9862_v9 = vor.u32 %v11173_v63, %v9859_v1  ;;  %v8998_v63 = vor.u32 %v10957_v57, %v8995_v54  ;;  %v9574_v1 = vor.u32 %v11101_v23, %v9571_v60  ;;  %v8851_v43 = vld [vmem:[#allocation5 + $0xe80] sm:$0xf0]  ;;  %v9355_v42 = vld [vmem:[#allocation5 + $0x1270] sm:$0xf0]  ;;  %v9289_v54 = vld [vmem:[#allocation5 + $0x11a0] sm:$0xf] }
 0x247   : > { %6345 = vmatpush.bf16.msra.mxu3 %v7846_v56  ;;  %v9211_v56 = vld [vmem:[#allocation5 + $0x1150] sm:$0xf0]  ;;  %v11039_v23 = vld [vmem:[#allocation5 + $0x11e4] sm:$0xf0] }
 0x248   : > { %6307 = vmatpush.bf16.msra.mxu0 %v9498_v33  ;;  %v9214_v31 = vor.u32 %v11011_v28, %v9211_v56  ;;  %v10993_v33 = vld [vmem:[#allocation5 + $0x107c] sm:$0xf]  ;;  %v10075_v28 = vld [vmem:[#allocation5 + $0x1810] sm:$0xf0] }
 0x249   : > { %6320 = vmatpush.bf16.msra.mxu1 %v10074_v49  ;;  %v9139_v49 = vld [vmem:[#allocation5 + $0x10c0] sm:$0xf0]  ;;  %v9931_v0 = vld [vmem:[#allocation5 + $0x16f0] sm:$0xf0] }
 0x24a   : > { %6333 = vmatpush.bf16.msra.mxu2 %v7198_v36  ;;  %v11137_v36 = vld [vmem:[#allocation5 + $0x14fc] sm:$0xf]  ;;  %v9142_v7 = vor.u32 %v10993_v33, %v9139_v49  ;;  %v9427_v33 = vld [vmem:[#allocation5 + $0x1300] sm:$0xf0] }
 0x24b   : > { %6346 = vmatpush.bf16.msra.mxu3 %v7774_v40  ;;  %v9718_v40 = vor.u32 %v11137_v36, %v9715_v37  ;;  %v10003_v49 = vld [vmem:[#allocation5 + $0x1780] sm:$0xf0]  ;;  %v8278_v36 = vor.u32 %v10777_v55, %v8275_v59  ;;  %v10759_v37 = vld [vmem:[#allocation5 + $0x92c] sm:$0xf]  ;;  %v10715_v59 = vld [vmem:[#allocation5 + $0x7c4] sm:$0xf0] }
 0x24c   : > { %6308 = vmatpush.bf16.msra.mxu0 %v9426_v32  ;;  %v11119_v32 = vld [vmem:[#allocation5 + $0x146c] sm:$0xf] }
 0x24d   : > { %6321 = vmatpush.bf16.msra.mxu1 %v10002_v13  ;;  %v10219_v13 = vld [vmem:[#allocation5 + $0x1930] sm:$0xf0]  ;;  %v9646_v11 = vor.u32 %v11119_v32, %v9643_v12 }
 0x24e   : > { %6334 = vmatpush.bf16.msra.mxu2 %v7126_v46  ;;  %v10222_v58 = vor.u32 %v11263_v52, %v10219_v13  ;;  %v7561_v52 = vld [vmem:[#allocation5 + $0x420] sm:$0xf]  ;;  %v10607_v13 = vld [vmem:[#allocation5 + $0x464] sm:$0xf0] }
 0x24f   : > { %6347 = vmatpush.bf16.msra.mxu3 %v7702_v50  ;;  %v8419_v50 = vld [vmem:[#allocation5 + $0xb20] sm:$0xf0] }
 0x250   : > { %6309 = vmatpush.bf16.msra.mxu0 %v9354_v62  ;;  %v11900_v46 = vpop.f32.mrf.mxu0  ;;  %v10147_v62 = vld [vmem:[#allocation5 + $0x18a0] sm:$0xf0]  ;;  %v8422_v16 = vor.u32 %v10813_v14, %v8419_v50  ;;  %v8713_v14 = vld [vmem:[#allocation5 + $0xd20] sm:$0xf]  ;;  %v10895_v50 = vld [vmem:[#allocation5 + $0xd64] sm:$0xf0] }
 0x251   : > { %6322 = vmatpush.bf16.msra.mxu1 %v9930_v2  ;;  %v11902_v10 = vpop.f32.mrf.mxu1  ;;  %v10795_v2 = vld [vmem:[#allocation5 + $0xa4c] sm:$0xf]  ;;  %v10150_v26 = vor.u32 %v11245_v61, %v10147_v62  ;;  %v7562_v61 = vor.u32 %v10607_v13, %v7561_v52  ;;  %v10535_v52 = vld [vmem:[#allocation5 + $0x224] sm:$0xf0]  ;;  %v7849_v13 = vld [vmem:[#allocation5 + $0x660] sm:$0xf] }
 0x252   : > { %6335 = vmatpush.bf16.msra.mxu2 %v7054_v3  ;;  %v8347_v3 = vld [vmem:[#allocation5 + $0xa90] sm:$0xf0] }
 0x253   : > { %6348 = vmatpush.bf16.msra.mxu3 %v7630_v5  ;;  %6310 = vmatmul.bf16.vlgmr.msra.gmra.mxu0 %v11715_v35  ;;  %v8923_v5 = vld [vmem:[#allocation5 + $0xf10] sm:$0xf0]  ;;  %v8350_v56 = vor.u32 %v10795_v2, %v8347_v3  ;;  %v8065_v2 = vld [vmem:[#allocation5 + $0x810] sm:$0xf]  ;;  %v9290_v3 = vor.u32 %v11039_v23, %v9289_v54 }
 0x254   : > { %6354 = vmatpush.bf16.msrb.mxu0 %v8710_v15  ;;  %6323 = vmatmul.bf16.vlgmr.msra.gmra.mxu1 %v11717_v38  ;;  %v11083_v15 = vld [vmem:[#allocation5 + $0x134c] sm:$0xf]  ;;  %v8926_v29 = vor.u32 %v10939_v4, %v8923_v5  ;;  %v10733_v4 = vld [vmem:[#allocation5 + $0x854] sm:$0xf0] }
 0x255   : > { %6367 = vmatpush.bf16.msrb.mxu1 %v9286_v6  ;;  %6336 = vmatmul.bf16.vlgmr.msra.gmra.mxu2 %v11702_v18  ;;  %v9499_v6 = vld [vmem:[#allocation5 + $0x1390] sm:$0xf0]  ;;  %v10877_v5 = vld [vmem:[#allocation5 + $0xcd4] sm:$0xf0] }
 0x256   : > { %6380 = vmatpush.bf16.msrb.mxu2 %v9862_v9  ;;  %6349 = vmatmul.bf16.vlgmr.msra.gmra.mxu3 %v11708_v22  ;;  %v9502_v30 = vor.u32 %v11083_v15, %v9499_v6  ;;  %v9217_v15 = vld [vmem:[#allocation5 + $0x1110] sm:$0xf]  ;;  %v11021_v6 = vld [vmem:[#allocation5 + $0x1154] sm:$0xf0] }
 0x257   : > { %6393 = vmatpush.bf16.msrb.mxu3 %v10438_v25  ;;  %v9218_v55 = vor.u32 %v11021_v6, %v9217_v15  ;;  %v11920_v6 = vld [vmem:[#allocation7 + $0x8] sm:$0xff] }
 0x258   : > { %6355 = vmatpush.bf16.msrb.mxu0 %v8638_v34  ;;  %v11904_v9 = vpop.f32.mrf.mxu2  ;;  %v6105_v25 = vpop.f32.mrf.mxu0  ;;  %v10921_v34 = vld [vmem:[#allocation5 + $0xe3c] sm:$0xf] }
 0x259   : > { %6368 = vmatpush.bf16.msrb.mxu1 %v9214_v31  ;;  %v11906_v24 = vpop.f32.mrf.mxu3  ;;  %v6118_v31 = vpop.f32.mrf.mxu1  ;;  %v8854_v53 = vor.u32 %v10921_v34, %v8851_v43  ;;  %v8569_v34 = vld [vmem:[#allocation5 + $0xc00] sm:$0xf]  ;;  %v11003_v43 = vld [vmem:[#allocation5 + $0x10c4] sm:$0xf0] }
 0x25a   : > { %6381 = vmatpush.bf16.msrb.mxu2 %v9790_v21  ;;  %v10078_v21 = vor.u32 %v11227_v27, %v10075_v28  ;;  %v8066_v28 = vor.u32 %v10733_v4, %v8065_v2  ;;  %v10859_v31 = vld [vmem:[#allocation5 + $0xc44] sm:$0xf0]  ;;  %v10805_v2 = vld [vmem:[#allocation5 + $0xa94] sm:$0xf0]  ;;  %v8929_v4 = vld [vmem:[#allocation5 + $0xed0] sm:$0xf] }
 0x25b   : > { %6394 = vmatpush.bf16.msrb.mxu3 %v10366_v51  ;;  %v11209_v51 = vld [vmem:[#allocation5 + $0x173c] sm:$0xf] }
 0x25c   : > { %6356 = vmatpush.bf16.msrb.mxu0 %v8566_v17  ;;  %v9430_v17 = vor.u32 %v11065_v44, %v9427_v33  ;;  %v10006_v41 = vor.u32 %v11209_v51, %v10003_v49  ;;  %v8570_v51 = vor.u32 %v10859_v31, %v8569_v34  ;;  %v7345_v49 = vld [vmem:[#allocation5 + $0x270] sm:$0xf]  ;;  %v10643_v34 = vld [vmem:[#allocation5 + $0x584] sm:$0xf0]  ;;  %v8281_v31 = vld [vmem:[#allocation5 + $0x9c0] sm:$0xf] }
 0x25d   : > { %6369 = vmatpush.bf16.msrb.mxu1 %v9142_v7  ;;  %v10903_v7 = vld [vmem:[#allocation5 + $0xdac] sm:$0xf] }
 0x25e   : > { %6382 = vmatpush.bf16.msrb.mxu2 %v9718_v40  ;;  %v8779_v40 = vld [vmem:[#allocation5 + $0xdf0] sm:$0xf0] }
 0x25f   : > { %6395 = vmatpush.bf16.msrb.mxu3 %v10294_v45  ;;  %v11191_v45 = vld [vmem:[#allocation5 + $0x16ac] sm:$0xf]  ;;  %v8782_v57 = vor.u32 %v10903_v7, %v8779_v40  ;;  %v10841_v7 = vld [vmem:[#allocation5 + $0xbb4] sm:$0xf0]  ;;  %v9073_v40 = vld [vmem:[#allocation5 + $0xff0] sm:$0xf] }
 0x260   : > { %6357 = vmatpush.bf16.msrb.mxu0 %v8494_v47  ;;  %v6131_v32 = vpop.f32.mrf.mxu2  ;;  %v8137_v47 = vld [vmem:[#allocation5 + $0x8a0] sm:$0xf]  ;;  %v9934_v60 = vor.u32 %v11191_v45, %v9931_v0 }
 0x261   : > { %6370 = vmatpush.bf16.msrb.mxu1 %v9070_v48  ;;  %v6144_v12 = vpop.f32.mrf.mxu3  ;;  %v8206_v48 = vor.u32 %v10759_v37, %v8203_v39  ;;  %v7921_v37 = vld [vmem:[#allocation5 + $0x6f0] sm:$0xf] }
 0x262   : > { %6383 = vmatpush.bf16.msrb.mxu2 %v9646_v11  ;;  %v10751_v11 = vld [vmem:[#allocation5 + $0x8e4] sm:$0xf0]  ;;  %v7273_v12 = vld [vmem:[#allocation5 + $0x1e0] sm:$0xf] }
 0x263   : > { %6396 = vmatpush.bf16.msrb.mxu3 %v10222_v58  ;;  %v9358_v58 = vor.u32 %v11047_v8, %v9355_v42  ;;  %v8138_v62 = vor.u32 %v10751_v11, %v8137_v47  ;;  %v10985_v8 = vld [vmem:[#allocation5 + $0x1034] sm:$0xf0]  ;;  %v8425_v11 = vld [vmem:[#allocation5 + $0xae0] sm:$0xf] }
 0x264   : > { %6358 = vmatpush.bf16.msrb.mxu0 %v8422_v16  ;;  %v8714_v16 = vor.u32 %v10895_v50, %v8713_v14  ;;  %v9074_v47 = vor.u32 %v10985_v8, %v9073_v40  ;;  %v10823_v14 = vld [vmem:[#allocation5 + $0xb24] sm:$0xf0]  ;;  %v9001_v50 = vld [vmem:[#allocation5 + $0xf60] sm:$0xf]  ;;  %v10769_v8 = vld [vmem:[#allocation5 + $0x974] sm:$0xf0] }
 0x265   : > { %6371 = vmatpush.bf16.msrb.mxu1 %v8998_v63  ;;  %v7489_v63 = vld [vmem:[#allocation5 + $0x390] sm:$0xf]  ;;  %v8426_v23 = vor.u32 %v10823_v14, %v8425_v11  ;;  %v11327_v11 = vld [vmem:[#allocation5 + $0x1ae4] sm:$0xf0]  ;;  %v10598_v14 = vld [vmem:[#allocation5 + $0x424] sm:$0xf] }
 0x266   : > { %6384 = vmatpush.bf16.msrb.mxu2 %v9574_v1  ;;  %v10589_v1 = vld [vmem:[#allocation5 + $0x3d4] sm:$0xf0] }
 0x267   : > { %6397 = vmatpush.bf16.msrb.mxu3 %v10150_v26  ;;  %v8641_v26 = vld [vmem:[#allocation5 + $0xc90] sm:$0xf]  ;;  %v7490_v27 = vor.u32 %v10589_v1, %v7489_v63  ;;  %v10661_v63 = vld [vmem:[#allocation5 + $0x614] sm:$0xf0] }
 0x268   : > { %6359 = vmatpush.bf16.msrb.mxu0 %v8350_v56  ;;  %v8642_v25 = vor.u32 %v10877_v5, %v8641_v26  ;;  %v7417_v56 = vld [vmem:[#allocation5 + $0x300] sm:$0xf]  ;;  %v8353_v1 = vld [vmem:[#allocation5 + $0xa50] sm:$0xf]  ;;  %v10949_v26 = vld [vmem:[#allocation5 + $0xf14] sm:$0xf0] }
 0x269   : > { %6372 = vmatpush.bf16.msrb.mxu1 %v8926_v29  ;;  %v10571_v29 = vld [vmem:[#allocation5 + $0x344] sm:$0xf0] }
 0x26a   : > { %6385 = vmatpush.bf16.msrb.mxu2 %v9502_v30  ;;  %v7993_v30 = vld [vmem:[#allocation5 + $0x780] sm:$0xf]  ;;  %v7418_v44 = vor.u32 %v10571_v29, %v7417_v56  ;;  %v8354_v56 = vor.u32 %v10805_v2, %v8353_v1  ;;  %v9793_v2 = vld [vmem:[#allocation5 + $0x1590] sm:$0xf] }
 0x26b   : > { %6398 = vmatpush.bf16.msrb.mxu3 %v10078_v21  ;;  %v9145_v21 = vld [vmem:[#allocation5 + $0x1080] sm:$0xf]  ;;  %v7994_v33 = vor.u32 %v10715_v59, %v7993_v30  ;;  %v10499_v30 = vld [vmem:[#allocation5 + $0x104] sm:$0xf0]  ;;  %v8930_v59 = vor.u32 %v10949_v26, %v8929_v4  ;;  %v11165_v4 = vld [vmem:[#allocation5 + $0x15d4] sm:$0xf0] }
 0x26c   : > { %6360 = vmatpush.bf16.msrb.mxu0 %v8278_v36  ;;  %v10553_v36 = vld [vmem:[#allocation5 + $0x2b4] sm:$0xf0]  ;;  %v9146_v39 = vor.u32 %v11003_v43, %v9145_v21  ;;  %v7129_v29 = vld [vmem:[#allocation5 + $0xc0] sm:$0xf]  ;;  %v10787_v21 = vld [vmem:[#allocation5 + $0xa04] sm:$0xf0] }
 0x26d   : > { %6373 = vmatpush.bf16.msrb.mxu1 %v8854_v53  ;;  %v10697_v53 = vld [vmem:[#allocation5 + $0x734] sm:$0xf0]  ;;  %v7346_v42 = vor.u32 %v10553_v36, %v7345_v49  ;;  %v8857_v43 = vld [vmem:[#allocation5 + $0xe40] sm:$0xf]  ;;  %v7057_v49 = vld [vmem:[#allocation5 + $0x30] sm:$0xf] }
 0x26e   : > { %6386 = vmatpush.bf16.msrb.mxu2 %v9430_v17  ;;  %v8497_v17 = vld [vmem:[#allocation5 + $0xb70] sm:$0xf]  ;;  %v7922_v0 = vor.u32 %v10697_v53, %v7921_v37  ;;  %v10481_v36 = vld [vmem:[#allocation5 + $0x74] sm:$0xf0] }
 0x26f   : > { %6399 = vmatpush.bf16.msrb.mxu3 %v10006_v41  ;;  %v8498_v32 = vor.u32 %v10841_v7, %v8497_v17  ;;  %v7633_v53 = vld [vmem:[#allocation5 + $0x4b0] sm:$0xf]  ;;  %v10625_v17 = vld [vmem:[#allocation5 + $0x4f4] sm:$0xf0] }
 0x270   : > { %6361 = vmatpush.bf16.msrb.mxu0 %v8206_v48  ;;  %v11912_v41 = vpop.f32.mrf.mxu0  ;;  %v10679_v48 = vld [vmem:[#allocation5 + $0x6a4] sm:$0xf0]  ;;  %v8209_v7 = vld [vmem:[#allocation5 + $0x930] sm:$0xf] }
 0x271   : > { %6374 = vmatpush.bf16.msrb.mxu1 %v8782_v57  ;;  %v11914_v45 = vpop.f32.mrf.mxu1  ;;  %v10967_v57 = vld [vmem:[#allocation5 + $0xfa4] sm:$0xf0]  ;;  %v7850_v54 = vor.u32 %v10679_v48, %v7849_v13  ;;  %v10441_v13 = vld [vmem:[#allocation5 + $0x1aa0] sm:$0xf]  ;;  %v7058_v48 = vor.u32 %v10481_v36, %v7057_v49  ;;  %v10369_v26 = vld [vmem:[#allocation5 + $0x1a10] sm:$0xf] }
 0x272   : > { %6387 = vmatpush.bf16.msrb.mxu2 %v9358_v58  ;;  %v7274_v58 = vor.u32 %v10535_v52, %v7273_v12  ;;  %v9865_v12 = vld [vmem:[#allocation5 + $0x1620] sm:$0xf]  ;;  %v11183_v52 = vld [vmem:[#allocation5 + $0x1664] sm:$0xf0]  ;;  %v7419_v49 = vld [vmem:[#allocation5 + $0x348] sm:$0xf0] }
 0x273   : > { %6400 = vmatpush.bf16.msrb.mxu3 %v9934_v60  ;;  %6362 = vmatmul.bf16.vlgmr.msrb.gmra.mxu0 %v11704_v19  ;;  %v7201_v60 = vld [vmem:[#allocation5 + $0x150] sm:$0xf]  ;;  %v7995_v36 = vld [vmem:[#allocation5 + $0x7c8] sm:$0xf0] }
 0x274   : > { %6406 = vmatpush.bf16.msra.mxu0 %v7562_v61  ;;  %6375 = vmatmul.bf16.vlgmr.msrb.gmra.mxu1 %v11706_v20  ;;  %v10517_v61 = vld [vmem:[#allocation5 + $0x194] sm:$0xf0] }
 0x275   : > { %6419 = vmatpush.bf16.msra.mxu1 %v8138_v62  ;;  %6388 = vmatmul.bf16.vlgmr.msrb.gmra.mxu2 %v11715_v35  ;;  %v7777_v62 = vld [vmem:[#allocation5 + $0x5d0] sm:$0xf] }
 0x276   : > { %6432 = vmatpush.bf16.msra.mxu2 %v8714_v16  ;;  %6401 = vmatmul.bf16.vlgmr.msrb.gmra.mxu3 %v11717_v38  ;;  %v9002_v16 = vor.u32 %v10967_v57, %v9001_v50  ;;  %v7563_v50 = vld [vmem:[#allocation5 + $0x468] sm:$0xf0]  ;;  %v7634_v57 = vor.u32 %v10625_v17, %v7633_v53 }
 0x277   : > { %6445 = vmatpush.bf16.msra.mxu3 %v9290_v3  ;;  %v7566_v1 = vor.u32 %v10598_v14, %v7563_v50 }
 0x278   : > { %6407 = vmatpush.bf16.msra.mxu0 %v7490_v27  ;;  %v11916_v3 = vpop.f32.mrf.mxu2  ;;  %v6157_v15 = vpop.f32.mrf.mxu0  ;;  %v7202_v27 = vor.u32 %v10517_v61, %v7201_v60 }
 0x279   : > { %6420 = vmatpush.bf16.msra.mxu1 %v8066_v28  ;;  %v11918_v5 = vpop.f32.mrf.mxu3  ;;  %v6170_v28 = vpop.f32.mrf.mxu1 }
 0x27a   : > { %6433 = vmatpush.bf16.msra.mxu2 %v8642_v25  ;;  %v7778_v25 = vor.u32 %v10661_v63, %v7777_v62  ;;  %v9866_v62 = vor.u32 %v11183_v52, %v9865_v12  ;;  %v10442_v63 = vor.u32 %v11327_v11, %v10441_v13  ;;  %v10580_v28 = vld [vmem:[#allocation5 + $0x394] sm:$0xf]  ;;  %v7347_v12 = vld [vmem:[#allocation5 + $0x2b8] sm:$0xf0] }
 0x27b   : > { %6446 = vmatpush.bf16.msra.mxu3 %v9218_v55  ;;  %v7705_v55 = vld [vmem:[#allocation5 + $0x540] sm:$0xf]  ;;  %v10688_v52 = vld [vmem:[#allocation5 + $0x6f4] sm:$0xf] }
 0x27c   : > { %6408 = vmatpush.bf16.msra.mxu0 %v7418_v44  ;;  %v10931_v44 = vld [vmem:[#allocation5 + $0xe84] sm:$0xf0]  ;;  %v7706_v37 = vor.u32 %v10643_v34, %v7705_v55 }
 0x27d   : > { %6421 = vmatpush.bf16.msra.mxu1 %v7994_v33  ;;  %v1101_v33 = vperm.slane %v11920_v6, 0  ;;  %v8858_v40 = vor.u32 %v10931_v44, %v8857_v43  ;;  %v10297_v43 = vld [vmem:[#allocation5 + $0x1980] sm:$0xf] }
 0x27e   : > { %6434 = vmatpush.bf16.msra.mxu2 %v8570_v51  ;;  %v7130_v51 = vor.u32 %v10499_v30, %v7129_v29  ;;  %v8067_v29 = vld [vmem:[#allocation5 + $0x858] sm:$0xf0]  ;;  %v9794_v30 = vor.u32 %v11165_v4, %v9793_v2 }
 0x27f   : > { %6447 = vmatpush.bf16.msra.mxu3 %v9146_v39  ;;  %v8282_v39 = vor.u32 %v10787_v21, %v8281_v31  ;;  %v6104_v60 = vadd.f32 %v11900_v46, %v1101_v33  ;;  %v9721_v31 = vld [vmem:[#allocation5 + $0x1500] sm:$0xf]  ;;  %v11147_v21 = vld [vmem:[#allocation5 + $0x1544] sm:$0xf0] }
 0x280   : > { %6409 = vmatpush.bf16.msra.mxu0 %v7346_v42  ;;  %v8785_v42 = vld [vmem:[#allocation5 + $0xdb0] sm:$0xf]  ;;  %v11291_v33 = vld [vmem:[#allocation5 + $0x19c4] sm:$0xf0] }
 0x281   : > { %6422 = vmatpush.bf16.msra.mxu1 %v7922_v0  ;;  %v10913_v0 = vld [vmem:[#allocation5 + $0xdf4] sm:$0xf0]  ;;  %v6117_v46 = vadd.f32 %v11902_v10, %v6104_v60  ;;  %v10706_v10 = vld [vmem:[#allocation5 + $0x784] sm:$0xf]  ;;  %v10298_v53 = vor.u32 %v11291_v33, %v10297_v43  ;;  %v11255_v60 = vld [vmem:[#allocation5 + $0x18a4] sm:$0xf0] }
 0x282   : > { %6435 = vmatpush.bf16.msra.mxu2 %v8498_v32  ;;  %v6183_v32 = vpop.f32.mrf.mxu2  ;;  %v8786_v61 = vor.u32 %v10913_v0, %v8785_v42  ;;  %v7998_v42 = vor.u32 %v10706_v10, %v7995_v36  ;;  %v11273_v0 = vld [vmem:[#allocation5 + $0x1934] sm:$0xf0]  ;;  %v11075_v10 = vld [vmem:[#allocation5 + $0x1304] sm:$0xf0]  ;;  %v10009_v36 = vld [vmem:[#allocation5 + $0x1740] sm:$0xf] }
 0x283   : > { %6448 = vmatpush.bf16.msra.mxu3 %v9074_v47  ;;  %v6196_v47 = vpop.f32.mrf.mxu3  ;;  %v10544_v32 = vld [vmem:[#allocation5 + $0x274] sm:$0xf] }
 0x284   : > { %6410 = vmatpush.bf16.msra.mxu0 %v7274_v58  ;;  %v8210_v58 = vor.u32 %v10769_v8, %v8209_v7  ;;  %v9649_v7 = vld [vmem:[#allocation5 + $0x1470] sm:$0xf]  ;;  %v7350_v11 = vor.u32 %v10544_v32, %v7347_v12 }
 0x285   : > { %6423 = vmatpush.bf16.msra.mxu1 %v7850_v54  ;;  %v10742_v54 = vld [vmem:[#allocation5 + $0x8a4] sm:$0xf]  ;;  %v10225_v8 = vld [vmem:[#allocation5 + $0x18f0] sm:$0xf] }
 0x286   : > { %6436 = vmatpush.bf16.msra.mxu2 %v8426_v23  ;;  %v8139_v23 = vld [vmem:[#allocation5 + $0x8e8] sm:$0xf0] }
 0x287   : > { %6449 = vmatpush.bf16.msra.mxu3 %v9002_v16  ;;  %v1102_v16 = vperm.slane %v11920_v6, 1  ;;  %v8142_v15 = vor.u32 %v10742_v54, %v8139_v23  ;;  %v10153_v54 = vld [vmem:[#allocation5 + $0x1860] sm:$0xf] }
 0x288   : > { %6411 = vmatpush.bf16.msra.mxu0 %v7202_v27  ;;  %v11309_v27 = vld [vmem:[#allocation5 + $0x1a54] sm:$0xf0]  ;;  %v10154_v4 = vor.u32 %v11255_v60, %v10153_v54  ;;  %v11030_v54 = vld [vmem:[#allocation5 + $0x11a4] sm:$0xf]  ;;  %v9291_v60 = vld [vmem:[#allocation5 + $0x11e8] sm:$0xf0] }
 0x289   : > { %6424 = vmatpush.bf16.msra.mxu1 %v7778_v25  ;;  %v7491_v25 = vld [vmem:[#allocation5 + $0x3d8] sm:$0xf0]  ;;  %v6182_v55 = vadd.f32 %v11916_v3, %v1102_v16  ;;  %v6130_v3 = vadd.f32 %v11904_v9, %v6117_v46 }
 0x28a   : > { %6437 = vmatpush.bf16.msra.mxu2 %v8354_v56  ;;  %v10724_v56 = vld [vmem:[#allocation5 + $0x814] sm:$0xf]  ;;  %v7494_v34 = vor.u32 %v10580_v28, %v7491_v25  ;;  %v7923_v9 = vld [vmem:[#allocation5 + $0x738] sm:$0xf0]  ;;  %v11093_v28 = vld [vmem:[#allocation5 + $0x1394] sm:$0xf0] }
 0x28b   : > { %6450 = vmatpush.bf16.msra.mxu3 %v8930_v59  ;;  %v10370_v59 = vor.u32 %v11309_v27, %v10369_v26  ;;  %v8070_v44 = vor.u32 %v10724_v56, %v8067_v29  ;;  %v6143_v13 = vadd.f32 %v11906_v24, %v6130_v3  ;;  %v7926_v23 = vor.u32 %v10688_v52, %v7923_v9  ;;  %v7851_v24 = vld [vmem:[#allocation5 + $0x6a8] sm:$0xf0]  ;;  %v9505_v27 = vld [vmem:[#allocation5 + $0x1350] sm:$0xf]  ;;  %v11201_v9 = vld [vmem:[#allocation5 + $0x16f4] sm:$0xf0] }
 0x28c   : > { %6412 = vmatpush.bf16.msra.mxu0 %v7130_v51  ;;  %v10562_v51 = vld [vmem:[#allocation5 + $0x304] sm:$0xf]  ;;  %v10081_v25 = vld [vmem:[#allocation5 + $0x17d0] sm:$0xf]  ;;  %v9506_v43 = vor.u32 %v11093_v28, %v9505_v27  ;;  %v10868_v27 = vld [vmem:[#allocation5 + $0xc94] sm:$0xf] }
 0x28d   : > { %6425 = vmatpush.bf16.msra.mxu1 %v7706_v37  ;;  %v9722_v37 = vor.u32 %v11147_v21, %v9721_v31  ;;  %v7422_v17 = vor.u32 %v10562_v51, %v7419_v49  ;;  %v7779_v31 = vld [vmem:[#allocation5 + $0x618] sm:$0xf0]  ;;  %v9433_v49 = vld [vmem:[#allocation5 + $0x12c0] sm:$0xf]  ;;  %v9937_v52 = vld [vmem:[#allocation5 + $0x16b0] sm:$0xf] }
 0x28e   : > { %6438 = vmatpush.bf16.msra.mxu2 %v8282_v39  ;;  %v6195_v39 = vadd.f32 %v11918_v5, %v6182_v55  ;;  %v10226_v5 = vor.u32 %v11273_v0, %v10225_v8  ;;  %v10508_v55 = vld [vmem:[#allocation5 + $0x154] sm:$0xf]  ;;  %v9434_v8 = vor.u32 %v11075_v10, %v9433_v49  ;;  %v11057_v0 = vld [vmem:[#allocation5 + $0x1274] sm:$0xf0]  ;;  %v8643_v28 = vld [vmem:[#allocation5 + $0xcd8] sm:$0xf0] }
 0x28f   : > { %6451 = vmatpush.bf16.msra.mxu3 %v8858_v40  ;;  %v11129_v40 = vld [vmem:[#allocation5 + $0x14b4] sm:$0xf0]  ;;  %v11138_v49 = vld [vmem:[#allocation5 + $0x1504] sm:$0xf]  ;;  %v9723_v10 = vld [vmem:[#allocation5 + $0x1548] sm:$0xf0] }
 0x290   : > { %6413 = vmatpush.bf16.msra.mxu0 %v7058_v48  ;;  %v9650_v47 = vor.u32 %v11129_v40, %v9649_v7  ;;  %v6207_v48 = vpop.f32.mrf.mxu0  ;;  %v7131_v7 = vld [vmem:[#allocation5 + $0x108] sm:$0xf0] }
 0x291   : > { %6426 = vmatpush.bf16.msra.mxu1 %v7634_v57  ;;  %v6208_v14 = vadd.f32 %v6207_v48, %v6195_v39  ;;  %v6220_v50 = vpop.f32.mrf.mxu1  ;;  %v9577_v57 = vld [vmem:[#allocation5 + $0x13e0] sm:$0xf]  ;;  %v7707_v40 = vld [vmem:[#allocation5 + $0x588] sm:$0xf0] }
 0x292   : > { %6439 = vmatpush.bf16.msra.mxu2 %v8210_v58  ;;  %v11111_v58 = vld [vmem:[#allocation5 + $0x1424] sm:$0xf0] }
 0x293   : > { %6452 = vmatpush.bf16.msra.mxu3 %v8786_v61  ;;  %6414 = vmatmul.bf16.vlgmr.msra.gmra.mxu0 %v11702_v18  ;;  %v10526_v61 = vld [vmem:[#allocation5 + $0x1e4] sm:$0xf]  ;;  %v6221_v16 = vadd.f32 %v6220_v50, %v6208_v14  ;;  %v9578_v2 = vor.u32 %v11111_v58, %v9577_v57  ;;  %v7635_v14 = vld [vmem:[#allocation5 + $0x4f8] sm:$0xf0]  ;;  %v8715_v58 = vld [vmem:[#allocation5 + $0xd68] sm:$0xf0] }
 0x294   : > { %6458 = vmatpush.bf16.msrb.mxu0 %v9866_v62  ;;  %6427 = vmatmul.bf16.vlgmr.msra.gmra.mxu1 %v11708_v22  ;;  %v7275_v62 = vld [vmem:[#allocation5 + $0x228] sm:$0xf0]  ;;  %v10886_v57 = vld [vmem:[#allocation5 + $0xd24] sm:$0xf] }
 0x295   : > { %6471 = vmatpush.bf16.msrb.mxu1 %v10442_v63  ;;  %6440 = vmatmul.bf16.vlgmr.msra.gmra.mxu2 %v11704_v19  ;;  %v10670_v63 = vld [vmem:[#allocation5 + $0x664] sm:$0xf]  ;;  %v7278_v26 = vor.u32 %v10526_v61, %v7275_v62  ;;  %v9867_v62 = vld [vmem:[#allocation5 + $0x1668] sm:$0xf0] }
 0x296   : > { %6484 = vmatpush.bf16.msrb.mxu2 %v7566_v1  ;;  %6453 = vmatmul.bf16.vlgmr.msra.gmra.mxu3 %v11706_v20  ;;  %v6156_v1 = vadd.f32 %v11912_v41, %v6143_v13  ;;  %v7854_v56 = vor.u32 %v10670_v63, %v7851_v24  ;;  %v10472_v13 = vld [vmem:[#allocation5 + $0x34] sm:$0xf]  ;;  %v11174_v61 = vld [vmem:[#allocation5 + $0x1624] sm:$0xf] }
 0x297   : > { %6497 = vmatpush.bf16.msrb.mxu3 %v8142_v15  ;;  %v11318_v24 = vld [vmem:[#allocation5 + $0x1aa4] sm:$0xf] }
 0x298   : > { %6459 = vmatpush.bf16.msrb.mxu0 %v9794_v30  ;;  %v6233_v15 = vpop.f32.mrf.mxu2  ;;  %v11237_v30 = vld [vmem:[#allocation5 + $0x1814] sm:$0xf0]  ;;  %v6169_v41 = vadd.f32 %v11914_v45, %v6156_v1  ;;  %v10634_v45 = vld [vmem:[#allocation5 + $0x544] sm:$0xf]  ;;  %v10443_v1 = vld [vmem:[#allocation5 + $0x1ae8] sm:$0xf0] }
 0x299   : > { %6472 = vmatpush.bf16.msrb.mxu1 %v10370_v59  ;;  %v6234_v29 = vadd.f32 %v6233_v15, %v6221_v16  ;;  %v6246_v46 = vpop.f32.mrf.mxu3  ;;  %v7203_v59 = vld [vmem:[#allocation5 + $0x198] sm:$0xf0]  ;;  %v10082_v33 = vor.u32 %v11237_v30, %v10081_v25  ;;  %v6222_v3 = vpop.f32.mrf.mxu1  ;;  %v7710_v48 = vor.u32 %v10634_v45, %v7707_v40  ;;  %v9938_v16 = vor.u32 %v11201_v9, %v9937_v52  ;;  %v11012_v25 = vld [vmem:[#allocation5 + $0x1114] sm:$0xf] }
 0x29a   : > { %6485 = vmatpush.bf16.msrb.mxu2 %v7494_v34  ;;  %v10652_v34 = vld [vmem:[#allocation5 + $0x5d4] sm:$0xf]  ;;  %v7206_v51 = vor.u32 %v10508_v55, %v7203_v59  ;;  %v9870_v15 = vor.u32 %v11174_v61, %v9867_v62  ;;  %v9795_v30 = vld [vmem:[#allocation5 + $0x15d8] sm:$0xf0]  ;;  %v10299_v3 = vld [vmem:[#allocation5 + $0x19c8] sm:$0xf0] }
 0x29b   : > { %6498 = vmatpush.bf16.msrb.mxu3 %v8070_v44  ;;  %v6247_v21 = vadd.f32 %v6246_v46, %v6234_v29  ;;  %v6209_v44 = vpop.f32.mrf.mxu0  ;;  %v7782_v39 = vor.u32 %v10652_v34, %v7779_v31  ;;  %v9219_v29 = vld [vmem:[#allocation5 + $0x1158] sm:$0xf0]  ;;  %v11156_v46 = vld [vmem:[#allocation5 + $0x1594] sm:$0xf]  ;;  %v8646_v34 = vor.u32 %v10868_v27, %v8643_v28 }
 0x29c   : > { %6460 = vmatpush.bf16.msrb.mxu0 %v9722_v37  ;;  %v11300_v55 = vld [vmem:[#allocation5 + $0x1a14] sm:$0xf]  ;;  %v10371_v59 = vld [vmem:[#allocation5 + $0x1a58] sm:$0xf0]  ;;  %v9222_v31 = vor.u32 %v11012_v25, %v9219_v29  ;;  %v10994_v44 = vld [vmem:[#allocation5 + $0x1084] sm:$0xf] }
 0x29d   : > { %6473 = vmatpush.bf16.msrb.mxu1 %v10298_v53  ;;  %v6878_v37 = vpack.c.bf16 %v6247_v21, %v6169_v41  ;;  %v11219_v53 = vld [vmem:[#allocation5 + $0x1784] sm:$0xf0]  ;;  %v9798_v41 = vor.u32 %v11156_v46, %v9795_v30  ;;  %v10850_v21 = vld [vmem:[#allocation5 + $0xc04] sm:$0xf]  ;;  %v10976_v45 = vld [vmem:[#allocation5 + $0xff4] sm:$0xf] }
 0x29e   : > { %6486 = vmatpush.bf16.msrb.mxu2 %v7422_v17  ;;  %v10490_v17 = vld [vmem:[#allocation5 + $0xc4] sm:$0xf]  ;;  %v10010_v32 = vor.u32 %v11219_v53, %v10009_v36  ;;  %v9726_v53 = vor.u32 %v11138_v49, %v9723_v10  ;;  %v11228_v25 = vld [vmem:[#allocation5 + $0x17d4] sm:$0xf]  ;;  %v10011_v49 = vld [vmem:[#allocation5 + $0x1788] sm:$0xf0] }
 0x29f   : > { %6499 = vmatpush.bf16.msrb.mxu3 %v7998_v42  ;;  %6887 = vst [vmem:[%s11774_s8 + $0x20] sm:$0xff] %v6878_v37  ;;  %v9361_v42 = vld [vmem:[#allocation5 + $0x1230] sm:$0xf]  ;;  %v7134_v12 = vor.u32 %v10490_v17, %v7131_v7  ;;  %v11282_v36 = vld [vmem:[#allocation5 + $0x1984] sm:$0xf] }
 0x2a0   : > { %6461 = vmatpush.bf16.msrb.mxu0 %v9650_v47  ;;  %v6235_v47 = vpop.f32.mrf.mxu2  ;;  %v10832_v17 = vld [vmem:[#allocation5 + $0xb74] sm:$0xf]  ;;  %v8499_v7 = vld [vmem:[#allocation5 + $0xbb8] sm:$0xf0]  ;;  %v10302_v40 = vor.u32 %v11282_v36, %v10299_v3 }
 0x2a1   : > { %6474 = vmatpush.bf16.msrb.mxu1 %v10226_v5  ;;  %v7059_v5 = vld [vmem:[#allocation5 + $0x78] sm:$0xf0]  ;;  %v6248_v50 = vpop.f32.mrf.mxu3  ;;  %v8502_v9 = vor.u32 %v10832_v17, %v8499_v7  ;;  %v10760_v36 = vld [vmem:[#allocation5 + $0x934] sm:$0xf] }
 0x2a2   : > { %6487 = vmatpush.bf16.msrb.mxu2 %v7350_v11  ;;  %v10616_v11 = vld [vmem:[#allocation5 + $0x4b4] sm:$0xf]  ;;  %v7062_v63 = vor.u32 %v10472_v13, %v7059_v5  ;;  %v8427_v5 = vld [vmem:[#allocation5 + $0xb28] sm:$0xf0]  ;;  %v8211_v3 = vld [vmem:[#allocation5 + $0x978] sm:$0xf0] }
 0x2a3   : > { %6500 = vmatpush.bf16.msrb.mxu3 %v7926_v23  ;;  %v9362_v23 = vor.u32 %v11057_v0, %v9361_v42  ;;  %v11120_v42 = vld [vmem:[#allocation5 + $0x1474] sm:$0xf]  ;;  %v9651_v0 = vld [vmem:[#allocation5 + $0x14b8] sm:$0xf0] }
 0x2a4   : > { %6462 = vmatpush.bf16.msrb.mxu0 %v9578_v2  ;;  %v7638_v2 = vor.u32 %v10616_v11, %v7635_v14  ;;  %v9654_v47 = vor.u32 %v11120_v42, %v9651_v0  ;;  %v10958_v11 = vld [vmem:[#allocation5 + $0xf64] sm:$0xf]  ;;  %v8787_v17 = vld [vmem:[#allocation5 + $0xdf8] sm:$0xf0]  ;;  %v11048_v7 = vld [vmem:[#allocation5 + $0x1234] sm:$0xf] }
 0x2a5   : > { %6475 = vmatpush.bf16.msrb.mxu1 %v10154_v4  ;;  %v8718_v4 = vor.u32 %v10886_v57, %v8715_v58  ;;  %v9003_v57 = vld [vmem:[#allocation5 + $0xfa8] sm:$0xf0]  ;;  %v11102_v58 = vld [vmem:[#allocation5 + $0x13e4] sm:$0xf]  ;;  %v9939_v42 = vld [vmem:[#allocation5 + $0x16f8] sm:$0xf0] }
 0x2a6   : > { %6488 = vmatpush.bf16.msrb.mxu2 %v7278_v26  ;;  %v9294_v26 = vor.u32 %v11030_v54, %v9291_v60  ;;  %v9579_v54 = vld [vmem:[#allocation5 + $0x1428] sm:$0xf0]  ;;  %v9006_v62 = vor.u32 %v10958_v11, %v9003_v57  ;;  %v10896_v11 = vld [vmem:[#allocation5 + $0xd6c] sm:$0xf0] }
 0x2a7   : > { %6501 = vmatpush.bf16.msrb.mxu3 %v7854_v56  ;;  %v10446_v56 = vor.u32 %v11318_v24, %v10443_v1  ;;  %v10155_v60 = vld [vmem:[#allocation5 + $0x18a8] sm:$0xf0]  ;;  %v8355_v24 = vld [vmem:[#allocation5 + $0xa98] sm:$0xf0]  ;;  %v10940_v1 = vld [vmem:[#allocation5 + $0xed4] sm:$0xf] }
 0x2a8   : > { %6463 = vmatpush.bf16.msrb.mxu0 %v9506_v43  ;;  %v8571_v43 = vld [vmem:[#allocation5 + $0xc48] sm:$0xf0] }
 0x2a9   : > { %6476 = vmatpush.bf16.msrb.mxu1 %v10082_v33  ;;  %v10374_v33 = vor.u32 %v11300_v55, %v10371_v59  ;;  %v8574_v37 = vor.u32 %v10850_v21, %v8571_v43  ;;  %v10778_v59 = vld [vmem:[#allocation5 + $0x9c4] sm:$0xf]  ;;  %v8859_v43 = vld [vmem:[#allocation5 + $0xe88] sm:$0xf0] }
 0x2aa   : > { %6489 = vmatpush.bf16.msrb.mxu2 %v7206_v51  ;;  %v9147_v51 = vld [vmem:[#allocation5 + $0x10c8] sm:$0xf0] }
 0x2ab   : > { %6502 = vmatpush.bf16.msrb.mxu3 %v7782_v39  ;;  %v9150_v39 = vor.u32 %v10994_v44, %v9147_v51  ;;  %v11066_v44 = vld [vmem:[#allocation5 + $0x12c4] sm:$0xf] }
 0x2ac   : > { %6464 = vmatpush.bf16.msrb.mxu0 %v9434_v8  ;;  %v9075_v8 = vld [vmem:[#allocation5 + $0x1038] sm:$0xf0]  ;;  %v11210_v51 = vld [vmem:[#allocation5 + $0x1744] sm:$0xf] }
 0x2ad   : > { %6477 = vmatpush.bf16.msrb.mxu1 %v10010_v32  ;;  %v11264_v32 = vld [vmem:[#allocation5 + $0x18f4] sm:$0xf]  ;;  %v9078_v13 = vor.u32 %v10976_v45, %v9075_v8  ;;  %v10014_v45 = vor.u32 %v11210_v51, %v10011_v49 }
 0x2ae   : > { %6490 = vmatpush.bf16.msrb.mxu2 %v7134_v12  ;;  %v10227_v12 = vld [vmem:[#allocation5 + $0x1938] sm:$0xf0]  ;;  %v11192_v8 = vld [vmem:[#allocation5 + $0x16b4] sm:$0xf] }
 0x2af   : > { %6503 = vmatpush.bf16.msrb.mxu3 %v7710_v48  ;;  %v10814_v48 = vld [vmem:[#allocation5 + $0xae4] sm:$0xf]  ;;  %v10230_v50 = vor.u32 %v11264_v32, %v10227_v12  ;;  %v7569_v12 = vld [vmem:[#allocation5 + $0x428] sm:$0xf] }
 0x2b0   : > { %6465 = vmatpush.bf16.msrb.mxu0 %v9362_v23  ;;  %v11941_v52 = vpop.f32.mrf.mxu0  ;;  %v11246_v23 = vld [vmem:[#allocation5 + $0x1864] sm:$0xf]  ;;  %v8430_v61 = vor.u32 %v10814_v48, %v8427_v5  ;;  %v10752_v48 = vld [vmem:[#allocation5 + $0x8ec] sm:$0xf0]  ;;  %v8721_v5 = vld [vmem:[#allocation5 + $0xd28] sm:$0xf] }
 0x2b1   : > { %6478 = vmatpush.bf16.msrb.mxu1 %v9938_v16  ;;  %v11943_v14 = vpop.f32.mrf.mxu1  ;;  %v9582_v16 = vor.u32 %v11102_v58, %v9579_v54  ;;  %v9297_v58 = vld [vmem:[#allocation5 + $0x11a8] sm:$0xf]  ;;  %v11040_v54 = vld [vmem:[#allocation5 + $0x11ec] sm:$0xf0] }
 0x2b2   : > { %6491 = vmatpush.bf16.msrb.mxu2 %v7062_v63  ;;  %v10796_v63 = vld [vmem:[#allocation5 + $0xa54] sm:$0xf] }
 0x2b3   : > { %6504 = vmatpush.bf16.msrb.mxu3 %v7638_v2  ;;  %6466 = vmatmul.bf16.vlgmr.msrb.gmra.mxu0 %v11715_v35  ;;  %v10158_v2 = vor.u32 %v11246_v23, %v10155_v60  ;;  %v8358_v46 = vor.u32 %v10796_v63, %v8355_v24  ;;  %v9942_v23 = vor.u32 %v11192_v8, %v9939_v42  ;;  %v10590_v63 = vld [vmem:[#allocation5 + $0x3dc] sm:$0xf0]  ;;  %v8073_v24 = vld [vmem:[#allocation5 + $0x818] sm:$0xf] }
 0x2b4   : > { %6510 = vmatpush.bf16.msra.mxu0 %v8718_v4  ;;  %6479 = vmatmul.bf16.vlgmr.msrb.gmra.mxu1 %v11717_v38  ;;  %v8931_v4 = vld [vmem:[#allocation5 + $0xf18] sm:$0xf0] }
 0x2b5   : > { %6523 = vmatpush.bf16.msra.mxu1 %v9294_v26  ;;  %6492 = vmatmul.bf16.vlgmr.msrb.gmra.mxu2 %v11702_v18  ;;  %v11084_v26 = vld [vmem:[#allocation5 + $0x1354] sm:$0xf]  ;;  %v8934_v30 = vor.u32 %v10940_v1, %v8931_v4  ;;  %v9298_v1 = vor.u32 %v11040_v54, %v9297_v58  ;;  %v8649_v4 = vld [vmem:[#allocation5 + $0xc98] sm:$0xf] }
 0x2b6   : > { %6536 = vmatpush.bf16.msra.mxu2 %v9870_v15  ;;  %6505 = vmatmul.bf16.vlgmr.msrb.gmra.mxu3 %v11708_v22  ;;  %v9507_v15 = vld [vmem:[#allocation5 + $0x1398] sm:$0xf0] }
 0x2b7   : > { %6549 = vmatpush.bf16.msra.mxu3 %v10446_v56  ;;  %v10083_v56 = vld [vmem:[#allocation5 + $0x1818] sm:$0xf0]  ;;  %v9510_v55 = vor.u32 %v11084_v26, %v9507_v15  ;;  %v10878_v26 = vld [vmem:[#allocation5 + $0xcdc] sm:$0xf0]  ;;  %v9225_v15 = vld [vmem:[#allocation5 + $0x1118] sm:$0xf] }
 0x2b8   : > { %6511 = vmatpush.bf16.msra.mxu0 %v8646_v34  ;;  %v11945_v27 = vpop.f32.mrf.mxu2  ;;  %v6261_v29 = vpop.f32.mrf.mxu0  ;;  %v8283_v34 = vld [vmem:[#allocation5 + $0xa08] sm:$0xf0]  ;;  %v10086_v21 = vor.u32 %v11228_v25, %v10083_v56  ;;  %v11022_v25 = vld [vmem:[#allocation5 + $0x115c] sm:$0xf0] }
 0x2b9   : > { %6524 = vmatpush.bf16.msra.mxu1 %v9222_v31  ;;  %v11947_v28 = vpop.f32.mrf.mxu3  ;;  %v10922_v31 = vld [vmem:[#allocation5 + $0xe44] sm:$0xf]  ;;  %v8286_v10 = vor.u32 %v10778_v59, %v8283_v34  ;;  %v8001_v59 = vld [vmem:[#allocation5 + $0x788] sm:$0xf]  ;;  %v9226_v34 = vor.u32 %v11022_v25, %v9225_v15 }
 0x2ba   : > { %6537 = vmatpush.bf16.msra.mxu2 %v9798_v41  ;;  %v6274_v41 = vpop.f32.mrf.mxu1 }
 0x2bb   : > { %6550 = vmatpush.bf16.msra.mxu3 %v10374_v33  ;;  %v9435_v33 = vld [vmem:[#allocation5 + $0x1308] sm:$0xf0]  ;;  %v8577_v41 = vld [vmem:[#allocation5 + $0xc08] sm:$0xf] }
 0x2bc   : > { %6512 = vmatpush.bf16.msra.mxu0 %v8574_v37  ;;  %v8862_v37 = vor.u32 %v10922_v31, %v8859_v43  ;;  %v10716_v31 = vld [vmem:[#allocation5 + $0x7cc] sm:$0xf0]  ;;  %v9153_v43 = vld [vmem:[#allocation5 + $0x1088] sm:$0xf] }
 0x2bd   : > { %6525 = vmatpush.bf16.msra.mxu1 %v9150_v39  ;;  %v9438_v39 = vor.u32 %v11066_v44, %v9435_v33  ;;  %v11004_v44 = vld [vmem:[#allocation5 + $0x10cc] sm:$0xf0]  ;;  %v8002_v51 = vor.u32 %v10716_v31, %v8001_v59 }
 0x2be   : > { %6538 = vmatpush.bf16.msra.mxu2 %v9726_v53  ;;  %v10904_v53 = vld [vmem:[#allocation5 + $0xdb4] sm:$0xf]  ;;  %v10500_v59 = vld [vmem:[#allocation5 + $0x10c] sm:$0xf0] }
 0x2bf   : > { %6551 = vmatpush.bf16.msra.mxu3 %v10302_v40  ;;  %v9363_v40 = vld [vmem:[#allocation5 + $0x1278] sm:$0xf0] }
 0x2c0   : > { %6513 = vmatpush.bf16.msra.mxu0 %v8502_v9  ;;  %v6287_v0 = vpop.f32.mrf.mxu2  ;;  %v10608_v9 = vld [vmem:[#allocation5 + $0x46c] sm:$0xf0]  ;;  %v9366_v57 = vor.u32 %v11048_v7, %v9363_v40  ;;  %v9081_v7 = vld [vmem:[#allocation5 + $0xff8] sm:$0xf] }
 0x2c1   : > { %6526 = vmatpush.bf16.msra.mxu1 %v9078_v13  ;;  %v6300_v32 = vpop.f32.mrf.mxu3  ;;  %v8145_v13 = vld [vmem:[#allocation5 + $0x8a8] sm:$0xf]  ;;  %v7570_v60 = vor.u32 %v10608_v9, %v7569_v12  ;;  %v10536_v9 = vld [vmem:[#allocation5 + $0x22c] sm:$0xf0] }
 0x2c2   : > { %6539 = vmatpush.bf16.msra.mxu2 %v9654_v47  ;;  %v8214_v47 = vor.u32 %v10760_v36, %v8211_v3  ;;  %v10554_v36 = vld [vmem:[#allocation5 + $0x2bc] sm:$0xf0]  ;;  %v7929_v3 = vld [vmem:[#allocation5 + $0x6f8] sm:$0xf]  ;;  %v7281_v12 = vld [vmem:[#allocation5 + $0x1e8] sm:$0xf] }
 0x2c3   : > { %6552 = vmatpush.bf16.msra.mxu3 %v10230_v50  ;;  %v8790_v50 = vor.u32 %v10904_v53, %v8787_v17  ;;  %v8505_v53 = vld [vmem:[#allocation5 + $0xb78] sm:$0xf]  ;;  %v10842_v17 = vld [vmem:[#allocation5 + $0xbbc] sm:$0xf0]  ;;  %v7282_v58 = vor.u32 %v10536_v9, %v7281_v12  ;;  %v9873_v12 = vld [vmem:[#allocation5 + $0x1628] sm:$0xf] }
 0x2c4   : > { %6514 = vmatpush.bf16.msra.mxu0 %v8430_v61  ;;  %v8146_v61 = vor.u32 %v10752_v48, %v8145_v13  ;;  %v8506_v32 = vor.u32 %v10842_v17, %v8505_v53  ;;  %v7857_v13 = vld [vmem:[#allocation5 + $0x668] sm:$0xf]  ;;  %v10680_v48 = vld [vmem:[#allocation5 + $0x6ac] sm:$0xf0]  ;;  %v10626_v53 = vld [vmem:[#allocation5 + $0x4fc] sm:$0xf0] }
 0x2c5   : > { %6527 = vmatpush.bf16.msra.mxu1 %v9006_v62  ;;  %v8722_v62 = vor.u32 %v10896_v11, %v8721_v5  ;;  %v8433_v5 = vld [vmem:[#allocation5 + $0xae8] sm:$0xf]  ;;  %v10824_v11 = vld [vmem:[#allocation5 + $0xb2c] sm:$0xf0]  ;;  %v7858_v54 = vor.u32 %v10680_v48, %v7857_v13  ;;  %v8217_v17 = vld [vmem:[#allocation5 + $0x938] sm:$0xf] }
 0x2c6   : > { %6540 = vmatpush.bf16.msra.mxu2 %v9582_v16  ;;  %v7497_v16 = vld [vmem:[#allocation5 + $0x398] sm:$0xf]  ;;  %v11184_v9 = vld [vmem:[#allocation5 + $0x166c] sm:$0xf0]  ;;  %v10449_v13 = vld [vmem:[#allocation5 + $0x1aa8] sm:$0xf] }
 0x2c7   : > { %6553 = vmatpush.bf16.msra.mxu3 %v10158_v2  ;;  %v10734_v2 = vld [vmem:[#allocation5 + $0x85c] sm:$0xf0]  ;;  %v7498_v56 = vor.u32 %v10590_v63, %v7497_v16 }
 0x2c8   : > { %6515 = vmatpush.bf16.msra.mxu0 %v8358_v46  ;;  %v8074_v29 = vor.u32 %v10734_v2, %v8073_v24  ;;  %v8650_v46 = vor.u32 %v10878_v26, %v8649_v4  ;;  %v10662_v63 = vld [vmem:[#allocation5 + $0x61c] sm:$0xf0]  ;;  %v8361_v24 = vld [vmem:[#allocation5 + $0xa58] sm:$0xf] }
 0x2c9   : > { %6528 = vmatpush.bf16.msra.mxu1 %v8934_v30  ;;  %v7425_v30 = vld [vmem:[#allocation5 + $0x308] sm:$0xf]  ;;  %v8937_v4 = vld [vmem:[#allocation5 + $0xed8] sm:$0xf]  ;;  %v10950_v26 = vld [vmem:[#allocation5 + $0xf1c] sm:$0xf0] }
 0x2ca   : > { %6541 = vmatpush.bf16.msra.mxu2 %v9510_v55  ;;  %v10572_v55 = vld [vmem:[#allocation5 + $0x34c] sm:$0xf0]  ;;  %v8938_v31 = vor.u32 %v10950_v26, %v8937_v4  ;;  %v11166_v4 = vld [vmem:[#allocation5 + $0x15dc] sm:$0xf0]  ;;  %v10377_v26 = vld [vmem:[#allocation5 + $0x1a18] sm:$0xf] }
 0x2cb   : > { %6554 = vmatpush.bf16.msra.mxu3 %v10086_v21  ;;  %v10860_v21 = vld [vmem:[#allocation5 + $0xc4c] sm:$0xf0]  ;;  %v7426_v33 = vor.u32 %v10572_v55, %v7425_v30  ;;  %v7137_v55 = vld [vmem:[#allocation5 + $0xc8] sm:$0xf] }
 0x2cc   : > { %6516 = vmatpush.bf16.msra.mxu0 %v8286_v10  ;;  %v8578_v49 = vor.u32 %v10860_v21, %v8577_v41  ;;  %v7353_v10 = vld [vmem:[#allocation5 + $0x278] sm:$0xf]  ;;  %v10644_v41 = vld [vmem:[#allocation5 + $0x58c] sm:$0xf0]  ;;  %v8289_v21 = vld [vmem:[#allocation5 + $0x9c8] sm:$0xf] }
 0x2cd   : > { %6529 = vmatpush.bf16.msra.mxu1 %v8862_v37  ;;  %v9154_v37 = vor.u32 %v11004_v44, %v9153_v43  ;;  %v7354_v8 = vor.u32 %v10554_v36, %v7353_v10  ;;  %v10788_v43 = vld [vmem:[#allocation5 + $0xa0c] sm:$0xf0]  ;;  %v8865_v44 = vld [vmem:[#allocation5 + $0xe48] sm:$0xf]  ;;  %v7065_v10 = vld [vmem:[#allocation5 + $0x38] sm:$0xf] }
 0x2ce   : > { %6542 = vmatpush.bf16.msra.mxu2 %v9438_v39  ;;  %v10698_v39 = vld [vmem:[#allocation5 + $0x73c] sm:$0xf0] }
 0x2cf   : > { %6555 = vmatpush.bf16.msra.mxu3 %v10014_v45  ;;  %v10986_v45 = vld [vmem:[#allocation5 + $0x103c] sm:$0xf0]  ;;  %v7930_v0 = vor.u32 %v10698_v39, %v7929_v3  ;;  %v7641_v39 = vld [vmem:[#allocation5 + $0x4b8] sm:$0xf] }
 0x2d0   : > { %6517 = vmatpush.bf16.msra.mxu0 %v8214_v47  ;;  %v11953_v40 = vpop.f32.mrf.mxu0  ;;  %v9082_v47 = vor.u32 %v10986_v45, %v9081_v7  ;;  %v10482_v36 = vld [vmem:[#allocation5 + $0x7c] sm:$0xf0] }
 0x2d1   : > { %6530 = vmatpush.bf16.msra.mxu1 %v8790_v50  ;;  %v11955_v42 = vpop.f32.mrf.mxu1  ;;  %v9009_v50 = vld [vmem:[#allocation5 + $0xf68] sm:$0xf]  ;;  %v10770_v45 = vld [vmem:[#allocation5 + $0x97c] sm:$0xf0]  ;;  %v7066_v48 = vor.u32 %v10482_v36, %v7065_v10  ;;  %v8003_v10 = vld [vmem:[#allocation5 + $0x7d0] sm:$0xf0] }
 0x2d2   : > { %6543 = vmatpush.bf16.msra.mxu2 %v9366_v57  ;;  %v10968_v57 = vld [vmem:[#allocation5 + $0xfac] sm:$0xf0] }
 0x2d3   : > { %6556 = vmatpush.bf16.msra.mxu3 %v9942_v23  ;;  %6518 = vmatmul.bf16.vlgmr.msra.gmra.mxu0 %v11704_v19  ;;  %v8434_v23 = vor.u32 %v10824_v11, %v8433_v5  ;;  %v9010_v16 = vor.u32 %v10968_v57, %v9009_v50  ;;  %v11328_v5 = vld [vmem:[#allocation5 + $0x1aec] sm:$0xf0]  ;;  %v10599_v11 = vld [vmem:[#allocation5 + $0x42c] sm:$0xf]  ;;  %v7571_v50 = vld [vmem:[#allocation5 + $0x470] sm:$0xf0]  ;;  %v7642_v57 = vor.u32 %v10626_v53, %v7641_v39 }
 0x2d4   : > { %6562 = vmatpush.bf16.msrb.mxu0 %v7570_v60  ;;  %6531 = vmatmul.bf16.vlgmr.msra.gmra.mxu1 %v11706_v20  ;;  %v7209_v60 = vld [vmem:[#allocation5 + $0x158] sm:$0xf] }
 0x2d5   : > { %6575 = vmatpush.bf16.msrb.mxu1 %v8146_v61  ;;  %6544 = vmatmul.bf16.vlgmr.msra.gmra.mxu2 %v11715_v35  ;;  %v10518_v61 = vld [vmem:[#allocation5 + $0x19c] sm:$0xf0]  ;;  %v9657_v53 = vld [vmem:[#allocation5 + $0x1478] sm:$0xf] }
 0x2d6   : > { %6588 = vmatpush.bf16.msrb.mxu2 %v8722_v62  ;;  %6557 = vmatmul.bf16.vlgmr.msra.gmra.mxu3 %v11717_v38  ;;  %v7785_v62 = vld [vmem:[#allocation5 + $0x5d8] sm:$0xf] }
 0x2d7   : > { %6601 = vmatpush.bf16.msrb.mxu3 %v9298_v1  ;;  %v10806_v1 = vld [vmem:[#allocation5 + $0xa9c] sm:$0xf0] }
 0x2d8   : > { %6563 = vmatpush.bf16.msrb.mxu0 %v7498_v56  ;;  %v11957_v2 = vpop.f32.mrf.mxu2  ;;  %v6313_v25 = vpop.f32.mrf.mxu0  ;;  %v7210_v56 = vor.u32 %v10518_v61, %v7209_v60  ;;  %v8362_v30 = vor.u32 %v10806_v1, %v8361_v24  ;;  %v7574_v24 = vor.u32 %v10599_v11, %v7571_v50  ;;  %v9801_v1 = vld [vmem:[#allocation5 + $0x1598] sm:$0xf]  ;;  %v9585_v50 = vld [vmem:[#allocation5 + $0x13e8] sm:$0xf] }
 0x2d9   : > { %6576 = vmatpush.bf16.msrb.mxu1 %v8074_v29  ;;  %v11959_v15 = vpop.f32.mrf.mxu3  ;;  %v6326_v29 = vpop.f32.mrf.mxu1 }
 0x2da   : > { %6589 = vmatpush.bf16.msrb.mxu2 %v8650_v46  ;;  %v7786_v46 = vor.u32 %v10662_v63, %v7785_v62  ;;  %v9874_v62 = vor.u32 %v11184_v9, %v9873_v12  ;;  %v10450_v63 = vor.u32 %v11328_v5, %v10449_v13  ;;  %v10581_v29 = vld [vmem:[#allocation5 + $0x39c] sm:$0xf] }
 0x2db   : > { %6602 = vmatpush.bf16.msrb.mxu3 %v9226_v34  ;;  %v7713_v34 = vld [vmem:[#allocation5 + $0x548] sm:$0xf]  ;;  %v10689_v12 = vld [vmem:[#allocation5 + $0x6fc] sm:$0xf] }
 0x2dc   : > { %6564 = vmatpush.bf16.msrb.mxu0 %v7426_v33  ;;  %v10932_v33 = vld [vmem:[#allocation5 + $0xe8c] sm:$0xf0]  ;;  %v7714_v3 = vor.u32 %v10644_v41, %v7713_v34  ;;  %v9729_v41 = vld [vmem:[#allocation5 + $0x1508] sm:$0xf] }
 0x2dd   : > { %6577 = vmatpush.bf16.msrb.mxu1 %v8002_v51  ;;  %v1103_v51 = vperm.slane %v11920_v6, 2  ;;  %v8866_v7 = vor.u32 %v10932_v33, %v8865_v44  ;;  %v11292_v33 = vld [vmem:[#allocation5 + $0x19cc] sm:$0xf0] }
 0x2de   : > { %6590 = vmatpush.bf16.msrb.mxu2 %v8578_v49  ;;  %v7138_v49 = vor.u32 %v10500_v59, %v7137_v55  ;;  %v8075_v55 = vld [vmem:[#allocation5 + $0x860] sm:$0xf0]  ;;  %v9802_v59 = vor.u32 %v11166_v4, %v9801_v1 }
 0x2df   : > { %6603 = vmatpush.bf16.msrb.mxu3 %v9154_v37  ;;  %v8290_v37 = vor.u32 %v10788_v43, %v8289_v21  ;;  %v6260_v60 = vadd.f32 %v11941_v52, %v1103_v51  ;;  %v11148_v21 = vld [vmem:[#allocation5 + $0x154c] sm:$0xf0]  ;;  %v10305_v43 = vld [vmem:[#allocation5 + $0x1988] sm:$0xf]  ;;  %v10563_v51 = vld [vmem:[#allocation5 + $0x30c] sm:$0xf] }
 0x2e0   : > { %6565 = vmatpush.bf16.msrb.mxu0 %v7354_v8  ;;  %v8793_v8 = vld [vmem:[#allocation5 + $0xdb8] sm:$0xf]  ;;  %v9730_v36 = vor.u32 %v11148_v21, %v9729_v41 }
 0x2e1   : > { %6578 = vmatpush.bf16.msrb.mxu1 %v7930_v0  ;;  %v10914_v0 = vld [vmem:[#allocation5 + $0xdfc] sm:$0xf0]  ;;  %v6273_v52 = vadd.f32 %v11943_v14, %v6260_v60  ;;  %v10707_v14 = vld [vmem:[#allocation5 + $0x78c] sm:$0xf] }
 0x2e2   : > { %6591 = vmatpush.bf16.msrb.mxu2 %v8506_v32  ;;  %v6339_v32 = vpop.f32.mrf.mxu2  ;;  %v8794_v61 = vor.u32 %v10914_v0, %v8793_v8  ;;  %v11274_v8 = vld [vmem:[#allocation5 + $0x193c] sm:$0xf0]  ;;  %v10545_v0 = vld [vmem:[#allocation5 + $0x27c] sm:$0xf]  ;;  %v10527_v60 = vld [vmem:[#allocation5 + $0x1ec] sm:$0xf] }
 0x2e3   : > { %6604 = vmatpush.bf16.msrb.mxu3 %v9082_v47  ;;  %v6352_v47 = vpop.f32.mrf.mxu3  ;;  %v7355_v32 = vld [vmem:[#allocation5 + $0x2c0] sm:$0xf0] }
 0x2e4   : > { %6566 = vmatpush.bf16.msrb.mxu0 %v7282_v58  ;;  %v8218_v58 = vor.u32 %v10770_v45, %v8217_v17  ;;  %v11130_v17 = vld [vmem:[#allocation5 + $0x14bc] sm:$0xf0]  ;;  %v8006_v45 = vor.u32 %v10707_v14, %v8003_v10  ;;  %v10017_v14 = vld [vmem:[#allocation5 + $0x1748] sm:$0xf] }
 0x2e5   : > { %6579 = vmatpush.bf16.msrb.mxu1 %v7858_v54  ;;  %v10743_v54 = vld [vmem:[#allocation5 + $0x8ac] sm:$0xf]  ;;  %v9658_v13 = vor.u32 %v11130_v17, %v9657_v53  ;;  %v7715_v53 = vld [vmem:[#allocation5 + $0x590] sm:$0xf0] }
 0x2e6   : > { %6592 = vmatpush.bf16.msrb.mxu2 %v8434_v23  ;;  %v8147_v23 = vld [vmem:[#allocation5 + $0x8f0] sm:$0xf0] }
 0x2e7   : > { %6605 = vmatpush.bf16.msrb.mxu3 %v9010_v16  ;;  %v1104_v16 = vperm.slane %v11920_v6, 3  ;;  %v8150_v25 = vor.u32 %v10743_v54, %v8147_v23  ;;  %v11256_v23 = vld [vmem:[#allocation5 + $0x18ac] sm:$0xf0] }
 0x2e8   : > { %6567 = vmatpush.bf16.msrb.mxu0 %v7210_v56  ;;  %v11310_v56 = vld [vmem:[#allocation5 + $0x1a5c] sm:$0xf0] }
 0x2e9   : > { %6580 = vmatpush.bf16.msrb.mxu1 %v7786_v46  ;;  %v7499_v46 = vld [vmem:[#allocation5 + $0x3e0] sm:$0xf0]  ;;  %v6338_v6 = vadd.f32 %v11957_v2, %v1104_v16  ;;  %v10378_v34 = vor.u32 %v11310_v56, %v10377_v26  ;;  %v6286_v2 = vadd.f32 %v11945_v27, %v6273_v52  ;;  %v10671_v16 = vld [vmem:[#allocation5 + $0x66c] sm:$0xf]  ;;  %v11094_v56 = vld [vmem:[#allocation5 + $0x139c] sm:$0xf0] }
 0x2ea   : > { %6593 = vmatpush.bf16.msrb.mxu2 %v8362_v30  ;;  %v10725_v30 = vld [vmem:[#allocation5 + $0x81c] sm:$0xf]  ;;  %v7931_v27 = vld [vmem:[#allocation5 + $0x740] sm:$0xf0]  ;;  %v11238_v52 = vld [vmem:[#allocation5 + $0x181c] sm:$0xf0] }
 0x2eb   : > { %6606 = vmatpush.bf16.msrb.mxu3 %v8938_v31  ;;  %v7502_v31 = vor.u32 %v10581_v29, %v7499_v46  ;;  %v8078_v44 = vor.u32 %v10725_v30, %v8075_v55  ;;  %v6299_v9 = vadd.f32 %v11947_v28, %v6286_v2  ;;  %v7934_v54 = vor.u32 %v10689_v12, %v7931_v27  ;;  %v7859_v28 = vld [vmem:[#allocation5 + $0x6b0] sm:$0xf0]  ;;  %v10089_v29 = vld [vmem:[#allocation5 + $0x17d8] sm:$0xf]  ;;  %v11202_v12 = vld [vmem:[#allocation5 + $0x16fc] sm:$0xf0] }
 0x2ec   : > { %6568 = vmatpush.bf16.msrb.mxu0 %v7138_v49  ;;  %v7427_v49 = vld [vmem:[#allocation5 + $0x350] sm:$0xf0]  ;;  %v7862_v46 = vor.u32 %v10671_v16, %v7859_v28  ;;  %v10473_v27 = vld [vmem:[#allocation5 + $0x3c] sm:$0xf]  ;;  %v11319_v16 = vld [vmem:[#allocation5 + $0x1aac] sm:$0xf] }
 0x2ed   : > { %6581 = vmatpush.bf16.msrb.mxu1 %v7714_v3  ;;  %v6351_v3 = vadd.f32 %v11959_v15, %v6338_v6  ;;  %v7430_v39 = vor.u32 %v10563_v51, %v7427_v49  ;;  %v7211_v6 = vld [vmem:[#allocation5 + $0x1a0] sm:$0xf0]  ;;  %v9441_v51 = vld [vmem:[#allocation5 + $0x12c8] sm:$0xf]  ;;  %v11076_v49 = vld [vmem:[#allocation5 + $0x130c] sm:$0xf0] }
 0x2ee   : > { %6594 = vmatpush.bf16.msrb.mxu2 %v8290_v37  ;;  %v10306_v37 = vor.u32 %v11292_v33, %v10305_v43  ;;  %v9442_v17 = vor.u32 %v11076_v49, %v9441_v51  ;;  %v10451_v28 = vld [vmem:[#allocation5 + $0x1af0] sm:$0xf0]  ;;  %v11283_v49 = vld [vmem:[#allocation5 + $0x198c] sm:$0xf] }
 0x2ef   : > { %6607 = vmatpush.bf16.msrb.mxu3 %v8866_v7  ;;  %v10233_v7 = vld [vmem:[#allocation5 + $0x18f8] sm:$0xf]  ;;  %v9731_v51 = vld [vmem:[#allocation5 + $0x1550] sm:$0xf0] }
 0x2f0   : > { %6569 = vmatpush.bf16.msrb.mxu0 %v7066_v48  ;;  %v6363_v47 = vpop.f32.mrf.mxu0  ;;  %v10234_v15 = vor.u32 %v11274_v8, %v10233_v7  ;;  %v7358_v48 = vor.u32 %v10545_v0, %v7355_v32  ;;  %v9369_v7 = vld [vmem:[#allocation5 + $0x1238] sm:$0xf] }
 0x2f1   : > { %6582 = vmatpush.bf16.msrb.mxu1 %v7642_v57  ;;  %v6364_v5 = vadd.f32 %v6363_v47, %v6351_v3  ;;  %v6376_v11 = vpop.f32.mrf.mxu1  ;;  %v11112_v57 = vld [vmem:[#allocation5 + $0x142c] sm:$0xf0]  ;;  %v9945_v32 = vld [vmem:[#allocation5 + $0x16b8] sm:$0xf]  ;;  %v7067_v47 = vld [vmem:[#allocation5 + $0x80] sm:$0xf0] }
 0x2f2   : > { %6595 = vmatpush.bf16.msrb.mxu2 %v8218_v58  ;;  %v10161_v58 = vld [vmem:[#allocation5 + $0x1868] sm:$0xf]  ;;  %v11220_v3 = vld [vmem:[#allocation5 + $0x178c] sm:$0xf0] }
 0x2f3   : > { %6608 = vmatpush.bf16.msrb.mxu3 %v8794_v61  ;;  %6570 = vmatmul.bf16.vlgmr.msrb.gmra.mxu0 %v11702_v18  ;;  %v7283_v61 = vld [vmem:[#allocation5 + $0x230] sm:$0xf0]  ;;  %v10162_v1 = vor.u32 %v11256_v23, %v10161_v58  ;;  %v10018_v8 = vor.u32 %v11220_v3, %v10017_v14  ;;  %v11175_v23 = vld [vmem:[#allocation5 + $0x162c] sm:$0xf]  ;;  %v10833_v3 = vld [vmem:[#allocation5 + $0xb7c] sm:$0xf] }
 0x2f4   : > { %6614 = vmatpush.bf16.msra.mxu0 %v9874_v62  ;;  %6583 = vmatmul.bf16.vlgmr.msrb.gmra.mxu1 %v11708_v22  ;;  %v6377_v62 = vadd.f32 %v6376_v11, %v6364_v5  ;;  %v7286_v4 = vor.u32 %v10527_v60, %v7283_v61  ;;  %v10887_v11 = vld [vmem:[#allocation5 + $0xd2c] sm:$0xf]  ;;  %v9875_v60 = vld [vmem:[#allocation5 + $0x1670] sm:$0xf0]  ;;  %v9946_v61 = vor.u32 %v11202_v12, %v9945_v32 }
 0x2f5   : > { %6627 = vmatpush.bf16.msra.mxu1 %v10450_v63  ;;  %6596 = vmatmul.bf16.vlgmr.msrb.gmra.mxu2 %v11704_v19  ;;  %v6312_v63 = vadd.f32 %v11953_v40, %v6299_v9  ;;  %v10307_v14 = vld [vmem:[#allocation5 + $0x19d0] sm:$0xf0] }
 0x2f6   : > { %6640 = vmatpush.bf16.msra.mxu2 %v7574_v24  ;;  %6609 = vmatmul.bf16.vlgmr.msrb.gmra.mxu3 %v11706_v20  ;;  %v9586_v24 = vor.u32 %v11112_v57, %v9585_v50  ;;  %v8723_v50 = vld [vmem:[#allocation5 + $0xd70] sm:$0xf0]  ;;  %v11031_v57 = vld [vmem:[#allocation5 + $0x11ac] sm:$0xf] }
 0x2f7   : > { %6653 = vmatpush.bf16.msra.mxu3 %v8150_v25  ;;  %v9513_v25 = vld [vmem:[#allocation5 + $0x1358] sm:$0xf]  ;;  %v6325_v40 = vadd.f32 %v11955_v42, %v6312_v63  ;;  %v10635_v42 = vld [vmem:[#allocation5 + $0x54c] sm:$0xf] }
 0x2f8   : > { %6615 = vmatpush.bf16.msra.mxu0 %v9802_v59  ;;  %v6389_v26 = vpop.f32.mrf.mxu2  ;;  %v10509_v59 = vld [vmem:[#allocation5 + $0x15c] sm:$0xf]  ;;  %v9514_v21 = vor.u32 %v11094_v56, %v9513_v25  ;;  %v6365_v43 = vpop.f32.mrf.mxu0  ;;  %v8651_v25 = vld [vmem:[#allocation5 + $0xce0] sm:$0xf0] }
 0x2f9   : > { %6628 = vmatpush.bf16.msra.mxu1 %v10378_v34  ;;  %v6390_v30 = vadd.f32 %v6389_v26, %v6377_v62  ;;  %v6402_v55 = vpop.f32.mrf.mxu3  ;;  %v10653_v34 = vld [vmem:[#allocation5 + $0x5dc] sm:$0xf]  ;;  %v7214_v33 = vor.u32 %v10509_v59, %v7211_v6  ;;  %v6378_v10 = vpop.f32.mrf.mxu1  ;;  %v7070_v62 = vor.u32 %v10473_v27, %v7067_v47  ;;  %v10379_v59 = vld [vmem:[#allocation5 + $0x1a60] sm:$0xf0]  ;;  %v10959_v47 = vld [vmem:[#allocation5 + $0xf6c] sm:$0xf] }
 0x2fa   : > { %6641 = vmatpush.bf16.msra.mxu2 %v7502_v31  ;;  %v7787_v31 = vld [vmem:[#allocation5 + $0x620] sm:$0xf0]  ;;  %v10869_v26 = vld [vmem:[#allocation5 + $0xc9c] sm:$0xf] }
 0x2fb   : > { %6654 = vmatpush.bf16.msra.mxu3 %v8078_v44  ;;  %v6403_v41 = vadd.f32 %v6402_v55, %v6390_v30  ;;  %v10090_v44 = vor.u32 %v11238_v52, %v10089_v29  ;;  %v11013_v56 = vld [vmem:[#allocation5 + $0x111c] sm:$0xf]  ;;  %v10454_v29 = vor.u32 %v11319_v16, %v10451_v28  ;;  %v9803_v55 = vld [vmem:[#allocation5 + $0x15e0] sm:$0xf0]  ;;  %v8654_v6 = vor.u32 %v10869_v26, %v8651_v25 }
 0x2fc   : > { %6616 = vmatpush.bf16.msra.mxu0 %v9730_v36  ;;  %v7790_v36 = vor.u32 %v10653_v34, %v7787_v31  ;;  %v11157_v30 = vld [vmem:[#allocation5 + $0x159c] sm:$0xf] }
 0x2fd   : > { %6629 = vmatpush.bf16.msra.mxu1 %v10306_v37  ;;  %v6879_v2 = vpack.c.bf16 %v6403_v41, %v6325_v40  ;;  %v10491_v37 = vld [vmem:[#allocation5 + $0xcc] sm:$0xf]  ;;  %v11301_v52 = vld [vmem:[#allocation5 + $0x1a1c] sm:$0xf]  ;;  %v9806_v31 = vor.u32 %v11157_v30, %v9803_v55  ;;  %v8579_v41 = vld [vmem:[#allocation5 + $0xc50] sm:$0xf0] }
 0x2fe   : > { %6642 = vmatpush.bf16.msra.mxu2 %v7430_v39  ;;  %v7139_v39 = vld [vmem:[#allocation5 + $0x110] sm:$0xf0]  ;;  %v10851_v40 = vld [vmem:[#allocation5 + $0xc0c] sm:$0xf]  ;;  %v10382_v43 = vor.u32 %v11301_v52, %v10379_v59  ;;  %v10941_v16 = vld [vmem:[#allocation5 + $0xedc] sm:$0xf] }
 0x2ff   : > { %6655 = vmatpush.bf16.msra.mxu3 %v8006_v45  ;;  %6888 = vst [vmem:[%s11774_s8 + $0x28] sm:$0xff] %v6879_v2  ;;  %v11058_v45 = vld [vmem:[#allocation5 + $0x127c] sm:$0xf0]  ;;  %v7142_v0 = vor.u32 %v10491_v37, %v7139_v39  ;;  %v8582_v10 = vor.u32 %v10851_v40, %v8579_v41  ;;  %v8507_v37 = vld [vmem:[#allocation5 + $0xbc0] sm:$0xf0] }
 0x300   : > { %6617 = vmatpush.bf16.msra.mxu0 %v9658_v13  ;;  %v6391_v9 = vpop.f32.mrf.mxu2  ;;  %v7718_v13 = vor.u32 %v10635_v42, %v7715_v53  ;;  %v9370_v58 = vor.u32 %v11058_v45, %v9369_v7  ;;  %v10977_v39 = vld [vmem:[#allocation5 + $0xffc] sm:$0xf]  ;;  %v10310_v42 = vor.u32 %v11283_v49, %v10307_v14  ;;  %v9083_v53 = vld [vmem:[#allocation5 + $0x1040] sm:$0xf0]  ;;  %v8510_v32 = vor.u32 %v10833_v3, %v8507_v37  ;;  %v10779_v52 = vld [vmem:[#allocation5 + $0x9cc] sm:$0xf] }
 0x301   : > { %6630 = vmatpush.bf16.msra.mxu1 %v10234_v15  ;;  %v10617_v15 = vld [vmem:[#allocation5 + $0x4bc] sm:$0xf]  ;;  %v6404_v5 = vpop.f32.mrf.mxu3  ;;  %v9659_v7 = vld [vmem:[#allocation5 + $0x14c0] sm:$0xf0]  ;;  %v9086_v12 = vor.u32 %v10977_v39, %v9083_v53  ;;  %v10815_v9 = vld [vmem:[#allocation5 + $0xaec] sm:$0xf] }
 0x302   : > { %6643 = vmatpush.bf16.msra.mxu2 %v7358_v48  ;;  %v7643_v48 = vld [vmem:[#allocation5 + $0x500] sm:$0xf0]  ;;  %v11265_v45 = vld [vmem:[#allocation5 + $0x18fc] sm:$0xf]  ;;  %v9011_v5 = vld [vmem:[#allocation5 + $0xfb0] sm:$0xf0] }
 0x303   : > { %6656 = vmatpush.bf16.msra.mxu3 %v7934_v54  ;;  %v9299_v54 = vld [vmem:[#allocation5 + $0x11f0] sm:$0xf0]  ;;  %v7646_v63 = vor.u32 %v10617_v15, %v7643_v48  ;;  %v11229_v25 = vld [vmem:[#allocation5 + $0x17dc] sm:$0xf]  ;;  %v11067_v41 = vld [vmem:[#allocation5 + $0x12cc] sm:$0xf] }
 0x304   : > { %6618 = vmatpush.bf16.msra.mxu0 %v9586_v24  ;;  %v8726_v24 = vor.u32 %v10887_v11, %v8723_v50  ;;  %v11103_v11 = vld [vmem:[#allocation5 + $0x13ec] sm:$0xf]  ;;  %v9587_v50 = vld [vmem:[#allocation5 + $0x1430] sm:$0xf0]  ;;  %v8219_v49 = vld [vmem:[#allocation5 + $0x980] sm:$0xf0] }
 0x305   : > { %6631 = vmatpush.bf16.msra.mxu1 %v10162_v1  ;;  %v9302_v1 = vor.u32 %v11031_v57, %v9299_v54  ;;  %v11247_v57 = vld [vmem:[#allocation5 + $0x186c] sm:$0xf]  ;;  %v8291_v59 = vld [vmem:[#allocation5 + $0xa10] sm:$0xf0]  ;;  %v11049_v3 = vld [vmem:[#allocation5 + $0x123c] sm:$0xf] }
 0x306   : > { %6644 = vmatpush.bf16.msra.mxu2 %v7286_v4  ;;  %v9878_v4 = vor.u32 %v11175_v23, %v9875_v60  ;;  %v9014_v23 = vor.u32 %v10959_v47, %v9011_v5  ;;  %v9590_v60 = vor.u32 %v11103_v11, %v9587_v50  ;;  %v8867_v40 = vld [vmem:[#allocation5 + $0xe90] sm:$0xf0]  ;;  %v9371_v39 = vld [vmem:[#allocation5 + $0x1280] sm:$0xf0]  ;;  %v9305_v5 = vld [vmem:[#allocation5 + $0x11b0] sm:$0xf] }
 0x307   : > { %6657 = vmatpush.bf16.msra.mxu3 %v7862_v46  ;;  %v9227_v46 = vld [vmem:[#allocation5 + $0x1160] sm:$0xf0]  ;;  %v11041_v11 = vld [vmem:[#allocation5 + $0x11f4] sm:$0xf0] }
 0x308   : > { %6619 = vmatpush.bf16.msra.mxu0 %v9514_v21  ;;  %v9230_v34 = vor.u32 %v11013_v56, %v9227_v46  ;;  %v10995_v21 = vld [vmem:[#allocation5 + $0x108c] sm:$0xf]  ;;  %v10091_v56 = vld [vmem:[#allocation5 + $0x1820] sm:$0xf0] }
 0x309   : > { %6632 = vmatpush.bf16.msra.mxu1 %v10090_v44  ;;  %v9155_v44 = vld [vmem:[#allocation5 + $0x10d0] sm:$0xf0]  ;;  %v9947_v53 = vld [vmem:[#allocation5 + $0x1700] sm:$0xf0] }
 0x30a   : > { %6645 = vmatpush.bf16.msra.mxu2 %v7214_v33  ;;  %v11139_v33 = vld [vmem:[#allocation5 + $0x150c] sm:$0xf]  ;;  %v9158_v2 = vor.u32 %v10995_v21, %v9155_v44  ;;  %v9443_v21 = vld [vmem:[#allocation5 + $0x1310] sm:$0xf0] }
 0x30b   : > { %6658 = vmatpush.bf16.msra.mxu3 %v7790_v36  ;;  %v9734_v36 = vor.u32 %v11139_v33, %v9731_v51  ;;  %v10019_v44 = vld [vmem:[#allocation5 + $0x1790] sm:$0xf0]  ;;  %v8294_v33 = vor.u32 %v10779_v52, %v8291_v59  ;;  %v10761_v51 = vld [vmem:[#allocation5 + $0x93c] sm:$0xf]  ;;  %v10717_v59 = vld [vmem:[#allocation5 + $0x7d4] sm:$0xf0] }
 0x30c   : > { %6620 = vmatpush.bf16.msra.mxu0 %v9442_v17  ;;  %v11121_v17 = vld [vmem:[#allocation5 + $0x147c] sm:$0xf] }
 0x30d   : > { %6633 = vmatpush.bf16.msra.mxu1 %v10018_v8  ;;  %v10235_v8 = vld [vmem:[#allocation5 + $0x1940] sm:$0xf0]  ;;  %v9662_v27 = vor.u32 %v11121_v17, %v9659_v7 }
 0x30e   : > { %6646 = vmatpush.bf16.msra.mxu2 %v7142_v0  ;;  %v10238_v48 = vor.u32 %v11265_v45, %v10235_v8  ;;  %v7577_v45 = vld [vmem:[#allocation5 + $0x430] sm:$0xf]  ;;  %v10609_v8 = vld [vmem:[#allocation5 + $0x474] sm:$0xf0] }
 0x30f   : > { %6659 = vmatpush.bf16.msra.mxu3 %v7718_v13  ;;  %v8435_v13 = vld [vmem:[#allocation5 + $0xb30] sm:$0xf0] }
 0x310   : > { %6621 = vmatpush.bf16.msra.mxu0 %v9370_v58  ;;  %v11980_v0 = vpop.f32.mrf.mxu0  ;;  %v10163_v58 = vld [vmem:[#allocation5 + $0x18b0] sm:$0xf0]  ;;  %v8438_v54 = vor.u32 %v10815_v9, %v8435_v13  ;;  %v8729_v9 = vld [vmem:[#allocation5 + $0xd30] sm:$0xf]  ;;  %v10897_v13 = vld [vmem:[#allocation5 + $0xd74] sm:$0xf0] }
 0x311   : > { %6634 = vmatpush.bf16.msra.mxu1 %v9946_v61  ;;  %v11982_v15 = vpop.f32.mrf.mxu1  ;;  %v10797_v61 = vld [vmem:[#allocation5 + $0xa5c] sm:$0xf]  ;;  %v10166_v28 = vor.u32 %v11247_v57, %v10163_v58  ;;  %v7578_v57 = vor.u32 %v10609_v8, %v7577_v45  ;;  %v10537_v45 = vld [vmem:[#allocation5 + $0x234] sm:$0xf0]  ;;  %v7865_v8 = vld [vmem:[#allocation5 + $0x670] sm:$0xf] }
 0x312   : > { %6647 = vmatpush.bf16.msra.mxu2 %v7070_v62  ;;  %v8363_v62 = vld [vmem:[#allocation5 + $0xaa0] sm:$0xf0] }
 0x313   : > { %6660 = vmatpush.bf16.msra.mxu3 %v7646_v63  ;;  %6622 = vmatmul.bf16.vlgmr.msra.gmra.mxu0 %v11715_v35  ;;  %v8939_v63 = vld [vmem:[#allocation5 + $0xf20] sm:$0xf0]  ;;  %v8366_v46 = vor.u32 %v10797_v61, %v8363_v62  ;;  %v8081_v61 = vld [vmem:[#allocation5 + $0x820] sm:$0xf]  ;;  %v9306_v62 = vor.u32 %v11041_v11, %v9305_v5 }
 0x314   : > { %6666 = vmatpush.bf16.msrb.mxu0 %v8726_v24  ;;  %6635 = vmatmul.bf16.vlgmr.msra.gmra.mxu1 %v11717_v38  ;;  %v11085_v24 = vld [vmem:[#allocation5 + $0x135c] sm:$0xf]  ;;  %v8942_v30 = vor.u32 %v10941_v16, %v8939_v63  ;;  %v10735_v16 = vld [vmem:[#allocation5 + $0x864] sm:$0xf0] }
 0x315   : > { %6679 = vmatpush.bf16.msrb.mxu1 %v9302_v1  ;;  %6648 = vmatmul.bf16.vlgmr.msra.gmra.mxu2 %v11702_v18  ;;  %v9515_v1 = vld [vmem:[#allocation5 + $0x13a0] sm:$0xf0]  ;;  %v10879_v63 = vld [vmem:[#allocation5 + $0xce4] sm:$0xf0] }
 0x316   : > { %6692 = vmatpush.bf16.msrb.mxu2 %v9878_v4  ;;  %6661 = vmatmul.bf16.vlgmr.msra.gmra.mxu3 %v11708_v22  ;;  %v9518_v55 = vor.u32 %v11085_v24, %v9515_v1  ;;  %v9233_v24 = vld [vmem:[#allocation5 + $0x1120] sm:$0xf]  ;;  %v11023_v1 = vld [vmem:[#allocation5 + $0x1164] sm:$0xf0] }
 0x317   : > { %6705 = vmatpush.bf16.msrb.mxu3 %v10454_v29  ;;  %v9234_v52 = vor.u32 %v11023_v1, %v9233_v24 }
 0x318   : > { %6667 = vmatpush.bf16.msrb.mxu0 %v8654_v6  ;;  %v11984_v4 = vpop.f32.mrf.mxu2  ;;  %v6417_v29 = vpop.f32.mrf.mxu0  ;;  %v10923_v6 = vld [vmem:[#allocation5 + $0xe4c] sm:$0xf] }
 0x319   : > { %6680 = vmatpush.bf16.msrb.mxu1 %v9230_v34  ;;  %v11986_v26 = vpop.f32.mrf.mxu3  ;;  %v6430_v34 = vpop.f32.mrf.mxu1  ;;  %v8870_v14 = vor.u32 %v10923_v6, %v8867_v40  ;;  %v8585_v6 = vld [vmem:[#allocation5 + $0xc10] sm:$0xf]  ;;  %v11005_v40 = vld [vmem:[#allocation5 + $0x10d4] sm:$0xf0] }
 0x31a   : > { %6693 = vmatpush.bf16.msrb.mxu2 %v9806_v31  ;;  %v10094_v31 = vor.u32 %v11229_v25, %v10091_v56  ;;  %v8082_v56 = vor.u32 %v10735_v16, %v8081_v61  ;;  %v10861_v34 = vld [vmem:[#allocation5 + $0xc54] sm:$0xf0]  ;;  %v10807_v61 = vld [vmem:[#allocation5 + $0xaa4] sm:$0xf0]  ;;  %v8945_v16 = vld [vmem:[#allocation5 + $0xee0] sm:$0xf] }
 0x31b   : > { %6706 = vmatpush.bf16.msrb.mxu3 %v10382_v43  ;;  %v11211_v43 = vld [vmem:[#allocation5 + $0x174c] sm:$0xf] }
 0x31c   : > { %6668 = vmatpush.bf16.msrb.mxu0 %v8582_v10  ;;  %v9446_v10 = vor.u32 %v11067_v41, %v9443_v21  ;;  %v10022_v37 = vor.u32 %v11211_v43, %v10019_v44  ;;  %v8586_v43 = vor.u32 %v10861_v34, %v8585_v6  ;;  %v7361_v44 = vld [vmem:[#allocation5 + $0x280] sm:$0xf]  ;;  %v8297_v6 = vld [vmem:[#allocation5 + $0x9d0] sm:$0xf]  ;;  %v10789_v34 = vld [vmem:[#allocation5 + $0xa14] sm:$0xf0] }
 0x31d   : > { %6681 = vmatpush.bf16.msrb.mxu1 %v9158_v2  ;;  %v10905_v2 = vld [vmem:[#allocation5 + $0xdbc] sm:$0xf] }
 0x31e   : > { %6694 = vmatpush.bf16.msrb.mxu2 %v9734_v36  ;;  %v8795_v36 = vld [vmem:[#allocation5 + $0xe00] sm:$0xf0] }
 0x31f   : > { %6707 = vmatpush.bf16.msrb.mxu3 %v10310_v42  ;;  %v11193_v42 = vld [vmem:[#allocation5 + $0x16bc] sm:$0xf]  ;;  %v8798_v47 = vor.u32 %v10905_v2, %v8795_v36  ;;  %v10843_v2 = vld [vmem:[#allocation5 + $0xbc4] sm:$0xf0]  ;;  %v9089_v36 = vld [vmem:[#allocation5 + $0x1000] sm:$0xf] }
 0x320   : > { %6669 = vmatpush.bf16.msrb.mxu0 %v8510_v32  ;;  %v6443_v17 = vpop.f32.mrf.mxu2  ;;  %v8153_v32 = vld [vmem:[#allocation5 + $0x8b0] sm:$0xf]  ;;  %v9950_v50 = vor.u32 %v11193_v42, %v9947_v53 }
 0x321   : > { %6682 = vmatpush.bf16.msrb.mxu1 %v9086_v12  ;;  %v6456_v7 = vpop.f32.mrf.mxu3  ;;  %v8222_v12 = vor.u32 %v10761_v51, %v8219_v49  ;;  %v7937_v51 = vld [vmem:[#allocation5 + $0x700] sm:$0xf] }
 0x322   : > { %6695 = vmatpush.bf16.msrb.mxu2 %v9662_v27  ;;  %v10753_v27 = vld [vmem:[#allocation5 + $0x8f4] sm:$0xf0]  ;;  %v7289_v7 = vld [vmem:[#allocation5 + $0x1f0] sm:$0xf] }
 0x323   : > { %6708 = vmatpush.bf16.msrb.mxu3 %v10238_v48  ;;  %v9374_v48 = vor.u32 %v11049_v3, %v9371_v39  ;;  %v8154_v58 = vor.u32 %v10753_v27, %v8153_v32  ;;  %v10987_v3 = vld [vmem:[#allocation5 + $0x1044] sm:$0xf0]  ;;  %v8441_v27 = vld [vmem:[#allocation5 + $0xaf0] sm:$0xf] }
 0x324   : > { %6670 = vmatpush.bf16.msrb.mxu0 %v8438_v54  ;;  %v8730_v54 = vor.u32 %v10897_v13, %v8729_v9  ;;  %v9090_v32 = vor.u32 %v10987_v3, %v9089_v36  ;;  %v10825_v9 = vld [vmem:[#allocation5 + $0xb34] sm:$0xf0]  ;;  %v9017_v13 = vld [vmem:[#allocation5 + $0xf70] sm:$0xf]  ;;  %v10771_v3 = vld [vmem:[#allocation5 + $0x984] sm:$0xf0] }
 0x325   : > { %6683 = vmatpush.bf16.msrb.mxu1 %v9014_v23  ;;  %v7505_v23 = vld [vmem:[#allocation5 + $0x3a0] sm:$0xf]  ;;  %v8442_v11 = vor.u32 %v10825_v9, %v8441_v27  ;;  %v11329_v27 = vld [vmem:[#allocation5 + $0x1af4] sm:$0xf0]  ;;  %v10600_v9 = vld [vmem:[#allocation5 + $0x434] sm:$0xf] }
 0x326   : > { %6696 = vmatpush.bf16.msrb.mxu2 %v9590_v60  ;;  %v10591_v60 = vld [vmem:[#allocation5 + $0x3e4] sm:$0xf0] }
 0x327   : > { %6709 = vmatpush.bf16.msrb.mxu3 %v10166_v28  ;;  %v8657_v28 = vld [vmem:[#allocation5 + $0xca0] sm:$0xf]  ;;  %v7506_v25 = vor.u32 %v10591_v60, %v7505_v23  ;;  %v10663_v23 = vld [vmem:[#allocation5 + $0x624] sm:$0xf0] }
 0x328   : > { %6671 = vmatpush.bf16.msrb.mxu0 %v8366_v46  ;;  %v8658_v29 = vor.u32 %v10879_v63, %v8657_v28  ;;  %v7433_v46 = vld [vmem:[#allocation5 + $0x310] sm:$0xf]  ;;  %v8369_v60 = vld [vmem:[#allocation5 + $0xa60] sm:$0xf]  ;;  %v10951_v28 = vld [vmem:[#allocation5 + $0xf24] sm:$0xf0] }
 0x329   : > { %6684 = vmatpush.bf16.msrb.mxu1 %v8942_v30  ;;  %v10573_v30 = vld [vmem:[#allocation5 + $0x354] sm:$0xf0] }
 0x32a   : > { %6697 = vmatpush.bf16.msrb.mxu2 %v9518_v55  ;;  %v8009_v55 = vld [vmem:[#allocation5 + $0x790] sm:$0xf]  ;;  %v7434_v41 = vor.u32 %v10573_v30, %v7433_v46  ;;  %v10501_v30 = vld [vmem:[#allocation5 + $0x114] sm:$0xf0] }
 0x32b   : > { %6710 = vmatpush.bf16.msrb.mxu3 %v10094_v31  ;;  %v9161_v31 = vld [vmem:[#allocation5 + $0x1090] sm:$0xf]  ;;  %v8010_v21 = vor.u32 %v10717_v59, %v8009_v55  ;;  %v10645_v59 = vld [vmem:[#allocation5 + $0x594] sm:$0xf0] }
 0x32c   : > { %6672 = vmatpush.bf16.msrb.mxu0 %v8294_v33  ;;  %v10555_v33 = vld [vmem:[#allocation5 + $0x2c4] sm:$0xf0]  ;;  %v9162_v49 = vor.u32 %v11005_v40, %v9161_v31  ;;  %v7145_v46 = vld [vmem:[#allocation5 + $0xd0] sm:$0xf]  ;;  %v10933_v40 = vld [vmem:[#allocation5 + $0xe94] sm:$0xf0] }
 0x32d   : > { %6685 = vmatpush.bf16.msrb.mxu1 %v8870_v14  ;;  %v10699_v14 = vld [vmem:[#allocation5 + $0x744] sm:$0xf0]  ;;  %v7362_v39 = vor.u32 %v10555_v33, %v7361_v44  ;;  %v7721_v55 = vld [vmem:[#allocation5 + $0x550] sm:$0xf]  ;;  %v7073_v44 = vld [vmem:[#allocation5 + $0x40] sm:$0xf] }
 0x32e   : > { %6698 = vmatpush.bf16.msrb.mxu2 %v9446_v10  ;;  %v8513_v10 = vld [vmem:[#allocation5 + $0xb80] sm:$0xf]  ;;  %v7938_v53 = vor.u32 %v10699_v14, %v7937_v51  ;;  %v8873_v31 = vld [vmem:[#allocation5 + $0xe50] sm:$0xf]  ;;  %v10483_v33 = vld [vmem:[#allocation5 + $0x84] sm:$0xf0]  ;;  %v7722_v51 = vor.u32 %v10645_v59, %v7721_v55 }
 0x32f   : > { %6711 = vmatpush.bf16.msrb.mxu3 %v10022_v37  ;;  %v8514_v17 = vor.u32 %v10843_v2, %v8513_v10  ;;  %v7649_v14 = vld [vmem:[#allocation5 + $0x4c0] sm:$0xf]  ;;  %v10627_v10 = vld [vmem:[#allocation5 + $0x504] sm:$0xf0]  ;;  %v8874_v36 = vor.u32 %v10933_v40, %v8873_v31  ;;  %v10313_v31 = vld [vmem:[#allocation5 + $0x1990] sm:$0xf] }
 0x330   : > { %6673 = vmatpush.bf16.msrb.mxu0 %v8222_v12  ;;  %v11992_v37 = vpop.f32.mrf.mxu0  ;;  %v10681_v12 = vld [vmem:[#allocation5 + $0x6b4] sm:$0xf0]  ;;  %v8225_v2 = vld [vmem:[#allocation5 + $0x940] sm:$0xf] }
 0x331   : > { %6686 = vmatpush.bf16.msrb.mxu1 %v8798_v47  ;;  %v11994_v42 = vpop.f32.mrf.mxu1  ;;  %v10969_v47 = vld [vmem:[#allocation5 + $0xfb4] sm:$0xf0]  ;;  %v7866_v5 = vor.u32 %v10681_v12, %v7865_v8  ;;  %v10457_v8 = vld [vmem:[#allocation5 + $0x1ab0] sm:$0xf]  ;;  %v7074_v12 = vor.u32 %v10483_v33, %v7073_v44  ;;  %v7435_v44 = vld [vmem:[#allocation5 + $0x358] sm:$0xf0] }
 0x332   : > { %6699 = vmatpush.bf16.msrb.mxu2 %v9374_v48  ;;  %v7290_v48 = vor.u32 %v10537_v45, %v7289_v7  ;;  %v9881_v7 = vld [vmem:[#allocation5 + $0x1630] sm:$0xf]  ;;  %v11185_v45 = vld [vmem:[#allocation5 + $0x1674] sm:$0xf0]  ;;  %v8011_v33 = vld [vmem:[#allocation5 + $0x7d8] sm:$0xf0] }
 0x333   : > { %6712 = vmatpush.bf16.msrb.mxu3 %v9950_v50  ;;  %6674 = vmatmul.bf16.vlgmr.msrb.gmra.mxu0 %v11704_v19  ;;  %v7217_v50 = vld [vmem:[#allocation5 + $0x160] sm:$0xf] }
 0x334   : > { %6718 = vmatpush.bf16.msra.mxu0 %v7578_v57  ;;  %6687 = vmatmul.bf16.vlgmr.msrb.gmra.mxu1 %v11706_v20  ;;  %v10519_v57 = vld [vmem:[#allocation5 + $0x1a4] sm:$0xf0] }
 0x335   : > { %6731 = vmatpush.bf16.msra.mxu1 %v8154_v58  ;;  %6700 = vmatmul.bf16.vlgmr.msrb.gmra.mxu2 %v11715_v35  ;;  %v7793_v58 = vld [vmem:[#allocation5 + $0x5e0] sm:$0xf]  ;;  %v7218_v1 = vor.u32 %v10519_v57, %v7217_v50 }
 0x336   : > { %6744 = vmatpush.bf16.msra.mxu2 %v8730_v54  ;;  %6713 = vmatmul.bf16.vlgmr.msrb.gmra.mxu3 %v11717_v38  ;;  %v9018_v54 = vor.u32 %v10969_v47, %v9017_v13  ;;  %v7579_v13 = vld [vmem:[#allocation5 + $0x478] sm:$0xf0]  ;;  %v7650_v47 = vor.u32 %v10627_v10, %v7649_v14 }
 0x337   : > { %6757 = vmatpush.bf16.msra.mxu3 %v9306_v62 }
 0x338   : > { %6719 = vmatpush.bf16.msra.mxu0 %v7506_v25  ;;  %v11996_v62 = vpop.f32.mrf.mxu2  ;;  %v6469_v24 = vpop.f32.mrf.mxu0 }
 0x339   : > { %6732 = vmatpush.bf16.msra.mxu1 %v8082_v56  ;;  %v11998_v63 = vpop.f32.mrf.mxu3  ;;  %v6482_v25 = vpop.f32.mrf.mxu1  ;;  %v7794_v56 = vor.u32 %v10663_v23, %v7793_v58  ;;  %v9882_v58 = vor.u32 %v11185_v45, %v9881_v7  ;;  %v10458_v23 = vor.u32 %v11329_v27, %v10457_v8  ;;  %v7363_v7 = vld [vmem:[#allocation5 + $0x2c8] sm:$0xf0]  ;;  %v10690_v45 = vld [vmem:[#allocation5 + $0x704] sm:$0xf] }
 0x33a   : > { %6745 = vmatpush.bf16.msra.mxu2 %v8658_v29  ;;  %v8370_v29 = vor.u32 %v10807_v61, %v8369_v60  ;;  %v7582_v60 = vor.u32 %v10600_v9, %v7579_v13  ;;  %v9809_v61 = vld [vmem:[#allocation5 + $0x15a0] sm:$0xf]  ;;  %v10582_v25 = vld [vmem:[#allocation5 + $0x3a4] sm:$0xf] }
 0x33b   : > { %6758 = vmatpush.bf16.msra.mxu3 %v9234_v52  ;;  %v8946_v52 = vor.u32 %v10951_v28, %v8945_v16  ;;  %v11167_v16 = vld [vmem:[#allocation5 + $0x15e4] sm:$0xf0]  ;;  %v10385_v28 = vld [vmem:[#allocation5 + $0x1a20] sm:$0xf] }
 0x33c   : > { %6720 = vmatpush.bf16.msra.mxu0 %v7434_v41  ;;  %v12000_v41 = vld [vmem:[#allocation7 + $0x8] sm:$0xff] }
 0x33d   : > { %6733 = vmatpush.bf16.msra.mxu1 %v8010_v21  ;;  %v1105_v21 = vperm.slane %v12000_v41, 4 }
 0x33e   : > { %6746 = vmatpush.bf16.msra.mxu2 %v8586_v43  ;;  %v7146_v43 = vor.u32 %v10501_v30, %v7145_v46  ;;  %v8083_v46 = vld [vmem:[#allocation5 + $0x868] sm:$0xf0]  ;;  %v9810_v30 = vor.u32 %v11167_v16, %v9809_v61 }
 0x33f   : > { %6759 = vmatpush.bf16.msra.mxu3 %v9162_v49  ;;  %v8298_v49 = vor.u32 %v10789_v34, %v8297_v6  ;;  %v6416_v50 = vadd.f32 %v11980_v0, %v1105_v21  ;;  %v9737_v6 = vld [vmem:[#allocation5 + $0x1510] sm:$0xf]  ;;  %v11149_v34 = vld [vmem:[#allocation5 + $0x1554] sm:$0xf0] }
 0x340   : > { %6721 = vmatpush.bf16.msra.mxu0 %v7362_v39  ;;  %v8801_v39 = vld [vmem:[#allocation5 + $0xdc0] sm:$0xf]  ;;  %v11293_v21 = vld [vmem:[#allocation5 + $0x19d4] sm:$0xf0] }
 0x341   : > { %6734 = vmatpush.bf16.msra.mxu1 %v7938_v53  ;;  %v10915_v53 = vld [vmem:[#allocation5 + $0xe04] sm:$0xf0]  ;;  %v6429_v0 = vadd.f32 %v11982_v15, %v6416_v50  ;;  %v10708_v15 = vld [vmem:[#allocation5 + $0x794] sm:$0xf]  ;;  %v10314_v14 = vor.u32 %v11293_v21, %v10313_v31  ;;  %v11257_v50 = vld [vmem:[#allocation5 + $0x18b4] sm:$0xf0] }
 0x342   : > { %6747 = vmatpush.bf16.msra.mxu2 %v8514_v17  ;;  %v6495_v17 = vpop.f32.mrf.mxu2  ;;  %v8802_v57 = vor.u32 %v10915_v53, %v8801_v39  ;;  %v8014_v39 = vor.u32 %v10708_v15, %v8011_v33  ;;  %v11275_v53 = vld [vmem:[#allocation5 + $0x1944] sm:$0xf0]  ;;  %v11077_v15 = vld [vmem:[#allocation5 + $0x1314] sm:$0xf0]  ;;  %v10025_v33 = vld [vmem:[#allocation5 + $0x1750] sm:$0xf] }
 0x343   : > { %6760 = vmatpush.bf16.msra.mxu3 %v9090_v32  ;;  %v6508_v32 = vpop.f32.mrf.mxu3  ;;  %v10546_v17 = vld [vmem:[#allocation5 + $0x284] sm:$0xf] }
 0x344   : > { %6722 = vmatpush.bf16.msra.mxu0 %v7290_v48  ;;  %v8226_v48 = vor.u32 %v10771_v3, %v8225_v2  ;;  %v9665_v2 = vld [vmem:[#allocation5 + $0x1480] sm:$0xf]  ;;  %v7366_v27 = vor.u32 %v10546_v17, %v7363_v7 }
 0x345   : > { %6735 = vmatpush.bf16.msra.mxu1 %v7866_v5  ;;  %v10744_v5 = vld [vmem:[#allocation5 + $0x8b4] sm:$0xf]  ;;  %v10241_v3 = vld [vmem:[#allocation5 + $0x1900] sm:$0xf] }
 0x346   : > { %6748 = vmatpush.bf16.msra.mxu2 %v8442_v11  ;;  %v8155_v11 = vld [vmem:[#allocation5 + $0x8f8] sm:$0xf0] }
 0x347   : > { %6761 = vmatpush.bf16.msra.mxu3 %v9018_v54  ;;  %v1106_v54 = vperm.slane %v12000_v41, 5  ;;  %v8158_v24 = vor.u32 %v10744_v5, %v8155_v11  ;;  %v10169_v5 = vld [vmem:[#allocation5 + $0x1870] sm:$0xf] }
 0x348   : > { %6723 = vmatpush.bf16.msra.mxu0 %v7218_v1  ;;  %v11311_v1 = vld [vmem:[#allocation5 + $0x1a64] sm:$0xf0]  ;;  %v10170_v16 = vor.u32 %v11257_v50, %v10169_v5  ;;  %v11032_v5 = vld [vmem:[#allocation5 + $0x11b4] sm:$0xf]  ;;  %v9307_v50 = vld [vmem:[#allocation5 + $0x11f8] sm:$0xf0] }
 0x349   : > { %6736 = vmatpush.bf16.msra.mxu1 %v7794_v56  ;;  %v7507_v56 = vld [vmem:[#allocation5 + $0x3e8] sm:$0xf0]  ;;  %v6494_v55 = vadd.f32 %v11996_v62, %v1106_v54  ;;  %v6442_v62 = vadd.f32 %v11984_v4, %v6429_v0 }
 0x34a   : > { %6749 = vmatpush.bf16.msra.mxu2 %v8370_v29  ;;  %v10726_v29 = vld [vmem:[#allocation5 + $0x824] sm:$0xf]  ;;  %v7510_v59 = vor.u32 %v10582_v25, %v7507_v56  ;;  %v7939_v4 = vld [vmem:[#allocation5 + $0x748] sm:$0xf0]  ;;  %v11095_v25 = vld [vmem:[#allocation5 + $0x13a4] sm:$0xf0] }
 0x34b   : > { %6762 = vmatpush.bf16.msra.mxu3 %v8946_v52  ;;  %v10386_v52 = vor.u32 %v11311_v1, %v10385_v28  ;;  %v8086_v40 = vor.u32 %v10726_v29, %v8083_v46  ;;  %v6455_v8 = vadd.f32 %v11986_v26, %v6442_v62  ;;  %v7942_v11 = vor.u32 %v10690_v45, %v7939_v4  ;;  %v7867_v26 = vld [vmem:[#allocation5 + $0x6b8] sm:$0xf0]  ;;  %v9521_v1 = vld [vmem:[#allocation5 + $0x1360] sm:$0xf]  ;;  %v11203_v4 = vld [vmem:[#allocation5 + $0x1704] sm:$0xf0] }
 0x34c   : > { %6724 = vmatpush.bf16.msra.mxu0 %v7146_v43  ;;  %v10564_v43 = vld [vmem:[#allocation5 + $0x314] sm:$0xf]  ;;  %v10097_v56 = vld [vmem:[#allocation5 + $0x17e0] sm:$0xf]  ;;  %v9522_v31 = vor.u32 %v11095_v25, %v9521_v1  ;;  %v10870_v1 = vld [vmem:[#allocation5 + $0xca4] sm:$0xf] }
 0x34d   : > { %6737 = vmatpush.bf16.msra.mxu1 %v7722_v51  ;;  %v9738_v51 = vor.u32 %v11149_v34, %v9737_v6  ;;  %v7438_v10 = vor.u32 %v10564_v43, %v7435_v44  ;;  %v7795_v6 = vld [vmem:[#allocation5 + $0x628] sm:$0xf0]  ;;  %v9449_v44 = vld [vmem:[#allocation5 + $0x12d0] sm:$0xf]  ;;  %v9953_v45 = vld [vmem:[#allocation5 + $0x16c0] sm:$0xf] }
 0x34e   : > { %6750 = vmatpush.bf16.msra.mxu2 %v8298_v49  ;;  %v6507_v49 = vadd.f32 %v11998_v63, %v6494_v55  ;;  %v10242_v63 = vor.u32 %v11275_v53, %v10241_v3  ;;  %v10510_v55 = vld [vmem:[#allocation5 + $0x164] sm:$0xf]  ;;  %v9450_v3 = vor.u32 %v11077_v15, %v9449_v44  ;;  %v11059_v53 = vld [vmem:[#allocation5 + $0x1284] sm:$0xf0]  ;;  %v8659_v25 = vld [vmem:[#allocation5 + $0xce8] sm:$0xf0] }
 0x34f   : > { %6763 = vmatpush.bf16.msra.mxu3 %v8874_v36  ;;  %v11131_v36 = vld [vmem:[#allocation5 + $0x14c4] sm:$0xf0]  ;;  %v11140_v44 = vld [vmem:[#allocation5 + $0x1514] sm:$0xf]  ;;  %v9739_v15 = vld [vmem:[#allocation5 + $0x1558] sm:$0xf0] }
 0x350   : > { %6725 = vmatpush.bf16.msra.mxu0 %v7074_v12  ;;  %v9666_v32 = vor.u32 %v11131_v36, %v9665_v2  ;;  %v6519_v12 = vpop.f32.mrf.mxu0  ;;  %v7147_v2 = vld [vmem:[#allocation5 + $0x118] sm:$0xf0] }
 0x351   : > { %6738 = vmatpush.bf16.msra.mxu1 %v7650_v47  ;;  %v6520_v9 = vadd.f32 %v6519_v12, %v6507_v49  ;;  %v6532_v13 = vpop.f32.mrf.mxu1  ;;  %v9593_v47 = vld [vmem:[#allocation5 + $0x13f0] sm:$0xf]  ;;  %v7723_v36 = vld [vmem:[#allocation5 + $0x598] sm:$0xf0] }
 0x352   : > { %6751 = vmatpush.bf16.msra.mxu2 %v8226_v48  ;;  %v11113_v48 = vld [vmem:[#allocation5 + $0x1434] sm:$0xf0] }
 0x353   : > { %6764 = vmatpush.bf16.msra.mxu3 %v8802_v57  ;;  %6726 = vmatmul.bf16.vlgmr.msra.gmra.mxu0 %v11702_v18  ;;  %v10528_v57 = vld [vmem:[#allocation5 + $0x1f4] sm:$0xf]  ;;  %v6533_v54 = vadd.f32 %v6532_v13, %v6520_v9  ;;  %v9594_v61 = vor.u32 %v11113_v48, %v9593_v47  ;;  %v7651_v9 = vld [vmem:[#allocation5 + $0x508] sm:$0xf0]  ;;  %v8731_v48 = vld [vmem:[#allocation5 + $0xd78] sm:$0xf0] }
 0x354   : > { %6770 = vmatpush.bf16.msrb.mxu0 %v9882_v58  ;;  %6739 = vmatmul.bf16.vlgmr.msra.gmra.mxu1 %v11708_v22  ;;  %v7291_v58 = vld [vmem:[#allocation5 + $0x238] sm:$0xf0]  ;;  %v10888_v47 = vld [vmem:[#allocation5 + $0xd34] sm:$0xf] }
 0x355   : > { %6783 = vmatpush.bf16.msrb.mxu1 %v10458_v23  ;;  %6752 = vmatmul.bf16.vlgmr.msra.gmra.mxu2 %v11704_v19  ;;  %v10672_v23 = vld [vmem:[#allocation5 + $0x674] sm:$0xf]  ;;  %v7294_v28 = vor.u32 %v10528_v57, %v7291_v58  ;;  %v9883_v58 = vld [vmem:[#allocation5 + $0x1678] sm:$0xf0] }
 0x356   : > { %6796 = vmatpush.bf16.msrb.mxu2 %v7582_v60  ;;  %6765 = vmatmul.bf16.vlgmr.msra.gmra.mxu3 %v11706_v20  ;;  %v6468_v60 = vadd.f32 %v11992_v37, %v6455_v8  ;;  %v7870_v29 = vor.u32 %v10672_v23, %v7867_v26  ;;  %v10474_v8 = vld [vmem:[#allocation5 + $0x44] sm:$0xf]  ;;  %v11176_v57 = vld [vmem:[#allocation5 + $0x1634] sm:$0xf] }
 0x357   : > { %6809 = vmatpush.bf16.msrb.mxu3 %v8158_v24  ;;  %v11320_v26 = vld [vmem:[#allocation5 + $0x1ab4] sm:$0xf] }
 0x358   : > { %6771 = vmatpush.bf16.msrb.mxu0 %v9810_v30  ;;  %v6545_v24 = vpop.f32.mrf.mxu2  ;;  %v11239_v30 = vld [vmem:[#allocation5 + $0x1824] sm:$0xf0]  ;;  %v6481_v37 = vadd.f32 %v11994_v42, %v6468_v60  ;;  %v10636_v42 = vld [vmem:[#allocation5 + $0x554] sm:$0xf]  ;;  %v10459_v60 = vld [vmem:[#allocation5 + $0x1af8] sm:$0xf0] }
 0x359   : > { %6784 = vmatpush.bf16.msrb.mxu1 %v10386_v52  ;;  %v6546_v46 = vadd.f32 %v6545_v24, %v6533_v54  ;;  %v6558_v0 = vpop.f32.mrf.mxu3  ;;  %v7219_v52 = vld [vmem:[#allocation5 + $0x1a8] sm:$0xf0]  ;;  %v10098_v21 = vor.u32 %v11239_v30, %v10097_v56  ;;  %v6534_v62 = vpop.f32.mrf.mxu1  ;;  %v7726_v12 = vor.u32 %v10636_v42, %v7723_v36  ;;  %v9954_v54 = vor.u32 %v11203_v4, %v9953_v45  ;;  %v11014_v56 = vld [vmem:[#allocation5 + $0x1124] sm:$0xf] }
 0x35a   : > { %6797 = vmatpush.bf16.msrb.mxu2 %v7510_v59  ;;  %v10654_v59 = vld [vmem:[#allocation5 + $0x5e4] sm:$0xf]  ;;  %v7222_v43 = vor.u32 %v10510_v55, %v7219_v52  ;;  %v9886_v24 = vor.u32 %v11176_v57, %v9883_v58  ;;  %v9811_v30 = vld [vmem:[#allocation5 + $0x15e8] sm:$0xf0]  ;;  %v10315_v62 = vld [vmem:[#allocation5 + $0x19d8] sm:$0xf0] }
 0x35b   : > { %6810 = vmatpush.bf16.msrb.mxu3 %v8086_v40  ;;  %v6559_v34 = vadd.f32 %v6558_v0, %v6546_v46  ;;  %v6521_v40 = vpop.f32.mrf.mxu0  ;;  %v7798_v49 = vor.u32 %v10654_v59, %v7795_v6  ;;  %v9235_v46 = vld [vmem:[#allocation5 + $0x1168] sm:$0xf0]  ;;  %v11158_v0 = vld [vmem:[#allocation5 + $0x15a4] sm:$0xf]  ;;  %v8662_v59 = vor.u32 %v10870_v1, %v8659_v25 }
 0x35c   : > { %6772 = vmatpush.bf16.msrb.mxu0 %v9738_v51  ;;  %v11302_v55 = vld [vmem:[#allocation5 + $0x1a24] sm:$0xf]  ;;  %v10387_v52 = vld [vmem:[#allocation5 + $0x1a68] sm:$0xf0]  ;;  %v9238_v6 = vor.u32 %v11014_v56, %v9235_v46  ;;  %v10996_v40 = vld [vmem:[#allocation5 + $0x1094] sm:$0xf] }
 0x35d   : > { %6785 = vmatpush.bf16.msrb.mxu1 %v10314_v14  ;;  %v6880_v51 = vpack.c.bf16 %v6559_v34, %v6481_v37  ;;  %v11221_v14 = vld [vmem:[#allocation5 + $0x1794] sm:$0xf0]  ;;  %v9814_v37 = vor.u32 %v11158_v0, %v9811_v30  ;;  %v10852_v34 = vld [vmem:[#allocation5 + $0xc14] sm:$0xf]  ;;  %v10978_v42 = vld [vmem:[#allocation5 + $0x1004] sm:$0xf] }
 0x35e   : > { %6798 = vmatpush.bf16.msrb.mxu2 %v7438_v10  ;;  %v10492_v10 = vld [vmem:[#allocation5 + $0xd4] sm:$0xf]  ;;  %v10026_v17 = vor.u32 %v11221_v14, %v10025_v33  ;;  %v9742_v14 = vor.u32 %v11140_v44, %v9739_v15  ;;  %v10798_v58 = vld [vmem:[#allocation5 + $0xa64] sm:$0xf]  ;;  %v10099_v25 = vld [vmem:[#allocation5 + $0x1828] sm:$0xf0] }
 0x35f   : > { %6811 = vmatpush.bf16.msrb.mxu3 %v8014_v39  ;;  %6889 = vst [vmem:[%s11774_s8 + $0x30] sm:$0xff] %v6880_v51  ;;  %v9377_v39 = vld [vmem:[#allocation5 + $0x1240] sm:$0xf]  ;;  %v7150_v7 = vor.u32 %v10492_v10, %v7147_v2  ;;  %v11284_v33 = vld [vmem:[#allocation5 + $0x1994] sm:$0xf] }
 0x360   : > { %6773 = vmatpush.bf16.msrb.mxu0 %v9666_v32  ;;  %v6547_v32 = vpop.f32.mrf.mxu2  ;;  %v10834_v10 = vld [vmem:[#allocation5 + $0xb84] sm:$0xf]  ;;  %v8515_v2 = vld [vmem:[#allocation5 + $0xbc8] sm:$0xf0]  ;;  %v10318_v36 = vor.u32 %v11284_v33, %v10315_v62  ;;  %v10780_v30 = vld [vmem:[#allocation5 + $0x9d4] sm:$0xf] }
 0x361   : > { %6786 = vmatpush.bf16.msrb.mxu1 %v10242_v63  ;;  %v7075_v63 = vld [vmem:[#allocation5 + $0x88] sm:$0xf0]  ;;  %v6560_v13 = vpop.f32.mrf.mxu3  ;;  %v8443_v32 = vld [vmem:[#allocation5 + $0xb38] sm:$0xf0]  ;;  %v11230_v1 = vld [vmem:[#allocation5 + $0x17e4] sm:$0xf] }
 0x362   : > { %6799 = vmatpush.bf16.msrb.mxu2 %v7366_v27  ;;  %v10618_v27 = vld [vmem:[#allocation5 + $0x4c4] sm:$0xf]  ;;  %v7078_v23 = vor.u32 %v10474_v8, %v7075_v63  ;;  %v10816_v8 = vld [vmem:[#allocation5 + $0xaf4] sm:$0xf]  ;;  %v8227_v62 = vld [vmem:[#allocation5 + $0x988] sm:$0xf0] }
 0x363   : > { %6812 = vmatpush.bf16.msrb.mxu3 %v7942_v11  ;;  %v9378_v11 = vor.u32 %v11059_v53, %v9377_v39  ;;  %v11122_v39 = vld [vmem:[#allocation5 + $0x1484] sm:$0xf]  ;;  %v11104_v13 = vld [vmem:[#allocation5 + $0x13f4] sm:$0xf] }
 0x364   : > { %6774 = vmatpush.bf16.msrb.mxu0 %v9594_v61  ;;  %v7654_v61 = vor.u32 %v10618_v27, %v7651_v9  ;;  %v11266_v53 = vld [vmem:[#allocation5 + $0x1904] sm:$0xf]  ;;  %v9019_v9 = vld [vmem:[#allocation5 + $0xfb8] sm:$0xf0] }
 0x365   : > { %6787 = vmatpush.bf16.msrb.mxu1 %v10170_v16  ;;  %v8734_v16 = vor.u32 %v10888_v47, %v8731_v48  ;;  %v9595_v47 = vld [vmem:[#allocation5 + $0x1438] sm:$0xf0]  ;;  %v11248_v48 = vld [vmem:[#allocation5 + $0x1874] sm:$0xf]  ;;  %v10762_v33 = vld [vmem:[#allocation5 + $0x944] sm:$0xf] }
 0x366   : > { %6800 = vmatpush.bf16.msrb.mxu2 %v7294_v28  ;;  %v9310_v28 = vor.u32 %v11032_v5, %v9307_v50  ;;  %v10171_v5 = vld [vmem:[#allocation5 + $0x18b8] sm:$0xf0]  ;;  %v9598_v57 = vor.u32 %v11104_v13, %v9595_v47 }
 0x367   : > { %6813 = vmatpush.bf16.msrb.mxu3 %v7870_v29  ;;  %v10462_v29 = vor.u32 %v11320_v26, %v10459_v60  ;;  %v10174_v26 = vor.u32 %v11248_v48, %v10171_v5  ;;  %v8947_v60 = vld [vmem:[#allocation5 + $0xf28] sm:$0xf0] }
 0x368   : > { %6775 = vmatpush.bf16.msrb.mxu0 %v9522_v31  ;;  %v8587_v31 = vld [vmem:[#allocation5 + $0xc58] sm:$0xf0] }
 0x369   : > { %6788 = vmatpush.bf16.msrb.mxu1 %v10098_v21  ;;  %v10390_v21 = vor.u32 %v11302_v55, %v10387_v52  ;;  %v8590_v51 = vor.u32 %v10852_v34, %v8587_v31  ;;  %v8299_v55 = vld [vmem:[#allocation5 + $0xa18] sm:$0xf0]  ;;  %v10924_v52 = vld [vmem:[#allocation5 + $0xe54] sm:$0xf] }
 0x36a   : > { %6801 = vmatpush.bf16.msrb.mxu2 %v7222_v43  ;;  %v9163_v43 = vld [vmem:[#allocation5 + $0x10d8] sm:$0xf0]  ;;  %v11068_v34 = vld [vmem:[#allocation5 + $0x12d4] sm:$0xf] }
 0x36b   : > { %6814 = vmatpush.bf16.msrb.mxu3 %v7798_v49  ;;  %v9166_v49 = vor.u32 %v10996_v40, %v9163_v43  ;;  %v9451_v31 = vld [vmem:[#allocation5 + $0x1318] sm:$0xf0]  ;;  %v11212_v40 = vld [vmem:[#allocation5 + $0x1754] sm:$0xf]  ;;  %v8302_v43 = vor.u32 %v10780_v30, %v8299_v55 }
 0x36c   : > { %6776 = vmatpush.bf16.msrb.mxu0 %v9450_v3  ;;  %v9091_v3 = vld [vmem:[#allocation5 + $0x1048] sm:$0xf0]  ;;  %v9454_v15 = vor.u32 %v11068_v34, %v9451_v31 }
 0x36d   : > { %6789 = vmatpush.bf16.msrb.mxu1 %v10026_v17  ;;  %v9094_v45 = vor.u32 %v10978_v42, %v9091_v3  ;;  %v11194_v3 = vld [vmem:[#allocation5 + $0x16c4] sm:$0xf] }
 0x36e   : > { %6802 = vmatpush.bf16.msrb.mxu2 %v7150_v7  ;;  %v8518_v7 = vor.u32 %v10834_v10, %v8515_v2  ;;  %v11050_v10 = vld [vmem:[#allocation5 + $0x1244] sm:$0xf]  ;;  %v9379_v2 = vld [vmem:[#allocation5 + $0x1288] sm:$0xf0] }
 0x36f   : > { %6815 = vmatpush.bf16.msrb.mxu3 %v7726_v12  ;;  %v10960_v12 = vld [vmem:[#allocation5 + $0xf74] sm:$0xf] }
 0x370   : > { %6777 = vmatpush.bf16.msrb.mxu0 %v9378_v11  ;;  %v12021_v17 = vpop.f32.mrf.mxu0  ;;  %v8446_v11 = vor.u32 %v10816_v8, %v8443_v32  ;;  %v9022_v50 = vor.u32 %v10960_v12, %v9019_v9  ;;  %v1107_v9 = vperm.slane %v12000_v41, 6 }
 0x371   : > { %6790 = vmatpush.bf16.msrb.mxu1 %v9954_v54  ;;  %v12023_v63 = vpop.f32.mrf.mxu1  ;;  %v8371_v54 = vld [vmem:[#allocation5 + $0xaa8] sm:$0xf0] }
 0x372   : > { %6803 = vmatpush.bf16.msrb.mxu2 %v7078_v23  ;;  %v10942_v23 = vld [vmem:[#allocation5 + $0xee4] sm:$0xf]  ;;  %v6572_v48 = vadd.f32 %v12021_v17, %v1107_v9 }
 0x373   : > { %6816 = vmatpush.bf16.msrb.mxu3 %v7654_v61  ;;  %6778 = vmatmul.bf16.vlgmr.msrb.gmra.mxu0 %v11715_v35  ;;  %v11086_v61 = vld [vmem:[#allocation5 + $0x1364] sm:$0xf]  ;;  %v8950_v46 = vor.u32 %v10942_v23, %v8947_v60 }
 0x374   : > { %6822 = vmatpush.bf16.msra.mxu0 %v8734_v16  ;;  %6791 = vmatmul.bf16.vlgmr.msrb.gmra.mxu1 %v11717_v38  ;;  %v9523_v16 = vld [vmem:[#allocation5 + $0x13a8] sm:$0xf0] }
 0x375   : > { %6835 = vmatpush.bf16.msra.mxu1 %v9310_v28  ;;  %6804 = vmatmul.bf16.vlgmr.msrb.gmra.mxu2 %v11702_v18  ;;  %v9667_v18 = vld [vmem:[#allocation5 + $0x14c8] sm:$0xf0]  ;;  %v9526_v0 = vor.u32 %v11086_v61, %v9523_v16 }
 0x376   : > { %6848 = vmatpush.bf16.msra.mxu2 %v9886_v24  ;;  %6817 = vmatmul.bf16.vlgmr.msrb.gmra.mxu3 %v11708_v22  ;;  %v10243_v22 = vld [vmem:[#allocation5 + $0x1948] sm:$0xf0]  ;;  %v9670_v4 = vor.u32 %v11122_v39, %v9667_v18  ;;  %v8230_v18 = vor.u32 %v10762_v33, %v8227_v62 }
 0x377   : > { %6861 = vmatpush.bf16.msra.mxu3 %v10462_v29  ;;  %v10246_v27 = vor.u32 %v11266_v53, %v10243_v22  ;;  %v8374_v29 = vor.u32 %v10798_v58, %v8371_v54  ;;  %v9955_v39 = vld [vmem:[#allocation5 + $0x1708] sm:$0xf0]  ;;  %v9382_v22 = vor.u32 %v11050_v10, %v9379_v2 }
 0x378   : > { %6823 = vmatpush.bf16.msra.mxu0 %v8662_v59  ;;  %v12025_v28 = vpop.f32.mrf.mxu2  ;;  %v6573_v56 = vpop.f32.mrf.mxu0 }
 0x379   : > { %6836 = vmatpush.bf16.msra.mxu1 %v9238_v6  ;;  %v12027_v24 = vpop.f32.mrf.mxu3  ;;  %v6586_v59 = vpop.f32.mrf.mxu1  ;;  %v10102_v6 = vor.u32 %v11230_v1, %v10099_v25 }
 0x37a   : > { %6849 = vmatpush.bf16.msra.mxu2 %v9814_v37  ;;  %v8875_v37 = vld [vmem:[#allocation5 + $0xe98] sm:$0xf0] }
 0x37b   : > { %6862 = vmatpush.bf16.msra.mxu3 %v10390_v21  ;;  %v10027_v21 = vld [vmem:[#allocation5 + $0x1798] sm:$0xf0]  ;;  %v8878_v44 = vor.u32 %v10924_v52, %v8875_v37 }
 0x37c   : > { %6824 = vmatpush.bf16.msra.mxu0 %v8590_v51  ;;  %v10906_v51 = vld [vmem:[#allocation5 + $0xdc4] sm:$0xf] }
 0x37d   : > { %6837 = vmatpush.bf16.msra.mxu1 %v9166_v49  ;;  %v10030_v49 = vor.u32 %v11212_v40, %v10027_v21  ;;  %v1089_v21 = vld [vmem:[#allocation7 + $0x10] sm:$0x3] }
 0x37e   : > { %6850 = vmatpush.bf16.msra.mxu2 %v9742_v14  ;;  %v8803_v14 = vld [vmem:[#allocation5 + $0xe08] sm:$0xf0]  ;;  %v1110_v62 = vperm.slane %v1089_v21, 1 }
 0x37f   : > { %6863 = vmatpush.bf16.msra.mxu3 %v10318_v36  ;;  %v8806_v53 = vor.u32 %v10906_v51, %v8803_v14 }
 0x380   : > { %6825 = vmatpush.bf16.msra.mxu0 %v8518_v7  ;;  %v6599_v42 = vpop.f32.mrf.mxu2  ;;  %v9958_v7 = vor.u32 %v11194_v3, %v9955_v39 }
 0x381   : > { %6838 = vmatpush.bf16.msra.mxu1 %v9094_v45  ;;  %v6612_v36 = vpop.f32.mrf.mxu3 }
 0x382   : > { %6851 = vmatpush.bf16.msra.mxu2 %v9670_v4 }
 0x383   : > { %6864 = vmatpush.bf16.msra.mxu3 %v10246_v27 }
 0x384   : > { %6826 = vmatpush.bf16.msra.mxu0 %v8446_v11 }
 0x385   : > { %6839 = vmatpush.bf16.msra.mxu1 %v9022_v50 }
 0x386   : > { %6852 = vmatpush.bf16.msra.mxu2 %v9598_v57 }
 0x387   : > { %6865 = vmatpush.bf16.msra.mxu3 %v10174_v26 }
 0x388   : > { %6827 = vmatpush.bf16.msra.mxu0 %v8374_v29 }
 0x389   : > { %6840 = vmatpush.bf16.msra.mxu1 %v8950_v46 }
 0x38a   : > { %6853 = vmatpush.bf16.msra.mxu2 %v9526_v0 }
 0x38b   : > { %6866 = vmatpush.bf16.msra.mxu3 %v10102_v6 }
 0x38c   : > { %6828 = vmatpush.bf16.msra.mxu0 %v8302_v43  ;;  %v1109_v43 = vperm.slane %v1089_v21, 0 }
 0x38d   : > { %6841 = vmatpush.bf16.msra.mxu1 %v8878_v44 }
 0x38e   : > { %6854 = vmatpush.bf16.msra.mxu2 %v9454_v15 }
 0x38f   : > { %6867 = vmatpush.bf16.msra.mxu3 %v10030_v49 }
 0x390   : > { %6829 = vmatpush.bf16.msra.mxu0 %v8230_v18  ;;  %v6623_v45 = vpop.f32.mrf.mxu0 }
 0x391   : > { %6842 = vmatpush.bf16.msra.mxu1 %v8806_v53  ;;  %v6636_v4 = vpop.f32.mrf.mxu1 }
 0x392   : > { %6855 = vmatpush.bf16.msra.mxu2 %v9382_v22 }
 0x393   : > { %6868 = vmatpush.bf16.msra.mxu3 %v9958_v7  ;;  %6830 = vmatmul.bf16.vlgmr.msra.gmra.mxu0 %v11704_v19  ;;  %v1108_v19 = vperm.slane %v12000_v41, 7 }
 0x394   : > { %6843 = vmatmul.bf16.vlgmr.msra.gmra.mxu1 %v11706_v20  ;;  %v6585_v20 = vadd.f32 %v12023_v63, %v6572_v48 }
 0x395   : > { %6856 = vmatmul.bf16.vlgmr.msra.gmra.mxu2 %v11715_v35 }
 0x396   : > { %6869 = vmatmul.bf16.vlgmr.msra.gmra.mxu3 %v11717_v38  ;;  %v6598_v35 = vadd.f32 %v12025_v28, %v6585_v20 }
 0x398   : > { %v6649_v8 = vpop.f32.mrf.mxu2  ;;  %v6625_v12 = vpop.f32.mrf.mxu0  ;;  %v6611_v11 = vadd.f32 %v12027_v24, %v6598_v35 }
 0x399   : > { %v6662_v32 = vpop.f32.mrf.mxu3  ;;  %v6638_v27 = vpop.f32.mrf.mxu1  ;;  %v6650_v5 = vadd.f32 %v6649_v8, %v1108_v19 }
 0x39a   : > { %v6624_v23 = vadd.f32 %v6623_v45, %v6611_v11 }
 0x39b   : > { %v6663_v38 = vadd.f32 %v6662_v32, %v6650_v5 }
 0x39c   : > { %v6637_v17 = vadd.f32 %v6636_v4, %v6624_v23 }
 0x3a0   : > { %v6651_v13 = vpop.f32.mrf.mxu2 }
 0x3a1   : > { %v6664_v47 = vpop.f32.mrf.mxu3 }
 0x3b0   : > { %v6675_v50 = vpop.f32.mrf.mxu0 }
 0x3b1   : > { %v6676_v57 = vadd.f32 %v6675_v50, %v6663_v38  ;;  %v6688_v58 = vpop.f32.mrf.mxu1 }
 0x3b3   : > { %v6689_v54 = vadd.f32 %v6688_v58, %v6676_v57 }
 0x3b8   : > { %v6701_v26 = vpop.f32.mrf.mxu2  ;;  %v6677_v41 = vpop.f32.mrf.mxu0 }
 0x3b9   : > { %v6702_v60 = vadd.f32 %v6701_v26, %v6689_v54  ;;  %v6714_v61 = vpop.f32.mrf.mxu3  ;;  %v6690_v1 = vpop.f32.mrf.mxu1 }
 0x3bb   : > { %v6715_v16 = vadd.f32 %v6714_v61, %v6702_v60 }
 0x3bd   : > { %v6881_v63 = vpack.c.bf16 %v6715_v16, %v6637_v17 }
 0x3bf   : > { %6890 = vst [vmem:[%s11774_s8 + $0x38] sm:$0xff] %v6881_v63 }
 0x3c0   : > { %v6703_v25 = vpop.f32.mrf.mxu2 }
 0x3c1   : > { %v6716_v28 = vpop.f32.mrf.mxu3 }
 0x3d0   : > { %v6727_v56 = vpop.f32.mrf.mxu0 }
 0x3d1   : > { %v6740_v29 = vpop.f32.mrf.mxu1  ;;  %v6728_v33 = vadd.f32 %v6727_v56, %v1109_v43 }
 0x3d3   : > { %v6741_v51 = vadd.f32 %v6740_v29, %v6728_v33 }
 0x3d8   : > { %v6753_v46 = vpop.f32.mrf.mxu2  ;;  %v6729_v0 = vpop.f32.mrf.mxu0 }
 0x3d9   : > { %v6766_v24 = vpop.f32.mrf.mxu3  ;;  %v6742_v30 = vpop.f32.mrf.mxu1  ;;  %v6754_v14 = vadd.f32 %v6753_v46, %v6741_v51 }
 0x3db   : > { %v6767_v36 = vadd.f32 %v6766_v24, %v6754_v14 }
 0x3e0   : > { %v6755_v55 = vpop.f32.mrf.mxu2 }
 0x3e1   : > { %v6768_v52 = vpop.f32.mrf.mxu3 }
 0x3f0   : > { %v6779_v59 = vpop.f32.mrf.mxu0 }
 0x3f1   : > { %v6792_v6 = vpop.f32.mrf.mxu1  ;;  %v6780_v39 = vadd.f32 %v6779_v59, %v6767_v36 }
 0x3f3   : > { %v6793_v8 = vadd.f32 %v6792_v6, %v6780_v39 }
 0x3f8   : > { %v6805_v37 = vpop.f32.mrf.mxu2  ;;  %v6781_v31 = vpop.f32.mrf.mxu0 }
 0x3f9   : > { %v6818_v34 = vpop.f32.mrf.mxu3  ;;  %v6794_v40 = vpop.f32.mrf.mxu1  ;;  %v6806_v49 = vadd.f32 %v6805_v37, %v1110_v62 }
 0x3fb   : > { %v6819_v10 = vadd.f32 %v6818_v34, %v6806_v49 }
 0x400   : > { %v6807_v44 = vpop.f32.mrf.mxu2 }
 0x401   : > { %v6820_v15 = vpop.f32.mrf.mxu3 }
 0x410   : > { %v6831_v2 = vpop.f32.mrf.mxu0 }
 0x411   : > { %v6844_v42 = vpop.f32.mrf.mxu1  ;;  %v6832_v3 = vadd.f32 %v6831_v2, %v6819_v10 }
 0x413   : > { %v6845_v18 = vadd.f32 %v6844_v42, %v6832_v3 }
 0x418   : > { %v6857_v53 = vpop.f32.mrf.mxu2  ;;  %v6833_v45 = vpop.f32.mrf.mxu0 }
 0x419   : > { %v6858_v22 = vadd.f32 %v6857_v53, %v6845_v18  ;;  %v6870_v7 = vpop.f32.mrf.mxu3  ;;  %v6846_v4 = vpop.f32.mrf.mxu1 }
 0x41b   : > { %v6871_v32 = vadd.f32 %v6870_v7, %v6858_v22 }
 0x41d   : > { %v6882_v12 = vpack.c.bf16 %v6871_v32, %v6793_v8 }
 0x41f   : > { %6891 = vst [vmem:[%s11774_s8 + $0x40] sm:$0xff] %v6882_v12 }
 0x420   : > { %v6859_v27 = vpop.f32.mrf.mxu2 }
 0x421   : > { %11523 = shalt.err (!%p11520_p9)
}
 0x422   : > { %11345 = dma.vmem_to_hbm [thread:$0]  (%p11657_p4), %s6907_s27, 1152, %s6909_s28, %s6893_s19   ;;  %v6872_v9 = vpop.f32.mrf.mxu3 }
 0x423 PF: > { %s6920_s9 = sand.u32 1, %s11554_s12   ;;  %p12084_p10 = scmp.ge.s32.totalorder %s11566_s15, 2 }
 0x424   : > { %s6921_s22 = scalar_lea.sflag [#allocation4], %s6920_s9 }
 0x425   : > { %p11359_p11 = pnand %p12084_p10, %p11661_p6 }
 0x427   : > { %p11360_p13 = pneg %p11359_p11 }
 0x429   : > { %11549 = dma.done.wait (%p11360_p13), %s6921_s22, 1152  }
 0x42a   : > { %11551 = vsyncadd (%p11360_p13), %s6921_s22, 4294966144  ;;  %p17_p0 = scmp.ge.s32.totalorder %s11635_s4, 4   ;;  %s12085_s12 = smov %s11558_s13 }
 0x42b   : > { %s12086_s13 = smov %s11562_s14  ;;  %s12087_s14 = smov %s11646_s7 }
 0x42c   : > { %s12088_s15 = smov %s11635_s4  ;;  %19 = sbr.rel (!%p17_p0) target bundleno = 6 (0x6), region = 85 }
 0x431   :  { %6927 = vsyncpa [#allocation3], 1 }
 0x432   :  { %6929 = vsyncpa [#allocation3 + $0x1], 1 }
 0x433   :  { %6930 = vsyncpa [#allocation6], 1 }
 0x434   :  { %6931 = vsyncpa [#allocation4], 1 }
 0x435   :  { %6933 = vsyncpa [#allocation4 + $0x1], 1 }

</bundles_post_ra>
